<compile_context>
chip_gen: v5e
topology: v5e:2x2
jax: 0.10.0
libtpu: 0.0.40
codegen_flags: <defaults>
</compile_context>

<pallas_src>
import jax
import jax.numpy as jnp
import numpy as np
from jax.experimental import pallas as pl
from jax.experimental.pallas import tpu as pltpu

EPS = 1e-5


def _round_up(a, b):
    return (a + b - 1) // b * b


def _write_reflect_pad1(pad_ref, x, H, W):
    """Write ReflectionPad2d(1)(x) into pad_ref[:, :W+2, :].

    Columns >= W+2 of the scratch are never touched here (they are zeroed once
    at kernel entry and stay zero across both branches).
    """
    pad_ref[1:H + 1, 1:W + 1, :] = x                          # interior
    pad_ref[1:H + 1, 0:1, :] = x[:, 1:2, :]                   # left  col <- col 1
    pad_ref[1:H + 1, W + 1:W + 2, :] = x[:, W - 2:W - 1, :]   # right col <- col W-2
    pad_ref[0:1, :, :] = pad_ref[2:3, :, :]                   # top    row <- orig row 1
    pad_ref[H + 1:H + 2, :, :] = pad_ref[H - 1:H, :, :]       # bottom row <- orig row H-2


def _instance_norm(y, inv_n):
    """Two-pass InstanceNorm2d (affine=False, biased variance, eps=1e-5)."""
    mean = jnp.sum(y, axis=(0, 1), keepdims=True) * inv_n
    d = y - mean
    var = jnp.sum(d * d, axis=(0, 1), keepdims=True) * inv_n
    return d * jax.lax.rsqrt(var + EPS)


def resnet_block_kernel(x_ref, w1_ref, w2_ref, o_ref, pad_ref, flat_ref, acc_ref):
    _, H, W, C = x_ref.shape
    Hp, Wf, _ = pad_ref.shape            # Wf = round_up(W + 2, 8)
    n_pad = Hp * Wf
    n_out = acc_ref.shape[0]             # H * Wf (junk cols j >= W dropped later)
    inv_n = 1.0 / float(H * W)

    # One-time zeroing: extra padded columns and the flat-scratch tail rows.
    # They are never overwritten, so no garbage/NaN can reach the MXU LHS.
    if Wf > W + 2:
        pad_ref[:, W + 2:Wf, :] = jnp.zeros((Hp, Wf - (W + 2), C), jnp.float32)
    tail = flat_ref.shape[0] - n_pad
    flat_ref[n_pad:n_pad + tail, :] = jnp.zeros((tail, C), jnp.bfloat16)

    def conv3x3(w_ref):
        # Padded image -> flat bf16 scratch: single cast, free re-tiling
        # (Wf is a multiple of 8, so the reshape is layout-preserving).
        flat_ref[0:n_pad, :] = pad_ref[...].reshape(n_pad, C).astype(jnp.bfloat16)
        for t in range(9):
            dh, dw = divmod(t, 3)
            k = dh * Wf + dw
            # tap rows r = i*Wf + j read flat[r + k]; for valid (i < H, j < W)
            # this stays inside the real padded image (<= Hp*Wf - 1); only
            # dropped rows ever read the zeroed tail.
            contrib = jnp.dot(flat_ref[k:k + n_out, :], w_ref[t],
                              preferred_element_type=jnp.float32)
            if t == 0:
                acc_ref[...] = contrib
            else:
                acc_ref[...] += contrib
        # NOTE: bias intentionally omitted — a per-channel bias immediately
        # before affine-free InstanceNorm cancels exactly.
        return acc_ref[...].reshape(H, Wf, C)[:, :W, :]

    # branch 1: reflect pad -> conv3x3 -> InstanceNorm -> ReLU (fused)
    _write_reflect_pad1(pad_ref, x_ref[0], H, W)
    y = jnp.maximum(_instance_norm(conv3x3(w1_ref), inv_n), 0.0)

    # branch 2: reflect pad -> conv3x3 -> InstanceNorm, residual add fused
    _write_reflect_pad1(pad_ref, y, H, W)
    z = _instance_norm(conv3x3(w2_ref), inv_n)
    o_ref[0] = (x_ref[0] + z).astype(o_ref.dtype)


def resnet_block(x_nchw, w1_oihw, b1, w2_oihw, b2):
    """ResnetBlock forward.

    x_nchw:  (N, C, H, W) float32
    weights: PyTorch Conv2d layout (Cout, Cin, 3, 3); biases: (Cout,)
             (biases are accepted for API parity but are a mathematical no-op
              before the affine-free InstanceNorm, so they are not used)
    """
    N, C, H, W = x_nchw.shape
    assert H >= 2 and W >= 2, "reflection padding of 1 needs H, W >= 2"
    del b1, b2  # IN(conv(x) + b) == IN(conv(x)) for affine-free InstanceNorm

    x_nhwc = jnp.transpose(x_nchw, (0, 2, 3, 1))            # -> NHWC

    def prep_w(w_oihw):
        # OIHW -> HWIO -> (9, Cin, Cout), bf16 MXU operands (f32 accumulation).
        return (jnp.transpose(w_oihw, (2, 3, 1, 0))
                .reshape(9, C, C)
                .astype(jnp.bfloat16))

    w1 = prep_w(w1_oihw)
    w2 = prep_w(w2_oihw)

    Hp = H + 2
    Wf = _round_up(W + 2, 8)             # 8-aligned padded width
    n_pad = Hp * Wf
    n_out = H * Wf
    flat_rows = n_pad + 16               # slack rows so every tap slice is in-bounds

    # Scoped-VMEM budget: scratches + double-buffered in/out/weight blocks.
    scratch_bytes = Hp * Wf * C * 4 + flat_rows * C * 2 + n_out * C * 4
    io_bytes = 2 * 2 * (H * W * C * 4)
    w_bytes = 2 * 2 * (9 * C * C * 2)
    vmem_limit = int(min(max(scratch_bytes + io_bytes + w_bytes + (8 << 20),
                             32 << 20), 64 << 20))

    cost = pl.CostEstimate(
        flops=2 * N * (2 * H * W * 9 * C * C),
        transcendentals=0,
        bytes_accessed=2 * N * H * W * C * 4 + 2 * 9 * C * C * 2)

    full = lambda shape: pl.BlockSpec(shape, lambda n: (0,) * len(shape))

    out_nhwc = pl.pallas_call(
        resnet_block_kernel,
        out_shape=jax.ShapeDtypeStruct((N, H, W, C), x_nhwc.dtype),
        grid_spec=pltpu.PrefetchScalarGridSpec(
            num_scalar_prefetch=0,
            grid=(N,),
            in_specs=[
                pl.BlockSpec((1, H, W, C), lambda n: (n, 0, 0, 0)),
                full((9, C, C)),
                full((9, C, C)),
            ],
            out_specs=pl.BlockSpec((1, H, W, C), lambda n: (n, 0, 0, 0)),
            scratch_shapes=[
                pltpu.VMEM((Hp, Wf, C), jnp.float32),        # padded image
                pltpu.VMEM((flat_rows, C), jnp.bfloat16),    # flat bf16 taps source
                pltpu.VMEM((n_out, C), jnp.float32),         # conv accumulator
            ],
        ),
        compiler_params=pltpu.CompilerParams(
            dimension_semantics=("parallel",),
            vmem_limit_bytes=vmem_limit),
        cost_estimate=cost,
    )(x_nhwc, w1, w2)

    return jnp.transpose(out_nhwc, (0, 3, 1, 2))             # -> NCHW


def _reference(x_nchw, w1_oihw, b1, w2_oihw, b2):
    """Pure-JAX f32 reference matching the PyTorch module (biases included)."""
    x = jnp.transpose(x_nchw, (0, 2, 3, 1)).astype(jnp.float32)

    def conv(inp, w_oihw, b):
        w = jnp.transpose(w_oihw, (2, 3, 1, 0)).astype(jnp.float32)
        p = jnp.pad(inp, ((0, 0), (1, 1), (1, 1), (0, 0)), mode="reflect")
        out = jax.lax.conv_general_dilated(
            p, w, window_strides=(1, 1), padding="VALID",
            dimension_numbers=("NHWC", "HWIO", "NHWC"),
            precision=jax.lax.Precision.HIGHEST)
        return out + b.reshape(1, 1, 1, -1)

    def inorm(y):
        m = jnp.mean(y, axis=(1, 2), keepdims=True)
        v = jnp.mean((y - m) ** 2, axis=(1, 2), keepdims=True)
        return (y - m) * jax.lax.rsqrt(v + EPS)

    y = jax.nn.relu(inorm(conv(x, w1_oihw, b1)))
    z = inorm(conv(y, w2_oihw, b2))
    return jnp.transpose(x + z, (0, 3, 1, 2))


if __name__ == "__main__":
    key = jax.random.PRNGKey(0)
    k_x, k_w1, k_b1, k_w2, k_b2 = jax.random.split(key, 5)

    N, C, H, W = 2, 4, 16, 16
    x = jax.random.normal(k_x, (N, C, H, W), dtype=jnp.float32)

    # PyTorch Conv2d(dim, dim, 3) parameter layouts: weight (Cout, Cin, 3, 3), bias (Cout,)
    w1 = 0.1 * jax.random.normal(k_w1, (C, C, 3, 3), dtype=jnp.float32)
    b1 = 0.1 * jax.random.normal(k_b1, (C,), dtype=jnp.float32)
    w2 = 0.1 * jax.random.normal(k_w2, (C, C, 3, 3), dtype=jnp.float32)
    b2 = 0.1 * jax.random.normal(k_b2, (C,), dtype=jnp.float32)

    out = jax.jit(resnet_block)(x, w1, b1, w2, b2)
    jax.block_until_ready(out)
    assert out.shape == (N, C, H, W)

    ref = _reference(x, w1, b1, w2, b2)
    np.testing.assert_allclose(np.asarray(out), np.asarray(ref),
                               atol=5e-2, rtol=5e-2)

    print("KERNEL_OK")
</pallas_src>

<mosaic_0001>
module attributes {stable_mosaic.version = 11 : i64} {
  func.func @resnet_block_kernel(%arg0: i32, %arg1: memref<1x16x16x4xf32, #tpu.memory_space<vmem>>, %arg2: memref<9x4x4xbf16, #tpu.memory_space<vmem>>, %arg3: memref<9x4x4xbf16, #tpu.memory_space<vmem>>, %arg4: memref<1x16x16x4xf32, #tpu.memory_space<vmem>>, %arg5: memref<18x24x4xf32, #tpu.memory_space<vmem>>, %arg6: memref<448x4xbf16, #tpu.memory_space<vmem>>, %arg7: memref<384x4xf32, #tpu.memory_space<vmem>>) attributes {dimension_semantics = [#tpu.dimension_semantics<parallel>], iteration_bounds = array<i64: 2>, scalar_prefetch = 0 : i64, scratch_operands = 3 : i64, tpu.core_type = #tpu.core_type<tc>, window_params = [{transform_indices = @transform_0, window_bounds = array<i64: 1, 16, 16, 4>}, {pipeline_mode = #tpu.pipeline_mode<synchronous>, transform_indices = @transform_1, window_bounds = array<i64: 9, 4, 4>}, {pipeline_mode = #tpu.pipeline_mode<synchronous>, transform_indices = @transform_2, window_bounds = array<i64: 9, 4, 4>}, {transform_indices = @transform_3, window_bounds = array<i64: 1, 16, 16, 4>}]} {
    %cst = arith.constant 0.000000e+00 : f32
    %0 = vector.broadcast %cst : f32 to vector<18x6x4xf32>
    %c0 = arith.constant 0 : index
    %c18 = arith.constant 18 : index
    %c0_0 = arith.constant 0 : index
    %1 = vector.load %arg5[%c0, %c18, %c0_0] : memref<18x24x4xf32, #tpu.memory_space<vmem>>, vector<18x6x4xf32>
    tpu.vector_store %arg5[%c0, %c18, %c0_0], %0 {strides = array<i32>} : memref<18x24x4xf32, #tpu.memory_space<vmem>>, vector<18x6x4xf32>,
    %cst_1 = arith.constant 0.000000e+00 : bf16
    %2 = vector.broadcast %cst_1 : bf16 to vector<16x4xbf16>
    %c432 = arith.constant 432 : index
    %c0_2 = arith.constant 0 : index
    %3 = vector.load %arg6[%c432, %c0_2] : memref<448x4xbf16, #tpu.memory_space<vmem>>, vector<16x4xbf16>
    tpu.vector_store %arg6[%c432, %c0_2], %2 {strides = array<i32>} : memref<448x4xbf16, #tpu.memory_space<vmem>>, vector<16x4xbf16>,
    %c0_3 = arith.constant 0 : index
    %c0_4 = arith.constant 0 : index
    %c0_5 = arith.constant 0 : index
    %c0_6 = arith.constant 0 : index
    %4 = vector.load %arg1[%c0_3, %c0_4, %c0_5, %c0_6] : memref<1x16x16x4xf32, #tpu.memory_space<vmem>>, vector<1x16x16x4xf32>
    %5 = vector.shape_cast %4 : vector<1x16x16x4xf32> to vector<16x16x4xf32>
    %c1 = arith.constant 1 : index
    %c1_7 = arith.constant 1 : index
    %c0_8 = arith.constant 0 : index
    %6 = vector.load %arg5[%c1, %c1_7, %c0_8] : memref<18x24x4xf32, #tpu.memory_space<vmem>>, vector<16x16x4xf32>
    tpu.vector_store %arg5[%c1, %c1_7, %c0_8], %5 {strides = array<i32>} : memref<18x24x4xf32, #tpu.memory_space<vmem>>, vector<16x16x4xf32>,
    %7 = vector.extract_strided_slice %5 {offsets = [0, 1, 0], sizes = [16, 1, 4], strides = [1, 1, 1]} : vector<16x16x4xf32> to vector<16x1x4xf32>
    %c1_9 = arith.constant 1 : index
    %c0_10 = arith.constant 0 : index
    %c0_11 = arith.constant 0 : index
    %8 = vector.load %arg5[%c1_9, %c0_10, %c0_11] : memref<18x24x4xf32, #tpu.memory_space<vmem>>, vector<16x1x4xf32>
    tpu.vector_store %arg5[%c1_9, %c0_10, %c0_11], %7 {strides = array<i32>} : memref<18x24x4xf32, #tpu.memory_space<vmem>>, vector<16x1x4xf32>,
    %9 = vector.extract_strided_slice %5 {offsets = [0, 14, 0], sizes = [16, 1, 4], strides = [1, 1, 1]} : vector<16x16x4xf32> to vector<16x1x4xf32>
    %c1_12 = arith.constant 1 : index
    %c17 = arith.constant 17 : index
    %c0_13 = arith.constant 0 : index
    %10 = vector.load %arg5[%c1_12, %c17, %c0_13] : memref<18x24x4xf32, #tpu.memory_space<vmem>>, vector<16x1x4xf32>
    tpu.vector_store %arg5[%c1_12, %c17, %c0_13], %9 {strides = array<i32>} : memref<18x24x4xf32, #tpu.memory_space<vmem>>, vector<16x1x4xf32>,
    %c2 = arith.constant 2 : index
    %c0_14 = arith.constant 0 : index
    %c0_15 = arith.constant 0 : index
    %11 = vector.load %arg5[%c2, %c0_14, %c0_15] : memref<18x24x4xf32, #tpu.memory_space<vmem>>, vector<1x24x4xf32>
    %c0_16 = arith.constant 0 : index
    %c0_17 = arith.constant 0 : index
    %c0_18 = arith.constant 0 : index
    %12 = vector.load %arg5[%c0_16, %c0_17, %c0_18] : memref<18x24x4xf32, #tpu.memory_space<vmem>>, vector<1x24x4xf32>
    tpu.vector_store %arg5[%c0_16, %c0_17, %c0_18], %11 {strides = array<i32>} : memref<18x24x4xf32, #tpu.memory_space<vmem>>, vector<1x24x4xf32>,
    %c15 = arith.constant 15 : index
    %c0_19 = arith.constant 0 : index
    %c0_20 = arith.constant 0 : index
    %13 = vector.load %arg5[%c15, %c0_19, %c0_20] : memref<18x24x4xf32, #tpu.memory_space<vmem>>, vector<1x24x4xf32>
    %c17_21 = arith.constant 17 : index
    %c0_22 = arith.constant 0 : index
    %c0_23 = arith.constant 0 : index
    %14 = vector.load %arg5[%c17_21, %c0_22, %c0_23] : memref<18x24x4xf32, #tpu.memory_space<vmem>>, vector<1x24x4xf32>
    tpu.vector_store %arg5[%c17_21, %c0_22, %c0_23], %13 {strides = array<i32>} : memref<18x24x4xf32, #tpu.memory_space<vmem>>, vector<1x24x4xf32>,
    %c0_24 = arith.constant 0 : index
    %c0_25 = arith.constant 0 : index
    %c0_26 = arith.constant 0 : index
    %15 = vector.load %arg5[%c0_24, %c0_25, %c0_26] : memref<18x24x4xf32, #tpu.memory_space<vmem>>, vector<18x24x4xf32>
    %16 = vector.shape_cast %15 : vector<18x24x4xf32> to vector<432x4xf32>
    %17 = arith.truncf %16 : vector<432x4xf32> to vector<432x4xbf16>
    %c0_27 = arith.constant 0 : index
    %c0_28 = arith.constant 0 : index
    %18 = vector.load %arg6[%c0_27, %c0_28] : memref<448x4xbf16, #tpu.memory_space<vmem>>, vector<432x4xbf16>
    tpu.vector_store %arg6[%c0_27, %c0_28], %17 {strides = array<i32>} : memref<448x4xbf16, #tpu.memory_space<vmem>>, vector<432x4xbf16>,
    %c0_29 = arith.constant 0 : index
    %c0_30 = arith.constant 0 : index
    %19 = vector.load %arg6[%c0_29, %c0_30] : memref<448x4xbf16, #tpu.memory_space<vmem>>, vector<384x4xbf16>
    %c0_31 = arith.constant 0 : index
    %c0_32 = arith.constant 0 : index
    %c0_33 = arith.constant 0 : index
    %20 = vector.load %arg2[%c0_31, %c0_32, %c0_33] : memref<9x4x4xbf16, #tpu.memory_space<vmem>>, vector<1x4x4xbf16>
    %21 = vector.shape_cast %20 : vector<1x4x4xbf16> to vector<4x4xbf16>
    %cst_34 = arith.constant dense<0.000000e+00> : vector<384x4xf32>
    %22 = tpu.matmul %19, %21, %cst_34 {dimension_numbers = #tpu.dot_dimension_numbers<[1], [0], [0], [1], [0, 0, 1, 1], [], []>} : vector<384x4xbf16>, vector<4x4xbf16>, vector<384x4xf32> -> vector<384x4xf32>
    %c0_35 = arith.constant 0 : index
    %c0_36 = arith.constant 0 : index
    %23 = vector.load %arg7[%c0_35, %c0_36] : memref<384x4xf32, #tpu.memory_space<vmem>>, vector<384x4xf32>
    tpu.vector_store %arg7[%c0_35, %c0_36], %22 {strides = array<i32>} : memref<384x4xf32, #tpu.memory_space<vmem>>, vector<384x4xf32>,
    %c1_37 = arith.constant 1 : index
    %c0_38 = arith.constant 0 : index
    %24 = vector.load %arg6[%c1_37, %c0_38] : memref<448x4xbf16, #tpu.memory_space<vmem>>, vector<384x4xbf16>
    %c1_39 = arith.constant 1 : index
    %c0_40 = arith.constant 0 : index
    %c0_41 = arith.constant 0 : index
    %25 = vector.load %arg2[%c1_39, %c0_40, %c0_41] : memref<9x4x4xbf16, #tpu.memory_space<vmem>>, vector<1x4x4xbf16>
    %26 = vector.shape_cast %25 : vector<1x4x4xbf16> to vector<4x4xbf16>
    %cst_42 = arith.constant dense<0.000000e+00> : vector<384x4xf32>
    %27 = tpu.matmul %24, %26, %cst_42 {dimension_numbers = #tpu.dot_dimension_numbers<[1], [0], [0], [1], [0, 0, 1, 1], [], []>} : vector<384x4xbf16>, vector<4x4xbf16>, vector<384x4xf32> -> vector<384x4xf32>
    %c0_43 = arith.constant 0 : index
    %c0_44 = arith.constant 0 : index
    %28 = vector.load %arg7[%c0_43, %c0_44] : memref<384x4xf32, #tpu.memory_space<vmem>>, vector<384x4xf32>
    %29 = arith.addf %28, %27 : vector<384x4xf32>
    %c0_45 = arith.constant 0 : index
    %c0_46 = arith.constant 0 : index
    %30 = vector.load %arg7[%c0_45, %c0_46] : memref<384x4xf32, #tpu.memory_space<vmem>>, vector<384x4xf32>
    tpu.vector_store %arg7[%c0_45, %c0_46], %29 {strides = array<i32>} : memref<384x4xf32, #tpu.memory_space<vmem>>, vector<384x4xf32>,
    %c2_47 = arith.constant 2 : index
    %c0_48 = arith.constant 0 : index
    %31 = vector.load %arg6[%c2_47, %c0_48] : memref<448x4xbf16, #tpu.memory_space<vmem>>, vector<384x4xbf16>
    %c2_49 = arith.constant 2 : index
    %c0_50 = arith.constant 0 : index
    %c0_51 = arith.constant 0 : index
    %32 = vector.load %arg2[%c2_49, %c0_50, %c0_51] : memref<9x4x4xbf16, #tpu.memory_space<vmem>>, vector<1x4x4xbf16>
    %33 = vector.shape_cast %32 : vector<1x4x4xbf16> to vector<4x4xbf16>
    %cst_52 = arith.constant dense<0.000000e+00> : vector<384x4xf32>
    %34 = tpu.matmul %31, %33, %cst_52 {dimension_numbers = #tpu.dot_dimension_numbers<[1], [0], [0], [1], [0, 0, 1, 1], [], []>} : vector<384x4xbf16>, vector<4x4xbf16>, vector<384x4xf32> -> vector<384x4xf32>
    %c0_53 = arith.constant 0 : index
    %c0_54 = arith.constant 0 : index
    %35 = vector.load %arg7[%c0_53, %c0_54] : memref<384x4xf32, #tpu.memory_space<vmem>>, vector<384x4xf32>
    %36 = arith.addf %35, %34 : vector<384x4xf32>
    %c0_55 = arith.constant 0 : index
    %c0_56 = arith.constant 0 : index
    %37 = vector.load %arg7[%c0_55, %c0_56] : memref<384x4xf32, #tpu.memory_space<vmem>>, vector<384x4xf32>
    tpu.vector_store %arg7[%c0_55, %c0_56], %36 {strides = array<i32>} : memref<384x4xf32, #tpu.memory_space<vmem>>, vector<384x4xf32>,
    %c24 = arith.constant 24 : index
    %c0_57 = arith.constant 0 : index
    %38 = vector.load %arg6[%c24, %c0_57] : memref<448x4xbf16, #tpu.memory_space<vmem>>, vector<384x4xbf16>
    %c3 = arith.constant 3 : index
    %c0_58 = arith.constant 0 : index
    %c0_59 = arith.constant 0 : index
    %39 = vector.load %arg2[%c3, %c0_58, %c0_59] : memref<9x4x4xbf16, #tpu.memory_space<vmem>>, vector<1x4x4xbf16>
    %40 = vector.shape_cast %39 : vector<1x4x4xbf16> to vector<4x4xbf16>
    %cst_60 = arith.constant dense<0.000000e+00> : vector<384x4xf32>
    %41 = tpu.matmul %38, %40, %cst_60 {dimension_numbers = #tpu.dot_dimension_numbers<[1], [0], [0], [1], [0, 0, 1, 1], [], []>} : vector<384x4xbf16>, vector<4x4xbf16>, vector<384x4xf32> -> vector<384x4xf32>
    %c0_61 = arith.constant 0 : index
    %c0_62 = arith.constant 0 : index
    %42 = vector.load %arg7[%c0_61, %c0_62] : memref<384x4xf32, #tpu.memory_space<vmem>>, vector<384x4xf32>
    %43 = arith.addf %42, %41 : vector<384x4xf32>
    %c0_63 = arith.constant 0 : index
    %c0_64 = arith.constant 0 : index
    %44 = vector.load %arg7[%c0_63, %c0_64] : memref<384x4xf32, #tpu.memory_space<vmem>>, vector<384x4xf32>
    tpu.vector_store %arg7[%c0_63, %c0_64], %43 {strides = array<i32>} : memref<384x4xf32, #tpu.memory_space<vmem>>, vector<384x4xf32>,
    %c25 = arith.constant 25 : index
    %c0_65 = arith.constant 0 : index
    %45 = vector.load %arg6[%c25, %c0_65] : memref<448x4xbf16, #tpu.memory_space<vmem>>, vector<384x4xbf16>
    %c4 = arith.constant 4 : index
    %c0_66 = arith.constant 0 : index
    %c0_67 = arith.constant 0 : index
    %46 = vector.load %arg2[%c4, %c0_66, %c0_67] : memref<9x4x4xbf16, #tpu.memory_space<vmem>>, vector<1x4x4xbf16>
    %47 = vector.shape_cast %46 : vector<1x4x4xbf16> to vector<4x4xbf16>
    %cst_68 = arith.constant dense<0.000000e+00> : vector<384x4xf32>
    %48 = tpu.matmul %45, %47, %cst_68 {dimension_numbers = #tpu.dot_dimension_numbers<[1], [0], [0], [1], [0, 0, 1, 1], [], []>} : vector<384x4xbf16>, vector<4x4xbf16>, vector<384x4xf32> -> vector<384x4xf32>
    %c0_69 = arith.constant 0 : index
    %c0_70 = arith.constant 0 : index
    %49 = vector.load %arg7[%c0_69, %c0_70] : memref<384x4xf32, #tpu.memory_space<vmem>>, vector<384x4xf32>
    %50 = arith.addf %49, %48 : vector<384x4xf32>
    %c0_71 = arith.constant 0 : index
    %c0_72 = arith.constant 0 : index
    %51 = vector.load %arg7[%c0_71, %c0_72] : memref<384x4xf32, #tpu.memory_space<vmem>>, vector<384x4xf32>
    tpu.vector_store %arg7[%c0_71, %c0_72], %50 {strides = array<i32>} : memref<384x4xf32, #tpu.memory_space<vmem>>, vector<384x4xf32>,
    %c26 = arith.constant 26 : index
    %c0_73 = arith.constant 0 : index
    %52 = vector.load %arg6[%c26, %c0_73] : memref<448x4xbf16, #tpu.memory_space<vmem>>, vector<384x4xbf16>
    %c5 = arith.constant 5 : index
    %c0_74 = arith.constant 0 : index
    %c0_75 = arith.constant 0 : index
    %53 = vector.load %arg2[%c5, %c0_74, %c0_75] : memref<9x4x4xbf16, #tpu.memory_space<vmem>>, vector<1x4x4xbf16>
    %54 = vector.shape_cast %53 : vector<1x4x4xbf16> to vector<4x4xbf16>
    %cst_76 = arith.constant dense<0.000000e+00> : vector<384x4xf32>
    %55 = tpu.matmul %52, %54, %cst_76 {dimension_numbers = #tpu.dot_dimension_numbers<[1], [0], [0], [1], [0, 0, 1, 1], [], []>} : vector<384x4xbf16>, vector<4x4xbf16>, vector<384x4xf32> -> vector<384x4xf32>
    %c0_77 = arith.constant 0 : index
    %c0_78 = arith.constant 0 : index
    %56 = vector.load %arg7[%c0_77, %c0_78] : memref<384x4xf32, #tpu.memory_space<vmem>>, vector<384x4xf32>
    %57 = arith.addf %56, %55 : vector<384x4xf32>
    %c0_79 = arith.constant 0 : index
    %c0_80 = arith.constant 0 : index
    %58 = vector.load %arg7[%c0_79, %c0_80] : memref<384x4xf32, #tpu.memory_space<vmem>>, vector<384x4xf32>
    tpu.vector_store %arg7[%c0_79, %c0_80], %57 {strides = array<i32>} : memref<384x4xf32, #tpu.memory_space<vmem>>, vector<384x4xf32>,
    %c48 = arith.constant 48 : index
    %c0_81 = arith.constant 0 : index
    %59 = vector.load %arg6[%c48, %c0_81] : memref<448x4xbf16, #tpu.memory_space<vmem>>, vector<384x4xbf16>
    %c6 = arith.constant 6 : index
    %c0_82 = arith.constant 0 : index
    %c0_83 = arith.constant 0 : index
    %60 = vector.load %arg2[%c6, %c0_82, %c0_83] : memref<9x4x4xbf16, #tpu.memory_space<vmem>>, vector<1x4x4xbf16>
    %61 = vector.shape_cast %60 : vector<1x4x4xbf16> to vector<4x4xbf16>
    %cst_84 = arith.constant dense<0.000000e+00> : vector<384x4xf32>
    %62 = tpu.matmul %59, %61, %cst_84 {dimension_numbers = #tpu.dot_dimension_numbers<[1], [0], [0], [1], [0, 0, 1, 1], [], []>} : vector<384x4xbf16>, vector<4x4xbf16>, vector<384x4xf32> -> vector<384x4xf32>
    %c0_85 = arith.constant 0 : index
    %c0_86 = arith.constant 0 : index
    %63 = vector.load %arg7[%c0_85, %c0_86] : memref<384x4xf32, #tpu.memory_space<vmem>>, vector<384x4xf32>
    %64 = arith.addf %63, %62 : vector<384x4xf32>
    %c0_87 = arith.constant 0 : index
    %c0_88 = arith.constant 0 : index
    %65 = vector.load %arg7[%c0_87, %c0_88] : memref<384x4xf32, #tpu.memory_space<vmem>>, vector<384x4xf32>
    tpu.vector_store %arg7[%c0_87, %c0_88], %64 {strides = array<i32>} : memref<384x4xf32, #tpu.memory_space<vmem>>, vector<384x4xf32>,
    %c49 = arith.constant 49 : index
    %c0_89 = arith.constant 0 : index
    %66 = vector.load %arg6[%c49, %c0_89] : memref<448x4xbf16, #tpu.memory_space<vmem>>, vector<384x4xbf16>
    %c7 = arith.constant 7 : index
    %c0_90 = arith.constant 0 : index
    %c0_91 = arith.constant 0 : index
    %67 = vector.load %arg2[%c7, %c0_90, %c0_91] : memref<9x4x4xbf16, #tpu.memory_space<vmem>>, vector<1x4x4xbf16>
    %68 = vector.shape_cast %67 : vector<1x4x4xbf16> to vector<4x4xbf16>
    %cst_92 = arith.constant dense<0.000000e+00> : vector<384x4xf32>
    %69 = tpu.matmul %66, %68, %cst_92 {dimension_numbers = #tpu.dot_dimension_numbers<[1], [0], [0], [1], [0, 0, 1, 1], [], []>} : vector<384x4xbf16>, vector<4x4xbf16>, vector<384x4xf32> -> vector<384x4xf32>
    %c0_93 = arith.constant 0 : index
    %c0_94 = arith.constant 0 : index
    %70 = vector.load %arg7[%c0_93, %c0_94] : memref<384x4xf32, #tpu.memory_space<vmem>>, vector<384x4xf32>
    %71 = arith.addf %70, %69 : vector<384x4xf32>
    %c0_95 = arith.constant 0 : index
    %c0_96 = arith.constant 0 : index
    %72 = vector.load %arg7[%c0_95, %c0_96] : memref<384x4xf32, #tpu.memory_space<vmem>>, vector<384x4xf32>
    tpu.vector_store %arg7[%c0_95, %c0_96], %71 {strides = array<i32>} : memref<384x4xf32, #tpu.memory_space<vmem>>, vector<384x4xf32>,
    %c50 = arith.constant 50 : index
    %c0_97 = arith.constant 0 : index
    %73 = vector.load %arg6[%c50, %c0_97] : memref<448x4xbf16, #tpu.memory_space<vmem>>, vector<384x4xbf16>
    %c8 = arith.constant 8 : index
    %c0_98 = arith.constant 0 : index
    %c0_99 = arith.constant 0 : index
    %74 = vector.load %arg2[%c8, %c0_98, %c0_99] : memref<9x4x4xbf16, #tpu.memory_space<vmem>>, vector<1x4x4xbf16>
    %75 = vector.shape_cast %74 : vector<1x4x4xbf16> to vector<4x4xbf16>
    %cst_100 = arith.constant dense<0.000000e+00> : vector<384x4xf32>
    %76 = tpu.matmul %73, %75, %cst_100 {dimension_numbers = #tpu.dot_dimension_numbers<[1], [0], [0], [1], [0, 0, 1, 1], [], []>} : vector<384x4xbf16>, vector<4x4xbf16>, vector<384x4xf32> -> vector<384x4xf32>
    %c0_101 = arith.constant 0 : index
    %c0_102 = arith.constant 0 : index
    %77 = vector.load %arg7[%c0_101, %c0_102] : memref<384x4xf32, #tpu.memory_space<vmem>>, vector<384x4xf32>
    %78 = arith.addf %77, %76 : vector<384x4xf32>
    %c0_103 = arith.constant 0 : index
    %c0_104 = arith.constant 0 : index
    %79 = vector.load %arg7[%c0_103, %c0_104] : memref<384x4xf32, #tpu.memory_space<vmem>>, vector<384x4xf32>
    tpu.vector_store %arg7[%c0_103, %c0_104], %78 {strides = array<i32>} : memref<384x4xf32, #tpu.memory_space<vmem>>, vector<384x4xf32>,
    %c0_105 = arith.constant 0 : index
    %c0_106 = arith.constant 0 : index
    %80 = vector.load %arg7[%c0_105, %c0_106] : memref<384x4xf32, #tpu.memory_space<vmem>>, vector<384x4xf32>
    %81 = vector.shape_cast %80 : vector<384x4xf32> to vector<16x24x4xf32>
    %82 = vector.extract_strided_slice %81 {offsets = [0, 0, 0], sizes = [16, 16, 4], strides = [1, 1, 1]} : vector<16x24x4xf32> to vector<16x16x4xf32>
    %cst_107 = arith.constant dense<0.000000e+00> : vector<4xf32>
    %83 = vector.multi_reduction <add>, %82, %cst_107 [0, 1] : vector<16x16x4xf32> to vector<4xf32>
    %84 = vector.shape_cast %83 : vector<4xf32> to vector<1x1x4xf32>
    %cst_108 = arith.constant 3.906250e-03 : f32
    %85 = vector.broadcast %cst_108 : f32 to vector<1x1x4xf32>
    %86 = arith.mulf %84, %85 : vector<1x1x4xf32>
    %87 = vector.broadcast %86 : vector<1x1x4xf32> to vector<16x16x4xf32>
    %88 = arith.subf %82, %87 : vector<16x16x4xf32>
    %89 = arith.mulf %88, %88 : vector<16x16x4xf32>
    %cst_109 = arith.constant dense<0.000000e+00> : vector<4xf32>
    %90 = vector.multi_reduction <add>, %89, %cst_109 [0, 1] : vector<16x16x4xf32> to vector<4xf32>
    %91 = vector.shape_cast %90 : vector<4xf32> to vector<1x1x4xf32>
    %cst_110 = arith.constant 3.906250e-03 : f32
    %92 = vector.broadcast %cst_110 : f32 to vector<1x1x4xf32>
    %93 = arith.mulf %91, %92 : vector<1x1x4xf32>
    %cst_111 = arith.constant 9.99999974E-6 : f32
    %94 = vector.broadcast %cst_111 : f32 to vector<1x1x4xf32>
    %95 = arith.addf %93, %94 : vector<1x1x4xf32>
    %96 = math.rsqrt %95 : vector<1x1x4xf32>
    %97 = vector.broadcast %96 : vector<1x1x4xf32> to vector<16x16x4xf32>
    %98 = arith.mulf %88, %97 : vector<16x16x4xf32>
    %cst_112 = arith.constant 0.000000e+00 : f32
    %99 = vector.broadcast %cst_112 : f32 to vector<16x16x4xf32>
    %100 = arith.maximumf %98, %99 : vector<16x16x4xf32>
    %c1_113 = arith.constant 1 : index
    %c1_114 = arith.constant 1 : index
    %c0_115 = arith.constant 0 : index
    %101 = vector.load %arg5[%c1_113, %c1_114, %c0_115] : memref<18x24x4xf32, #tpu.memory_space<vmem>>, vector<16x16x4xf32>
    tpu.vector_store %arg5[%c1_113, %c1_114, %c0_115], %100 {strides = array<i32>} : memref<18x24x4xf32, #tpu.memory_space<vmem>>, vector<16x16x4xf32>,
    %102 = vector.extract_strided_slice %100 {offsets = [0, 1, 0], sizes = [16, 1, 4], strides = [1, 1, 1]} : vector<16x16x4xf32> to vector<16x1x4xf32>
    %c1_116 = arith.constant 1 : index
    %c0_117 = arith.constant 0 : index
    %c0_118 = arith.constant 0 : index
    %103 = vector.load %arg5[%c1_116, %c0_117, %c0_118] : memref<18x24x4xf32, #tpu.memory_space<vmem>>, vector<16x1x4xf32>
    tpu.vector_store %arg5[%c1_116, %c0_117, %c0_118], %102 {strides = array<i32>} : memref<18x24x4xf32, #tpu.memory_space<vmem>>, vector<16x1x4xf32>,
    %104 = vector.extract_strided_slice %100 {offsets = [0, 14, 0], sizes = [16, 1, 4], strides = [1, 1, 1]} : vector<16x16x4xf32> to vector<16x1x4xf32>
    %c1_119 = arith.constant 1 : index
    %c17_120 = arith.constant 17 : index
    %c0_121 = arith.constant 0 : index
    %105 = vector.load %arg5[%c1_119, %c17_120, %c0_121] : memref<18x24x4xf32, #tpu.memory_space<vmem>>, vector<16x1x4xf32>
    tpu.vector_store %arg5[%c1_119, %c17_120, %c0_121], %104 {strides = array<i32>} : memref<18x24x4xf32, #tpu.memory_space<vmem>>, vector<16x1x4xf32>,
    %c2_122 = arith.constant 2 : index
    %c0_123 = arith.constant 0 : index
    %c0_124 = arith.constant 0 : index
    %106 = vector.load %arg5[%c2_122, %c0_123, %c0_124] : memref<18x24x4xf32, #tpu.memory_space<vmem>>, vector<1x24x4xf32>
    %c0_125 = arith.constant 0 : index
    %c0_126 = arith.constant 0 : index
    %c0_127 = arith.constant 0 : index
    %107 = vector.load %arg5[%c0_125, %c0_126, %c0_127] : memref<18x24x4xf32, #tpu.memory_space<vmem>>, vector<1x24x4xf32>
    tpu.vector_store %arg5[%c0_125, %c0_126, %c0_127], %106 {strides = array<i32>} : memref<18x24x4xf32, #tpu.memory_space<vmem>>, vector<1x24x4xf32>,
    %c15_128 = arith.constant 15 : index
    %c0_129 = arith.constant 0 : index
    %c0_130 = arith.constant 0 : index
    %108 = vector.load %arg5[%c15_128, %c0_129, %c0_130] : memref<18x24x4xf32, #tpu.memory_space<vmem>>, vector<1x24x4xf32>
    %c17_131 = arith.constant 17 : index
    %c0_132 = arith.constant 0 : index
    %c0_133 = arith.constant 0 : index
    %109 = vector.load %arg5[%c17_131, %c0_132, %c0_133] : memref<18x24x4xf32, #tpu.memory_space<vmem>>, vector<1x24x4xf32>
    tpu.vector_store %arg5[%c17_131, %c0_132, %c0_133], %108 {strides = array<i32>} : memref<18x24x4xf32, #tpu.memory_space<vmem>>, vector<1x24x4xf32>,
    %c0_134 = arith.constant 0 : index
    %c0_135 = arith.constant 0 : index
    %c0_136 = arith.constant 0 : index
    %110 = vector.load %arg5[%c0_134, %c0_135, %c0_136] : memref<18x24x4xf32, #tpu.memory_space<vmem>>, vector<18x24x4xf32>
    %111 = vector.shape_cast %110 : vector<18x24x4xf32> to vector<432x4xf32>
    %112 = arith.truncf %111 : vector<432x4xf32> to vector<432x4xbf16>
    %c0_137 = arith.constant 0 : index
    %c0_138 = arith.constant 0 : index
    %113 = vector.load %arg6[%c0_137, %c0_138] : memref<448x4xbf16, #tpu.memory_space<vmem>>, vector<432x4xbf16>
    tpu.vector_store %arg6[%c0_137, %c0_138], %112 {strides = array<i32>} : memref<448x4xbf16, #tpu.memory_space<vmem>>, vector<432x4xbf16>,
    %c0_139 = arith.constant 0 : index
    %c0_140 = arith.constant 0 : index
    %114 = vector.load %arg6[%c0_139, %c0_140] : memref<448x4xbf16, #tpu.memory_space<vmem>>, vector<384x4xbf16>
    %c0_141 = arith.constant 0 : index
    %c0_142 = arith.constant 0 : index
    %c0_143 = arith.constant 0 : index
    %115 = vector.load %arg3[%c0_141, %c0_142, %c0_143] : memref<9x4x4xbf16, #tpu.memory_space<vmem>>, vector<1x4x4xbf16>
    %116 = vector.shape_cast %115 : vector<1x4x4xbf16> to vector<4x4xbf16>
    %cst_144 = arith.constant dense<0.000000e+00> : vector<384x4xf32>
    %117 = tpu.matmul %114, %116, %cst_144 {dimension_numbers = #tpu.dot_dimension_numbers<[1], [0], [0], [1], [0, 0, 1, 1], [], []>} : vector<384x4xbf16>, vector<4x4xbf16>, vector<384x4xf32> -> vector<384x4xf32>
    %c0_145 = arith.constant 0 : index
    %c0_146 = arith.constant 0 : index
    %118 = vector.load %arg7[%c0_145, %c0_146] : memref<384x4xf32, #tpu.memory_space<vmem>>, vector<384x4xf32>
    tpu.vector_store %arg7[%c0_145, %c0_146], %117 {strides = array<i32>} : memref<384x4xf32, #tpu.memory_space<vmem>>, vector<384x4xf32>,
    %c1_147 = arith.constant 1 : index
    %c0_148 = arith.constant 0 : index
    %119 = vector.load %arg6[%c1_147, %c0_148] : memref<448x4xbf16, #tpu.memory_space<vmem>>, vector<384x4xbf16>
    %c1_149 = arith.constant 1 : index
    %c0_150 = arith.constant 0 : index
    %c0_151 = arith.constant 0 : index
    %120 = vector.load %arg3[%c1_149, %c0_150, %c0_151] : memref<9x4x4xbf16, #tpu.memory_space<vmem>>, vector<1x4x4xbf16>
    %121 = vector.shape_cast %120 : vector<1x4x4xbf16> to vector<4x4xbf16>
    %cst_152 = arith.constant dense<0.000000e+00> : vector<384x4xf32>
    %122 = tpu.matmul %119, %121, %cst_152 {dimension_numbers = #tpu.dot_dimension_numbers<[1], [0], [0], [1], [0, 0, 1, 1], [], []>} : vector<384x4xbf16>, vector<4x4xbf16>, vector<384x4xf32> -> vector<384x4xf32>
    %c0_153 = arith.constant 0 : index
    %c0_154 = arith.constant 0 : index
    %123 = vector.load %arg7[%c0_153, %c0_154] : memref<384x4xf32, #tpu.memory_space<vmem>>, vector<384x4xf32>
    %124 = arith.addf %123, %122 : vector<384x4xf32>
    %c0_155 = arith.constant 0 : index
    %c0_156 = arith.constant 0 : index
    %125 = vector.load %arg7[%c0_155, %c0_156] : memref<384x4xf32, #tpu.memory_space<vmem>>, vector<384x4xf32>
    tpu.vector_store %arg7[%c0_155, %c0_156], %124 {strides = array<i32>} : memref<384x4xf32, #tpu.memory_space<vmem>>, vector<384x4xf32>,
    %c2_157 = arith.constant 2 : index
    %c0_158 = arith.constant 0 : index
    %126 = vector.load %arg6[%c2_157, %c0_158] : memref<448x4xbf16, #tpu.memory_space<vmem>>, vector<384x4xbf16>
    %c2_159 = arith.constant 2 : index
    %c0_160 = arith.constant 0 : index
    %c0_161 = arith.constant 0 : index
    %127 = vector.load %arg3[%c2_159, %c0_160, %c0_161] : memref<9x4x4xbf16, #tpu.memory_space<vmem>>, vector<1x4x4xbf16>
    %128 = vector.shape_cast %127 : vector<1x4x4xbf16> to vector<4x4xbf16>
    %cst_162 = arith.constant dense<0.000000e+00> : vector<384x4xf32>
    %129 = tpu.matmul %126, %128, %cst_162 {dimension_numbers = #tpu.dot_dimension_numbers<[1], [0], [0], [1], [0, 0, 1, 1], [], []>} : vector<384x4xbf16>, vector<4x4xbf16>, vector<384x4xf32> -> vector<384x4xf32>
    %c0_163 = arith.constant 0 : index
    %c0_164 = arith.constant 0 : index
    %130 = vector.load %arg7[%c0_163, %c0_164] : memref<384x4xf32, #tpu.memory_space<vmem>>, vector<384x4xf32>
    %131 = arith.addf %130, %129 : vector<384x4xf32>
    %c0_165 = arith.constant 0 : index
    %c0_166 = arith.constant 0 : index
    %132 = vector.load %arg7[%c0_165, %c0_166] : memref<384x4xf32, #tpu.memory_space<vmem>>, vector<384x4xf32>
    tpu.vector_store %arg7[%c0_165, %c0_166], %131 {strides = array<i32>} : memref<384x4xf32, #tpu.memory_space<vmem>>, vector<384x4xf32>,
    %c24_167 = arith.constant 24 : index
    %c0_168 = arith.constant 0 : index
    %133 = vector.load %arg6[%c24_167, %c0_168] : memref<448x4xbf16, #tpu.memory_space<vmem>>, vector<384x4xbf16>
    %c3_169 = arith.constant 3 : index
    %c0_170 = arith.constant 0 : index
    %c0_171 = arith.constant 0 : index
    %134 = vector.load %arg3[%c3_169, %c0_170, %c0_171] : memref<9x4x4xbf16, #tpu.memory_space<vmem>>, vector<1x4x4xbf16>
    %135 = vector.shape_cast %134 : vector<1x4x4xbf16> to vector<4x4xbf16>
    %cst_172 = arith.constant dense<0.000000e+00> : vector<384x4xf32>
    %136 = tpu.matmul %133, %135, %cst_172 {dimension_numbers = #tpu.dot_dimension_numbers<[1], [0], [0], [1], [0, 0, 1, 1], [], []>} : vector<384x4xbf16>, vector<4x4xbf16>, vector<384x4xf32> -> vector<384x4xf32>
    %c0_173 = arith.constant 0 : index
    %c0_174 = arith.constant 0 : index
    %137 = vector.load %arg7[%c0_173, %c0_174] : memref<384x4xf32, #tpu.memory_space<vmem>>, vector<384x4xf32>
    %138 = arith.addf %137, %136 : vector<384x4xf32>
    %c0_175 = arith.constant 0 : index
    %c0_176 = arith.constant 0 : index
    %139 = vector.load %arg7[%c0_175, %c0_176] : memref<384x4xf32, #tpu.memory_space<vmem>>, vector<384x4xf32>
    tpu.vector_store %arg7[%c0_175, %c0_176], %138 {strides = array<i32>} : memref<384x4xf32, #tpu.memory_space<vmem>>, vector<384x4xf32>,
    %c25_177 = arith.constant 25 : index
    %c0_178 = arith.constant 0 : index
    %140 = vector.load %arg6[%c25_177, %c0_178] : memref<448x4xbf16, #tpu.memory_space<vmem>>, vector<384x4xbf16>
    %c4_179 = arith.constant 4 : index
    %c0_180 = arith.constant 0 : index
    %c0_181 = arith.constant 0 : index
    %141 = vector.load %arg3[%c4_179, %c0_180, %c0_181] : memref<9x4x4xbf16, #tpu.memory_space<vmem>>, vector<1x4x4xbf16>
    %142 = vector.shape_cast %141 : vector<1x4x4xbf16> to vector<4x4xbf16>
    %cst_182 = arith.constant dense<0.000000e+00> : vector<384x4xf32>
    %143 = tpu.matmul %140, %142, %cst_182 {dimension_numbers = #tpu.dot_dimension_numbers<[1], [0], [0], [1], [0, 0, 1, 1], [], []>} : vector<384x4xbf16>, vector<4x4xbf16>, vector<384x4xf32> -> vector<384x4xf32>
    %c0_183 = arith.constant 0 : index
    %c0_184 = arith.constant 0 : index
    %144 = vector.load %arg7[%c0_183, %c0_184] : memref<384x4xf32, #tpu.memory_space<vmem>>, vector<384x4xf32>
    %145 = arith.addf %144, %143 : vector<384x4xf32>
    %c0_185 = arith.constant 0 : index
    %c0_186 = arith.constant 0 : index
    %146 = vector.load %arg7[%c0_185, %c0_186] : memref<384x4xf32, #tpu.memory_space<vmem>>, vector<384x4xf32>
    tpu.vector_store %arg7[%c0_185, %c0_186], %145 {strides = array<i32>} : memref<384x4xf32, #tpu.memory_space<vmem>>, vector<384x4xf32>,
    %c26_187 = arith.constant 26 : index
    %c0_188 = arith.constant 0 : index
    %147 = vector.load %arg6[%c26_187, %c0_188] : memref<448x4xbf16, #tpu.memory_space<vmem>>, vector<384x4xbf16>
    %c5_189 = arith.constant 5 : index
    %c0_190 = arith.constant 0 : index
    %c0_191 = arith.constant 0 : index
    %148 = vector.load %arg3[%c5_189, %c0_190, %c0_191] : memref<9x4x4xbf16, #tpu.memory_space<vmem>>, vector<1x4x4xbf16>
    %149 = vector.shape_cast %148 : vector<1x4x4xbf16> to vector<4x4xbf16>
    %cst_192 = arith.constant dense<0.000000e+00> : vector<384x4xf32>
    %150 = tpu.matmul %147, %149, %cst_192 {dimension_numbers = #tpu.dot_dimension_numbers<[1], [0], [0], [1], [0, 0, 1, 1], [], []>} : vector<384x4xbf16>, vector<4x4xbf16>, vector<384x4xf32> -> vector<384x4xf32>
    %c0_193 = arith.constant 0 : index
    %c0_194 = arith.constant 0 : index
    %151 = vector.load %arg7[%c0_193, %c0_194] : memref<384x4xf32, #tpu.memory_space<vmem>>, vector<384x4xf32>
    %152 = arith.addf %151, %150 : vector<384x4xf32>
    %c0_195 = arith.constant 0 : index
    %c0_196 = arith.constant 0 : index
    %153 = vector.load %arg7[%c0_195, %c0_196] : memref<384x4xf32, #tpu.memory_space<vmem>>, vector<384x4xf32>
    tpu.vector_store %arg7[%c0_195, %c0_196], %152 {strides = array<i32>} : memref<384x4xf32, #tpu.memory_space<vmem>>, vector<384x4xf32>,
    %c48_197 = arith.constant 48 : index
    %c0_198 = arith.constant 0 : index
    %154 = vector.load %arg6[%c48_197, %c0_198] : memref<448x4xbf16, #tpu.memory_space<vmem>>, vector<384x4xbf16>
    %c6_199 = arith.constant 6 : index
    %c0_200 = arith.constant 0 : index
    %c0_201 = arith.constant 0 : index
    %155 = vector.load %arg3[%c6_199, %c0_200, %c0_201] : memref<9x4x4xbf16, #tpu.memory_space<vmem>>, vector<1x4x4xbf16>
    %156 = vector.shape_cast %155 : vector<1x4x4xbf16> to vector<4x4xbf16>
    %cst_202 = arith.constant dense<0.000000e+00> : vector<384x4xf32>
    %157 = tpu.matmul %154, %156, %cst_202 {dimension_numbers = #tpu.dot_dimension_numbers<[1], [0], [0], [1], [0, 0, 1, 1], [], []>} : vector<384x4xbf16>, vector<4x4xbf16>, vector<384x4xf32> -> vector<384x4xf32>
    %c0_203 = arith.constant 0 : index
    %c0_204 = arith.constant 0 : index
    %158 = vector.load %arg7[%c0_203, %c0_204] : memref<384x4xf32, #tpu.memory_space<vmem>>, vector<384x4xf32>
    %159 = arith.addf %158, %157 : vector<384x4xf32>
    %c0_205 = arith.constant 0 : index
    %c0_206 = arith.constant 0 : index
    %160 = vector.load %arg7[%c0_205, %c0_206] : memref<384x4xf32, #tpu.memory_space<vmem>>, vector<384x4xf32>
    tpu.vector_store %arg7[%c0_205, %c0_206], %159 {strides = array<i32>} : memref<384x4xf32, #tpu.memory_space<vmem>>, vector<384x4xf32>,
    %c49_207 = arith.constant 49 : index
    %c0_208 = arith.constant 0 : index
    %161 = vector.load %arg6[%c49_207, %c0_208] : memref<448x4xbf16, #tpu.memory_space<vmem>>, vector<384x4xbf16>
    %c7_209 = arith.constant 7 : index
    %c0_210 = arith.constant 0 : index
    %c0_211 = arith.constant 0 : index
    %162 = vector.load %arg3[%c7_209, %c0_210, %c0_211] : memref<9x4x4xbf16, #tpu.memory_space<vmem>>, vector<1x4x4xbf16>
    %163 = vector.shape_cast %162 : vector<1x4x4xbf16> to vector<4x4xbf16>
    %cst_212 = arith.constant dense<0.000000e+00> : vector<384x4xf32>
    %164 = tpu.matmul %161, %163, %cst_212 {dimension_numbers = #tpu.dot_dimension_numbers<[1], [0], [0], [1], [0, 0, 1, 1], [], []>} : vector<384x4xbf16>, vector<4x4xbf16>, vector<384x4xf32> -> vector<384x4xf32>
    %c0_213 = arith.constant 0 : index
    %c0_214 = arith.constant 0 : index
    %165 = vector.load %arg7[%c0_213, %c0_214] : memref<384x4xf32, #tpu.memory_space<vmem>>, vector<384x4xf32>
    %166 = arith.addf %165, %164 : vector<384x4xf32>
    %c0_215 = arith.constant 0 : index
    %c0_216 = arith.constant 0 : index
    %167 = vector.load %arg7[%c0_215, %c0_216] : memref<384x4xf32, #tpu.memory_space<vmem>>, vector<384x4xf32>
    tpu.vector_store %arg7[%c0_215, %c0_216], %166 {strides = array<i32>} : memref<384x4xf32, #tpu.memory_space<vmem>>, vector<384x4xf32>,
    %c50_217 = arith.constant 50 : index
    %c0_218 = arith.constant 0 : index
    %168 = vector.load %arg6[%c50_217, %c0_218] : memref<448x4xbf16, #tpu.memory_space<vmem>>, vector<384x4xbf16>
    %c8_219 = arith.constant 8 : index
    %c0_220 = arith.constant 0 : index
    %c0_221 = arith.constant 0 : index
    %169 = vector.load %arg3[%c8_219, %c0_220, %c0_221] : memref<9x4x4xbf16, #tpu.memory_space<vmem>>, vector<1x4x4xbf16>
    %170 = vector.shape_cast %169 : vector<1x4x4xbf16> to vector<4x4xbf16>
    %cst_222 = arith.constant dense<0.000000e+00> : vector<384x4xf32>
    %171 = tpu.matmul %168, %170, %cst_222 {dimension_numbers = #tpu.dot_dimension_numbers<[1], [0], [0], [1], [0, 0, 1, 1], [], []>} : vector<384x4xbf16>, vector<4x4xbf16>, vector<384x4xf32> -> vector<384x4xf32>
    %c0_223 = arith.constant 0 : index
    %c0_224 = arith.constant 0 : index
    %172 = vector.load %arg7[%c0_223, %c0_224] : memref<384x4xf32, #tpu.memory_space<vmem>>, vector<384x4xf32>
    %173 = arith.addf %172, %171 : vector<384x4xf32>
    %c0_225 = arith.constant 0 : index
    %c0_226 = arith.constant 0 : index
    %174 = vector.load %arg7[%c0_225, %c0_226] : memref<384x4xf32, #tpu.memory_space<vmem>>, vector<384x4xf32>
    tpu.vector_store %arg7[%c0_225, %c0_226], %173 {strides = array<i32>} : memref<384x4xf32, #tpu.memory_space<vmem>>, vector<384x4xf32>,
    %c0_227 = arith.constant 0 : index
    %c0_228 = arith.constant 0 : index
    %175 = vector.load %arg7[%c0_227, %c0_228] : memref<384x4xf32, #tpu.memory_space<vmem>>, vector<384x4xf32>
    %176 = vector.shape_cast %175 : vector<384x4xf32> to vector<16x24x4xf32>
    %177 = vector.extract_strided_slice %176 {offsets = [0, 0, 0], sizes = [16, 16, 4], strides = [1, 1, 1]} : vector<16x24x4xf32> to vector<16x16x4xf32>
    %cst_229 = arith.constant dense<0.000000e+00> : vector<4xf32>
    %178 = vector.multi_reduction <add>, %177, %cst_229 [0, 1] : vector<16x16x4xf32> to vector<4xf32>
    %179 = vector.shape_cast %178 : vector<4xf32> to vector<1x1x4xf32>
    %cst_230 = arith.constant 3.906250e-03 : f32
    %180 = vector.broadcast %cst_230 : f32 to vector<1x1x4xf32>
    %181 = arith.mulf %179, %180 : vector<1x1x4xf32>
    %182 = vector.broadcast %181 : vector<1x1x4xf32> to vector<16x16x4xf32>
    %183 = arith.subf %177, %182 : vector<16x16x4xf32>
    %184 = arith.mulf %183, %183 : vector<16x16x4xf32>
    %cst_231 = arith.constant dense<0.000000e+00> : vector<4xf32>
    %185 = vector.multi_reduction <add>, %184, %cst_231 [0, 1] : vector<16x16x4xf32> to vector<4xf32>
    %186 = vector.shape_cast %185 : vector<4xf32> to vector<1x1x4xf32>
    %cst_232 = arith.constant 3.906250e-03 : f32
    %187 = vector.broadcast %cst_232 : f32 to vector<1x1x4xf32>
    %188 = arith.mulf %186, %187 : vector<1x1x4xf32>
    %cst_233 = arith.constant 9.99999974E-6 : f32
    %189 = vector.broadcast %cst_233 : f32 to vector<1x1x4xf32>
    %190 = arith.addf %188, %189 : vector<1x1x4xf32>
    %191 = math.rsqrt %190 : vector<1x1x4xf32>
    %192 = vector.broadcast %191 : vector<1x1x4xf32> to vector<16x16x4xf32>
    %193 = arith.mulf %183, %192 : vector<16x16x4xf32>
    %c0_234 = arith.constant 0 : index
    %c0_235 = arith.constant 0 : index
    %c0_236 = arith.constant 0 : index
    %c0_237 = arith.constant 0 : index
    %194 = vector.load %arg1[%c0_234, %c0_235, %c0_236, %c0_237] : memref<1x16x16x4xf32, #tpu.memory_space<vmem>>, vector<1x16x16x4xf32>
    %195 = vector.shape_cast %194 : vector<1x16x16x4xf32> to vector<16x16x4xf32>
    %196 = arith.addf %195, %193 : vector<16x16x4xf32>
    %c0_238 = arith.constant 0 : index
    %c0_239 = arith.constant 0 : index
    %c0_240 = arith.constant 0 : index
    %c0_241 = arith.constant 0 : index
    %197 = vector.load %arg4[%c0_238, %c0_239, %c0_240, %c0_241] : memref<1x16x16x4xf32, #tpu.memory_space<vmem>>, vector<1x16x16x4xf32>
    %198 = vector.shape_cast %197 : vector<1x16x16x4xf32> to vector<16x16x4xf32>
    %199 = vector.shape_cast %196 : vector<16x16x4xf32> to vector<1x16x16x4xf32>
    tpu.vector_store %arg4[%c0_238, %c0_239, %c0_240, %c0_241], %199 {strides = array<i32>} : memref<1x16x16x4xf32, #tpu.memory_space<vmem>>, vector<1x16x16x4xf32>,
    return
  }
  func.func @transform_0(%arg0: i32) -> (i32, i32, i32, i32) {
    %c0_i32 = arith.constant 0 : i32
    %c0_i32_0 = arith.constant 0 : i32
    %c0_i32_1 = arith.constant 0 : i32
    %c0_i32_2 = arith.constant 0 : i32
    return %arg0, %c0_i32, %c0_i32_0, %c0_i32_1 : i32, i32, i32, i32
  }
  func.func @transform_1(%arg0: i32) -> (i32, i32, i32) {
    %c0_i32 = arith.constant 0 : i32
    %c0_i32_0 = arith.constant 0 : i32
    %c0_i32_1 = arith.constant 0 : i32
    %c0_i32_2 = arith.constant 0 : i32
    return %c0_i32, %c0_i32_0, %c0_i32_1 : i32, i32, i32
  }
  func.func @transform_2(%arg0: i32) -> (i32, i32, i32) {
    %c0_i32 = arith.constant 0 : i32
    %c0_i32_0 = arith.constant 0 : i32
    %c0_i32_1 = arith.constant 0 : i32
    %c0_i32_2 = arith.constant 0 : i32
    return %c0_i32, %c0_i32_0, %c0_i32_1 : i32, i32, i32
  }
  func.func @transform_3(%arg0: i32) -> (i32, i32, i32, i32) {
    %c0_i32 = arith.constant 0 : i32
    %c0_i32_0 = arith.constant 0 : i32
    %c0_i32_1 = arith.constant 0 : i32
    %c0_i32_2 = arith.constant 0 : i32
    return %arg0, %c0_i32, %c0_i32_0, %c0_i32_1 : i32, i32, i32, i32
  }
}

</mosaic_0001>

<bundles_post_ra>
// kernel: resnet_block.1
= control target key start
LH: loop header
LB: loop body
LE: loop exit
PB: predicated region body
PF: predicated region fallthrough
CT: control target
= control target key end

     0   :  { %s14768_s12 = smov 0   ;;  %s18864_s0 = inlined_call_operand.vmem [shape: f32[2,16,16,4], index: 0, kind: input, shape index: {}]   ;;  %s18865_s1 = inlined_call_operand.vmem [shape: bf16[9,4,4], index: 1, kind: input, shape index: {}]   ;;  %s18866_s2 = inlined_call_operand.vmem [shape: bf16[9,4,4], index: 2, kind: input, shape index: {}]   ;;  %s18867_s3 = inlined_call_operand.vmem [shape: f32[2,16,16,4], index: 3, kind: output, shape index: {}]  }
   0x1 LB: > { %s12101_s13 = sadd.s32 4294967295, %s14744_s12   ;;  %p12105_p0 = scmp.ge.s32.totalorder %s14744_s12, 1  ;;  %s14744_s12 = sphi %s14768_s12, %s13_s12  }
   0x2   : > { %p137_p1 = scmp.lt.s32.totalorder %s14744_s12, 3 }
   0x4   : > { %p138_p2 = pnand %p12105_p0, %p137_p1 }
   0x5   : > { %p161_p3 = scmp.lt.s32.totalorder (!%p138_p2), %s12101_s13, 1 }
   0x6   : > { %141 = sbr.rel (%p138_p2) target bundleno = 2820 (0xb04), region = 32 }
   0xb   : > { %v519_v0 = vld [vmem:[%s18865_s1] sm:$0x3]  ;;  %vm712_vm0 = vcmask 1041408   ;;  %v12351_v2 = vld [vmem:[%s18865_s1 + $0x4] sm:$0x3]  ;;  %vm172_vm1 = vcmask 29696  }
   0xc   : > { %v714_v1 = vsel %vm712_vm0, %v519_v0, 0  ;;  %s18869_s13 = smov (!%p161_p3, %s12101_s13), 1  ;;  %v1909_v3 = vsel %vm712_vm0, %v12351_v2, 0  ;;  %v12230_v4 = vld [vmem:[%s18865_s1 + $0x2] sm:$0x3]  ;;  %v14746_v6 = vmov 0.0  }
   0xd   : > { %14722 = vmatpush.bf16.msra.mxu2 %v714_v1  ;;  %723 = vmatpush.bf16.msra.mxu0 %v714_v1  ;;  %v1337_v5 = vsel %vm712_vm0, %v12230_v4, 0  ;;  %181 = vst.msk [vmem:[#allocation2 + $0xd2] sm:$0x3f] %vm172_vm1, %v14746_v6  ;;  %s14288_s20 = sshll.u32 %s18869_s13, 8  ;;  %vm227_vm2 = vcmask 31744   ;;  %vm260_vm3 = vcmask 25601  }
   0xe   : > { %14723 = vmatpush.bf16.msra.mxu3 %v1337_v5  ;;  %173 = vst.msk [vmem:[#allocation2 + $0x12] sm:$0x3f] %vm172_vm1, %v14746_v6  ;;  %v12472_v7 = vld [vmem:[%s18865_s1 + $0x6] sm:$0x3]  ;;  %1346 = vmatpush.bf16.msra.mxu1 %v1337_v5  ;;  %s14801_s25 = scalar_lea.vmem %s18864_s0, %s14288_s20  ;;  %vm277_vm4 = vcmask 30726   ;;  %vm191_vm5 = vcmask 27648   ;;  %s18713_s6 = scalar_lea.vmem %s18867_s3, %s14288_s20 }
   0xf   : > { %174 = vst.msk [vmem:[#allocation2 + $0x2a] sm:$0x3f] %vm172_vm1, %v14746_v6  ;;  %v2427_v8 = vsel %vm712_vm0, %v12472_v7, 0  ;;  %v208_v9 = vld [vmem:[%s14801_s25 + $0x70] sm:$0xff]  ;;  %v209_v10 = vld [vmem:[%s14801_s25 + $0x78] sm:$0xff]  ;;  %v210_v11 = vld [vmem:[%s14801_s25 + $0x80] sm:$0xff] }
  0x10   : > { %175 = vst.msk [vmem:[#allocation2 + $0x42] sm:$0x3f] %vm172_vm1, %v14746_v6  ;;  %v196_v24 = vld [vmem:[%s14801_s25 + $0x10] sm:$0xff]  ;;  %v197_v26 = vld [vmem:[%s14801_s25 + $0x18] sm:$0xff]  ;;  %vm1067_vm6 = vsmask.f32 7424 }
  0x11   : > { %1918 = vmatpush.bf16.msrb.mxu2 %v1909_v3  ;;  %242 = vst.msk [vmem:[#allocation2 + $0xc1] sm:$0xff] %vm227_vm2, %v208_v9  ;;  %v211_v30 = vld [vmem:[%s14801_s25 + $0x88] sm:$0xff]  ;;  %v194_v32 = vld [vmem:[%s14801_s25] sm:$0xff]  ;;  %v212_v36 = vld [vmem:[%s14801_s25 + $0x90] sm:$0xff]  ;;  %vm1786_vm7 = vcmask 1046528  }
  0x12   : > { %2436 = vmatpush.bf16.msrb.mxu3 %v2427_v8  ;;  %243 = vst.msk [vmem:[#allocation2 + $0xc9] sm:$0xff] %vm227_vm2, %v209_v10  ;;  %v12593_v34 = vld [vmem:[%s18865_s1 + $0x8] sm:$0x3]  ;;  %v213_v40 = vld [vmem:[%s14801_s25 + $0x98] sm:$0xff]  ;;  %v214_v61 = vld [vmem:[%s14801_s25 + $0xa0] sm:$0xff] }
  0x13   : > { %268 = vst.msk [vmem:[#allocation2 + $0xbf] sm:$0x2] %vm260_vm3, %v208_v9  ;;  %v3145_v35 = vsel %vm712_vm0, %v12593_v34, 0  ;;  %v195_v48 = vld [vmem:[%s14801_s25 + $0x8] sm:$0xff] }
  0x14   : > { %285 = vst.msk [vmem:[#allocation2 + $0xcb] sm:$0x40] %vm277_vm4, %v209_v10  ;;  %3154 = vmatpush.bf16.msrb.mxu0 %v3145_v35 }
  0x15   : > { %244 = vst.msk [vmem:[#allocation2 + $0xd9] sm:$0xff] %vm227_vm2, %v210_v11 }
  0x16   : > { %269 = vst.msk [vmem:[#allocation2 + $0xd7] sm:$0x2] %vm260_vm3, %v210_v11 }
  0x17   : > { %176 = vst.msk [vmem:[#allocation2 + $0x5a] sm:$0x3f] %vm172_vm1, %v14746_v6 }
  0x18   : > { %177 = vst.msk [vmem:[#allocation2 + $0x72] sm:$0x3f] %vm172_vm1, %v14746_v6 }
  0x19   : > { %v334_v12 = vld [vmem:[#allocation2 + $0xc8] sm:$0xff]  ;;  %178 = vst.msk [vmem:[#allocation2 + $0x8a] sm:$0x3f] %vm172_vm1, %v14746_v6 }
  0x1a   : > { %v333_v13 = vld [vmem:[#allocation2 + $0xc0] sm:$0xff]  ;;  %v388_v14 = vpack.c.bf16 %v334_v12, %v334_v12  ;;  %179 = vst.msk [vmem:[#allocation2 + $0xa2] sm:$0x3f] %vm172_vm1, %v14746_v6  ;;  %v215_v12 = vld [vmem:[%s14801_s25 + $0xa8] sm:$0xff] }
  0x1b   : > { %v387_v15 = vpack.c.bf16 %v333_v13, %v333_v13  ;;  %v335_v16 = vld [vmem:[#allocation2 + $0xd0] sm:$0xff]  ;;  %180 = vst.msk [vmem:[#allocation2 + $0xba] sm:$0x3f] %vm172_vm1, %v14746_v6 }
  0x1c   : > { %442 = vst.msk [vmem:[#allocation3 + $0x64] sm:$0xf] %vm191_vm5, %v388_v14  ;;  %v389_v17 = vpack.c.bf16 %v335_v16, %v335_v16 }
  0x1d   : > { %441 = vst.msk [vmem:[#allocation3 + $0x60] sm:$0xf] %vm191_vm5, %v387_v15  ;;  %v336_v18 = vld [vmem:[#allocation2 + $0xd8] sm:$0xff] }
  0x1e   : > { %v390_v19 = vpack.c.bf16 %v336_v18, %v336_v18  ;;  %443 = vst.msk [vmem:[#allocation3 + $0x68] sm:$0xf] %vm191_vm5, %v389_v17  ;;  %v198_v17 = vld [vmem:[%s14801_s25 + $0x20] sm:$0xff] }
  0x1f   : > { %182 = vst.msk [vmem:[#allocation2 + $0xea] sm:$0x3f] %vm172_vm1, %v14746_v6 }
  0x20   : > { %444 = vst.msk [vmem:[#allocation3 + $0x6c] sm:$0xf] %vm191_vm5, %v390_v19 }
  0x21   : > { %183 = vst.msk [vmem:[#allocation2 + $0x102] sm:$0x3f] %vm172_vm1, %v14746_v6 }
  0x22   : > { %184 = vst.msk [vmem:[#allocation2 + $0x11a] sm:$0x3f] %vm172_vm1, %v14746_v6 }
  0x23   : > { %185 = vst.msk [vmem:[#allocation2 + $0x132] sm:$0x3f] %vm172_vm1, %v14746_v6 }
  0x24   : > { %v14302_v20 = vld [vmem:[#allocation3 + $0x60] sm:$0xff]  ;;  %186 = vst.msk [vmem:[#allocation2 + $0x14a] sm:$0x3f] %vm172_vm1, %v14746_v6 }
  0x25   : > { %v14326_v21 = vld [vmem:[#allocation3 + $0x60] sm:$0xff]  ;;  %187 = vst.msk [vmem:[#allocation2 + $0x162] sm:$0x3f] %vm172_vm1, %v14746_v6  ;;  %12218 = vmatmul.msk.bf16.vlgmr.msra.gmra.mxu2 %vm227_vm2, %v14302_v20 }
  0x26   : > { %v1164_v22 = vshll.u32 %v14326_v21, 16  ;;  %v1168_v23 = vshrl.u32 %v14326_v21, 16  ;;  %188 = vst.msk [vmem:[#allocation2 + $0x17a] sm:$0x3f] %vm172_vm1, %v14746_v6 }
  0x27   : > { %v14833_v25 = vld [vmem:[#allocation3 + $0x68] sm:$0xff]  ;;  %189 = vst.msk [vmem:[#allocation2 + $0x192] sm:$0x3f] %vm172_vm1, %v14746_v6 }
  0x28   : > { %v14837_v27 = vrot.slane %v1164_v22, 1  ;;  %190 = vst.msk [vmem:[#allocation2 + $0x1aa] sm:$0x3f] %vm172_vm1, %v14746_v6  ;;  %v1172_v28 = vshll.u32 %v14833_v25, 16  ;;  %v14303_v38 = vld [vmem:[#allocation3 + $0x68] sm:$0xff]  ;;  %v1176_v56 = vshrl.u32 %v14833_v25, 16 }
  0x29   : > { %230 = vst.msk [vmem:[#allocation2 + $0x31] sm:$0xff] %vm227_vm2, %v196_v24 }
  0x2a   : > { %v1170_v29 = vor.u32 %v1168_v23, %v14837_v27  ;;  %231 = vst.msk [vmem:[#allocation2 + $0x39] sm:$0xff] %vm227_vm2, %v197_v26  ;;  %v1174_v31 = vrot.slane %v1172_v28, 1 }
  0x2b   : > { %262 = vst.msk [vmem:[#allocation2 + $0x2f] sm:$0x2] %vm260_vm3, %v196_v24 }
  0x2c   : > { %279 = vst.msk [vmem:[#allocation2 + $0x3b] sm:$0x40] %vm277_vm4, %v197_v26  ;;  %v1175_v33 = vsel %vm1067_vm6, %v1170_v29, %v1174_v31  ;;  %v1178_v63 = vor.u32 %v1176_v56, %v1174_v31 }
  0x2d   : > { %245 = vst.msk [vmem:[#allocation2 + $0xe1] sm:$0xff] %vm227_vm2, %v211_v30  ;;  %12339 = vmatmul.msk.bf16.vlgmr.msra.gmra.mxu3 %vm227_vm2, %v1175_v33 }
  0x2e   : > { %286 = vst.msk [vmem:[#allocation2 + $0xe3] sm:$0x40] %vm277_vm4, %v211_v30 }
  0x2f   : > { %228 = vst.msk [vmem:[#allocation2 + $0x19] sm:$0xff] %vm227_vm2, %v194_v32 }
  0x30   : > { %261 = vst.msk [vmem:[#allocation2 + $0x17] sm:$0x2] %vm260_vm3, %v194_v32 }
  0x31   : > { %v14859_v37 = vld [vmem:[#allocation2 + $0x38] sm:$0xff]  ;;  %246 = vst.msk [vmem:[#allocation2 + $0xf1] sm:$0xff] %vm227_vm2, %v212_v36 }
  0x32   : > { %v14862_v39 = vld [vmem:[#allocation2 + $0x30] sm:$0xff]  ;;  %299 = vst.msk [vmem:[#allocation2 + $0x8] sm:$0xff] %vm227_vm2, %v14859_v37  ;;  %v370_v7 = vpack.c.bf16 %v14859_v37, %v14859_v37 }
  0x33   : > { %298 = vst.msk [vmem:[#allocation2] sm:$0xff] %vm227_vm2, %v14862_v39  ;;  %v14869_v41 = vld [vmem:[#allocation2 + $0x40] sm:$0xff]  ;;  %v369_v3 = vpack.c.bf16 %v14862_v39, %v14862_v39  ;;  %v216_v39 = vld [vmem:[%s14801_s25 + $0xb0] sm:$0xff] }
  0x34   : > { %v337_v42 = vld [vmem:[#allocation2 + $0xe0] sm:$0xff]  ;;  %300 = vst.msk [vmem:[#allocation2 + $0x10] sm:$0xff] %vm227_vm2, %v14869_v41  ;;  %v371_v29 = vpack.c.bf16 %v14869_v41, %v14869_v41 }
  0x35   : > { %v338_v43 = vld [vmem:[#allocation2 + $0xe8] sm:$0xff]  ;;  %v391_v44 = vpack.c.bf16 %v337_v42, %v337_v42  ;;  %247 = vst.msk [vmem:[#allocation2 + $0xf9] sm:$0xff] %vm227_vm2, %v213_v40  ;;  %12219 = vmatmul.msk.bf16.gmra.mxu2 %vm227_vm2, %v14303_v38 }
  0x36   : > { %v392_v45 = vpack.c.bf16 %v338_v43, %v338_v43  ;;  %270 = vst.msk [vmem:[#allocation2 + $0xef] sm:$0x2] %vm260_vm3, %v212_v36  ;;  %v217_v43 = vld [vmem:[%s14801_s25 + $0xb8] sm:$0xff] }
  0x37   : > { %445 = vst.msk [vmem:[#allocation3 + $0x70] sm:$0xf] %vm191_vm5, %v391_v44  ;;  %v312_v46 = vld [vmem:[#allocation2 + $0x18] sm:$0xff] }
  0x38   : > { %446 = vst.msk [vmem:[#allocation3 + $0x74] sm:$0xf] %vm191_vm5, %v392_v45  ;;  %v366_v47 = vpack.c.bf16 %v312_v46, %v312_v46 }
  0x39   : > { %v310_v49 = vld [vmem:[#allocation2 + $0x8] sm:$0xff]  ;;  %287 = vst.msk [vmem:[#allocation2 + $0xfb] sm:$0x40] %vm277_vm4, %v213_v40 }
  0x3a   : > { %v309_v50 = vld [vmem:[#allocation2] sm:$0xff]  ;;  %v364_v51 = vpack.c.bf16 %v310_v49, %v310_v49  ;;  %420 = vst.msk [vmem:[#allocation3 + $0xc] sm:$0xf] %vm191_vm5, %v366_v47 }
  0x3b   : > { %v363_v52 = vpack.c.bf16 %v309_v50, %v309_v50  ;;  %v311_v53 = vld [vmem:[#allocation2 + $0x10] sm:$0xff]  ;;  %229 = vst.msk [vmem:[#allocation2 + $0x21] sm:$0xff] %vm227_vm2, %v195_v48 }
  0x3c   : > { %418 = vst.msk [vmem:[#allocation3 + $0x4] sm:$0xf] %vm191_vm5, %v364_v51  ;;  %v365_v54 = vpack.c.bf16 %v311_v53, %v311_v53  ;;  %v340_v55 = vld [vmem:[#allocation2 + $0xf8] sm:$0xff] }
  0x3d   : > { %417 = vst.msk [vmem:[#allocation3] sm:$0xf] %vm191_vm5, %v363_v52  ;;  %v339_v57 = vld [vmem:[#allocation2 + $0xf0] sm:$0xff]  ;;  %v394_v58 = vpack.c.bf16 %v340_v55, %v340_v55 }
  0x3e   : > { %419 = vst.msk [vmem:[#allocation3 + $0x8] sm:$0xf] %vm191_vm5, %v365_v54  ;;  %v393_v59 = vpack.c.bf16 %v339_v57, %v339_v57 }
  0x3f   : > { %v14328_v60 = vld [vmem:[#allocation3 + $0x70] sm:$0xff]  ;;  %448 = vst.msk [vmem:[#allocation3 + $0x7c] sm:$0xf] %vm191_vm5, %v394_v58 }
  0x40   : > { %447 = vst.msk [vmem:[#allocation3 + $0x78] sm:$0xf] %vm191_vm5, %v393_v59  ;;  %v341_v62 = vld [vmem:[#allocation2 + $0x100] sm:$0xff]  ;;  %v1180_v0 = vshll.u32 %v14328_v60, 16  ;;  %v1184_v24 = vshrl.u32 %v14328_v60, 16 }
  0x41   : > { %278 = vst.msk [vmem:[#allocation2 + $0x23] sm:$0x40] %vm277_vm4, %v195_v48  ;;  %v395_v1 = vpack.c.bf16 %v341_v62, %v341_v62  ;;  %v14304_v5 = vld [vmem:[#allocation3 + $0x70] sm:$0xff]  ;;  %v199_v48 = vld [vmem:[%s14801_s25 + $0x28] sm:$0xff] }
  0x42   : > { %v313_v2 = vld [vmem:[#allocation2 + $0x20] sm:$0xff]  ;;  %248 = vst.msk [vmem:[#allocation2 + $0x109] sm:$0xff] %vm227_vm2, %v214_v61  ;;  %v1182_v4 = vrot.slane %v1180_v0, 1 }
  0x43   : > { %v367_v6 = vpack.c.bf16 %v313_v2, %v313_v2  ;;  %271 = vst.msk [vmem:[#allocation2 + $0x107] sm:$0x2] %vm260_vm3, %v214_v61 }
  0x44   : > { %v14290_v8 = vld [vmem:[#allocation3] sm:$0xff]  ;;  %449 = vst.msk [vmem:[#allocation3 + $0x80] sm:$0xf] %vm191_vm5, %v395_v1  ;;  %v1183_v10 = vsel %vm1067_vm6, %v1178_v63, %v1182_v4  ;;  %v1186_v30 = vor.u32 %v1184_v24, %v1182_v4 }
  0x45   : > { %v14314_v9 = vld [vmem:[#allocation3] sm:$0xff]  ;;  %v14315_v11 = vld [vmem:[#allocation3 + $0x8] sm:$0xff]  ;;  %421 = vst.msk [vmem:[#allocation3 + $0x10] sm:$0xf] %vm191_vm5, %v367_v6  ;;  %12206 = vmatmul.msk.bf16.vlgmr.msra.gmra.mxu0 %vm227_vm2, %v14290_v8  ;;  %12340 = vmatmul.msk.bf16.gmra.mxu3 %vm227_vm2, %v1183_v10 }
  0x46   : > { %v1069_v13 = vshrl.u32 %v14314_v9, 16  ;;  %v1071_v14 = vshll.u32 %v14314_v9, 16  ;;  %423 = vst.msk [vmem:[#allocation3 + $0x18] sm:$0xf] %vm191_vm5, %v369_v3  ;;  %v1076_v15 = vshll.u32 %v14315_v11, 16  ;;  %12220 = vmatmul.msk.bf16.gmra.mxu2 %vm227_vm2, %v14304_v5  ;;  %v14291_v36 = vld [vmem:[#allocation3 + $0x8] sm:$0xff] }
  0x47   : > { %v14904_v16 = vld [vmem:[#allocation3 + $0x78] sm:$0xff]  ;;  %424 = vst.msk [vmem:[#allocation3 + $0x1c] sm:$0xf] %vm191_vm5, %v370_v7  ;;  %v1080_v38 = vshrl.u32 %v14315_v11, 16  ;;  %v218_v3 = vld [vmem:[%s14801_s25 + $0xc0] sm:$0xff]  ;;  %v200_v6 = vld [vmem:[%s14801_s25 + $0x30] sm:$0xff] }
  0x48   : > { %v1073_v18 = vrot.slane %v1071_v14, 1  ;;  %v314_v19 = vld [vmem:[#allocation2 + $0x28] sm:$0xff]  ;;  %249 = vst.msk [vmem:[#allocation2 + $0x111] sm:$0xff] %vm227_vm2, %v215_v12  ;;  %v1078_v20 = vrot.slane %v1076_v15, 1  ;;  %v1188_v25 = vshll.u32 %v14904_v16, 16  ;;  %v1192_v51 = vshrl.u32 %v14904_v16, 16 }
  0x49   : > { %v368_v21 = vpack.c.bf16 %v314_v19, %v314_v19  ;;  %288 = vst.msk [vmem:[#allocation2 + $0x113] sm:$0x40] %vm277_vm4, %v215_v12  ;;  %v14305_v42 = vld [vmem:[#allocation3 + $0x78] sm:$0xff]  ;;  %v201_v7 = vld [vmem:[%s14801_s25 + $0x38] sm:$0xff] }
  0x4a   : > { %v1074_v22 = vor.u32 %v1073_v18, %v1069_v13  ;;  %v342_v23 = vld [vmem:[#allocation2 + $0x108] sm:$0xff]  ;;  %232 = vst.msk [vmem:[#allocation2 + $0x49] sm:$0xff] %vm227_vm2, %v198_v17  ;;  %v1190_v31 = vrot.slane %v1188_v25, 1  ;;  %v1082_v46 = vor.u32 %v1080_v38, %v1078_v20 }
  0x4b   : > { %422 = vst.msk [vmem:[#allocation3 + $0x14] sm:$0xf] %vm191_vm5, %v368_v21  ;;  %v396_v26 = vpack.c.bf16 %v342_v23, %v342_v23 }
  0x4c   : > { %v1079_v28 = vsel %vm1067_vm6, %v1074_v22, %v1078_v20  ;;  %263 = vst.msk [vmem:[#allocation2 + $0x47] sm:$0x2] %vm260_vm3, %v198_v17  ;;  %v1191_v40 = vsel %vm1067_vm6, %v1186_v30, %v1190_v31  ;;  %v1194_v57 = vor.u32 %v1192_v51, %v1190_v31 }
  0x4d   : > { %12327 = vmatmul.msk.bf16.vlgmr.msra.gmra.mxu1 %vm227_vm2, %v1079_v28  ;;  %450 = vst.msk [vmem:[#allocation3 + $0x84] sm:$0xf] %vm191_vm5, %v396_v26 }
  0x4e   : > { %425 = vst.msk [vmem:[#allocation3 + $0x20] sm:$0xf] %vm191_vm5, %v371_v29  ;;  %v14939_v55 = vld [vmem:[#allocation3 + $0x18] sm:$0xff] }
  0x4f   : > { %v343_v32 = vld [vmem:[#allocation2 + $0x110] sm:$0xff]  ;;  %250 = vst.msk [vmem:[#allocation2 + $0x121] sm:$0xff] %vm227_vm2, %v216_v39  ;;  %v1092_v1 = vshll.u32 %v14939_v55, 16  ;;  %v14293_v25 = vld [vmem:[#allocation3 + $0x18] sm:$0xff]  ;;  %v1096_v26 = vshrl.u32 %v14939_v55, 16 }
  0x50   : > { %v344_v33 = vld [vmem:[#allocation2 + $0x118] sm:$0xff]  ;;  %v397_v34 = vpack.c.bf16 %v343_v32, %v343_v32  ;;  %251 = vst.msk [vmem:[#allocation2 + $0x129] sm:$0xff] %vm227_vm2, %v217_v43  ;;  %v219_v29 = vld [vmem:[%s14801_s25 + $0xc8] sm:$0xff]  ;;  %v202_v32 = vld [vmem:[%s14801_s25 + $0x40] sm:$0xff] }
  0x51   : > { %v398_v35 = vpack.c.bf16 %v344_v33, %v344_v33  ;;  %272 = vst.msk [vmem:[#allocation2 + $0x11f] sm:$0x2] %vm260_vm3, %v216_v39  ;;  %v1094_v9 = vrot.slane %v1092_v1, 1 }
  0x52   : > { %v14316_v37 = vld [vmem:[#allocation3 + $0x10] sm:$0xff]  ;;  %451 = vst.msk [vmem:[#allocation3 + $0x88] sm:$0xf] %vm191_vm5, %v397_v34 }
  0x53   : > { %452 = vst.msk [vmem:[#allocation3 + $0x8c] sm:$0xf] %vm191_vm5, %v398_v35  ;;  %v318_v41 = vld [vmem:[#allocation2 + $0x48] sm:$0xff]  ;;  %v1084_v44 = vshll.u32 %v14316_v37, 16  ;;  %v14292_v63 = vld [vmem:[#allocation3 + $0x10] sm:$0xff]  ;;  %v1088_v0 = vshrl.u32 %v14316_v37, 16  ;;  %v1098_v33 = vor.u32 %v1096_v26, %v1094_v9 }
  0x54   : > { %v372_v45 = vpack.c.bf16 %v318_v41, %v318_v41  ;;  %v14330_v49 = vld [vmem:[#allocation3 + $0x80] sm:$0xff]  ;;  %289 = vst.msk [vmem:[#allocation2 + $0x12b] sm:$0x40] %vm277_vm4, %v217_v43 }
  0x55   : > { %12207 = vmatmul.msk.bf16.gmra.mxu0 %vm227_vm2, %v14291_v36  ;;  %12341 = vmatmul.msk.bf16.gmra.mxu3 %vm227_vm2, %v1191_v40  ;;  %v1086_v47 = vrot.slane %v1084_v44, 1  ;;  %233 = vst.msk [vmem:[#allocation2 + $0x51] sm:$0xff] %vm227_vm2, %v199_v48  ;;  %v1196_v52 = vshll.u32 %v14330_v49, 16  ;;  %v14306_v5 = vld [vmem:[#allocation3 + $0x80] sm:$0xff]  ;;  %v1200_v13 = vshrl.u32 %v14330_v49, 16 }
  0x56   : > { %426 = vst.msk [vmem:[#allocation3 + $0x24] sm:$0xf] %vm191_vm5, %v372_v45  ;;  %12221 = vmatmul.msk.bf16.gmra.mxu2 %vm227_vm2, %v14305_v42 }
  0x57   : > { %v1087_v50 = vsel %vm1067_vm6, %v1082_v46, %v1086_v47  ;;  %280 = vst.msk [vmem:[#allocation2 + $0x53] sm:$0x40] %vm277_vm4, %v199_v48  ;;  %v346_v53 = vld [vmem:[#allocation2 + $0x128] sm:$0xff]  ;;  %v1198_v58 = vrot.slane %v1196_v52, 1  ;;  %v1090_v8 = vor.u32 %v1088_v0, %v1086_v47 }
  0x58   : > { %v400_v54 = vpack.c.bf16 %v346_v53, %v346_v53  ;;  %v345_v56 = vld [vmem:[#allocation2 + $0x120] sm:$0xff]  ;;  %252 = vst.msk [vmem:[#allocation2 + $0x139] sm:$0xff] %vm227_vm2, %v218_v3  ;;  %v220_v53 = vld [vmem:[%s14801_s25 + $0xd0] sm:$0xff] }
  0x59   : > { %v399_v59 = vpack.c.bf16 %v345_v56, %v345_v56  ;;  %v1199_v4 = vsel %vm1067_vm6, %v1194_v57, %v1198_v58  ;;  %273 = vst.msk [vmem:[#allocation2 + $0x137] sm:$0x2] %vm260_vm3, %v218_v3  ;;  %v1095_v11 = vsel %vm1067_vm6, %v1090_v8, %v1094_v9  ;;  %v1202_v19 = vor.u32 %v1200_v13, %v1198_v58  ;;  %v203_v57 = vld [vmem:[%s14801_s25 + $0x48] sm:$0xff] }
  0x5a   : > { %454 = vst.msk [vmem:[#allocation3 + $0x94] sm:$0xf] %vm191_vm5, %v400_v54  ;;  %v14331_v10 = vld [vmem:[#allocation3 + $0x88] sm:$0xff] }
  0x5b   : > { %453 = vst.msk [vmem:[#allocation3 + $0x90] sm:$0xf] %vm191_vm5, %v399_v59  ;;  %v347_v12 = vld [vmem:[#allocation2 + $0x130] sm:$0xff]  ;;  %v1204_v14 = vshll.u32 %v14331_v10, 16  ;;  %v14307_v31 = vld [vmem:[#allocation3 + $0x88] sm:$0xff]  ;;  %v1208_v37 = vshrl.u32 %v14331_v10, 16 }
  0x5c   : > { %v319_v60 = vld [vmem:[#allocation2 + $0x50] sm:$0xff]  ;;  %234 = vst.msk [vmem:[#allocation2 + $0x61] sm:$0xff] %vm227_vm2, %v200_v6  ;;  %v401_v15 = vpack.c.bf16 %v347_v12, %v347_v12  ;;  %v221_v54 = vld [vmem:[%s14801_s25 + $0xd8] sm:$0xff] }
  0x5d   : > { %12328 = vmatmul.msk.bf16.gmra.mxu1 %vm227_vm2, %v1087_v50  ;;  %v373_v62 = vpack.c.bf16 %v319_v60, %v319_v60  ;;  %235 = vst.msk [vmem:[#allocation2 + $0x69] sm:$0xff] %vm227_vm2, %v201_v7  ;;  %v14318_v17 = vld [vmem:[#allocation3 + $0x20] sm:$0xff]  ;;  %v1206_v20 = vrot.slane %v1204_v14, 1  ;;  %v222_v14 = vld [vmem:[%s14801_s25 + $0xe0] sm:$0xff] }
  0x5e   : > { %v320_v61 = vld [vmem:[#allocation2 + $0x58] sm:$0xff]  ;;  %264 = vst.msk [vmem:[#allocation2 + $0x5f] sm:$0x2] %vm260_vm3, %v200_v6  ;;  %v1100_v28 = vshll.u32 %v14318_v17, 16  ;;  %v14294_v50 = vld [vmem:[#allocation3 + $0x20] sm:$0xff]  ;;  %v1104_v51 = vshrl.u32 %v14318_v17, 16 }
  0x5f   : > { %v374_v2 = vpack.c.bf16 %v320_v61, %v320_v61  ;;  %427 = vst.msk [vmem:[#allocation3 + $0x28] sm:$0xf] %vm191_vm5, %v373_v62  ;;  %v1207_v30 = vsel %vm1067_vm6, %v1202_v19, %v1206_v20  ;;  %v1210_v47 = vor.u32 %v1208_v37, %v1206_v20  ;;  %v204_v17 = vld [vmem:[%s14801_s25 + $0x50] sm:$0xff] }
  0x60   : > { %281 = vst.msk [vmem:[#allocation2 + $0x6b] sm:$0x40] %vm277_vm4, %v201_v7  ;;  %v348_v16 = vld [vmem:[#allocation2 + $0x138] sm:$0xff]  ;;  %v1102_v34 = vrot.slane %v1100_v28, 1 }
  0x61   : > { %428 = vst.msk [vmem:[#allocation3 + $0x2c] sm:$0xf] %vm191_vm5, %v374_v2  ;;  %v402_v18 = vpack.c.bf16 %v348_v16, %v348_v16 }
  0x62   : > { %455 = vst.msk [vmem:[#allocation3 + $0x98] sm:$0xf] %vm191_vm5, %v401_v15  ;;  %v14332_v35 = vld [vmem:[#allocation3 + $0x90] sm:$0xff]  ;;  %v1103_v36 = vsel %vm1067_vm6, %v1098_v33, %v1102_v34  ;;  %v1106_v58 = vor.u32 %v1104_v51, %v1102_v34 }
  0x63   : > { %456 = vst.msk [vmem:[#allocation3 + $0x9c] sm:$0xf] %vm191_vm5, %v402_v18  ;;  %v1212_v38 = vshll.u32 %v14332_v35, 16  ;;  %v14308_v56 = vld [vmem:[#allocation3 + $0x90] sm:$0xff]  ;;  %v1216_v62 = vshrl.u32 %v14332_v35, 16  ;;  %v205_v18 = vld [vmem:[%s14801_s25 + $0x58] sm:$0xff] }
  0x64   : > { %v322_v21 = vld [vmem:[#allocation2 + $0x68] sm:$0xff]  ;;  %253 = vst.msk [vmem:[#allocation2 + $0x141] sm:$0xff] %vm227_vm2, %v219_v29 }
  0x65   : > { %12208 = vmatmul.msk.bf16.gmra.mxu0 %vm227_vm2, %v14292_v63  ;;  %12342 = vmatmul.msk.bf16.gmra.mxu3 %vm227_vm2, %v1199_v4  ;;  %v321_v22 = vld [vmem:[#allocation2 + $0x60] sm:$0xff]  ;;  %v376_v23 = vpack.c.bf16 %v322_v21, %v322_v21  ;;  %290 = vst.msk [vmem:[#allocation2 + $0x143] sm:$0x40] %vm277_vm4, %v219_v29  ;;  %v1214_v48 = vrot.slane %v1212_v38, 1 }
  0x66   : > { %12222 = vmatmul.msk.bf16.gmra.mxu2 %vm227_vm2, %v14306_v5  ;;  %v375_v24 = vpack.c.bf16 %v321_v22, %v321_v22  ;;  %236 = vst.msk [vmem:[#allocation2 + $0x79] sm:$0xff] %vm227_vm2, %v202_v32 }
  0x67   : > { %430 = vst.msk [vmem:[#allocation3 + $0x34] sm:$0xf] %vm191_vm5, %v376_v23  ;;  %v323_v43 = vld [vmem:[#allocation2 + $0x70] sm:$0xff]  ;;  %v1215_v55 = vsel %vm1067_vm6, %v1210_v47, %v1214_v48  ;;  %v1218_v6 = vor.u32 %v1216_v62, %v1214_v48 }
  0x68   : > { %429 = vst.msk [vmem:[#allocation3 + $0x30] sm:$0xf] %vm191_vm5, %v375_v24  ;;  %v14319_v44 = vld [vmem:[#allocation3 + $0x28] sm:$0xff]  ;;  %v377_v46 = vpack.c.bf16 %v323_v43, %v323_v43  ;;  %v206_v43 = vld [vmem:[%s14801_s25 + $0x60] sm:$0xff]  ;;  %v224_v62 = vld [vmem:[%s14801_s25 + $0xf0] sm:$0xff] }
  0x69   : > { %265 = vst.msk [vmem:[#allocation2 + $0x77] sm:$0x2] %vm260_vm3, %v202_v32  ;;  %v1108_v52 = vshll.u32 %v14319_v44, 16  ;;  %v1112_v12 = vshrl.u32 %v14319_v44, 16 }
  0x6a   : > { %431 = vst.msk [vmem:[#allocation3 + $0x38] sm:$0xf] %vm191_vm5, %v377_v46  ;;  %v14333_v60 = vld [vmem:[#allocation3 + $0x98] sm:$0xff] }
  0x6b   : > { %v349_v39 = vld [vmem:[#allocation2 + $0x140] sm:$0xff]  ;;  %254 = vst.msk [vmem:[#allocation2 + $0x151] sm:$0xff] %vm227_vm2, %v220_v53  ;;  %v1110_v59 = vrot.slane %v1108_v52, 1  ;;  %v1220_v63 = vshll.u32 %v14333_v60, 16  ;;  %v14309_v16 = vld [vmem:[#allocation3 + $0x98] sm:$0xff]  ;;  %v1224_v24 = vshrl.u32 %v14333_v60, 16 }
  0x6c   : > { %v350_v40 = vld [vmem:[#allocation2 + $0x148] sm:$0xff]  ;;  %v403_v42 = vpack.c.bf16 %v349_v39, %v349_v39  ;;  %255 = vst.msk [vmem:[#allocation2 + $0x159] sm:$0xff] %vm227_vm2, %v221_v54 }
  0x6d   : > { %12329 = vmatmul.msk.bf16.gmra.mxu1 %vm227_vm2, %v1095_v11  ;;  %v404_v41 = vpack.c.bf16 %v350_v40, %v350_v40  ;;  %274 = vst.msk [vmem:[#allocation2 + $0x14f] sm:$0x2] %vm260_vm3, %v220_v53  ;;  %v1111_v61 = vsel %vm1067_vm6, %v1106_v58, %v1110_v59  ;;  %v1222_v7 = vrot.slane %v1220_v63, 1  ;;  %v14295_v11 = vld [vmem:[#allocation3 + $0x28] sm:$0xff]  ;;  %v1114_v19 = vor.u32 %v1112_v12, %v1110_v59  ;;  %v223_v40 = vld [vmem:[%s14801_s25 + $0xe8] sm:$0xff] }
  0x6e   : > { %457 = vst.msk [vmem:[#allocation3 + $0xa0] sm:$0xf] %vm191_vm5, %v403_v42 }
  0x6f   : > { %458 = vst.msk [vmem:[#allocation3 + $0xa4] sm:$0xf] %vm191_vm5, %v404_v41  ;;  %v14320_v4 = vld [vmem:[#allocation3 + $0x30] sm:$0xff]  ;;  %v1223_v15 = vsel %vm1067_vm6, %v1218_v6, %v1222_v7  ;;  %v1226_v32 = vor.u32 %v1224_v24, %v1222_v7 }
  0x70   : > { %v324_v45 = vld [vmem:[#allocation2 + $0x78] sm:$0xff]  ;;  %291 = vst.msk [vmem:[#allocation2 + $0x15b] sm:$0x40] %vm277_vm4, %v221_v54  ;;  %v1116_v13 = vshll.u32 %v14320_v4, 16  ;;  %v14296_v37 = vld [vmem:[#allocation3 + $0x30] sm:$0xff]  ;;  %v1120_v38 = vshrl.u32 %v14320_v4, 16 }
  0x71   : > { %v378_v49 = vpack.c.bf16 %v324_v45, %v324_v45  ;;  %237 = vst.msk [vmem:[#allocation2 + $0x81] sm:$0xff] %vm227_vm2, %v203_v57 }
  0x72   : > { %282 = vst.msk [vmem:[#allocation2 + $0x83] sm:$0x40] %vm277_vm4, %v203_v57  ;;  %v1118_v20 = vrot.slane %v1116_v13, 1 }
  0x73   : > { %432 = vst.msk [vmem:[#allocation3 + $0x3c] sm:$0xf] %vm191_vm5, %v378_v49  ;;  %v352_v0 = vld [vmem:[#allocation2 + $0x158] sm:$0xff] }
  0x74   : > { %v351_v1 = vld [vmem:[#allocation2 + $0x150] sm:$0xff]  ;;  %v406_v2 = vpack.c.bf16 %v352_v0, %v352_v0  ;;  %256 = vst.msk [vmem:[#allocation2 + $0x169] sm:$0xff] %vm227_vm2, %v222_v14  ;;  %v1119_v22 = vsel %vm1067_vm6, %v1114_v19, %v1118_v20  ;;  %v1122_v44 = vor.u32 %v1120_v38, %v1118_v20 }
  0x75   : > { %12209 = vmatmul.msk.bf16.gmra.mxu0 %vm227_vm2, %v14293_v25  ;;  %12343 = vmatmul.msk.bf16.gmra.mxu3 %vm227_vm2, %v1207_v30  ;;  %v405_v3 = vpack.c.bf16 %v351_v1, %v351_v1  ;;  %275 = vst.msk [vmem:[#allocation2 + $0x167] sm:$0x2] %vm260_vm3, %v222_v14 }
  0x76   : > { %12223 = vmatmul.msk.bf16.gmra.mxu2 %vm227_vm2, %v14307_v31  ;;  %460 = vst.msk [vmem:[#allocation3 + $0xac] sm:$0xf] %vm191_vm5, %v406_v2  ;;  %v14334_v21 = vld [vmem:[#allocation3 + $0xa0] sm:$0xff] }
  0x77   : > { %459 = vst.msk [vmem:[#allocation3 + $0xa8] sm:$0xf] %vm191_vm5, %v405_v3  ;;  %v353_v23 = vld [vmem:[#allocation2 + $0x160] sm:$0xff]  ;;  %v1228_v25 = vshll.u32 %v14334_v21, 16  ;;  %v14310_v41 = vld [vmem:[#allocation3 + $0xa0] sm:$0xff] }
  0x78   : > { %v325_v5 = vld [vmem:[#allocation2 + $0x80] sm:$0xff]  ;;  %238 = vst.msk [vmem:[#allocation2 + $0x91] sm:$0xff] %vm227_vm2, %v204_v17  ;;  %v407_v28 = vpack.c.bf16 %v353_v23, %v353_v23 }
  0x79   : > { %v326_v8 = vld [vmem:[#allocation2 + $0x88] sm:$0xff]  ;;  %v379_v9 = vpack.c.bf16 %v325_v5, %v325_v5  ;;  %239 = vst.msk [vmem:[#allocation2 + $0x99] sm:$0xff] %vm227_vm2, %v205_v18  ;;  %v1230_v33 = vrot.slane %v1228_v25, 1 }
  0x7a   : > { %v380_v10 = vpack.c.bf16 %v326_v8, %v326_v8  ;;  %266 = vst.msk [vmem:[#allocation2 + $0x8f] sm:$0x2] %vm260_vm3, %v204_v17  ;;  %v15017_v30 = vld [vmem:[#allocation3 + $0x38] sm:$0xff] }
  0x7b   : > { %433 = vst.msk [vmem:[#allocation3 + $0x40] sm:$0xf] %vm191_vm5, %v379_v9  ;;  %v1124_v39 = vshll.u32 %v15017_v30, 16  ;;  %v1231_v42 = vsel %vm1067_vm6, %v1226_v32, %v1230_v33  ;;  %v14297_v2 = vld [vmem:[#allocation3 + $0x38] sm:$0xff]  ;;  %v1128_v3 = vshrl.u32 %v15017_v30, 16 }
  0x7c   : > { %434 = vst.msk [vmem:[#allocation3 + $0x44] sm:$0xf] %vm191_vm5, %v380_v10  ;;  %v354_v26 = vld [vmem:[#allocation2 + $0x168] sm:$0xff] }
  0x7d   : > { %12330 = vmatmul.msk.bf16.gmra.mxu1 %vm227_vm2, %v1103_v36  ;;  %283 = vst.msk [vmem:[#allocation2 + $0x9b] sm:$0x40] %vm277_vm4, %v205_v18  ;;  %v408_v29 = vpack.c.bf16 %v354_v26, %v354_v26  ;;  %v1126_v45 = vrot.slane %v1124_v39, 1  ;;  %v207_v8 = vld [vmem:[%s14801_s25 + $0x68] sm:$0xff] }
  0x7e   : > { %461 = vst.msk [vmem:[#allocation3 + $0xb0] sm:$0xf] %vm191_vm5, %v407_v28  ;;  %v15032_v46 = vld [vmem:[#allocation3 + $0xa8] sm:$0xff] }
  0x7f   : > { %462 = vst.msk [vmem:[#allocation3 + $0xb4] sm:$0xf] %vm191_vm5, %v408_v29  ;;  %v1127_v48 = vsel %vm1067_vm6, %v1122_v44, %v1126_v45  ;;  %v1236_v51 = vshll.u32 %v15032_v46, 16  ;;  %v14311_v7 = vld [vmem:[#allocation3 + $0xa8] sm:$0xff]  ;;  %v1130_v9 = vor.u32 %v1128_v3, %v1126_v45  ;;  %v1240_v17 = vshrl.u32 %v15032_v46, 16 }
  0x80   : > { %v328_v31 = vld [vmem:[#allocation2 + $0x98] sm:$0xff]  ;;  %257 = vst.msk [vmem:[#allocation2 + $0x171] sm:$0xff] %vm227_vm2, %v223_v40 }
  0x81   : > { %v327_v34 = vld [vmem:[#allocation2 + $0x90] sm:$0xff]  ;;  %v382_v35 = vpack.c.bf16 %v328_v31, %v328_v31  ;;  %292 = vst.msk [vmem:[#allocation2 + $0x173] sm:$0x40] %vm277_vm4, %v223_v40  ;;  %v1238_v60 = vrot.slane %v1236_v51, 1 }
  0x82   : > { %v381_v36 = vpack.c.bf16 %v327_v34, %v327_v34  ;;  %240 = vst.msk [vmem:[#allocation2 + $0xa9] sm:$0xff] %vm227_vm2, %v206_v43 }
  0x83   : > { %436 = vst.msk [vmem:[#allocation3 + $0x4c] sm:$0xf] %vm191_vm5, %v382_v35  ;;  %v1242_v25 = vor.u32 %v1240_v17, %v1238_v60  ;;  %v14298_v30 = vld [vmem:[#allocation3 + $0x40] sm:$0xff] }
  0x84   : > { %435 = vst.msk [vmem:[#allocation3 + $0x48] sm:$0xf] %vm191_vm5, %v381_v36 }
  0x85   : > { %12210 = vmatmul.msk.bf16.gmra.mxu0 %vm227_vm2, %v14294_v50  ;;  %12344 = vmatmul.msk.bf16.gmra.mxu3 %vm227_vm2, %v1215_v55  ;;  %267 = vst.msk [vmem:[#allocation2 + $0xa7] sm:$0x2] %vm260_vm3, %v206_v43  ;;  %v1232_v50 = vshrl.u32 %v14334_v21, 16  ;;  %v329_v55 = vld [vmem:[#allocation2 + $0xa0] sm:$0xff] }
  0x86   : > { %12224 = vmatmul.msk.bf16.gmra.mxu2 %vm227_vm2, %v14308_v56  ;;  %v15040_v56 = vld [vmem:[#allocation3 + $0x40] sm:$0xff]  ;;  %v383_v58 = vpack.c.bf16 %v329_v55, %v329_v55  ;;  %258 = vst.msk [vmem:[#allocation2 + $0x181] sm:$0xff] %vm227_vm2, %v224_v62  ;;  %v14312_v35 = vld [vmem:[#allocation3 + $0xb0] sm:$0xff] }
  0x87   : > { %v355_v49 = vld [vmem:[#allocation2 + $0x170] sm:$0xff]  ;;  %v1234_v59 = vor.u32 %v1232_v50, %v1230_v33  ;;  %v1132_v4 = vshll.u32 %v15040_v56, 16  ;;  %276 = vst.msk [vmem:[#allocation2 + $0x17f] sm:$0x2] %vm260_vm3, %v224_v62  ;;  %v1136_v31 = vshrl.u32 %v15040_v56, 16 }
  0x88   : > { %v356_v52 = vld [vmem:[#allocation2 + $0x178] sm:$0xff]  ;;  %v409_v53 = vpack.c.bf16 %v355_v49, %v355_v49  ;;  %437 = vst.msk [vmem:[#allocation3 + $0x50] sm:$0xf] %vm191_vm5, %v383_v58 }
  0x89   : > { %v410_v54 = vpack.c.bf16 %v356_v52, %v356_v52  ;;  %v1239_v6 = vsel %vm1067_vm6, %v1234_v59, %v1238_v60  ;;  %v1134_v10 = vrot.slane %v1132_v4, 1  ;;  %241 = vst.msk [vmem:[#allocation2 + $0xb1] sm:$0xff] %vm227_vm2, %v207_v8 }
  0x8a   : > { %463 = vst.msk [vmem:[#allocation3 + $0xb8] sm:$0xf] %vm191_vm5, %v409_v53 }
  0x8b   : > { %464 = vst.msk [vmem:[#allocation3 + $0xbc] sm:$0xf] %vm191_vm5, %v410_v54  ;;  %v1138_v36 = vor.u32 %v1136_v31, %v1134_v10 }
  0x8c   : > { %v330_v57 = vld [vmem:[#allocation2 + $0xa8] sm:$0xff]  ;;  %284 = vst.msk [vmem:[#allocation2 + $0xb3] sm:$0x40] %vm277_vm4, %v207_v8 }
  0x8d   : > { %12331 = vmatmul.msk.bf16.gmra.mxu1 %vm227_vm2, %v1111_v61  ;;  %v384_v61 = vpack.c.bf16 %v330_v57, %v330_v57  ;;  %v14299_v57 = vld [vmem:[#allocation3 + $0x48] sm:$0xff] }
  0x8e   : > { %v357_v19 = vld [vmem:[#allocation2 + $0x180] sm:$0xff] }
  0x8f   : > { %438 = vst.msk [vmem:[#allocation3 + $0x54] sm:$0xf] %vm191_vm5, %v384_v61  ;;  %v411_v20 = vpack.c.bf16 %v357_v19, %v357_v19 }
  0x90   : > { %v331_v21 = vld [vmem:[#allocation2 + $0xb0] sm:$0xff] }
  0x91   : > { %v385_v24 = vpack.c.bf16 %v331_v21, %v331_v21  ;;  %465 = vst.msk [vmem:[#allocation3 + $0xc0] sm:$0xf] %vm191_vm5, %v411_v20 }
  0x92   : > { %v15077_v39 = vld [vmem:[#allocation3 + $0xb8] sm:$0xff] }
  0x93   : > { %v332_v23 = vld [vmem:[#allocation2 + $0xb8] sm:$0xff]  ;;  %439 = vst.msk [vmem:[#allocation3 + $0x58] sm:$0xf] %vm191_vm5, %v385_v24  ;;  %v1256_v19 = vshrl.u32 %v15077_v39, 16 }
  0x94   : > { %v386_v28 = vpack.c.bf16 %v332_v23, %v332_v23 }
  0x95   : > { %12211 = vmatmul.msk.bf16.gmra.mxu0 %vm227_vm2, %v14295_v11  ;;  %12345 = vmatmul.msk.bf16.gmra.mxu3 %vm227_vm2, %v1223_v15  ;;  %v14336_v11 = vld [vmem:[#allocation3 + $0xb0] sm:$0xff]  ;;  %v1135_v15 = vsel %vm1067_vm6, %v1130_v9, %v1134_v10 }
  0x96   : > { %12225 = vmatmul.msk.bf16.gmra.mxu2 %vm227_vm2, %v14309_v16  ;;  %v1244_v18 = vshll.u32 %v14336_v11, 16  ;;  %440 = vst.msk [vmem:[#allocation3 + $0x5c] sm:$0xf] %vm191_vm5, %v386_v28  ;;  %v15086_v50 = vld [vmem:[#allocation3 + $0x50] sm:$0xff] }
  0x97   : > { %v1148_v60 = vshll.u32 %v15086_v50, 16 }
  0x98   : > { %v1246_v26 = vrot.slane %v1244_v18, 1  ;;  %v941_v54 = vld [vmem:[#allocation3 + $0xc0] sm:$0x1] }
  0x9a   : > { %v1247_v34 = vsel %vm1067_vm6, %v1242_v25, %v1246_v26  ;;  %v12956_v25 = vld [vmem:[%s18865_s1 + $0xe] sm:$0x3] }
  0x9d   : > { %12332 = vmatmul.msk.bf16.gmra.mxu1 %vm227_vm2, %v1119_v22  ;;  %v15064_v22 = vld [vmem:[#allocation3 + $0x48] sm:$0xff]  ;;  %v15111_v24 = vld [vmem:[#allocation3 + $0x58] sm:$0xff] }
  0x9e   : > { %v1140_v32 = vshll.u32 %v15064_v22, 16  ;;  %v1144_v59 = vshrl.u32 %v15064_v22, 16  ;;  %v15106_v22 = vld [vmem:[#allocation3 + $0x8] sm:$0xff] }
  0xa5   : > { %12212 = vmatmul.msk.bf16.gmra.mxu0 %vm227_vm2, %v14296_v37  ;;  %12346 = vmatmul.msk.bf16.gmra.mxu3 %vm227_vm2, %v1231_v42  ;;  %v1142_v37 = vrot.slane %v1140_v32, 1  ;;  %v1788_v32 = vrot.slane %v15106_v22, 1 }
  0xa6   : > { %12226 = vmatmul.msk.bf16.gmra.mxu2 %vm227_vm2, %v14310_v41 }
  0xa7   : > { %v1143_v41 = vsel %vm1067_vm6, %v1138_v36, %v1142_v37  ;;  %v1146_v4 = vor.u32 %v1144_v59, %v1142_v37  ;;  %v1152_v37 = vshrl.u32 %v15086_v50, 16 }
  0xa8   : > { %v785_v47 = vpop.f32.mrf.mxu2 }
  0xa9   : > { %869 = vst.msk [vmem:[#allocation4 + $0xc0] sm:$0xff] %vm227_vm2, %v785_v47  ;;  %v1248_v47 = vshrl.u32 %v14336_v11, 16  ;;  %v12354_v11 = vld [vmem:[#allocation3] sm:$0xe] }
  0xab   : > { %v1250_v52 = vor.u32 %v1248_v47, %v1246_v26 }
  0xad   : > { %12333 = vmatmul.msk.bf16.gmra.mxu1 %vm227_vm2, %v1127_v48  ;;  %v1252_v48 = vshll.u32 %v15077_v39, 16 }
  0xaf   : > { %v1254_v53 = vrot.slane %v1252_v48, 1 }
  0xb0   : > { %v1408_v63 = vpop.f32.mrf.mxu3  ;;  %v1492_v0 = vld [vmem:[#allocation4 + $0xc0] sm:$0xff]  ;;  %v787_v1 = vpop.f32.mrf.mxu2 }
  0xb1   : > { %v1540_v5 = vadd.f32 %v1492_v0, %v1408_v63  ;;  %870 = vst.msk [vmem:[#allocation4 + $0xc8] sm:$0xff] %vm227_vm2, %v787_v1  ;;  %v1255_v0 = vsel %vm1067_vm6, %v1250_v52, %v1254_v53  ;;  %v14313_v1 = vld [vmem:[#allocation3 + $0xb8] sm:$0xff]  ;;  %v1258_v28 = vor.u32 %v1256_v19, %v1254_v53 }
  0xb3   : > { %1588 = vst.msk [vmem:[#allocation4 + $0xc0] sm:$0xff] %vm227_vm2, %v1540_v5  ;;  %v1150_v5 = vrot.slane %v1148_v60, 1 }
  0xb5   : > { %12213 = vmatmul.msk.bf16.gmra.mxu0 %vm227_vm2, %v14297_v2  ;;  %12347 = vmatmul.msk.bf16.gmra.mxu3 %vm227_vm2, %v1239_v6  ;;  %v1041_v2 = vunpack.c.l.b16 %v941_v54  ;;  %v12835_v6 = vld [vmem:[%s18865_s1 + $0xc] sm:$0x3] }
  0xb6   : > { %12227 = vmatmul.msk.bf16.gmra.mxu2 %vm227_vm2, %v14311_v7  ;;  %v4234_v9 = vsel %vm712_vm0, %v12835_v6, 0  ;;  %v14386_v6 = vld [vmem:[#allocation3 + $0xc] sm:$0xff] }
  0xb7   : > { %v1066_v8 = vpack.c.b16 %v1041_v2, %v1041_v2  ;;  %4243 = vmatpush.bf16.msra.mxu2 %v4234_v9  ;;  %v1160_v2 = vshrl.u32 %v15111_v24, 16  ;;  %v2877_v22 = vshrl.u32 %v14386_v6, 16 }
  0xb8   : > { %v1410_v12 = vpop.f32.mrf.mxu3  ;;  %v1493_v13 = vld [vmem:[#allocation4 + $0xc8] sm:$0xff]  ;;  %v790_v14 = vpop.f32.mrf.mxu2 }
  0xb9   : > { %v1541_v16 = vadd.f32 %v1493_v13, %v1410_v12  ;;  %871 = vst.msk [vmem:[#allocation4 + $0xd0] sm:$0xff] %vm227_vm2, %v790_v14  ;;  %v14338_v12 = vld [vmem:[#allocation3] sm:$0xf0]  ;;  %v1151_v14 = vsel %vm1067_vm6, %v1146_v4, %v1150_v5  ;;  %v1260_v20 = vshll.u32 %v1066_v8, 16 }
  0xba   : > { %v12355_v23 = vor.u32 %v14338_v12, %v12354_v11 }
  0xbb   : > { %1589 = vst.msk [vmem:[#allocation4 + $0xc8] sm:$0xff] %vm227_vm2, %v1541_v16 }
  0xbc   : > { %v1787_v31 = vrot.slane %v12355_v23, 1 }
  0xbd   : > { %12334 = vmatmul.msk.bf16.gmra.mxu1 %vm227_vm2, %v1135_v15 }
  0xc0   : > { %v792_v29 = vpop.f32.mrf.mxu2  ;;  %v1494_v38 = vld [vmem:[#allocation4 + $0xd0] sm:$0xff] }
  0xc1   : > { %872 = vst.msk [vmem:[#allocation4 + $0xd8] sm:$0xff] %vm227_vm2, %v792_v29  ;;  %v1262_v29 = vrot.slane %v1260_v20, 1 }
  0xc2   : > { %v725_v33 = vpop.f32.mrf.mxu0 }
  0xc3   : > { %845 = vst.msk [vmem:[#allocation4] sm:$0xff] %vm227_vm2, %v725_v33 }
  0xc5   : > { %12214 = vmatmul.msk.bf16.gmra.mxu0 %vm227_vm2, %v14298_v30  ;;  %12348 = vmatmul.msk.bf16.gmra.mxu3 %vm227_vm2, %v1247_v34  ;;  %v4952_v30 = vsel %vm712_vm0, %v12956_v25, 0 }
  0xc6   : > { %12228 = vmatmul.msk.bf16.gmra.mxu2 %vm227_vm2, %v14312_v35  ;;  %4961 = vmatpush.bf16.msra.mxu3 %v4952_v30  ;;  %v14300_v35 = vld [vmem:[#allocation3 + $0x50] sm:$0xff]  ;;  %v12717_v30 = vld [vmem:[#allocation3 + $0xc] sm:$0xe] }
  0xc8   : > { %v1413_v40 = vpop.f32.mrf.mxu3  ;;  %v1495_v51 = vld [vmem:[#allocation4 + $0xd8] sm:$0xff] }
  0xc9   : > { %v1542_v43 = vadd.f32 %v1494_v38, %v1413_v40  ;;  %v795_v44 = vpop.f32.mrf.mxu2  ;;  %v1156_v38 = vshll.u32 %v15111_v24, 16 }
  0xca   : > { %v1348_v42 = vpop.f32.mrf.mxu1  ;;  %v727_v45 = vpop.f32.mrf.mxu0  ;;  %v1468_v46 = vld [vmem:[#allocation4] sm:$0xff]  ;;  %873 = vst.msk [vmem:[#allocation4 + $0xe0] sm:$0xff] %vm227_vm2, %v795_v44  ;;  %v1789_v44 = vsel %vm1786_vm7, %v1787_v31, %v1788_v32  ;;  %v14410_v31 = vld [vmem:[#allocation3 + $0xc] sm:$0xf0] }
  0xcb   : > { %846 = vst.msk [vmem:[#allocation4 + $0x8] sm:$0xff] %vm227_vm2, %v727_v45  ;;  %v1516_v49 = vadd.f32 %v1468_v46, %v1348_v42  ;;  %v1154_v45 = vor.u32 %v1152_v37, %v1150_v5  ;;  %v1158_v46 = vrot.slane %v1156_v38, 1  ;;  %v15170_v38 = vld [vmem:[#allocation3 + $0x14] sm:$0xff] }
  0xcc   : > { %1590 = vst.msk [vmem:[#allocation4 + $0xd0] sm:$0xff] %vm227_vm2, %v1542_v43 }
  0xcd   : > { %12335 = vmatmul.msk.bf16.gmra.mxu1 %vm227_vm2, %v1143_v41  ;;  %1564 = vst.msk [vmem:[#allocation4] sm:$0xff] %vm227_vm2, %v1516_v49  ;;  %v1263_v41 = vsel %vm1067_vm6, %v1258_v28, %v1262_v29  ;;  %v1159_v50 = vsel %vm1067_vm6, %v1154_v45, %v1158_v46  ;;  %v1162_v11 = vor.u32 %v1160_v2, %v1158_v46  ;;  %v3595_v46 = vrot.slane %v15170_v38, 1 }
  0xd0   : > { %v1415_v55 = vpop.f32.mrf.mxu3 }
  0xd1   : > { %v1543_v58 = vadd.f32 %v1495_v51, %v1415_v55  ;;  %v797_v61 = vpop.f32.mrf.mxu2  ;;  %v1496_v7 = vld [vmem:[#allocation4 + $0xe0] sm:$0xff] }
  0xd2   : > { %v1350_v56 = vpop.f32.mrf.mxu1  ;;  %v730_v62 = vpop.f32.mrf.mxu0  ;;  %v1469_v63 = vld [vmem:[#allocation4 + $0x8] sm:$0xff]  ;;  %874 = vst.msk [vmem:[#allocation4 + $0xe8] sm:$0xff] %vm227_vm2, %v797_v61 }
  0xd3   : > { %847 = vst.msk [vmem:[#allocation4 + $0x10] sm:$0xff] %vm227_vm2, %v730_v62  ;;  %v1517_v3 = vadd.f32 %v1469_v63, %v1350_v56  ;;  %v15132_v56 = vld [vmem:[#allocation3 + $0x10] sm:$0xff]  ;;  %v14301_v63 = vld [vmem:[#allocation3 + $0x58] sm:$0xff] }
  0xd4   : > { %1591 = vst.msk [vmem:[#allocation4 + $0xd8] sm:$0xff] %vm227_vm2, %v1543_v58  ;;  %v1790_v60 = vrot.slane %v15132_v56, 1 }
  0xd5   : > { %1565 = vst.msk [vmem:[#allocation4 + $0x8] sm:$0xff] %vm227_vm2, %v1517_v3  ;;  %12215 = vmatmul.msk.bf16.gmra.mxu0 %vm227_vm2, %v14299_v57  ;;  %12349 = vmatmul.msk.bf16.gmra.mxu3 %vm227_vm2, %v1255_v0  ;;  %v13077_v57 = vld [vmem:[%s18865_s1 + $0x10] sm:$0x3] }
  0xd6   : > { %12229 = vmatmul.msk.bf16.gmra.mxu2 %vm227_vm2, %v14313_v1  ;;  %v5523_v59 = vsel %vm712_vm0, %v13077_v57, 0  ;;  %v14362_v1 = vld [vmem:[#allocation3 + $0xc] sm:$0xff]  ;;  %v1791_v9 = vsel %vm1786_vm7, %v1788_v32, %v1790_v60 }
  0xd7   : > { %5532 = vmatpush.bf16.msra.mxu0 %v5523_v59  ;;  %v15188_v59 = vld [vmem:[#allocation3 + $0x20] sm:$0xff] }
  0xd8   : > { %v1418_v10 = vpop.f32.mrf.mxu3 }
  0xd9   : > { %v1544_v15 = vadd.f32 %v1496_v7, %v1418_v10  ;;  %v800_v16 = vpop.f32.mrf.mxu2  ;;  %v1497_v26 = vld [vmem:[#allocation4 + $0xe8] sm:$0xff]  ;;  %v12714_v7 = vld [vmem:[%s18865_s1 + $0xa] sm:$0x3] }
  0xda   : > { %v1353_v13 = vpop.f32.mrf.mxu1  ;;  %v732_v17 = vpop.f32.mrf.mxu0  ;;  %v1470_v18 = vld [vmem:[#allocation4 + $0x10] sm:$0xff]  ;;  %875 = vst.msk [vmem:[#allocation4 + $0xf0] sm:$0xff] %vm227_vm2, %v800_v16  ;;  %v3716_v10 = vsel %vm712_vm0, %v12714_v7, 0 }
  0xdb   : > { %848 = vst.msk [vmem:[#allocation4 + $0x18] sm:$0xff] %vm227_vm2, %v732_v17  ;;  %v1518_v21 = vadd.f32 %v1470_v18, %v1353_v13  ;;  %3725 = vmatpush.bf16.msrb.mxu1 %v3716_v10  ;;  %v15157_v13 = vld [vmem:[#allocation3 + $0x14] sm:$0xff]  ;;  %v1167_v17 = vsel %vm1067_vm6, %v1162_v11, %v14837_v27 }
  0xdc   : > { %1592 = vst.msk [vmem:[#allocation4 + $0xe0] sm:$0xff] %vm227_vm2, %v1544_v15  ;;  %v2884_v24 = vshll.u32 %v15157_v13, 16  ;;  %v2888_v56 = vshrl.u32 %v15157_v13, 16  ;;  %v14389_v13 = vld [vmem:[#allocation3 + $0x24] sm:$0xff] }
  0xdd   : > { %12336 = vmatmul.msk.bf16.gmra.mxu1 %vm227_vm2, %v1151_v14  ;;  %1566 = vst.msk [vmem:[#allocation4 + $0x10] sm:$0xff] %vm227_vm2, %v1518_v21  ;;  %v2879_v14 = vshll.u32 %v14386_v6, 16 }
  0xde   : > { %v2886_v29 = vrot.slane %v2884_v24, 1  ;;  %v15209_v24 = vld [vmem:[#allocation3 + $0x28] sm:$0xff] }
  0xdf   : > { %v2881_v23 = vrot.slane %v2879_v14, 1 }
  0xe0   : > { %v1420_v33 = vpop.f32.mrf.mxu3 }
  0xe1   : > { %v1545_v36 = vadd.f32 %v1497_v26, %v1420_v33  ;;  %v802_v39 = vpop.f32.mrf.mxu2  ;;  %v1498_v47 = vld [vmem:[#allocation4 + $0xf0] sm:$0xff]  ;;  %v15164_v26 = vld [vmem:[#allocation3 + $0x18] sm:$0xff]  ;;  %v2882_v28 = vor.u32 %v2881_v23, %v2877_v22  ;;  %v2900_v22 = vshll.u32 %v14389_v13, 16 }
  0xe2   : > { %v1355_v34 = vpop.f32.mrf.mxu1  ;;  %v735_v40 = vpop.f32.mrf.mxu0  ;;  %v1471_v42 = vld [vmem:[#allocation4 + $0x18] sm:$0xff]  ;;  %876 = vst.msk [vmem:[#allocation4 + $0xf8] sm:$0xff] %vm227_vm2, %v802_v39  ;;  %v1792_v32 = vrot.slane %v15164_v26, 1  ;;  %v12718_v39 = vor.u32 %v14410_v31, %v12717_v30 }
  0xe3   : > { %849 = vst.msk [vmem:[#allocation4 + $0x20] sm:$0xff] %vm227_vm2, %v735_v40  ;;  %v1519_v43 = vadd.f32 %v1471_v42, %v1355_v34 }
  0xe4   : > { %1593 = vst.msk [vmem:[#allocation4 + $0xe8] sm:$0xff] %vm227_vm2, %v1545_v36  ;;  %v14363_v36 = vld [vmem:[#allocation3 + $0x14] sm:$0xff]  ;;  %v3594_v45 = vrot.slane %v12718_v39, 1 }
  0xe5   : > { %1567 = vst.msk [vmem:[#allocation4 + $0x18] sm:$0xff] %vm227_vm2, %v1519_v43  ;;  %12216 = vmatmul.msk.bf16.gmra.mxu0 %vm227_vm2, %v14300_v35  ;;  %12350 = vmatmul.msk.bf16.gmra.mxu3 %vm227_vm2, %v1263_v41  ;;  %v2887_v41 = vsel %vm1067_vm6, %v2882_v28, %v2886_v29  ;;  %v1796_v28 = vrot.slane %v15209_v24, 1 }
  0xe6   : > { %12448 = vmatmul.msk.bf16.vlgmr.msrb.gmra.mxu2 %vm227_vm2, %v1789_v44  ;;  %v1793_v44 = vsel %vm1786_vm7, %v1790_v60, %v1792_v32 }
  0xe8   : > { %v1423_v48 = vpop.f32.mrf.mxu3 }
  0xe9   : > { %v1546_v51 = vadd.f32 %v1498_v47, %v1423_v48  ;;  %v805_v52 = vpop.f32.mrf.mxu2  ;;  %v1499_v58 = vld [vmem:[#allocation4 + $0xf8] sm:$0xff] }
  0xea   : > { %v1358_v49 = vpop.f32.mrf.mxu1  ;;  %v737_v53 = vpop.f32.mrf.mxu0  ;;  %v1472_v54 = vld [vmem:[#allocation4 + $0x20] sm:$0xff]  ;;  %877 = vst.msk [vmem:[#allocation4 + $0x100] sm:$0xff] %vm227_vm2, %v805_v52 }
  0xeb   : > { %850 = vst.msk [vmem:[#allocation4 + $0x28] sm:$0xff] %vm227_vm2, %v737_v53  ;;  %v1520_v55 = vadd.f32 %v1472_v54, %v1358_v49  ;;  %v14388_v48 = vld [vmem:[#allocation3 + $0x1c] sm:$0xff]  ;;  %v3596_v53 = vsel %vm1786_vm7, %v3594_v45, %v3595_v46 }
  0xec   : > { %1594 = vst.msk [vmem:[#allocation4 + $0xf0] sm:$0xff] %vm227_vm2, %v1546_v51  ;;  %v2892_v57 = vshll.u32 %v14388_v48, 16 }
  0xed   : > { %12337 = vmatmul.msk.bf16.gmra.mxu1 %vm227_vm2, %v1159_v50  ;;  %1568 = vst.msk [vmem:[#allocation4 + $0x20] sm:$0xff] %vm227_vm2, %v1520_v55 }
  0xf0   : > { %v1425_v61 = vpop.f32.mrf.mxu3 }
  0xf1   : > { %v1547_v0 = vadd.f32 %v1499_v58, %v1425_v61  ;;  %v807_v3 = vpop.f32.mrf.mxu2  ;;  %v1500_v12 = vld [vmem:[#allocation4 + $0x100] sm:$0xff]  ;;  %v2890_v61 = vor.u32 %v2888_v56, %v2886_v29 }
  0xf2   : > { %v1360_v62 = vpop.f32.mrf.mxu1  ;;  %v740_v4 = vpop.f32.mrf.mxu0  ;;  %v1473_v5 = vld [vmem:[#allocation4 + $0x28] sm:$0xff]  ;;  %878 = vst.msk [vmem:[#allocation4 + $0x108] sm:$0xff] %vm227_vm2, %v807_v3  ;;  %v14364_v3 = vld [vmem:[#allocation3 + $0x1c] sm:$0xff] }
  0xf3   : > { %851 = vst.msk [vmem:[#allocation4 + $0x30] sm:$0xff] %vm227_vm2, %v740_v4  ;;  %v1521_v8 = vadd.f32 %v1473_v5, %v1360_v62  ;;  %v2894_v62 = vrot.slane %v2892_v57, 1  ;;  %v15194_v5 = vld [vmem:[#allocation3 + $0x1c] sm:$0xff] }
  0xf4   : > { %1595 = vst.msk [vmem:[#allocation4 + $0xf8] sm:$0xff] %vm227_vm2, %v1547_v0  ;;  %v3597_v11 = vrot.slane %v15194_v5, 1 }
  0xf5   : > { %1569 = vst.msk [vmem:[#allocation4 + $0x28] sm:$0xff] %vm227_vm2, %v1521_v8  ;;  %12217 = vmatmul.msk.bf16.gmra.mxu0 %vm227_vm2, %v14301_v63  ;;  %12569 = vmatmul.msk.bf16.vlgmr.msrb.gmra.mxu3 %vm227_vm2, %v14362_v1  ;;  %v1794_v63 = vrot.slane %v15188_v59, 1  ;;  %v2895_v8 = vsel %vm1067_vm6, %v2890_v61, %v2894_v62  ;;  %v14366_v61 = vld [vmem:[#allocation3 + $0x2c] sm:$0xff] }
  0xf6   : > { %12449 = vmatmul.msk.bf16.gmra.mxu2 %vm227_vm2, %v1791_v9 }
  0xf7   : > { %v1795_v10 = vsel %vm1786_vm7, %v1792_v32, %v1794_v63  ;;  %v14365_v32 = vld [vmem:[#allocation3 + $0x24] sm:$0xff]  ;;  %v1797_v39 = vsel %vm1786_vm7, %v1794_v63, %v1796_v28  ;;  %v15236_v63 = vld [vmem:[#allocation3 + $0x2c] sm:$0xff] }
  0xf8   : > { %v1428_v15 = vpop.f32.mrf.mxu3  ;;  %v3601_v5 = vrot.slane %v15236_v63, 1 }
  0xf9   : > { %v1548_v18 = vadd.f32 %v1500_v12, %v1428_v15  ;;  %v810_v19 = vpop.f32.mrf.mxu2  ;;  %v1501_v27 = vld [vmem:[#allocation4 + $0x108] sm:$0xff] }
  0xfa   : > { %v1363_v16 = vpop.f32.mrf.mxu1  ;;  %v742_v20 = vpop.f32.mrf.mxu0  ;;  %v1474_v21 = vld [vmem:[#allocation4 + $0x30] sm:$0xff]  ;;  %879 = vst.msk [vmem:[#allocation4 + $0x110] sm:$0xff] %vm227_vm2, %v810_v19 }
  0xfb   : > { %852 = vst.msk [vmem:[#allocation4 + $0x38] sm:$0xff] %vm227_vm2, %v742_v20  ;;  %v1522_v25 = vadd.f32 %v1474_v21, %v1363_v16  ;;  %v2896_v21 = vshrl.u32 %v14388_v48, 16 }
  0xfc   : > { %1596 = vst.msk [vmem:[#allocation4 + $0x100] sm:$0xff] %vm227_vm2, %v1548_v18  ;;  %v3598_v18 = vsel %vm1786_vm7, %v3595_v46, %v3597_v11 }
  0xfd   : > { %12338 = vmatmul.msk.bf16.gmra.mxu1 %vm227_vm2, %v1167_v17  ;;  %1570 = vst.msk [vmem:[#allocation4 + $0x30] sm:$0xff] %vm227_vm2, %v1522_v25  ;;  %v2898_v26 = vor.u32 %v2896_v21, %v2894_v62 }
 0x100   : > { %v1430_v33 = vpop.f32.mrf.mxu3 }
 0x101   : > { %v1549_v35 = vadd.f32 %v1501_v27, %v1430_v33  ;;  %v812_v37 = vpop.f32.mrf.mxu2  ;;  %v1502_v47 = vld [vmem:[#allocation4 + $0x110] sm:$0xff]  ;;  %v2902_v27 = vrot.slane %v2900_v22, 1 }
 0x102   : > { %v1365_v34 = vpop.f32.mrf.mxu1  ;;  %v745_v40 = vpop.f32.mrf.mxu0  ;;  %v1475_v42 = vld [vmem:[#allocation4 + $0x38] sm:$0xff]  ;;  %880 = vst.msk [vmem:[#allocation4 + $0x118] sm:$0xff] %vm227_vm2, %v812_v37 }
 0x103   : > { %853 = vst.msk [vmem:[#allocation4 + $0x40] sm:$0xff] %vm227_vm2, %v745_v40  ;;  %v1523_v43 = vadd.f32 %v1475_v42, %v1365_v34  ;;  %v15215_v34 = vld [vmem:[#allocation3 + $0x24] sm:$0xff]  ;;  %v2903_v37 = vsel %vm1067_vm6, %v2898_v26, %v2902_v27  ;;  %v14367_v26 = vld [vmem:[#allocation3 + $0x34] sm:$0xff] }
 0x104   : > { %1597 = vst.msk [vmem:[#allocation4 + $0x108] sm:$0xff] %vm227_vm2, %v1549_v35  ;;  %v3599_v40 = vrot.slane %v15215_v34, 1 }
 0x105   : > { %1571 = vst.msk [vmem:[#allocation4 + $0x38] sm:$0xff] %vm227_vm2, %v1523_v43  ;;  %12690 = vmatmul.msk.bf16.vlgmr.msrb.gmra.mxu0 %vm227_vm2, %v2887_v41  ;;  %12570 = vmatmul.msk.bf16.gmra.mxu3 %vm227_vm2, %v14363_v36  ;;  %v14390_v41 = vld [vmem:[#allocation3 + $0x2c] sm:$0xff] }
 0x106   : > { %12450 = vmatmul.msk.bf16.gmra.mxu2 %vm227_vm2, %v1793_v44 }
 0x108   : > { %v1433_v49 = vpop.f32.mrf.mxu3 }
 0x109   : > { %v1550_v51 = vadd.f32 %v1502_v47, %v1433_v49  ;;  %v815_v52 = vpop.f32.mrf.mxu2  ;;  %v1503_v60 = vld [vmem:[#allocation4 + $0x118] sm:$0xff]  ;;  %v3600_v47 = vsel %vm1786_vm7, %v3597_v11, %v3599_v40 }
 0x10a   : > { %v1368_v50 = vpop.f32.mrf.mxu1  ;;  %v747_v54 = vpop.f32.mrf.mxu0  ;;  %v1476_v55 = vld [vmem:[#allocation4 + $0x40] sm:$0xff]  ;;  %881 = vst.msk [vmem:[#allocation4 + $0x120] sm:$0xff] %vm227_vm2, %v815_v52 }
 0x10b   : > { %854 = vst.msk [vmem:[#allocation4 + $0x48] sm:$0xff] %vm227_vm2, %v747_v54  ;;  %v1524_v58 = vadd.f32 %v1476_v55, %v1368_v50  ;;  %v2904_v50 = vshrl.u32 %v14389_v13, 16 }
 0x10c   : > { %1598 = vst.msk [vmem:[#allocation4 + $0x110] sm:$0xff] %vm227_vm2, %v1550_v51  ;;  %v2908_v51 = vshll.u32 %v14390_v41, 16 }
 0x10d   : > { %12811 = vmatmul.msk.bf16.vlgmr.msrb.gmra.mxu1 %vm227_vm2, %v3596_v53  ;;  %1572 = vst.msk [vmem:[#allocation4 + $0x40] sm:$0xff] %vm227_vm2, %v1524_v58  ;;  %v15230_v53 = vld [vmem:[#allocation3 + $0x30] sm:$0xff]  ;;  %v2906_v55 = vor.u32 %v2904_v50, %v2902_v27 }
 0x10e   : > { %v2910_v56 = vrot.slane %v2908_v51, 1  ;;  %v1798_v57 = vrot.slane %v15230_v53, 1 }
 0x110   : > { %v1435_v0 = vpop.f32.mrf.mxu3 }
 0x111   : > { %v1551_v2 = vadd.f32 %v1503_v60, %v1435_v0  ;;  %v817_v4 = vpop.f32.mrf.mxu2  ;;  %v1504_v12 = vld [vmem:[#allocation4 + $0x120] sm:$0xff] }
 0x112   : > { %v1370_v1 = vpop.f32.mrf.mxu1  ;;  %v750_v6 = vpop.f32.mrf.mxu0  ;;  %v1477_v7 = vld [vmem:[#allocation4 + $0x48] sm:$0xff]  ;;  %882 = vst.msk [vmem:[#allocation4 + $0x128] sm:$0xff] %vm227_vm2, %v817_v4  ;;  %v1799_v4 = vsel %vm1786_vm7, %v1796_v28, %v1798_v57  ;;  %v15257_v28 = vld [vmem:[#allocation3 + $0x34] sm:$0xff] }
 0x113   : > { %855 = vst.msk [vmem:[#allocation4 + $0x50] sm:$0xff] %vm227_vm2, %v750_v6  ;;  %v1525_v9 = vadd.f32 %v1477_v7, %v1370_v1  ;;  %v14391_v7 = vld [vmem:[#allocation3 + $0x34] sm:$0xff]  ;;  %v3603_v34 = vrot.slane %v15257_v28, 1 }
 0x114   : > { %1599 = vst.msk [vmem:[#allocation4 + $0x118] sm:$0xff] %vm227_vm2, %v1551_v2  ;;  %v2911_v2 = vsel %vm1067_vm6, %v2906_v55, %v2910_v56  ;;  %v14368_v55 = vld [vmem:[#allocation3 + $0x3c] sm:$0xff] }
 0x115   : > { %1573 = vst.msk [vmem:[#allocation4 + $0x48] sm:$0xff] %vm227_vm2, %v1525_v9  ;;  %12691 = vmatmul.msk.bf16.gmra.mxu0 %vm227_vm2, %v2895_v8  ;;  %12571 = vmatmul.msk.bf16.gmra.mxu3 %vm227_vm2, %v14364_v3 }
 0x116   : > { %12451 = vmatmul.msk.bf16.gmra.mxu2 %vm227_vm2, %v1795_v10 }
 0x118   : > { %v1438_v14 = vpop.f32.mrf.mxu3 }
 0x119   : > { %v1552_v16 = vadd.f32 %v1504_v12, %v1438_v14  ;;  %v820_v17 = vpop.f32.mrf.mxu2  ;;  %v1505_v25 = vld [vmem:[#allocation4 + $0x128] sm:$0xff]  ;;  %v3602_v12 = vsel %vm1786_vm7, %v3599_v40, %v3601_v5 }
 0x11a   : > { %v1373_v15 = vpop.f32.mrf.mxu1  ;;  %v752_v19 = vpop.f32.mrf.mxu0  ;;  %v1478_v20 = vld [vmem:[#allocation4 + $0x50] sm:$0xff]  ;;  %883 = vst.msk [vmem:[#allocation4 + $0x130] sm:$0xff] %vm227_vm2, %v820_v17 }
 0x11b   : > { %856 = vst.msk [vmem:[#allocation4 + $0x58] sm:$0xff] %vm227_vm2, %v752_v19  ;;  %v1526_v23 = vadd.f32 %v1478_v20, %v1373_v15  ;;  %v2912_v15 = vshrl.u32 %v14390_v41, 16 }
 0x11c   : > { %1600 = vst.msk [vmem:[#allocation4 + $0x120] sm:$0xff] %vm227_vm2, %v1552_v16  ;;  %v2916_v16 = vshll.u32 %v14391_v7, 16 }
 0x11d   : > { %12812 = vmatmul.msk.bf16.gmra.mxu1 %vm227_vm2, %v3598_v18  ;;  %1574 = vst.msk [vmem:[#allocation4 + $0x50] sm:$0xff] %vm227_vm2, %v1526_v23  ;;  %v15251_v18 = vld [vmem:[#allocation3 + $0x38] sm:$0xff]  ;;  %v2914_v20 = vor.u32 %v2912_v15, %v2910_v56 }
 0x11e   : > { %v2918_v21 = vrot.slane %v2916_v16, 1  ;;  %v1800_v22 = vrot.slane %v15251_v18, 1 }
 0x120   : > { %v1440_v29 = vpop.f32.mrf.mxu3 }
 0x121   : > { %v1553_v31 = vadd.f32 %v1505_v25, %v1440_v29  ;;  %v822_v33 = vpop.f32.mrf.mxu2  ;;  %v1506_v42 = vld [vmem:[#allocation4 + $0x130] sm:$0xff] }
 0x122   : > { %v1375_v30 = vpop.f32.mrf.mxu1  ;;  %v755_v35 = vpop.f32.mrf.mxu0  ;;  %v1479_v36 = vld [vmem:[#allocation4 + $0x58] sm:$0xff]  ;;  %884 = vst.msk [vmem:[#allocation4 + $0x138] sm:$0xff] %vm227_vm2, %v822_v33  ;;  %v1801_v33 = vsel %vm1786_vm7, %v1798_v57, %v1800_v22 }
 0x123   : > { %857 = vst.msk [vmem:[#allocation4 + $0x60] sm:$0xff] %vm227_vm2, %v755_v35  ;;  %v1527_v38 = vadd.f32 %v1479_v36, %v1375_v30  ;;  %v14392_v36 = vld [vmem:[#allocation3 + $0x3c] sm:$0xff] }
 0x124   : > { %1601 = vst.msk [vmem:[#allocation4 + $0x128] sm:$0xff] %vm227_vm2, %v1553_v31  ;;  %v2919_v31 = vsel %vm1067_vm6, %v2914_v20, %v2918_v21  ;;  %v15278_v57 = vld [vmem:[#allocation3 + $0x3c] sm:$0xff]  ;;  %v14369_v20 = vld [vmem:[#allocation3 + $0x44] sm:$0xff] }
 0x125   : > { %1575 = vst.msk [vmem:[#allocation4 + $0x58] sm:$0xff] %vm227_vm2, %v1527_v38  ;;  %12692 = vmatmul.msk.bf16.gmra.mxu0 %vm227_vm2, %v2903_v37  ;;  %12572 = vmatmul.msk.bf16.gmra.mxu3 %vm227_vm2, %v14365_v32  ;;  %v3605_v63 = vrot.slane %v15278_v57, 1 }
 0x126   : > { %12452 = vmatmul.msk.bf16.gmra.mxu2 %vm227_vm2, %v1797_v39 }
 0x128   : > { %v1443_v43 = vpop.f32.mrf.mxu3 }
 0x129   : > { %v1554_v45 = vadd.f32 %v1506_v42, %v1443_v43  ;;  %v825_v46 = vpop.f32.mrf.mxu2  ;;  %v1507_v54 = vld [vmem:[#allocation4 + $0x138] sm:$0xff]  ;;  %v3604_v42 = vsel %vm1786_vm7, %v3601_v5, %v3603_v34 }
 0x12a   : > { %v1378_v44 = vpop.f32.mrf.mxu1  ;;  %v757_v48 = vpop.f32.mrf.mxu0  ;;  %v1480_v49 = vld [vmem:[#allocation4 + $0x60] sm:$0xff]  ;;  %885 = vst.msk [vmem:[#allocation4 + $0x140] sm:$0xff] %vm227_vm2, %v825_v46 }
 0x12b   : > { %858 = vst.msk [vmem:[#allocation4 + $0x68] sm:$0xff] %vm227_vm2, %v757_v48  ;;  %v1528_v52 = vadd.f32 %v1480_v49, %v1378_v44  ;;  %v2920_v44 = vshrl.u32 %v14391_v7, 16 }
 0x12c   : > { %1602 = vst.msk [vmem:[#allocation4 + $0x130] sm:$0xff] %vm227_vm2, %v1554_v45  ;;  %v2924_v45 = vshll.u32 %v14392_v36, 16 }
 0x12d   : > { %12813 = vmatmul.msk.bf16.gmra.mxu1 %vm227_vm2, %v3600_v47  ;;  %1576 = vst.msk [vmem:[#allocation4 + $0x60] sm:$0xff] %vm227_vm2, %v1528_v52  ;;  %v15272_v47 = vld [vmem:[#allocation3 + $0x40] sm:$0xff]  ;;  %v2922_v49 = vor.u32 %v2920_v44, %v2918_v21 }
 0x12e   : > { %v2926_v50 = vrot.slane %v2924_v45, 1  ;;  %v1802_v51 = vrot.slane %v15272_v47, 1 }
 0x130   : > { %v1445_v58 = vpop.f32.mrf.mxu3 }
 0x131   : > { %v1555_v60 = vadd.f32 %v1507_v54, %v1445_v58  ;;  %v827_v62 = vpop.f32.mrf.mxu2  ;;  %v1508_v6 = vld [vmem:[#allocation4 + $0x140] sm:$0xff] }
 0x132   : > { %v1380_v59 = vpop.f32.mrf.mxu1  ;;  %v760_v0 = vpop.f32.mrf.mxu0  ;;  %v1481_v1 = vld [vmem:[#allocation4 + $0x68] sm:$0xff]  ;;  %886 = vst.msk [vmem:[#allocation4 + $0x148] sm:$0xff] %vm227_vm2, %v827_v62  ;;  %v1803_v62 = vsel %vm1786_vm7, %v1800_v22, %v1802_v51 }
 0x133   : > { %859 = vst.msk [vmem:[#allocation4 + $0x70] sm:$0xff] %vm227_vm2, %v760_v0  ;;  %v1529_v3 = vadd.f32 %v1481_v1, %v1380_v59  ;;  %v14393_v1 = vld [vmem:[#allocation3 + $0x44] sm:$0xff] }
 0x134   : > { %1603 = vst.msk [vmem:[#allocation4 + $0x138] sm:$0xff] %vm227_vm2, %v1555_v60  ;;  %v2927_v60 = vsel %vm1067_vm6, %v2922_v49, %v2926_v50  ;;  %v15299_v22 = vld [vmem:[#allocation3 + $0x44] sm:$0xff] }
 0x135   : > { %1577 = vst.msk [vmem:[#allocation4 + $0x68] sm:$0xff] %vm227_vm2, %v1529_v3  ;;  %12693 = vmatmul.msk.bf16.gmra.mxu0 %vm227_vm2, %v2911_v2  ;;  %12573 = vmatmul.msk.bf16.gmra.mxu3 %vm227_vm2, %v14366_v61  ;;  %v3607_v28 = vrot.slane %v15299_v22, 1  ;;  %v2043_v22 = vld [vmem:[#allocation4 + $0x18] sm:$0xff] }
 0x136   : > { %12453 = vmatmul.msk.bf16.gmra.mxu2 %vm227_vm2, %v1799_v4 }
 0x138   : > { %v1448_v8 = vpop.f32.mrf.mxu3 }
 0x139   : > { %v1556_v10 = vadd.f32 %v1508_v6, %v1448_v8  ;;  %v830_v11 = vpop.f32.mrf.mxu2  ;;  %v1509_v19 = vld [vmem:[#allocation4 + $0x148] sm:$0xff]  ;;  %v3606_v6 = vsel %vm1786_vm7, %v3603_v34, %v3605_v63 }
 0x13a   : > { %v1383_v9 = vpop.f32.mrf.mxu1  ;;  %v762_v13 = vpop.f32.mrf.mxu0  ;;  %v1482_v14 = vld [vmem:[#allocation4 + $0x70] sm:$0xff]  ;;  %887 = vst.msk [vmem:[#allocation4 + $0x150] sm:$0xff] %vm227_vm2, %v830_v11 }
 0x13b   : > { %860 = vst.msk [vmem:[#allocation4 + $0x78] sm:$0xff] %vm227_vm2, %v762_v13  ;;  %v1530_v17 = vadd.f32 %v1482_v14, %v1383_v9  ;;  %v2928_v9 = vshrl.u32 %v14392_v36, 16  ;;  %v3608_v36 = vsel %vm1786_vm7, %v3605_v63, %v3607_v28  ;;  %v15335_v63 = vld [vmem:[#allocation3 + $0x54] sm:$0xff] }
 0x13c   : > { %1604 = vst.msk [vmem:[#allocation4 + $0x140] sm:$0xff] %vm227_vm2, %v1556_v10  ;;  %v2932_v10 = vshll.u32 %v14393_v1, 16 }
 0x13d   : > { %12814 = vmatmul.msk.bf16.gmra.mxu1 %vm227_vm2, %v3602_v12  ;;  %1578 = vst.msk [vmem:[#allocation4 + $0x70] sm:$0xff] %vm227_vm2, %v1530_v17  ;;  %v15293_v12 = vld [vmem:[#allocation3 + $0x48] sm:$0xff]  ;;  %v2930_v14 = vor.u32 %v2928_v9, %v2926_v50  ;;  %v2948_v9 = vshll.u32 %v15335_v63, 16 }
 0x13e   : > { %v2934_v15 = vrot.slane %v2932_v10, 1  ;;  %v1804_v16 = vrot.slane %v15293_v12, 1  ;;  %v15341_v12 = vld [vmem:[#allocation3 + $0x58] sm:$0xff] }
 0x140   : > { %v1450_v23 = vpop.f32.mrf.mxu3 }
 0x141   : > { %v1557_v25 = vadd.f32 %v1509_v19, %v1450_v23  ;;  %v832_v27 = vpop.f32.mrf.mxu2  ;;  %v1510_v35 = vld [vmem:[#allocation4 + $0x150] sm:$0xff] }
 0x142   : > { %v1385_v24 = vpop.f32.mrf.mxu1  ;;  %v765_v29 = vpop.f32.mrf.mxu0  ;;  %v1483_v30 = vld [vmem:[#allocation4 + $0x78] sm:$0xff]  ;;  %888 = vst.msk [vmem:[#allocation4 + $0x158] sm:$0xff] %vm227_vm2, %v832_v27  ;;  %v1805_v27 = vsel %vm1786_vm7, %v1802_v51, %v1804_v16  ;;  %v14370_v51 = vld [vmem:[#allocation3 + $0x4c] sm:$0xff] }
 0x143   : > { %861 = vst.msk [vmem:[#allocation4 + $0x80] sm:$0xff] %vm227_vm2, %v765_v29  ;;  %v1531_v32 = vadd.f32 %v1483_v30, %v1385_v24  ;;  %v15311_v30 = vld [vmem:[#allocation3 + $0x4c] sm:$0xff] }
 0x144   : > { %1605 = vst.msk [vmem:[#allocation4 + $0x148] sm:$0xff] %vm227_vm2, %v1557_v25  ;;  %v2935_v25 = vsel %vm1067_vm6, %v2930_v14, %v2934_v15 }
 0x145   : > { %1579 = vst.msk [vmem:[#allocation4 + $0x78] sm:$0xff] %vm227_vm2, %v1531_v32  ;;  %12694 = vmatmul.msk.bf16.gmra.mxu0 %vm227_vm2, %v2919_v31  ;;  %12574 = vmatmul.msk.bf16.gmra.mxu3 %vm227_vm2, %v14367_v26 }
 0x146   : > { %12454 = vmatmul.msk.bf16.gmra.mxu2 %vm227_vm2, %v1801_v33 }
 0x148   : > { %v1453_v37 = vpop.f32.mrf.mxu3 }
 0x149   : > { %v1558_v39 = vadd.f32 %v1510_v35, %v1453_v37  ;;  %v835_v40 = vpop.f32.mrf.mxu2  ;;  %v1511_v48 = vld [vmem:[#allocation4 + $0x158] sm:$0xff]  ;;  %v2040_v35 = vld [vmem:[#allocation4] sm:$0xff] }
 0x14a   : > { %v1388_v38 = vpop.f32.mrf.mxu1  ;;  %v767_v41 = vpop.f32.mrf.mxu0  ;;  %v1484_v43 = vld [vmem:[#allocation4 + $0x80] sm:$0xff]  ;;  %889 = vst.msk [vmem:[#allocation4 + $0x160] sm:$0xff] %vm227_vm2, %v835_v40  ;;  %v2940_v40 = vshll.u32 %v15311_v30, 16 }
 0x14b   : > { %862 = vst.msk [vmem:[#allocation4 + $0x88] sm:$0xff] %vm227_vm2, %v767_v41  ;;  %v1532_v46 = vadd.f32 %v1484_v43, %v1388_v38  ;;  %v15316_v43 = vld [vmem:[#allocation3 + $0x50] sm:$0xff] }
 0x14c   : > { %1606 = vst.msk [vmem:[#allocation4 + $0x150] sm:$0xff] %vm227_vm2, %v1558_v39  ;;  %v2936_v39 = vshrl.u32 %v14393_v1, 16  ;;  %v1806_v47 = vrot.slane %v15316_v43, 1  ;;  %v2952_v43 = vshrl.u32 %v15335_v63, 16 }
 0x14d   : > { %12815 = vmatmul.msk.bf16.gmra.mxu1 %vm227_vm2, %v3604_v42  ;;  %1580 = vst.msk [vmem:[#allocation4 + $0x80] sm:$0xff] %vm227_vm2, %v1532_v46  ;;  %v2942_v46 = vrot.slane %v2940_v40, 1 }
 0x14e   : > { %v2938_v45 = vor.u32 %v2936_v39, %v2934_v15  ;;  %v2950_v15 = vrot.slane %v2948_v9, 1  ;;  %v2044_v39 = vld [vmem:[#allocation4 + $0x20] sm:$0xff] }
 0x150   : > { %v1455_v52 = vpop.f32.mrf.mxu3  ;;  %v2943_v57 = vsel %vm1067_vm6, %v2938_v45, %v2942_v46 }
 0x151   : > { %v1559_v54 = vadd.f32 %v1511_v48, %v1455_v52  ;;  %v837_v56 = vpop.f32.mrf.mxu2  ;;  %v1512_v0 = vld [vmem:[#allocation4 + $0x160] sm:$0xff] }
 0x152   : > { %v1390_v53 = vpop.f32.mrf.mxu1  ;;  %v770_v58 = vpop.f32.mrf.mxu0  ;;  %v1485_v59 = vld [vmem:[#allocation4 + $0x88] sm:$0xff]  ;;  %890 = vst.msk [vmem:[#allocation4 + $0x168] sm:$0xff] %vm227_vm2, %v837_v56 }
 0x153   : > { %863 = vst.msk [vmem:[#allocation4 + $0x90] sm:$0xff] %vm227_vm2, %v770_v58  ;;  %v1533_v61 = vadd.f32 %v1485_v59, %v1390_v53  ;;  %v2041_v53 = vld [vmem:[#allocation4 + $0x8] sm:$0xff] }
 0x154   : > { %1607 = vst.msk [vmem:[#allocation4 + $0x158] sm:$0xff] %vm227_vm2, %v1559_v54  ;;  %v15323_v54 = vld [vmem:[#allocation3 + $0x4c] sm:$0xff] }
 0x155   : > { %1581 = vst.msk [vmem:[#allocation4 + $0x88] sm:$0xff] %vm227_vm2, %v1533_v61  ;;  %12695 = vmatmul.msk.bf16.gmra.mxu0 %vm227_vm2, %v2927_v60  ;;  %12575 = vmatmul.msk.bf16.gmra.mxu3 %vm227_vm2, %v14368_v55  ;;  %v1807_v60 = vsel %vm1786_vm7, %v1804_v16, %v1806_v47  ;;  %v3609_v61 = vrot.slane %v15323_v54, 1  ;;  %v1808_v16 = vrot.slane %v15341_v12, 1  ;;  %v2046_v12 = vld [vmem:[#allocation4 + $0x30] sm:$0xff] }
 0x156   : > { %12455 = vmatmul.msk.bf16.gmra.mxu2 %vm227_vm2, %v1803_v62 }
 0x158   : > { %v1458_v2 = vpop.f32.mrf.mxu3 }
 0x159   : > { %v1560_v4 = vadd.f32 %v1512_v0, %v1458_v2  ;;  %v840_v5 = vpop.f32.mrf.mxu2  ;;  %v1513_v13 = vld [vmem:[#allocation4 + $0x168] sm:$0xff] }
 0x15a   : > { %v1393_v3 = vpop.f32.mrf.mxu1  ;;  %v772_v7 = vpop.f32.mrf.mxu0  ;;  %v1486_v8 = vld [vmem:[#allocation4 + $0x90] sm:$0xff]  ;;  %891 = vst.msk [vmem:[#allocation4 + $0x170] sm:$0xff] %vm227_vm2, %v840_v5  ;;  %v3610_v5 = vsel %vm1786_vm7, %v3607_v28, %v3609_v61 }
 0x15b   : > { %864 = vst.msk [vmem:[#allocation4 + $0x98] sm:$0xff] %vm227_vm2, %v772_v7  ;;  %v1534_v11 = vadd.f32 %v1486_v8, %v1393_v3  ;;  %v2944_v8 = vshrl.u32 %v15311_v30, 16  ;;  %v1809_v30 = vsel %vm1786_vm7, %v1806_v47, %v1808_v16  ;;  %v15368_v47 = vld [vmem:[#allocation3 + $0x60] sm:$0xff] }
 0x15c   : > { %1608 = vst.msk [vmem:[#allocation4 + $0x160] sm:$0xff] %vm227_vm2, %v1560_v4  ;;  %v2042_v4 = vld [vmem:[#allocation4 + $0x10] sm:$0xff] }
 0x15d   : > { %12816 = vmatmul.msk.bf16.gmra.mxu1 %vm227_vm2, %v3606_v6  ;;  %1582 = vst.msk [vmem:[#allocation4 + $0x90] sm:$0xff] %vm227_vm2, %v1534_v11  ;;  %v2946_v14 = vor.u32 %v2944_v8, %v2942_v46 }
 0x160   : > { %v1460_v17 = vpop.f32.mrf.mxu3 }
 0x161   : > { %v1561_v19 = vadd.f32 %v1513_v13, %v1460_v17  ;;  %v842_v21 = vpop.f32.mrf.mxu2  ;;  %v1514_v29 = vld [vmem:[#allocation4 + $0x170] sm:$0xff] }
 0x162   : > { %v1395_v18 = vpop.f32.mrf.mxu1  ;;  %v775_v23 = vpop.f32.mrf.mxu0  ;;  %v1487_v24 = vld [vmem:[#allocation4 + $0x98] sm:$0xff]  ;;  %892 = vst.msk [vmem:[#allocation4 + $0x178] sm:$0xff] %vm227_vm2, %v842_v21 }
 0x163   : > { %865 = vst.msk [vmem:[#allocation4 + $0xa0] sm:$0xff] %vm227_vm2, %v775_v23  ;;  %v1535_v26 = vadd.f32 %v1487_v24, %v1395_v18  ;;  %v15348_v23 = vld [vmem:[#allocation3 + $0x54] sm:$0xff] }
 0x164   : > { %1609 = vst.msk [vmem:[#allocation4 + $0x168] sm:$0xff] %vm227_vm2, %v1561_v19 }
 0x165   : > { %1583 = vst.msk [vmem:[#allocation4 + $0x98] sm:$0xff] %vm227_vm2, %v1535_v26  ;;  %12696 = vmatmul.msk.bf16.gmra.mxu0 %vm227_vm2, %v2935_v25  ;;  %12576 = vmatmul.msk.bf16.gmra.mxu3 %vm227_vm2, %v14369_v20  ;;  %v14371_v20 = vld [vmem:[#allocation3 + $0x54] sm:$0xff]  ;;  %v2951_v26 = vsel %vm1067_vm6, %v2946_v14, %v2950_v15 }
 0x166   : > { %12456 = vmatmul.msk.bf16.gmra.mxu2 %vm227_vm2, %v1805_v27 }
 0x168   : > { %v1463_v31 = vpop.f32.mrf.mxu3 }
 0x169   : > { %v1562_v33 = vadd.f32 %v1514_v29, %v1463_v31  ;;  %v1920_v34 = vpop.f32.mrf.mxu2  ;;  %v1515_v44 = vld [vmem:[#allocation4 + $0x178] sm:$0xff] }
 0x16a   : > { %v1398_v32 = vpop.f32.mrf.mxu1  ;;  %v777_v37 = vpop.f32.mrf.mxu0  ;;  %v1488_v38 = vld [vmem:[#allocation4 + $0xa0] sm:$0xff]  ;;  %v2088_v42 = vadd.f32 %v2040_v35, %v1920_v34 }
 0x16b   : > { %866 = vst.msk [vmem:[#allocation4 + $0xa8] sm:$0xff] %vm227_vm2, %v777_v37  ;;  %v1536_v41 = vadd.f32 %v1488_v38, %v1398_v32  ;;  %v3611_v32 = vrot.slane %v15348_v23, 1  ;;  %v15362_v34 = vld [vmem:[#allocation3 + $0x5c] sm:$0xff] }
 0x16c   : > { %1610 = vst.msk [vmem:[#allocation4 + $0x170] sm:$0xff] %vm227_vm2, %v1562_v33 }
 0x16d   : > { %12817 = vmatmul.msk.bf16.gmra.mxu1 %vm227_vm2, %v3608_v36  ;;  %1584 = vst.msk [vmem:[#allocation4 + $0xa0] sm:$0xff] %vm227_vm2, %v1536_v41  ;;  %v3612_v40 = vsel %vm1786_vm7, %v3609_v61, %v3611_v32 }
 0x16e   : > { %2136 = vst.msk [vmem:[#allocation4] sm:$0xff] %vm227_vm2, %v2088_v42 }
 0x170   : > { %v1465_v48 = vpop.f32.mrf.mxu3 }
 0x171   : > { %v1563_v50 = vadd.f32 %v1515_v44, %v1465_v48  ;;  %v1922_v52 = vpop.f32.mrf.mxu2  ;;  %v2956_v44 = vshll.u32 %v15362_v34, 16 }
 0x172   : > { %v1400_v49 = vpop.f32.mrf.mxu1  ;;  %v780_v55 = vpop.f32.mrf.mxu0  ;;  %v1489_v56 = vld [vmem:[#allocation4 + $0xa8] sm:$0xff]  ;;  %v2089_v58 = vadd.f32 %v2041_v53, %v1922_v52  ;;  %v1810_v53 = vrot.slane %v15368_v47, 1 }
 0x173   : > { %867 = vst.msk [vmem:[#allocation4 + $0xb0] sm:$0xff] %vm227_vm2, %v780_v55  ;;  %v1537_v59 = vadd.f32 %v1489_v56, %v1400_v49  ;;  %v2958_v52 = vrot.slane %v2956_v44, 1  ;;  %v14372_v56 = vld [vmem:[#allocation3 + $0x5c] sm:$0xff]  ;;  %v15419_v44 = vld [vmem:[#allocation3 + $0x6c] sm:$0xff] }
 0x174   : > { %1611 = vst.msk [vmem:[#allocation4 + $0x178] sm:$0xff] %vm227_vm2, %v1563_v50 }
 0x175   : > { %1585 = vst.msk [vmem:[#allocation4 + $0xa8] sm:$0xff] %vm227_vm2, %v1537_v59  ;;  %12697 = vmatmul.msk.bf16.gmra.mxu0 %vm227_vm2, %v2943_v57  ;;  %12577 = vmatmul.msk.bf16.gmra.mxu3 %vm227_vm2, %v14370_v51  ;;  %v2558_v62 = vld [vmem:[#allocation4] sm:$0xff]  ;;  %v2954_v51 = vor.u32 %v2952_v43, %v2950_v15  ;;  %v2045_v59 = vld [vmem:[#allocation4 + $0x28] sm:$0xff] }
 0x176   : > { %2137 = vst.msk [vmem:[#allocation4 + $0x8] sm:$0xff] %vm227_vm2, %v2089_v58  ;;  %12457 = vmatmul.msk.bf16.gmra.mxu2 %vm227_vm2, %v1807_v60  ;;  %v15375_v60 = vld [vmem:[#allocation3 + $0x5c] sm:$0xff] }
 0x177   : > { %v2959_v63 = vsel %vm1067_vm6, %v2954_v51, %v2958_v52 }
 0x178   : > { %v2438_v0 = vpop.f32.mrf.mxu3 }
 0x179   : > { %v2606_v2 = vadd.f32 %v2558_v62, %v2438_v0  ;;  %v1925_v3 = vpop.f32.mrf.mxu2 }
 0x17a   : > { %v1403_v1 = vpop.f32.mrf.mxu1  ;;  %v782_v6 = vpop.f32.mrf.mxu0  ;;  %v1490_v7 = vld [vmem:[#allocation4 + $0xb0] sm:$0xff]  ;;  %v2090_v10 = vadd.f32 %v2042_v4, %v1925_v3 }
 0x17b   : > { %868 = vst.msk [vmem:[#allocation4 + $0xb8] sm:$0xff] %vm227_vm2, %v782_v6  ;;  %v1538_v11 = vadd.f32 %v1490_v7, %v1403_v1  ;;  %v15390_v7 = vld [vmem:[#allocation3 + $0x64] sm:$0xff] }
 0x17c   : > { %2654 = vst.msk [vmem:[#allocation4] sm:$0xff] %vm227_vm2, %v2606_v2  ;;  %v1811_v2 = vsel %vm1786_vm7, %v1808_v16, %v1810_v53  ;;  %v2960_v16 = vshrl.u32 %v15362_v34, 16 }
 0x17d   : > { %12818 = vmatmul.msk.bf16.gmra.mxu1 %vm227_vm2, %v3610_v5  ;;  %1586 = vst.msk [vmem:[#allocation4 + $0xb0] sm:$0xff] %vm227_vm2, %v1538_v11  ;;  %v2559_v13 = vld [vmem:[#allocation4 + $0x8] sm:$0xff]  ;;  %v3613_v5 = vrot.slane %v15375_v60, 1 }
 0x17e   : > { %2138 = vst.msk [vmem:[#allocation4 + $0x10] sm:$0xff] %vm227_vm2, %v2090_v10 }
 0x180   : > { %v2440_v17 = vpop.f32.mrf.mxu3 }
 0x181   : > { %v2607_v19 = vadd.f32 %v2559_v13, %v2440_v17  ;;  %v1927_v21 = vpop.f32.mrf.mxu2  ;;  %v3614_v13 = vsel %vm1786_vm7, %v3611_v32, %v3613_v5  ;;  %v2964_v17 = vshll.u32 %v15390_v7, 16  ;;  %v2047_v32 = vld [vmem:[#allocation4 + $0x38] sm:$0xff] }
 0x182   : > { %v1405_v18 = vpop.f32.mrf.mxu1  ;;  %v1491_v24 = vld [vmem:[#allocation4 + $0xb8] sm:$0xff]  ;;  %v3156_v25 = vpop.f32.mrf.mxu0  ;;  %v2091_v27 = vadd.f32 %v2043_v22, %v1927_v21 }
 0x183   : > { %v1539_v28 = vadd.f32 %v1491_v24, %v1405_v18  ;;  %v3276_v29 = vld [vmem:[#allocation4] sm:$0xff]  ;;  %2655 = vst.msk [vmem:[#allocation4 + $0x8] sm:$0xff] %vm227_vm2, %v2607_v19  ;;  %v2962_v24 = vor.u32 %v2960_v16, %v2958_v52 }
 0x184   : > { %v3324_v31 = vadd.f32 %v3276_v29, %v3156_v25  ;;  %2139 = vst.msk [vmem:[#allocation4 + $0x18] sm:$0xff] %vm227_vm2, %v2091_v27  ;;  %v2966_v25 = vrot.slane %v2964_v17, 1  ;;  %v14373_v29 = vld [vmem:[#allocation3 + $0x64] sm:$0xff]  ;;  %v15448_v17 = vld [vmem:[#allocation3 + $0x74] sm:$0xff] }
 0x185   : > { %1587 = vst.msk [vmem:[#allocation4 + $0xb8] sm:$0xff] %vm227_vm2, %v1539_v28  ;;  %12698 = vmatmul.msk.bf16.gmra.mxu0 %vm227_vm2, %v2951_v26  ;;  %12578 = vmatmul.msk.bf16.gmra.mxu3 %vm227_vm2, %v14371_v20  ;;  %v2560_v33 = vld [vmem:[#allocation4 + $0x10] sm:$0xff]  ;;  %v15397_v20 = vld [vmem:[#allocation3 + $0x68] sm:$0xff] }
 0x186   : > { %3372 = vst.msk [vmem:[#allocation4] sm:$0xff] %vm227_vm2, %v3324_v31  ;;  %12458 = vmatmul.msk.bf16.gmra.mxu2 %vm227_vm2, %v1809_v30  ;;  %v1812_v26 = vrot.slane %v15397_v20, 1 }
 0x188   : > { %v2443_v35 = vpop.f32.mrf.mxu3 }
 0x189   : > { %v2608_v36 = vadd.f32 %v2560_v33, %v2443_v35  ;;  %v1930_v38 = vpop.f32.mrf.mxu2  ;;  %v15404_v33 = vld [vmem:[#allocation3 + $0x64] sm:$0xff] }
 0x18a   : > { %v3727_v37 = vpop.f32.mrf.mxu1  ;;  %v3158_v42 = vpop.f32.mrf.mxu0  ;;  %v3277_v41 = vld [vmem:[#allocation4 + $0x8] sm:$0xff]  ;;  %v2092_v45 = vadd.f32 %v2044_v39, %v1930_v38  ;;  %v1813_v39 = vsel %vm1786_vm7, %v1810_v53, %v1812_v26  ;;  %v2968_v53 = vshrl.u32 %v15390_v7, 16 }
 0x18b   : > { %v3325_v46 = vadd.f32 %v3277_v41, %v3158_v42  ;;  %2656 = vst.msk [vmem:[#allocation4 + $0x10] sm:$0xff] %vm227_vm2, %v2608_v36  ;;  %v2561_v50 = vld [vmem:[#allocation4 + $0x18] sm:$0xff]  ;;  %v2967_v36 = vsel %vm1067_vm6, %v2962_v24, %v2966_v25  ;;  %v3615_v41 = vrot.slane %v15404_v33, 1 }
 0x18c   : > { %2140 = vst.msk [vmem:[#allocation4 + $0x20] sm:$0xff] %vm227_vm2, %v2092_v45 }
 0x18d   : > { %12819 = vmatmul.msk.bf16.gmra.mxu1 %vm227_vm2, %v3612_v40  ;;  %3373 = vst.msk [vmem:[#allocation4 + $0x8] sm:$0xff] %vm227_vm2, %v3325_v46  ;;  %v3847_v48 = vld [vmem:[#allocation4] sm:$0xff] }
 0x18e   : > { %v3895_v49 = vadd.f32 %v3847_v48, %v3727_v37 }
 0x190   : > { %3943 = vst.msk [vmem:[#allocation4] sm:$0xff] %vm227_vm2, %v3895_v49  ;;  %v2445_v54 = vpop.f32.mrf.mxu3  ;;  %v2048_v49 = vld [vmem:[#allocation4 + $0x40] sm:$0xff] }
 0x191   : > { %v2609_v55 = vadd.f32 %v2561_v50, %v2445_v54  ;;  %v1932_v58 = vpop.f32.mrf.mxu2  ;;  %v3616_v50 = vsel %vm1786_vm7, %v3613_v5, %v3615_v41  ;;  %v2972_v54 = vshll.u32 %v15419_v44, 16  ;;  %v2049_v5 = vld [vmem:[#allocation4 + $0x48] sm:$0xff] }
 0x192   : > { %v3729_v57 = vpop.f32.mrf.mxu1  ;;  %v3161_v61 = vpop.f32.mrf.mxu0  ;;  %v3278_v62 = vld [vmem:[#allocation4 + $0x10] sm:$0xff]  ;;  %v2093_v0 = vadd.f32 %v2045_v59, %v1932_v58 }
 0x193   : > { %v3326_v1 = vadd.f32 %v3278_v62, %v3161_v61  ;;  %2657 = vst.msk [vmem:[#allocation4 + $0x18] sm:$0xff] %vm227_vm2, %v2609_v55  ;;  %v2562_v6 = vld [vmem:[#allocation4 + $0x20] sm:$0xff]  ;;  %v2970_v61 = vor.u32 %v2968_v53, %v2966_v25  ;;  %v2974_v62 = vrot.slane %v2972_v54, 1 }
 0x194   : > { %v3848_v3 = vld [vmem:[#allocation4 + $0x8] sm:$0xff]  ;;  %2141 = vst.msk [vmem:[#allocation4 + $0x28] sm:$0xff] %vm227_vm2, %v2093_v0  ;;  %v15477_v54 = vld [vmem:[#allocation3 + $0x7c] sm:$0xff] }
 0x195   : > { %3374 = vst.msk [vmem:[#allocation4 + $0x10] sm:$0xff] %vm227_vm2, %v3326_v1  ;;  %12699 = vmatmul.msk.bf16.gmra.mxu0 %vm227_vm2, %v2959_v63  ;;  %12579 = vmatmul.msk.bf16.gmra.mxu3 %vm227_vm2, %v14372_v56  ;;  %v3896_v4 = vadd.f32 %v3848_v3, %v3729_v57  ;;  %v15426_v57 = vld [vmem:[#allocation3 + $0x70] sm:$0xff] }
 0x196   : > { %12459 = vmatmul.msk.bf16.gmra.mxu2 %vm227_vm2, %v1811_v2  ;;  %v1814_v63 = vrot.slane %v15426_v57, 1  ;;  %v14374_v2 = vld [vmem:[#allocation3 + $0x6c] sm:$0xff] }
 0x197   : > { %3944 = vst.msk [vmem:[#allocation4 + $0x8] sm:$0xff] %vm227_vm2, %v3896_v4 }
 0x198   : > { %v2448_v8 = vpop.f32.mrf.mxu3 }
 0x199   : > { %v2610_v9 = vadd.f32 %v2562_v6, %v2448_v8  ;;  %v1935_v11 = vpop.f32.mrf.mxu2  ;;  %v15433_v6 = vld [vmem:[#allocation3 + $0x6c] sm:$0xff] }
 0x19a   : > { %v3732_v10 = vpop.f32.mrf.mxu1  ;;  %v3163_v14 = vpop.f32.mrf.mxu0  ;;  %v3279_v15 = vld [vmem:[#allocation4 + $0x18] sm:$0xff]  ;;  %v2094_v18 = vadd.f32 %v2046_v12, %v1935_v11  ;;  %v1815_v12 = vsel %vm1786_vm7, %v1812_v26, %v1814_v63  ;;  %v2976_v26 = vshrl.u32 %v15419_v44, 16 }
 0x19b   : > { %v3327_v19 = vadd.f32 %v3279_v15, %v3163_v14  ;;  %2658 = vst.msk [vmem:[#allocation4 + $0x20] sm:$0xff] %vm227_vm2, %v2610_v9  ;;  %v2563_v23 = vld [vmem:[#allocation4 + $0x28] sm:$0xff]  ;;  %v2975_v9 = vsel %vm1067_vm6, %v2970_v61, %v2974_v62  ;;  %v3617_v15 = vrot.slane %v15433_v6, 1 }
 0x19c   : > { %v3849_v21 = vld [vmem:[#allocation4 + $0x10] sm:$0xff]  ;;  %2142 = vst.msk [vmem:[#allocation4 + $0x30] sm:$0xff] %vm227_vm2, %v2094_v18 }
 0x19d   : > { %12820 = vmatmul.msk.bf16.gmra.mxu1 %vm227_vm2, %v3614_v13  ;;  %3375 = vst.msk [vmem:[#allocation4 + $0x18] sm:$0xff] %vm227_vm2, %v3327_v19  ;;  %v3897_v22 = vadd.f32 %v3849_v21, %v3732_v10 }
 0x19f   : > { %3945 = vst.msk [vmem:[#allocation4 + $0x10] sm:$0xff] %vm227_vm2, %v3897_v22  ;;  %v2050_v22 = vld [vmem:[#allocation4 + $0x50] sm:$0xff] }
 0x1a0   : > { %v2450_v27 = vpop.f32.mrf.mxu3 }
 0x1a1   : > { %v2611_v28 = vadd.f32 %v2563_v23, %v2450_v27  ;;  %v1937_v31 = vpop.f32.mrf.mxu2  ;;  %v3618_v23 = vsel %vm1786_vm7, %v3615_v41, %v3617_v15  ;;  %v2980_v27 = vshll.u32 %v15448_v17, 16  ;;  %v2051_v41 = vld [vmem:[#allocation4 + $0x58] sm:$0xff] }
 0x1a2   : > { %v3734_v30 = vpop.f32.mrf.mxu1  ;;  %v3166_v34 = vpop.f32.mrf.mxu0  ;;  %v3280_v35 = vld [vmem:[#allocation4 + $0x20] sm:$0xff]  ;;  %v2095_v37 = vadd.f32 %v2047_v32, %v1937_v31 }
 0x1a3   : > { %v3328_v38 = vadd.f32 %v3280_v35, %v3166_v34  ;;  %2659 = vst.msk [vmem:[#allocation4 + $0x28] sm:$0xff] %vm227_vm2, %v2611_v28  ;;  %v2564_v43 = vld [vmem:[#allocation4 + $0x30] sm:$0xff]  ;;  %v2978_v34 = vor.u32 %v2976_v26, %v2974_v62  ;;  %v2982_v35 = vrot.slane %v2980_v27, 1  ;;  %v15506_v27 = vld [vmem:[#allocation3 + $0x84] sm:$0xff] }
 0x1a4   : > { %v3850_v40 = vld [vmem:[#allocation4 + $0x18] sm:$0xff]  ;;  %2143 = vst.msk [vmem:[#allocation4 + $0x38] sm:$0xff] %vm227_vm2, %v2095_v37 }
 0x1a5   : > { %3376 = vst.msk [vmem:[#allocation4 + $0x20] sm:$0xff] %vm227_vm2, %v3328_v38  ;;  %12700 = vmatmul.msk.bf16.gmra.mxu0 %vm227_vm2, %v2967_v36  ;;  %12580 = vmatmul.msk.bf16.gmra.mxu3 %vm227_vm2, %v14373_v29  ;;  %v3898_v42 = vadd.f32 %v3850_v40, %v3734_v30  ;;  %v15455_v30 = vld [vmem:[#allocation3 + $0x78] sm:$0xff] }
 0x1a6   : > { %12460 = vmatmul.msk.bf16.gmra.mxu2 %vm227_vm2, %v1813_v39  ;;  %v1816_v36 = vrot.slane %v15455_v30, 1  ;;  %v14375_v39 = vld [vmem:[#allocation3 + $0x74] sm:$0xff] }
 0x1a7   : > { %3946 = vst.msk [vmem:[#allocation4 + $0x18] sm:$0xff] %vm227_vm2, %v3898_v42 }
 0x1a8   : > { %v2453_v45 = vpop.f32.mrf.mxu3 }
 0x1a9   : > { %v2612_v46 = vadd.f32 %v2564_v43, %v2453_v45  ;;  %v1940_v48 = vpop.f32.mrf.mxu2  ;;  %v15462_v43 = vld [vmem:[#allocation3 + $0x74] sm:$0xff] }
 0x1aa   : > { %v3737_v47 = vpop.f32.mrf.mxu1  ;;  %v3168_v51 = vpop.f32.mrf.mxu0  ;;  %v3281_v52 = vld [vmem:[#allocation4 + $0x28] sm:$0xff]  ;;  %v2096_v55 = vadd.f32 %v2048_v49, %v1940_v48  ;;  %v1817_v49 = vsel %vm1786_vm7, %v1814_v63, %v1816_v36  ;;  %v2984_v63 = vshrl.u32 %v15448_v17, 16 }
 0x1ab   : > { %v3329_v56 = vadd.f32 %v3281_v52, %v3168_v51  ;;  %2660 = vst.msk [vmem:[#allocation4 + $0x30] sm:$0xff] %vm227_vm2, %v2612_v46  ;;  %v2565_v60 = vld [vmem:[#allocation4 + $0x38] sm:$0xff]  ;;  %v2983_v46 = vsel %vm1067_vm6, %v2978_v34, %v2982_v35  ;;  %v3619_v52 = vrot.slane %v15462_v43, 1 }
 0x1ac   : > { %v3851_v58 = vld [vmem:[#allocation4 + $0x20] sm:$0xff]  ;;  %2144 = vst.msk [vmem:[#allocation4 + $0x40] sm:$0xff] %vm227_vm2, %v2096_v55 }
 0x1ad   : > { %12821 = vmatmul.msk.bf16.gmra.mxu1 %vm227_vm2, %v3616_v50  ;;  %3377 = vst.msk [vmem:[#allocation4 + $0x28] sm:$0xff] %vm227_vm2, %v3329_v56  ;;  %v3899_v59 = vadd.f32 %v3851_v58, %v3737_v47 }
 0x1af   : > { %3947 = vst.msk [vmem:[#allocation4 + $0x20] sm:$0xff] %vm227_vm2, %v3899_v59  ;;  %v2052_v59 = vld [vmem:[#allocation4 + $0x60] sm:$0xff] }
 0x1b0   : > { %v2455_v0 = vpop.f32.mrf.mxu3 }
 0x1b1   : > { %v2613_v1 = vadd.f32 %v2565_v60, %v2455_v0  ;;  %v1942_v4 = vpop.f32.mrf.mxu2  ;;  %v3620_v60 = vsel %vm1786_vm7, %v3617_v15, %v3619_v52  ;;  %v2988_v0 = vshll.u32 %v15477_v54, 16  ;;  %v2053_v15 = vld [vmem:[#allocation4 + $0x68] sm:$0xff] }
 0x1b2   : > { %v3739_v3 = vpop.f32.mrf.mxu1  ;;  %v3171_v7 = vpop.f32.mrf.mxu0  ;;  %v3282_v8 = vld [vmem:[#allocation4 + $0x30] sm:$0xff]  ;;  %v2097_v10 = vadd.f32 %v2049_v5, %v1942_v4 }
 0x1b3   : > { %v3330_v11 = vadd.f32 %v3282_v8, %v3171_v7  ;;  %2661 = vst.msk [vmem:[#allocation4 + $0x38] sm:$0xff] %vm227_vm2, %v2613_v1  ;;  %v2566_v16 = vld [vmem:[#allocation4 + $0x40] sm:$0xff]  ;;  %v2986_v7 = vor.u32 %v2984_v63, %v2982_v35  ;;  %v2990_v8 = vrot.slane %v2988_v0, 1  ;;  %v15535_v0 = vld [vmem:[#allocation3 + $0x8c] sm:$0xff] }
 0x1b4   : > { %v3852_v13 = vld [vmem:[#allocation4 + $0x28] sm:$0xff]  ;;  %2145 = vst.msk [vmem:[#allocation4 + $0x48] sm:$0xff] %vm227_vm2, %v2097_v10 }
 0x1b5   : > { %3378 = vst.msk [vmem:[#allocation4 + $0x30] sm:$0xff] %vm227_vm2, %v3330_v11  ;;  %12701 = vmatmul.msk.bf16.gmra.mxu0 %vm227_vm2, %v2975_v9  ;;  %12581 = vmatmul.msk.bf16.gmra.mxu3 %vm227_vm2, %v14374_v2  ;;  %v3900_v14 = vadd.f32 %v3852_v13, %v3739_v3  ;;  %v15484_v3 = vld [vmem:[#allocation3 + $0x80] sm:$0xff] }
 0x1b6   : > { %12461 = vmatmul.msk.bf16.gmra.mxu2 %vm227_vm2, %v1815_v12  ;;  %v1818_v9 = vrot.slane %v15484_v3, 1  ;;  %v14376_v12 = vld [vmem:[#allocation3 + $0x7c] sm:$0xff] }
 0x1b7   : > { %3948 = vst.msk [vmem:[#allocation4 + $0x28] sm:$0xff] %vm227_vm2, %v3900_v14 }
 0x1b8   : > { %v2458_v18 = vpop.f32.mrf.mxu3 }
 0x1b9   : > { %v2614_v19 = vadd.f32 %v2566_v16, %v2458_v18  ;;  %v1945_v21 = vpop.f32.mrf.mxu2  ;;  %v15491_v16 = vld [vmem:[#allocation3 + $0x7c] sm:$0xff] }
 0x1ba   : > { %v3742_v20 = vpop.f32.mrf.mxu1  ;;  %v3173_v24 = vpop.f32.mrf.mxu0  ;;  %v3283_v25 = vld [vmem:[#allocation4 + $0x38] sm:$0xff]  ;;  %v2098_v28 = vadd.f32 %v2050_v22, %v1945_v21  ;;  %v1819_v22 = vsel %vm1786_vm7, %v1816_v36, %v1818_v9  ;;  %v2992_v36 = vshrl.u32 %v15477_v54, 16 }
 0x1bb   : > { %v3331_v29 = vadd.f32 %v3283_v25, %v3173_v24  ;;  %2662 = vst.msk [vmem:[#allocation4 + $0x40] sm:$0xff] %vm227_vm2, %v2614_v19  ;;  %v2567_v33 = vld [vmem:[#allocation4 + $0x48] sm:$0xff]  ;;  %v2991_v19 = vsel %vm1067_vm6, %v2986_v7, %v2990_v8  ;;  %v3621_v25 = vrot.slane %v15491_v16, 1 }
 0x1bc   : > { %v3853_v31 = vld [vmem:[#allocation4 + $0x30] sm:$0xff]  ;;  %2146 = vst.msk [vmem:[#allocation4 + $0x50] sm:$0xff] %vm227_vm2, %v2098_v28 }
 0x1bd   : > { %12822 = vmatmul.msk.bf16.gmra.mxu1 %vm227_vm2, %v3618_v23  ;;  %3379 = vst.msk [vmem:[#allocation4 + $0x38] sm:$0xff] %vm227_vm2, %v3331_v29  ;;  %v3901_v32 = vadd.f32 %v3853_v31, %v3742_v20 }
 0x1bf   : > { %3949 = vst.msk [vmem:[#allocation4 + $0x30] sm:$0xff] %vm227_vm2, %v3901_v32  ;;  %v2054_v32 = vld [vmem:[#allocation4 + $0x70] sm:$0xff] }
 0x1c0   : > { %v2460_v37 = vpop.f32.mrf.mxu3 }
 0x1c1   : > { %v2615_v38 = vadd.f32 %v2567_v33, %v2460_v37  ;;  %v1947_v42 = vpop.f32.mrf.mxu2  ;;  %v3622_v33 = vsel %vm1786_vm7, %v3619_v52, %v3621_v25  ;;  %v2996_v37 = vshll.u32 %v15506_v27, 16  ;;  %v2055_v52 = vld [vmem:[#allocation4 + $0x78] sm:$0xff] }
 0x1c2   : > { %v3744_v40 = vpop.f32.mrf.mxu1  ;;  %v3176_v44 = vpop.f32.mrf.mxu0  ;;  %v3284_v45 = vld [vmem:[#allocation4 + $0x40] sm:$0xff]  ;;  %v2099_v47 = vadd.f32 %v2051_v41, %v1947_v42 }
 0x1c3   : > { %v3332_v48 = vadd.f32 %v3284_v45, %v3176_v44  ;;  %2663 = vst.msk [vmem:[#allocation4 + $0x48] sm:$0xff] %vm227_vm2, %v2615_v38  ;;  %v2568_v53 = vld [vmem:[#allocation4 + $0x50] sm:$0xff]  ;;  %v2994_v44 = vor.u32 %v2992_v36, %v2990_v8  ;;  %v2998_v45 = vrot.slane %v2996_v37, 1 }
 0x1c4   : > { %v3854_v50 = vld [vmem:[#allocation4 + $0x38] sm:$0xff]  ;;  %2147 = vst.msk [vmem:[#allocation4 + $0x58] sm:$0xff] %vm227_vm2, %v2099_v47 }
 0x1c5   : > { %3380 = vst.msk [vmem:[#allocation4 + $0x40] sm:$0xff] %vm227_vm2, %v3332_v48  ;;  %12702 = vmatmul.msk.bf16.gmra.mxu0 %vm227_vm2, %v2983_v46  ;;  %12582 = vmatmul.msk.bf16.gmra.mxu3 %vm227_vm2, %v14375_v39  ;;  %v3902_v51 = vadd.f32 %v3854_v50, %v3744_v40  ;;  %v15513_v40 = vld [vmem:[#allocation3 + $0x88] sm:$0xff]  ;;  %v15564_v37 = vld [vmem:[#allocation3 + $0x94] sm:$0xff] }
 0x1c6   : > { %12462 = vmatmul.msk.bf16.gmra.mxu2 %vm227_vm2, %v1817_v49  ;;  %v1820_v46 = vrot.slane %v15513_v40, 1  ;;  %v14377_v49 = vld [vmem:[#allocation3 + $0x84] sm:$0xff] }
 0x1c7   : > { %3950 = vst.msk [vmem:[#allocation4 + $0x38] sm:$0xff] %vm227_vm2, %v3902_v51 }
 0x1c8   : > { %v2463_v55 = vpop.f32.mrf.mxu3 }
 0x1c9   : > { %v2616_v56 = vadd.f32 %v2568_v53, %v2463_v55  ;;  %v1950_v58 = vpop.f32.mrf.mxu2  ;;  %v15520_v53 = vld [vmem:[#allocation3 + $0x84] sm:$0xff] }
 0x1ca   : > { %v3747_v57 = vpop.f32.mrf.mxu1  ;;  %v3178_v61 = vpop.f32.mrf.mxu0  ;;  %v3285_v62 = vld [vmem:[#allocation4 + $0x48] sm:$0xff]  ;;  %v2100_v1 = vadd.f32 %v2052_v59, %v1950_v58  ;;  %v1821_v59 = vsel %vm1786_vm7, %v1818_v9, %v1820_v46  ;;  %v3000_v9 = vshrl.u32 %v15506_v27, 16 }
 0x1cb   : > { %v3333_v2 = vadd.f32 %v3285_v62, %v3178_v61  ;;  %2664 = vst.msk [vmem:[#allocation4 + $0x50] sm:$0xff] %vm227_vm2, %v2616_v56  ;;  %v2569_v6 = vld [vmem:[#allocation4 + $0x58] sm:$0xff]  ;;  %v2999_v56 = vsel %vm1067_vm6, %v2994_v44, %v2998_v45  ;;  %v3623_v62 = vrot.slane %v15520_v53, 1 }
 0x1cc   : > { %v3855_v4 = vld [vmem:[#allocation4 + $0x40] sm:$0xff]  ;;  %2148 = vst.msk [vmem:[#allocation4 + $0x60] sm:$0xff] %vm227_vm2, %v2100_v1 }
 0x1cd   : > { %12823 = vmatmul.msk.bf16.gmra.mxu1 %vm227_vm2, %v3620_v60  ;;  %3381 = vst.msk [vmem:[#allocation4 + $0x48] sm:$0xff] %vm227_vm2, %v3333_v2  ;;  %v3903_v5 = vadd.f32 %v3855_v4, %v3747_v57 }
 0x1cf   : > { %3951 = vst.msk [vmem:[#allocation4 + $0x40] sm:$0xff] %vm227_vm2, %v3903_v5  ;;  %v2056_v5 = vld [vmem:[#allocation4 + $0x80] sm:$0xff] }
 0x1d0   : > { %v2465_v10 = vpop.f32.mrf.mxu3 }
 0x1d1   : > { %v2617_v11 = vadd.f32 %v2569_v6, %v2465_v10  ;;  %v1952_v14 = vpop.f32.mrf.mxu2  ;;  %v3624_v6 = vsel %vm1786_vm7, %v3621_v25, %v3623_v62  ;;  %v3004_v10 = vshll.u32 %v15535_v0, 16  ;;  %v2057_v25 = vld [vmem:[#allocation4 + $0x88] sm:$0xff] }
 0x1d2   : > { %v3749_v13 = vpop.f32.mrf.mxu1  ;;  %v3181_v17 = vpop.f32.mrf.mxu0  ;;  %v3286_v18 = vld [vmem:[#allocation4 + $0x50] sm:$0xff]  ;;  %v2101_v20 = vadd.f32 %v2053_v15, %v1952_v14 }
 0x1d3   : > { %v3334_v21 = vadd.f32 %v3286_v18, %v3181_v17  ;;  %2665 = vst.msk [vmem:[#allocation4 + $0x58] sm:$0xff] %vm227_vm2, %v2617_v11  ;;  %v2570_v26 = vld [vmem:[#allocation4 + $0x60] sm:$0xff]  ;;  %v3002_v17 = vor.u32 %v3000_v9, %v2998_v45  ;;  %v3006_v18 = vrot.slane %v3004_v10, 1 }
 0x1d4   : > { %v3856_v23 = vld [vmem:[#allocation4 + $0x48] sm:$0xff]  ;;  %2149 = vst.msk [vmem:[#allocation4 + $0x68] sm:$0xff] %vm227_vm2, %v2101_v20  ;;  %v15593_v10 = vld [vmem:[#allocation3 + $0x9c] sm:$0xff] }
 0x1d5   : > { %3382 = vst.msk [vmem:[#allocation4 + $0x50] sm:$0xff] %vm227_vm2, %v3334_v21  ;;  %12703 = vmatmul.msk.bf16.gmra.mxu0 %vm227_vm2, %v2991_v19  ;;  %12583 = vmatmul.msk.bf16.gmra.mxu3 %vm227_vm2, %v14376_v12  ;;  %v3904_v24 = vadd.f32 %v3856_v23, %v3749_v13  ;;  %v15542_v13 = vld [vmem:[#allocation3 + $0x90] sm:$0xff] }
 0x1d6   : > { %12463 = vmatmul.msk.bf16.gmra.mxu2 %vm227_vm2, %v1819_v22  ;;  %v1822_v19 = vrot.slane %v15542_v13, 1  ;;  %v14378_v22 = vld [vmem:[#allocation3 + $0x8c] sm:$0xff] }
 0x1d7   : > { %3952 = vst.msk [vmem:[#allocation4 + $0x48] sm:$0xff] %vm227_vm2, %v3904_v24 }
 0x1d8   : > { %v2468_v28 = vpop.f32.mrf.mxu3 }
 0x1d9   : > { %v2618_v29 = vadd.f32 %v2570_v26, %v2468_v28  ;;  %v1955_v31 = vpop.f32.mrf.mxu2  ;;  %v15549_v26 = vld [vmem:[#allocation3 + $0x8c] sm:$0xff] }
 0x1da   : > { %v3752_v30 = vpop.f32.mrf.mxu1  ;;  %v3183_v34 = vpop.f32.mrf.mxu0  ;;  %v3287_v35 = vld [vmem:[#allocation4 + $0x58] sm:$0xff]  ;;  %v2102_v38 = vadd.f32 %v2054_v32, %v1955_v31  ;;  %v1823_v32 = vsel %vm1786_vm7, %v1820_v46, %v1822_v19  ;;  %v3008_v46 = vshrl.u32 %v15535_v0, 16 }
 0x1db   : > { %v3335_v39 = vadd.f32 %v3287_v35, %v3183_v34  ;;  %2666 = vst.msk [vmem:[#allocation4 + $0x60] sm:$0xff] %vm227_vm2, %v2618_v29  ;;  %v2571_v43 = vld [vmem:[#allocation4 + $0x68] sm:$0xff]  ;;  %v3007_v29 = vsel %vm1067_vm6, %v3002_v17, %v3006_v18  ;;  %v3625_v35 = vrot.slane %v15549_v26, 1 }
 0x1dc   : > { %v3857_v42 = vld [vmem:[#allocation4 + $0x50] sm:$0xff]  ;;  %2150 = vst.msk [vmem:[#allocation4 + $0x70] sm:$0xff] %vm227_vm2, %v2102_v38 }
 0x1dd   : > { %12824 = vmatmul.msk.bf16.gmra.mxu1 %vm227_vm2, %v3622_v33  ;;  %3383 = vst.msk [vmem:[#allocation4 + $0x58] sm:$0xff] %vm227_vm2, %v3335_v39  ;;  %v3905_v41 = vadd.f32 %v3857_v42, %v3752_v30 }
 0x1df   : > { %3953 = vst.msk [vmem:[#allocation4 + $0x50] sm:$0xff] %vm227_vm2, %v3905_v41  ;;  %v2058_v41 = vld [vmem:[#allocation4 + $0x90] sm:$0xff] }
 0x1e0   : > { %v2470_v47 = vpop.f32.mrf.mxu3 }
 0x1e1   : > { %v2619_v48 = vadd.f32 %v2571_v43, %v2470_v47  ;;  %v1957_v51 = vpop.f32.mrf.mxu2  ;;  %v3626_v43 = vsel %vm1786_vm7, %v3623_v62, %v3625_v35  ;;  %v3012_v47 = vshll.u32 %v15564_v37, 16  ;;  %v2059_v62 = vld [vmem:[#allocation4 + $0x98] sm:$0xff] }
 0x1e2   : > { %v3754_v50 = vpop.f32.mrf.mxu1  ;;  %v3186_v54 = vpop.f32.mrf.mxu0  ;;  %v3288_v55 = vld [vmem:[#allocation4 + $0x60] sm:$0xff]  ;;  %v2103_v57 = vadd.f32 %v2055_v52, %v1957_v51 }
 0x1e3   : > { %v3336_v58 = vadd.f32 %v3288_v55, %v3186_v54  ;;  %2667 = vst.msk [vmem:[#allocation4 + $0x68] sm:$0xff] %vm227_vm2, %v2619_v48  ;;  %v2572_v63 = vld [vmem:[#allocation4 + $0x70] sm:$0xff]  ;;  %v3010_v54 = vor.u32 %v3008_v46, %v3006_v18  ;;  %v3014_v55 = vrot.slane %v3012_v47, 1  ;;  %v15622_v47 = vld [vmem:[#allocation3 + $0xa4] sm:$0xff] }
 0x1e4   : > { %v3858_v60 = vld [vmem:[#allocation4 + $0x58] sm:$0xff]  ;;  %2151 = vst.msk [vmem:[#allocation4 + $0x78] sm:$0xff] %vm227_vm2, %v2103_v57 }
 0x1e5   : > { %3384 = vst.msk [vmem:[#allocation4 + $0x60] sm:$0xff] %vm227_vm2, %v3336_v58  ;;  %12704 = vmatmul.msk.bf16.gmra.mxu0 %vm227_vm2, %v2999_v56  ;;  %12584 = vmatmul.msk.bf16.gmra.mxu3 %vm227_vm2, %v14377_v49  ;;  %v3906_v61 = vadd.f32 %v3858_v60, %v3754_v50  ;;  %v15571_v50 = vld [vmem:[#allocation3 + $0x98] sm:$0xff] }
 0x1e6   : > { %12464 = vmatmul.msk.bf16.gmra.mxu2 %vm227_vm2, %v1821_v59  ;;  %v1824_v56 = vrot.slane %v15571_v50, 1  ;;  %v14379_v59 = vld [vmem:[#allocation3 + $0x94] sm:$0xff] }
 0x1e7   : > { %3954 = vst.msk [vmem:[#allocation4 + $0x58] sm:$0xff] %vm227_vm2, %v3906_v61 }
 0x1e8   : > { %v2473_v1 = vpop.f32.mrf.mxu3 }
 0x1e9   : > { %v2620_v2 = vadd.f32 %v2572_v63, %v2473_v1  ;;  %v1960_v4 = vpop.f32.mrf.mxu2  ;;  %v15578_v63 = vld [vmem:[#allocation3 + $0x94] sm:$0xff] }
 0x1ea   : > { %v3757_v3 = vpop.f32.mrf.mxu1  ;;  %v3188_v7 = vpop.f32.mrf.mxu0  ;;  %v3289_v8 = vld [vmem:[#allocation4 + $0x68] sm:$0xff]  ;;  %v2104_v11 = vadd.f32 %v2056_v5, %v1960_v4  ;;  %v1825_v5 = vsel %vm1786_vm7, %v1822_v19, %v1824_v56  ;;  %v3016_v19 = vshrl.u32 %v15564_v37, 16 }
 0x1eb   : > { %v3337_v12 = vadd.f32 %v3289_v8, %v3188_v7  ;;  %2668 = vst.msk [vmem:[#allocation4 + $0x70] sm:$0xff] %vm227_vm2, %v2620_v2  ;;  %v2573_v16 = vld [vmem:[#allocation4 + $0x78] sm:$0xff]  ;;  %v3015_v2 = vsel %vm1067_vm6, %v3010_v54, %v3014_v55  ;;  %v3627_v8 = vrot.slane %v15578_v63, 1 }
 0x1ec   : > { %v3859_v14 = vld [vmem:[#allocation4 + $0x60] sm:$0xff]  ;;  %2152 = vst.msk [vmem:[#allocation4 + $0x80] sm:$0xff] %vm227_vm2, %v2104_v11 }
 0x1ed   : > { %12825 = vmatmul.msk.bf16.gmra.mxu1 %vm227_vm2, %v3624_v6  ;;  %3385 = vst.msk [vmem:[#allocation4 + $0x68] sm:$0xff] %vm227_vm2, %v3337_v12  ;;  %v3907_v15 = vadd.f32 %v3859_v14, %v3757_v3 }
 0x1ef   : > { %3955 = vst.msk [vmem:[#allocation4 + $0x60] sm:$0xff] %vm227_vm2, %v3907_v15  ;;  %v2060_v15 = vld [vmem:[#allocation4 + $0xa0] sm:$0xff] }
 0x1f0   : > { %v2475_v20 = vpop.f32.mrf.mxu3 }
 0x1f1   : > { %v2621_v21 = vadd.f32 %v2573_v16, %v2475_v20  ;;  %v1962_v24 = vpop.f32.mrf.mxu2  ;;  %v3628_v16 = vsel %vm1786_vm7, %v3625_v35, %v3627_v8  ;;  %v3020_v20 = vshll.u32 %v15593_v10, 16  ;;  %v2061_v35 = vld [vmem:[#allocation4 + $0xa8] sm:$0xff] }
 0x1f2   : > { %v3759_v23 = vpop.f32.mrf.mxu1  ;;  %v3191_v27 = vpop.f32.mrf.mxu0  ;;  %v3290_v28 = vld [vmem:[#allocation4 + $0x70] sm:$0xff]  ;;  %v2105_v30 = vadd.f32 %v2057_v25, %v1962_v24 }
 0x1f3   : > { %v3338_v31 = vadd.f32 %v3290_v28, %v3191_v27  ;;  %2669 = vst.msk [vmem:[#allocation4 + $0x78] sm:$0xff] %vm227_vm2, %v2621_v21  ;;  %v2574_v36 = vld [vmem:[#allocation4 + $0x80] sm:$0xff]  ;;  %v3018_v27 = vor.u32 %v3016_v19, %v3014_v55  ;;  %v3022_v28 = vrot.slane %v3020_v20, 1  ;;  %v15651_v20 = vld [vmem:[#allocation3 + $0xac] sm:$0xff] }
 0x1f4   : > { %v3860_v33 = vld [vmem:[#allocation4 + $0x68] sm:$0xff]  ;;  %2153 = vst.msk [vmem:[#allocation4 + $0x88] sm:$0xff] %vm227_vm2, %v2105_v30 }
 0x1f5   : > { %3386 = vst.msk [vmem:[#allocation4 + $0x70] sm:$0xff] %vm227_vm2, %v3338_v31  ;;  %12705 = vmatmul.msk.bf16.gmra.mxu0 %vm227_vm2, %v3007_v29  ;;  %12585 = vmatmul.msk.bf16.gmra.mxu3 %vm227_vm2, %v14378_v22  ;;  %v3908_v34 = vadd.f32 %v3860_v33, %v3759_v23  ;;  %v15600_v23 = vld [vmem:[#allocation3 + $0xa0] sm:$0xff] }
 0x1f6   : > { %12465 = vmatmul.msk.bf16.gmra.mxu2 %vm227_vm2, %v1823_v32  ;;  %v1826_v29 = vrot.slane %v15600_v23, 1  ;;  %v14380_v32 = vld [vmem:[#allocation3 + $0x9c] sm:$0xff] }
 0x1f7   : > { %3956 = vst.msk [vmem:[#allocation4 + $0x68] sm:$0xff] %vm227_vm2, %v3908_v34 }
 0x1f8   : > { %v2478_v38 = vpop.f32.mrf.mxu3 }
 0x1f9   : > { %v2622_v39 = vadd.f32 %v2574_v36, %v2478_v38  ;;  %v1965_v42 = vpop.f32.mrf.mxu2  ;;  %v15607_v36 = vld [vmem:[#allocation3 + $0x9c] sm:$0xff] }
 0x1fa   : > { %v3762_v40 = vpop.f32.mrf.mxu1  ;;  %v3193_v44 = vpop.f32.mrf.mxu0  ;;  %v3291_v45 = vld [vmem:[#allocation4 + $0x78] sm:$0xff]  ;;  %v2106_v48 = vadd.f32 %v2058_v41, %v1965_v42  ;;  %v1827_v41 = vsel %vm1786_vm7, %v1824_v56, %v1826_v29  ;;  %v3024_v56 = vshrl.u32 %v15593_v10, 16 }
 0x1fb   : > { %v3339_v49 = vadd.f32 %v3291_v45, %v3193_v44  ;;  %2670 = vst.msk [vmem:[#allocation4 + $0x80] sm:$0xff] %vm227_vm2, %v2622_v39  ;;  %v2575_v53 = vld [vmem:[#allocation4 + $0x88] sm:$0xff]  ;;  %v3023_v39 = vsel %vm1067_vm6, %v3018_v27, %v3022_v28  ;;  %v3629_v45 = vrot.slane %v15607_v36, 1 }
 0x1fc   : > { %v3861_v51 = vld [vmem:[#allocation4 + $0x70] sm:$0xff]  ;;  %2154 = vst.msk [vmem:[#allocation4 + $0x90] sm:$0xff] %vm227_vm2, %v2106_v48 }
 0x1fd   : > { %12826 = vmatmul.msk.bf16.gmra.mxu1 %vm227_vm2, %v3626_v43  ;;  %3387 = vst.msk [vmem:[#allocation4 + $0x78] sm:$0xff] %vm227_vm2, %v3339_v49  ;;  %v3909_v52 = vadd.f32 %v3861_v51, %v3762_v40 }
 0x1ff   : > { %3957 = vst.msk [vmem:[#allocation4 + $0x70] sm:$0xff] %vm227_vm2, %v3909_v52  ;;  %v2062_v52 = vld [vmem:[#allocation4 + $0xb0] sm:$0xff] }
 0x200   : > { %v2480_v57 = vpop.f32.mrf.mxu3 }
 0x201   : > { %v2623_v58 = vadd.f32 %v2575_v53, %v2480_v57  ;;  %v1967_v61 = vpop.f32.mrf.mxu2  ;;  %v3630_v53 = vsel %vm1786_vm7, %v3627_v8, %v3629_v45  ;;  %v3028_v57 = vshll.u32 %v15622_v47, 16  ;;  %v2063_v8 = vld [vmem:[#allocation4 + $0xb8] sm:$0xff] }
 0x202   : > { %v3764_v60 = vpop.f32.mrf.mxu1  ;;  %v3196_v0 = vpop.f32.mrf.mxu0  ;;  %v3292_v1 = vld [vmem:[#allocation4 + $0x80] sm:$0xff]  ;;  %v2107_v3 = vadd.f32 %v2059_v62, %v1967_v61 }
 0x203   : > { %v3340_v4 = vadd.f32 %v3292_v1, %v3196_v0  ;;  %2671 = vst.msk [vmem:[#allocation4 + $0x88] sm:$0xff] %vm227_vm2, %v2623_v58  ;;  %v2576_v9 = vld [vmem:[#allocation4 + $0x90] sm:$0xff]  ;;  %v3026_v0 = vor.u32 %v3024_v56, %v3022_v28  ;;  %v3030_v1 = vrot.slane %v3028_v57, 1 }
 0x204   : > { %v3862_v6 = vld [vmem:[#allocation4 + $0x78] sm:$0xff]  ;;  %2155 = vst.msk [vmem:[#allocation4 + $0x98] sm:$0xff] %vm227_vm2, %v2107_v3 }
 0x205   : > { %3388 = vst.msk [vmem:[#allocation4 + $0x80] sm:$0xff] %vm227_vm2, %v3340_v4  ;;  %12706 = vmatmul.msk.bf16.gmra.mxu0 %vm227_vm2, %v3015_v2  ;;  %12586 = vmatmul.msk.bf16.gmra.mxu3 %vm227_vm2, %v14379_v59  ;;  %v3910_v7 = vadd.f32 %v3862_v6, %v3764_v60  ;;  %v15629_v60 = vld [vmem:[#allocation3 + $0xa8] sm:$0xff] }
 0x206   : > { %12466 = vmatmul.msk.bf16.gmra.mxu2 %vm227_vm2, %v1825_v5  ;;  %v1828_v2 = vrot.slane %v15629_v60, 1  ;;  %v14381_v5 = vld [vmem:[#allocation3 + $0xa4] sm:$0xff] }
 0x207   : > { %3958 = vst.msk [vmem:[#allocation4 + $0x78] sm:$0xff] %vm227_vm2, %v3910_v7 }
 0x208   : > { %v2483_v11 = vpop.f32.mrf.mxu3 }
 0x209   : > { %v2624_v12 = vadd.f32 %v2576_v9, %v2483_v11  ;;  %v1970_v14 = vpop.f32.mrf.mxu2  ;;  %v15636_v9 = vld [vmem:[#allocation3 + $0xa4] sm:$0xff] }
 0x20a   : > { %v3767_v13 = vpop.f32.mrf.mxu1  ;;  %v3198_v17 = vpop.f32.mrf.mxu0  ;;  %v3293_v18 = vld [vmem:[#allocation4 + $0x88] sm:$0xff]  ;;  %v2108_v21 = vadd.f32 %v2060_v15, %v1970_v14  ;;  %v1829_v15 = vsel %vm1786_vm7, %v1826_v29, %v1828_v2  ;;  %v3032_v29 = vshrl.u32 %v15622_v47, 16 }
 0x20b   : > { %v3341_v22 = vadd.f32 %v3293_v18, %v3198_v17  ;;  %2672 = vst.msk [vmem:[#allocation4 + $0x90] sm:$0xff] %vm227_vm2, %v2624_v12  ;;  %v2577_v26 = vld [vmem:[#allocation4 + $0x98] sm:$0xff]  ;;  %v3031_v12 = vsel %vm1067_vm6, %v3026_v0, %v3030_v1  ;;  %v3631_v18 = vrot.slane %v15636_v9, 1  ;;  %v15670_v47 = vld [vmem:[#allocation3 + $0xac] sm:$0xff] }
 0x20c   : > { %v3863_v24 = vld [vmem:[#allocation4 + $0x80] sm:$0xff]  ;;  %2156 = vst.msk [vmem:[#allocation4 + $0xa0] sm:$0xff] %vm227_vm2, %v2108_v21  ;;  %v3633_v56 = vrot.slane %v15670_v47, 1 }
 0x20d   : > { %12827 = vmatmul.msk.bf16.gmra.mxu1 %vm227_vm2, %v3628_v16  ;;  %3389 = vst.msk [vmem:[#allocation4 + $0x88] sm:$0xff] %vm227_vm2, %v3341_v22  ;;  %v3911_v25 = vadd.f32 %v3863_v24, %v3767_v13 }
 0x20f   : > { %3959 = vst.msk [vmem:[#allocation4 + $0x80] sm:$0xff] %vm227_vm2, %v3911_v25  ;;  %v2064_v25 = vld [vmem:[#allocation4 + $0xc0] sm:$0xff] }
 0x210   : > { %v2485_v30 = vpop.f32.mrf.mxu3 }
 0x211   : > { %v2625_v31 = vadd.f32 %v2577_v26, %v2485_v30  ;;  %v1972_v34 = vpop.f32.mrf.mxu2  ;;  %v3632_v26 = vsel %vm1786_vm7, %v3629_v45, %v3631_v18  ;;  %v3036_v30 = vshll.u32 %v15651_v20, 16 }
 0x212   : > { %v3769_v33 = vpop.f32.mrf.mxu1  ;;  %v3201_v37 = vpop.f32.mrf.mxu0  ;;  %v3294_v38 = vld [vmem:[#allocation4 + $0x90] sm:$0xff]  ;;  %v2109_v40 = vadd.f32 %v2061_v35, %v1972_v34  ;;  %v225_v35 = vld [vmem:[%s14801_s25 + $0xf8] sm:$0xff] }
 0x213   : > { %v3342_v42 = vadd.f32 %v3294_v38, %v3201_v37  ;;  %2673 = vst.msk [vmem:[#allocation4 + $0x98] sm:$0xff] %vm227_vm2, %v2625_v31  ;;  %v2578_v46 = vld [vmem:[#allocation4 + $0xa0] sm:$0xff]  ;;  %v3034_v38 = vor.u32 %v3032_v29, %v3030_v1 }
 0x214   : > { %v3864_v43 = vld [vmem:[#allocation4 + $0x88] sm:$0xff]  ;;  %2157 = vst.msk [vmem:[#allocation4 + $0xa8] sm:$0xff] %vm227_vm2, %v2109_v40 }
 0x215   : > { %3390 = vst.msk [vmem:[#allocation4 + $0x90] sm:$0xff] %vm227_vm2, %v3342_v42  ;;  %12707 = vmatmul.msk.bf16.gmra.mxu0 %vm227_vm2, %v3023_v39  ;;  %12587 = vmatmul.msk.bf16.gmra.mxu3 %vm227_vm2, %v14380_v32  ;;  %v3912_v44 = vadd.f32 %v3864_v43, %v3769_v33  ;;  %v15660_v33 = vld [vmem:[#allocation3 + $0xb0] sm:$0xff]  ;;  %v3038_v39 = vrot.slane %v3036_v30, 1 }
 0x216   : > { %12467 = vmatmul.msk.bf16.gmra.mxu2 %vm227_vm2, %v1827_v41  ;;  %259 = vst.msk [vmem:[#allocation2 + $0x189] sm:$0xff] %vm227_vm2, %v225_v35  ;;  %v1830_v40 = vrot.slane %v15660_v33, 1  ;;  %v14382_v43 = vld [vmem:[#allocation3 + $0xac] sm:$0xff]  ;;  %v15721_v33 = vld [vmem:[#allocation3 + $0xbc] sm:$0xff] }
 0x217   : > { %3960 = vst.msk [vmem:[#allocation4 + $0x88] sm:$0xff] %vm227_vm2, %v3912_v44 }
 0x218   : > { %v2488_v48 = vpop.f32.mrf.mxu3  ;;  %293 = vst.msk [vmem:[#allocation2 + $0x18b] sm:$0x40] %vm277_vm4, %v225_v35 }
 0x219   : > { %v2626_v49 = vadd.f32 %v2578_v46, %v2488_v48  ;;  %v1975_v51 = vpop.f32.mrf.mxu2  ;;  %v2065_v46 = vld [vmem:[#allocation4 + $0xc8] sm:$0xff] }
 0x21a   : > { %v3772_v50 = vpop.f32.mrf.mxu1  ;;  %v3203_v54 = vpop.f32.mrf.mxu0  ;;  %v3295_v55 = vld [vmem:[#allocation4 + $0x98] sm:$0xff]  ;;  %v2110_v58 = vadd.f32 %v2062_v52, %v1975_v51 }
 0x21b   : > { %v3343_v59 = vadd.f32 %v3295_v55, %v3203_v54  ;;  %2674 = vst.msk [vmem:[#allocation4 + $0xa0] sm:$0xff] %vm227_vm2, %v2626_v49  ;;  %v2579_v63 = vld [vmem:[#allocation4 + $0xa8] sm:$0xff] }
 0x21c   : > { %v3865_v61 = vld [vmem:[#allocation4 + $0x90] sm:$0xff]  ;;  %2158 = vst.msk [vmem:[#allocation4 + $0xb0] sm:$0xff] %vm227_vm2, %v2110_v58 }
 0x21d   : > { %12828 = vmatmul.msk.bf16.gmra.mxu1 %vm227_vm2, %v3630_v53  ;;  %3391 = vst.msk [vmem:[#allocation4 + $0x98] sm:$0xff] %vm227_vm2, %v3343_v59  ;;  %v3913_v62 = vadd.f32 %v3865_v61, %v3772_v50  ;;  %v3039_v50 = vsel %vm1067_vm6, %v3034_v38, %v3038_v39  ;;  %v1831_v53 = vsel %vm1786_vm7, %v1828_v2, %v1830_v40  ;;  %v358_v57 = vld [vmem:[#allocation2 + $0x188] sm:$0xff] }
 0x21e   : > { %v15685_v59 = vld [vmem:[#allocation3 + $0xb4] sm:$0xff]  ;;  %v412_v60 = vpack.c.bf16 %v358_v57, %v358_v57 }
 0x21f   : > { %3961 = vst.msk [vmem:[#allocation4 + $0x90] sm:$0xff] %vm227_vm2, %v3913_v62  ;;  %v359_v61 = vld [vmem:[#allocation2 + $0x190] sm:$0xff] }
 0x220   : > { %v2490_v3 = vpop.f32.mrf.mxu3  ;;  %466 = vst.msk [vmem:[#allocation3 + $0xc4] sm:$0xf] %vm191_vm5, %v412_v60 }
 0x221   : > { %v2627_v4 = vadd.f32 %v2579_v63, %v2490_v3  ;;  %v1977_v7 = vpop.f32.mrf.mxu2  ;;  %v413_v63 = vpack.c.bf16 %v359_v61, %v359_v61  ;;  %v2066_v3 = vld [vmem:[#allocation4 + $0xd0] sm:$0xff] }
 0x222   : > { %v3774_v6 = vpop.f32.mrf.mxu1  ;;  %v3206_v10 = vpop.f32.mrf.mxu0  ;;  %v3296_v11 = vld [vmem:[#allocation4 + $0xa0] sm:$0xff]  ;;  %v2111_v13 = vadd.f32 %v2063_v8, %v1977_v7  ;;  %v3040_v7 = vshrl.u32 %v15651_v20, 16  ;;  %v3044_v8 = vshll.u32 %v15685_v59, 16 }
 0x223   : > { %v3344_v14 = vadd.f32 %v3296_v11, %v3206_v10  ;;  %2675 = vst.msk [vmem:[#allocation4 + $0xa8] sm:$0xff] %vm227_vm2, %v2627_v4  ;;  %v2580_v19 = vld [vmem:[#allocation4 + $0xb0] sm:$0xff]  ;;  %v3634_v4 = vsel %vm1786_vm7, %v3631_v18, %v3633_v56 }
 0x224   : > { %v3866_v16 = vld [vmem:[#allocation4 + $0x98] sm:$0xff]  ;;  %2159 = vst.msk [vmem:[#allocation4 + $0xb8] sm:$0xff] %vm227_vm2, %v2111_v13 }
 0x225   : > { %3392 = vst.msk [vmem:[#allocation4 + $0xa0] sm:$0xff] %vm227_vm2, %v3344_v14  ;;  %12708 = vmatmul.msk.bf16.gmra.mxu0 %vm227_vm2, %v3031_v12  ;;  %12588 = vmatmul.msk.bf16.gmra.mxu3 %vm227_vm2, %v14381_v5  ;;  %v3914_v17 = vadd.f32 %v3866_v16, %v3774_v6  ;;  %v15698_v12 = vld [vmem:[#allocation3 + $0xb8] sm:$0xff]  ;;  %v3042_v16 = vor.u32 %v3040_v7, %v3038_v39 }
 0x226   : > { %12468 = vmatmul.msk.bf16.gmra.mxu2 %vm227_vm2, %v1829_v15  ;;  %467 = vst.msk [vmem:[#allocation3 + $0xc8] sm:$0xf] %vm191_vm5, %v413_v63  ;;  %v302_v13 = vld [vmem:[#allocation2 + $0x168] sm:$0xff]  ;;  %v1832_v18 = vrot.slane %v15698_v12, 1 }
 0x227   : > { %3962 = vst.msk [vmem:[#allocation4 + $0x98] sm:$0xff] %vm227_vm2, %v3914_v17  ;;  %v3046_v17 = vrot.slane %v3044_v8, 1 }
 0x228   : > { %v2493_v21 = vpop.f32.mrf.mxu3  ;;  %306 = vst.msk [vmem:[#allocation2 + $0x198] sm:$0xff] %vm227_vm2, %v302_v13 }
 0x229   : > { %v2628_v22 = vadd.f32 %v2580_v19, %v2493_v21  ;;  %v1980_v24 = vpop.f32.mrf.mxu2  ;;  %v14383_v21 = vld [vmem:[#allocation3 + $0xb4] sm:$0xff] }
 0x22a   : > { %v3777_v23 = vpop.f32.mrf.mxu1  ;;  %v3208_v27 = vpop.f32.mrf.mxu0  ;;  %v3297_v28 = vld [vmem:[#allocation4 + $0xa8] sm:$0xff]  ;;  %v2112_v31 = vadd.f32 %v2064_v25, %v1980_v24  ;;  %v2067_v24 = vld [vmem:[#allocation4 + $0xd8] sm:$0xff] }
 0x22b   : > { %v3345_v32 = vadd.f32 %v3297_v28, %v3208_v27  ;;  %2676 = vst.msk [vmem:[#allocation4 + $0xb0] sm:$0xff] %vm227_vm2, %v2628_v22  ;;  %v2581_v37 = vld [vmem:[#allocation4 + $0xb8] sm:$0xff]  ;;  %v3047_v28 = vsel %vm1067_vm6, %v3042_v16, %v3046_v17 }
 0x22c   : > { %v3867_v34 = vld [vmem:[#allocation4 + $0xa0] sm:$0xff]  ;;  %2160 = vst.msk [vmem:[#allocation4 + $0xc0] sm:$0xff] %vm227_vm2, %v2112_v31  ;;  %v15706_v25 = vld [vmem:[#allocation3 + $0xb4] sm:$0xff]  ;;  %v1833_v31 = vsel %vm1786_vm7, %v1830_v40, %v1832_v18 }
 0x22d   : > { %12829 = vmatmul.msk.bf16.gmra.mxu1 %vm227_vm2, %v3632_v26  ;;  %3393 = vst.msk [vmem:[#allocation4 + $0xa8] sm:$0xff] %vm227_vm2, %v3345_v32  ;;  %v3915_v36 = vadd.f32 %v3867_v34, %v3777_v23  ;;  %v1660_v34 = vld [vmem:[#allocation3 + $0xc0] sm:$0x1] }
 0x22e   : > { %v1760_v40 = vunpack.c.l.b16 %v1660_v34 }
 0x22f   : > { %3963 = vst.msk [vmem:[#allocation4 + $0xa0] sm:$0xff] %vm227_vm2, %v3915_v36  ;;  %v3635_v36 = vrot.slane %v15706_v25, 1 }
 0x230   : > { %v2495_v42 = vpop.f32.mrf.mxu3 }
 0x231   : > { %v2629_v41 = vadd.f32 %v2581_v37, %v2495_v42  ;;  %v1982_v45 = vpop.f32.mrf.mxu2  ;;  %v360_v37 = vld [vmem:[#allocation2 + $0x198] sm:$0xff] }
 0x232   : > { %v3779_v44 = vpop.f32.mrf.mxu1  ;;  %v3211_v48 = vpop.f32.mrf.mxu0  ;;  %v3298_v49 = vld [vmem:[#allocation4 + $0xb0] sm:$0xff]  ;;  %v2113_v51 = vadd.f32 %v2065_v46, %v1982_v45  ;;  %v414_v39 = vpack.c.bf16 %v360_v37, %v360_v37  ;;  %v2068_v45 = vld [vmem:[#allocation4 + $0xe0] sm:$0xff]  ;;  %v3636_v46 = vsel %vm1786_vm7, %v3633_v56, %v3635_v36 }
 0x233   : > { %v3346_v52 = vadd.f32 %v3298_v49, %v3211_v48  ;;  %2677 = vst.msk [vmem:[#allocation4 + $0xb8] sm:$0xff] %vm227_vm2, %v2629_v41  ;;  %v2582_v58 = vld [vmem:[#allocation4 + $0xc0] sm:$0xff] }
 0x234   : > { %v3868_v54 = vld [vmem:[#allocation4 + $0xa8] sm:$0xff]  ;;  %2161 = vst.msk [vmem:[#allocation4 + $0xc8] sm:$0xff] %vm227_vm2, %v2113_v51  ;;  %v3052_v51 = vshll.u32 %v15721_v33, 16 }
 0x235   : > { %3394 = vst.msk [vmem:[#allocation4 + $0xb0] sm:$0xff] %vm227_vm2, %v3346_v52  ;;  %12709 = vmatmul.msk.bf16.gmra.mxu0 %vm227_vm2, %v3039_v50  ;;  %12589 = vmatmul.msk.bf16.gmra.mxu3 %vm227_vm2, %v14382_v43  ;;  %v3916_v55 = vadd.f32 %v3868_v54, %v3779_v44  ;;  %v3048_v50 = vshrl.u32 %v15685_v59, 16  ;;  %v1785_v54 = vpack.c.b16 %v1760_v40, %v1760_v40 }
 0x236   : > { %12469 = vmatmul.msk.bf16.gmra.mxu2 %vm227_vm2, %v1831_v53  ;;  %468 = vst.msk [vmem:[#allocation3 + $0xcc] sm:$0xf] %vm191_vm5, %v414_v39  ;;  %v15765_v39 = vld [vmem:[#allocation3 + $0xc4] sm:$0xff] }
 0x237   : > { %3964 = vst.msk [vmem:[#allocation4 + $0xa8] sm:$0xff] %vm227_vm2, %v3916_v55  ;;  %v3050_v57 = vor.u32 %v3048_v50, %v3046_v17  ;;  %v1834_v59 = vrot.slane %v1785_v54, 1 }
 0x238   : > { %v2498_v62 = vpop.f32.mrf.mxu3 }
 0x239   : > { %v2630_v0 = vadd.f32 %v2582_v58, %v2498_v62  ;;  %v1985_v2 = vpop.f32.mrf.mxu2  ;;  %v3054_v58 = vrot.slane %v3052_v51, 1  ;;  %v14384_v62 = vld [vmem:[#allocation3 + $0xbc] sm:$0xff]  ;;  %v1835_v8 = vsel %vm1786_vm7, %v1832_v18, %v1834_v59  ;;  %v2070_v18 = vld [vmem:[#allocation4 + $0xf0] sm:$0xff]  ;;  %v3639_v51 = vrot.slane %v15765_v39, 1 }
 0x23a   : > { %v3782_v1 = vpop.f32.mrf.mxu1  ;;  %v3213_v5 = vpop.f32.mrf.mxu0  ;;  %v3299_v6 = vld [vmem:[#allocation4 + $0xb8] sm:$0xff]  ;;  %v2114_v10 = vadd.f32 %v2066_v3, %v1985_v2 }
 0x23b   : > { %v3347_v11 = vadd.f32 %v3299_v6, %v3213_v5  ;;  %2678 = vst.msk [vmem:[#allocation4 + $0xc0] sm:$0xff] %vm227_vm2, %v2630_v0  ;;  %v2583_v15 = vld [vmem:[#allocation4 + $0xc8] sm:$0xff]  ;;  %v15737_v2 = vld [vmem:[#allocation3 + $0xbc] sm:$0xff]  ;;  %v3055_v5 = vsel %vm1067_vm6, %v3050_v57, %v3054_v58 }
 0x23c   : > { %v3869_v14 = vld [vmem:[#allocation4 + $0xb0] sm:$0xff]  ;;  %2162 = vst.msk [vmem:[#allocation4 + $0xd0] sm:$0xff] %vm227_vm2, %v2114_v10  ;;  %v3637_v13 = vrot.slane %v15737_v2, 1 }
 0x23d   : > { %12830 = vmatmul.msk.bf16.gmra.mxu1 %vm227_vm2, %v3634_v4  ;;  %3395 = vst.msk [vmem:[#allocation4 + $0xb8] sm:$0xff] %vm227_vm2, %v3347_v11  ;;  %v3917_v9 = vadd.f32 %v3869_v14, %v3782_v1  ;;  %v2069_v1 = vld [vmem:[#allocation4 + $0xe8] sm:$0xff] }
 0x23f   : > { %3965 = vst.msk [vmem:[#allocation4 + $0xb0] sm:$0xff] %vm227_vm2, %v3917_v9  ;;  %v15750_v9 = vld [vmem:[#allocation3 + $0xc4] sm:$0xff] }
 0x240   : > { %v2500_v19 = vpop.f32.mrf.mxu3  ;;  %v3064_v57 = vshrl.u32 %v15750_v9, 16 }
 0x241   : > { %v2631_v20 = vadd.f32 %v2583_v15, %v2500_v19  ;;  %v1987_v23 = vpop.f32.mrf.mxu2  ;;  %v3638_v19 = vsel %vm1786_vm7, %v3635_v36, %v3637_v13 }
 0x242   : > { %v3784_v22 = vpop.f32.mrf.mxu1  ;;  %v3216_v26 = vpop.f32.mrf.mxu0  ;;  %v3300_v27 = vld [vmem:[#allocation4 + $0xc0] sm:$0xff]  ;;  %v2115_v29 = vadd.f32 %v2067_v24, %v1987_v23  ;;  %v3060_v23 = vshll.u32 %v15750_v9, 16 }
 0x243   : > { %v3348_v30 = vadd.f32 %v3300_v27, %v3216_v26  ;;  %2679 = vst.msk [vmem:[#allocation4 + $0xc8] sm:$0xff] %vm227_vm2, %v2631_v20  ;;  %v2584_v38 = vld [vmem:[#allocation4 + $0xd0] sm:$0xff] }
 0x244   : > { %v3870_v32 = vld [vmem:[#allocation4 + $0xb8] sm:$0xff]  ;;  %2163 = vst.msk [vmem:[#allocation4 + $0xd8] sm:$0xff] %vm227_vm2, %v2115_v29 }
 0x245   : > { %3396 = vst.msk [vmem:[#allocation4 + $0xc0] sm:$0xff] %vm227_vm2, %v3348_v30  ;;  %12710 = vmatmul.msk.bf16.gmra.mxu0 %vm227_vm2, %v3047_v28  ;;  %12590 = vmatmul.msk.bf16.gmra.mxu3 %vm227_vm2, %v14383_v21  ;;  %v3918_v35 = vadd.f32 %v3870_v32, %v3784_v22  ;;  %v3056_v22 = vshrl.u32 %v15721_v33, 16  ;;  %v3062_v30 = vrot.slane %v3060_v23, 1 }
 0x246   : > { %12470 = vmatmul.msk.bf16.gmra.mxu2 %vm227_vm2, %v1833_v31  ;;  %v2750_v31 = vld [vmem:[#allocation3 + $0xcc] sm:$0x1] }
 0x247   : > { %3966 = vst.msk [vmem:[#allocation4 + $0xb8] sm:$0xff] %vm227_vm2, %v3918_v35  ;;  %v3058_v29 = vor.u32 %v3056_v22, %v3054_v58  ;;  %v14385_v35 = vld [vmem:[#allocation3 + $0xc4] sm:$0xff]  ;;  %v2850_v33 = vunpack.c.l.b16 %v2750_v31 }
 0x248   : > { %v2503_v42 = vpop.f32.mrf.mxu3  ;;  %v15798_v31 = vld [vmem:[#allocation3 + $0x28] sm:$0xff] }
 0x249   : > { %v2632_v41 = vadd.f32 %v2584_v38, %v2503_v42  ;;  %v1990_v44 = vpop.f32.mrf.mxu2  ;;  %v2071_v38 = vld [vmem:[#allocation4 + $0xf8] sm:$0xff]  ;;  %v2875_v50 = vpack.c.b16 %v2850_v33, %v2850_v33  ;;  %v2074_v33 = vld [vmem:[#allocation4 + $0x110] sm:$0xff] }
 0x24a   : > { %v3787_v43 = vpop.f32.mrf.mxu1  ;;  %v3218_v48 = vpop.f32.mrf.mxu0  ;;  %v3301_v49 = vld [vmem:[#allocation4 + $0xc8] sm:$0xff]  ;;  %v2116_v52 = vadd.f32 %v2068_v45, %v1990_v44  ;;  %v14434_v44 = vld [vmem:[#allocation3 + $0x18] sm:$0xff] }
 0x24b   : > { %v3349_v53 = vadd.f32 %v3301_v49, %v3218_v48  ;;  %2680 = vst.msk [vmem:[#allocation4 + $0xd0] sm:$0xff] %vm227_vm2, %v2632_v41  ;;  %v2585_v56 = vld [vmem:[#allocation4 + $0xd8] sm:$0xff]  ;;  %v3063_v41 = vsel %vm1067_vm6, %v3058_v29, %v3062_v30  ;;  %v3068_v58 = vshll.u32 %v2875_v50, 16 }
 0x24c   : > { %v3871_v55 = vld [vmem:[#allocation4 + $0xc0] sm:$0xff]  ;;  %2164 = vst.msk [vmem:[#allocation4 + $0xe0] sm:$0xff] %vm227_vm2, %v2116_v52  ;;  %v14458_v45 = vld [vmem:[#allocation3 + $0x18] sm:$0xff] }
 0x24d   : > { %12831 = vmatmul.msk.bf16.gmra.mxu1 %vm227_vm2, %v3636_v46  ;;  %3397 = vst.msk [vmem:[#allocation4 + $0xc8] sm:$0xff] %vm227_vm2, %v3349_v53  ;;  %v3919_v47 = vadd.f32 %v3871_v55, %v3787_v43  ;;  %v15775_v53 = vld [vmem:[#allocation3 + $0x20] sm:$0xff]  ;;  %v4686_v54 = vshll.u32 %v14458_v45, 16 }
 0x24f   : > { %3967 = vst.msk [vmem:[#allocation4 + $0xc0] sm:$0xff] %vm227_vm2, %v3919_v47 }
 0x250   : > { %v2505_v60 = vpop.f32.mrf.mxu3 }
 0x251   : > { %v2633_v61 = vadd.f32 %v2585_v56, %v2505_v60  ;;  %v1992_v0 = vpop.f32.mrf.mxu2  ;;  %v2072_v60 = vld [vmem:[#allocation4 + $0x100] sm:$0xff] }
 0x252   : > { %v3789_v63 = vpop.f32.mrf.mxu1  ;;  %v3221_v3 = vpop.f32.mrf.mxu0  ;;  %v3302_v4 = vld [vmem:[#allocation4 + $0xd0] sm:$0xff]  ;;  %v2117_v6 = vadd.f32 %v2069_v1, %v1992_v0  ;;  %v4684_v1 = vshrl.u32 %v14458_v45, 16 }
 0x253   : > { %v3350_v7 = vadd.f32 %v3302_v4, %v3221_v3  ;;  %2681 = vst.msk [vmem:[#allocation4 + $0xd8] sm:$0xff] %vm227_vm2, %v2633_v61  ;;  %v2586_v14 = vld [vmem:[#allocation4 + $0xe0] sm:$0xff]  ;;  %v3640_v61 = vsel %vm1786_vm7, %v3637_v13, %v3639_v51  ;;  %v4688_v3 = vrot.slane %v4686_v54, 1  ;;  %v4691_v4 = vshll.u32 %v15775_v53, 16 }
 0x254   : > { %v3872_v10 = vld [vmem:[#allocation4 + $0xc8] sm:$0xff]  ;;  %2165 = vst.msk [vmem:[#allocation4 + $0xe8] sm:$0xff] %vm227_vm2, %v2117_v6  ;;  %v3070_v13 = vrot.slane %v3068_v58, 1 }
 0x255   : > { %3398 = vst.msk [vmem:[#allocation4 + $0xd0] sm:$0xff] %vm227_vm2, %v3350_v7  ;;  %12711 = vmatmul.msk.bf16.gmra.mxu0 %vm227_vm2, %v3055_v5  ;;  %12591 = vmatmul.msk.bf16.gmra.mxu3 %vm227_vm2, %v14384_v62  ;;  %v3920_v11 = vadd.f32 %v3872_v10, %v3789_v63  ;;  %v3468_v5 = vld [vmem:[#allocation3 + $0xcc] sm:$0x1]  ;;  %v4693_v9 = vrot.slane %v4691_v4, 1 }
 0x256   : > { %12471 = vmatmul.msk.bf16.gmra.mxu2 %vm227_vm2, %v1835_v8  ;;  %v3568_v8 = vunpack.c.l.b16 %v3468_v5 }
 0x257   : > { %3968 = vst.msk [vmem:[#allocation4 + $0xc8] sm:$0xff] %vm227_vm2, %v3920_v11  ;;  %v3066_v11 = vor.u32 %v3064_v57, %v3062_v30 }
 0x258   : > { %v2508_v12 = vpop.f32.mrf.mxu3 }
 0x259   : > { %v2634_v15 = vadd.f32 %v2586_v14, %v2508_v12  ;;  %v1995_v17 = vpop.f32.mrf.mxu2  ;;  %v4689_v14 = vor.u32 %v4688_v3, %v4684_v1  ;;  %v3071_v22 = vsel %vm1067_vm6, %v3066_v11, %v3070_v13  ;;  %v14436_v1 = vld [vmem:[#allocation3 + $0x28] sm:$0xff]  ;;  %v2076_v13 = vld [vmem:[#allocation4 + $0x120] sm:$0xff] }
 0x25a   : > { %v3792_v16 = vpop.f32.mrf.mxu1  ;;  %v3223_v20 = vpop.f32.mrf.mxu0  ;;  %v3303_v21 = vld [vmem:[#allocation4 + $0xd8] sm:$0xff]  ;;  %v2118_v24 = vadd.f32 %v2070_v18, %v1995_v17  ;;  %v2073_v18 = vld [vmem:[#allocation4 + $0x108] sm:$0xff] }
 0x25b   : > { %v3351_v26 = vadd.f32 %v3303_v21, %v3223_v20  ;;  %2682 = vst.msk [vmem:[#allocation4 + $0xe0] sm:$0xff] %vm227_vm2, %v2634_v15  ;;  %v2587_v28 = vld [vmem:[#allocation4 + $0xe8] sm:$0xff]  ;;  %v4694_v23 = vsel %vm1067_vm6, %v4689_v14, %v4693_v9 }
 0x25c   : > { %v3873_v27 = vld [vmem:[#allocation4 + $0xd0] sm:$0xff]  ;;  %2166 = vst.msk [vmem:[#allocation4 + $0xf0] sm:$0xff] %vm227_vm2, %v2118_v24 }
 0x25d   : > { %12832 = vmatmul.msk.bf16.gmra.mxu1 %vm227_vm2, %v3638_v19  ;;  %3399 = vst.msk [vmem:[#allocation4 + $0xd8] sm:$0xff] %vm227_vm2, %v3351_v26  ;;  %v3921_v25 = vadd.f32 %v3873_v27, %v3792_v16  ;;  %v3593_v19 = vpack.c.b16 %v3568_v8, %v3568_v8  ;;  %v14435_v26 = vld [vmem:[#allocation3 + $0x20] sm:$0xff] }
 0x25f   : > { %3969 = vst.msk [vmem:[#allocation4 + $0xd0] sm:$0xff] %vm227_vm2, %v3921_v25  ;;  %v3641_v29 = vrot.slane %v3593_v19, 1 }
 0x260   : > { %v2510_v32 = vpop.f32.mrf.mxu3 }
 0x261   : > { %v2635_v34 = vadd.f32 %v2587_v28, %v2510_v32  ;;  %v1997_v37 = vpop.f32.mrf.mxu2  ;;  %v13080_v32 = vld [vmem:[#allocation3 + $0x18] sm:$0xe] }
 0x262   : > { %v3794_v36 = vpop.f32.mrf.mxu1  ;;  %v3226_v40 = vpop.f32.mrf.mxu0  ;;  %v3304_v42 = vld [vmem:[#allocation4 + $0xe0] sm:$0xff]  ;;  %v2119_v43 = vadd.f32 %v2071_v38, %v1997_v37 }
 0x263   : > { %v3352_v46 = vadd.f32 %v3304_v42, %v3226_v40  ;;  %2683 = vst.msk [vmem:[#allocation4 + $0xe8] sm:$0xff] %vm227_vm2, %v2635_v34  ;;  %v2588_v52 = vld [vmem:[#allocation4 + $0xf0] sm:$0xff]  ;;  %v14482_v34 = vld [vmem:[#allocation3 + $0x18] sm:$0xf0]  ;;  %v3642_v40 = vsel %vm1786_vm7, %v3639_v51, %v3641_v29  ;;  %v2077_v29 = vld [vmem:[#allocation4 + $0x128] sm:$0xff] }
 0x264   : > { %v3874_v48 = vld [vmem:[#allocation4 + $0xd8] sm:$0xff]  ;;  %2167 = vst.msk [vmem:[#allocation4 + $0xf8] sm:$0xff] %vm227_vm2, %v2119_v43  ;;  %v15804_v43 = vld [vmem:[#allocation3 + $0x20] sm:$0xff] }
 0x265   : > { %3400 = vst.msk [vmem:[#allocation4 + $0xe0] sm:$0xff] %vm227_vm2, %v3352_v46  ;;  %12712 = vmatmul.msk.bf16.gmra.mxu0 %vm227_vm2, %v3063_v41  ;;  %12592 = vmatmul.msk.bf16.gmra.mxu3 %vm227_vm2, %v14385_v35  ;;  %v3922_v49 = vadd.f32 %v3874_v48, %v3794_v36  ;;  %v4695_v46 = vshrl.u32 %v15775_v53, 16  ;;  %v4699_v48 = vshll.u32 %v15798_v31, 16  ;;  %v5402_v54 = vrot.slane %v15804_v43, 1 }
 0x266   : > { %12932 = vmatmul.msk.bf16.vlgmr.msra.gmra.mxu2 %vm227_vm2, %v14434_v44  ;;  %v13081_v44 = vor.u32 %v14482_v34, %v13080_v32 }
 0x267   : > { %3970 = vst.msk [vmem:[#allocation4 + $0xd8] sm:$0xff] %vm227_vm2, %v3922_v49 }
 0x268   : > { %v2513_v55 = vpop.f32.mrf.mxu3 }
 0x269   : > { %v2636_v47 = vadd.f32 %v2588_v52, %v2513_v55  ;;  %v2000_v59 = vpop.f32.mrf.mxu2  ;;  %v5401_v52 = vrot.slane %v13081_v44, 1  ;;  %v4697_v55 = vor.u32 %v4695_v46, %v4693_v9  ;;  %v2078_v46 = vld [vmem:[#allocation4 + $0x130] sm:$0xff] }
 0x26a   : > { %v3797_v56 = vpop.f32.mrf.mxu1  ;;  %v3228_v62 = vpop.f32.mrf.mxu0  ;;  %v3305_v63 = vld [vmem:[#allocation4 + $0xe8] sm:$0xff]  ;;  %v2120_v0 = vadd.f32 %v2072_v60, %v2000_v59  ;;  %v2075_v59 = vld [vmem:[#allocation4 + $0x118] sm:$0xff] }
 0x26b   : > { %v3353_v6 = vadd.f32 %v3305_v63, %v3228_v62  ;;  %2684 = vst.msk [vmem:[#allocation4 + $0xf0] sm:$0xff] %vm227_vm2, %v2636_v47  ;;  %v2589_v10 = vld [vmem:[#allocation4 + $0xf8] sm:$0xff]  ;;  %v4701_v47 = vrot.slane %v4699_v48, 1  ;;  %v5403_v62 = vsel %vm1786_vm7, %v5401_v52, %v5402_v54 }
 0x26c   : > { %v3875_v7 = vld [vmem:[#allocation4 + $0xe0] sm:$0xff]  ;;  %2168 = vst.msk [vmem:[#allocation4 + $0x100] sm:$0xff] %vm227_vm2, %v2120_v0 }
 0x26d   : > { %12833 = vmatmul.msk.bf16.gmra.mxu1 %vm227_vm2, %v3640_v61  ;;  %3401 = vst.msk [vmem:[#allocation4 + $0xe8] sm:$0xff] %vm227_vm2, %v3353_v6  ;;  %v3923_v2 = vadd.f32 %v3875_v7, %v3797_v56  ;;  %v4702_v63 = vsel %vm1067_vm6, %v4697_v55, %v4701_v47  ;;  %v15822_v7 = vld [vmem:[#allocation3 + $0x30] sm:$0xff] }
 0x26f   : > { %3971 = vst.msk [vmem:[#allocation4 + $0xe0] sm:$0xff] %vm227_vm2, %v3923_v2 }
 0x270   : > { %v2515_v12 = vpop.f32.mrf.mxu3 }
 0x271   : > { %v2637_v15 = vadd.f32 %v2589_v10, %v2515_v12  ;;  %v2002_v17 = vpop.f32.mrf.mxu2  ;;  %v15825_v12 = vld [vmem:[#allocation3 + $0x28] sm:$0xff] }
 0x272   : > { %v3799_v16 = vpop.f32.mrf.mxu1  ;;  %v3231_v20 = vpop.f32.mrf.mxu0  ;;  %v3306_v21 = vld [vmem:[#allocation4 + $0xf0] sm:$0xff]  ;;  %v2121_v24 = vadd.f32 %v2073_v18, %v2002_v17  ;;  %v4707_v17 = vshll.u32 %v15822_v7, 16 }
 0x273   : > { %v3354_v27 = vadd.f32 %v3306_v21, %v3231_v20  ;;  %2685 = vst.msk [vmem:[#allocation4 + $0xf8] sm:$0xff] %vm227_vm2, %v2637_v15  ;;  %v2590_v30 = vld [vmem:[#allocation4 + $0x100] sm:$0xff] }
 0x274   : > { %v3876_v25 = vld [vmem:[#allocation4 + $0xe8] sm:$0xff]  ;;  %2169 = vst.msk [vmem:[#allocation4 + $0x108] sm:$0xff] %vm227_vm2, %v2121_v24  ;;  %v4709_v24 = vrot.slane %v4707_v17, 1 }
 0x275   : > { %3402 = vst.msk [vmem:[#allocation4 + $0xf0] sm:$0xff] %vm227_vm2, %v3354_v27  ;;  %12713 = vmatmul.msk.bf16.gmra.mxu0 %vm227_vm2, %v3071_v22  ;;  %13053 = vmatmul.msk.bf16.vlgmr.msra.gmra.mxu3 %vm227_vm2, %v4694_v23  ;;  %v3924_v28 = vadd.f32 %v3876_v25, %v3799_v16  ;;  %v4703_v16 = vshrl.u32 %v15798_v31, 16  ;;  %v5404_v22 = vrot.slane %v15825_v12, 1 }
 0x276   : > { %12933 = vmatmul.msk.bf16.gmra.mxu2 %vm227_vm2, %v14435_v26 }
 0x277   : > { %3972 = vst.msk [vmem:[#allocation4 + $0xe8] sm:$0xff] %vm227_vm2, %v3924_v28  ;;  %v4705_v23 = vor.u32 %v4703_v16, %v4701_v47  ;;  %v5405_v32 = vsel %vm1786_vm7, %v5402_v54, %v5404_v22 }
 0x278   : > { %v2518_v35 = vpop.f32.mrf.mxu3 }
 0x279   : > { %v2638_v36 = vadd.f32 %v2590_v30, %v2518_v35  ;;  %v2005_v38 = vpop.f32.mrf.mxu2  ;;  %v4710_v34 = vsel %vm1067_vm6, %v4705_v23, %v4709_v24 }
 0x27a   : > { %v3802_v37 = vpop.f32.mrf.mxu1  ;;  %v3233_v42 = vpop.f32.mrf.mxu0  ;;  %v3307_v41 = vld [vmem:[#allocation4 + $0xf8] sm:$0xff]  ;;  %v2122_v45 = vadd.f32 %v2074_v33, %v2005_v38 }
 0x27b   : > { %v3355_v49 = vadd.f32 %v3307_v41, %v3233_v42  ;;  %2686 = vst.msk [vmem:[#allocation4 + $0x100] sm:$0xff] %vm227_vm2, %v2638_v36  ;;  %v2591_v51 = vld [vmem:[#allocation4 + $0x108] sm:$0xff]  ;;  %v14437_v36 = vld [vmem:[#allocation3 + $0x30] sm:$0xff]  ;;  %v15842_v42 = vld [vmem:[#allocation3 + $0x38] sm:$0xff] }
 0x27c   : > { %v3877_v50 = vld [vmem:[#allocation4 + $0xf0] sm:$0xff]  ;;  %2170 = vst.msk [vmem:[#allocation4 + $0x110] sm:$0xff] %vm227_vm2, %v2122_v45  ;;  %v4715_v52 = vshll.u32 %v15842_v42, 16 }
 0x27d   : > { %12834 = vmatmul.msk.bf16.gmra.mxu1 %vm227_vm2, %v3642_v40  ;;  %3403 = vst.msk [vmem:[#allocation4 + $0xf8] sm:$0xff] %vm227_vm2, %v3355_v49  ;;  %v3925_v39 = vadd.f32 %v3877_v50, %v3802_v37  ;;  %v15845_v50 = vld [vmem:[#allocation3 + $0x30] sm:$0xff] }
 0x27f   : > { %3973 = vst.msk [vmem:[#allocation4 + $0xf0] sm:$0xff] %vm227_vm2, %v3925_v39 }
 0x280   : > { %v2520_v53 = vpop.f32.mrf.mxu3 }
 0x281   : > { %v2639_v56 = vadd.f32 %v2591_v51, %v2520_v53  ;;  %v2007_v58 = vpop.f32.mrf.mxu2  ;;  %v4711_v51 = vshrl.u32 %v15822_v7, 16 }
 0x282   : > { %v3804_v57 = vpop.f32.mrf.mxu1  ;;  %v3236_v60 = vpop.f32.mrf.mxu0  ;;  %v3308_v61 = vld [vmem:[#allocation4 + $0x100] sm:$0xff]  ;;  %v2123_v0 = vadd.f32 %v2075_v59, %v2007_v58  ;;  %v4717_v58 = vrot.slane %v4715_v52, 1 }
 0x283   : > { %v3356_v3 = vadd.f32 %v3308_v61, %v3236_v60  ;;  %2687 = vst.msk [vmem:[#allocation4 + $0x108] sm:$0xff] %vm227_vm2, %v2639_v56  ;;  %v2592_v6 = vld [vmem:[#allocation4 + $0x110] sm:$0xff]  ;;  %v5406_v56 = vrot.slane %v15845_v50, 1 }
 0x284   : > { %v3878_v4 = vld [vmem:[#allocation4 + $0xf8] sm:$0xff]  ;;  %2171 = vst.msk [vmem:[#allocation4 + $0x118] sm:$0xff] %vm227_vm2, %v2123_v0 }
 0x285   : > { %3404 = vst.msk [vmem:[#allocation4 + $0x100] sm:$0xff] %vm227_vm2, %v3356_v3  ;;  %13174 = vmatmul.msk.bf16.vlgmr.msra.gmra.mxu0 %vm227_vm2, %v5403_v62  ;;  %13054 = vmatmul.msk.bf16.gmra.mxu3 %vm227_vm2, %v4702_v63  ;;  %v3926_v5 = vadd.f32 %v3878_v4, %v3804_v57  ;;  %v4713_v57 = vor.u32 %v4711_v51, %v4709_v24  ;;  %v2079_v63 = vld [vmem:[#allocation4 + $0x138] sm:$0xff] }
 0x286   : > { %12934 = vmatmul.msk.bf16.gmra.mxu2 %vm227_vm2, %v14436_v1  ;;  %v5407_v3 = vsel %vm1786_vm7, %v5404_v22, %v5406_v56 }
 0x287   : > { %3974 = vst.msk [vmem:[#allocation4 + $0xf8] sm:$0xff] %vm227_vm2, %v3926_v5  ;;  %v4718_v4 = vsel %vm1067_vm6, %v4713_v57, %v4717_v58 }
 0x288   : > { %v2523_v2 = vpop.f32.mrf.mxu3 }
 0x289   : > { %v2640_v8 = vadd.f32 %v2592_v6, %v2523_v2  ;;  %v2010_v11 = vpop.f32.mrf.mxu2  ;;  %v14438_v6 = vld [vmem:[#allocation3 + $0x38] sm:$0xff] }
 0x28a   : > { %v3807_v10 = vpop.f32.mrf.mxu1  ;;  %v3238_v14 = vpop.f32.mrf.mxu0  ;;  %v3309_v9 = vld [vmem:[#allocation4 + $0x108] sm:$0xff]  ;;  %v2124_v15 = vadd.f32 %v2076_v13, %v2010_v11  ;;  %v15862_v11 = vld [vmem:[#allocation3 + $0x40] sm:$0xff] }
 0x28b   : > { %v3357_v18 = vadd.f32 %v3309_v9, %v3238_v14  ;;  %2688 = vst.msk [vmem:[#allocation4 + $0x110] sm:$0xff] %vm227_vm2, %v2640_v8  ;;  %v2593_v21 = vld [vmem:[#allocation4 + $0x118] sm:$0xff] }
 0x28c   : > { %v3879_v19 = vld [vmem:[#allocation4 + $0x100] sm:$0xff]  ;;  %2172 = vst.msk [vmem:[#allocation4 + $0x120] sm:$0xff] %vm227_vm2, %v2124_v15 }
 0x28d   : > { %3405 = vst.msk [vmem:[#allocation4 + $0x108] sm:$0xff] %vm227_vm2, %v3357_v18  ;;  %v3927_v20 = vadd.f32 %v3879_v19, %v3807_v10  ;;  %v2080_v15 = vld [vmem:[#allocation4 + $0x140] sm:$0xff]  ;;  %v15865_v18 = vld [vmem:[#allocation3 + $0x38] sm:$0xff] }
 0x28f   : > { %3975 = vst.msk [vmem:[#allocation4 + $0x100] sm:$0xff] %vm227_vm2, %v3927_v20  ;;  %v4719_v20 = vshrl.u32 %v15842_v42, 16 }
 0x290   : > { %v2525_v26 = vpop.f32.mrf.mxu3 }
 0x291   : > { %v2641_v27 = vadd.f32 %v2593_v21, %v2525_v26  ;;  %v2012_v28 = vpop.f32.mrf.mxu2  ;;  %v4723_v21 = vshll.u32 %v15862_v11, 16 }
 0x292   : > { %v3809_v25 = vpop.f32.mrf.mxu1  ;;  %v3241_v30 = vpop.f32.mrf.mxu0  ;;  %v3310_v31 = vld [vmem:[#allocation4 + $0x110] sm:$0xff]  ;;  %v2125_v35 = vadd.f32 %v2077_v29, %v2012_v28 }
 0x293   : > { %v3358_v37 = vadd.f32 %v3310_v31, %v3241_v30  ;;  %2689 = vst.msk [vmem:[#allocation4 + $0x118] sm:$0xff] %vm227_vm2, %v2641_v27  ;;  %v2594_v40 = vld [vmem:[#allocation4 + $0x120] sm:$0xff]  ;;  %v5408_v27 = vrot.slane %v15865_v18, 1  ;;  %v4725_v28 = vrot.slane %v4723_v21, 1 }
 0x294   : > { %v3880_v38 = vld [vmem:[#allocation4 + $0x108] sm:$0xff]  ;;  %2173 = vst.msk [vmem:[#allocation4 + $0x128] sm:$0xff] %vm227_vm2, %v2125_v35 }
 0x295   : > { %3406 = vst.msk [vmem:[#allocation4 + $0x110] sm:$0xff] %vm227_vm2, %v3358_v37  ;;  %13175 = vmatmul.msk.bf16.gmra.mxu0 %vm227_vm2, %v5405_v32  ;;  %13055 = vmatmul.msk.bf16.gmra.mxu3 %vm227_vm2, %v4710_v34  ;;  %v3928_v33 = vadd.f32 %v3880_v38, %v3809_v25  ;;  %v4721_v25 = vor.u32 %v4719_v20, %v4717_v58  ;;  %v2081_v34 = vld [vmem:[#allocation4 + $0x148] sm:$0xff] }
 0x296   : > { %12935 = vmatmul.msk.bf16.gmra.mxu2 %vm227_vm2, %v14437_v36  ;;  %v5409_v37 = vsel %vm1786_vm7, %v5406_v56, %v5408_v27 }
 0x297   : > { %3976 = vst.msk [vmem:[#allocation4 + $0x108] sm:$0xff] %vm227_vm2, %v3928_v33  ;;  %v4726_v38 = vsel %vm1067_vm6, %v4721_v25, %v4725_v28 }
 0x298   : > { %v2528_v41 = vpop.f32.mrf.mxu3 }
 0x299   : > { %v2642_v43 = vadd.f32 %v2594_v40, %v2528_v41  ;;  %v2015_v45 = vpop.f32.mrf.mxu2  ;;  %v14439_v40 = vld [vmem:[#allocation3 + $0x40] sm:$0xff] }
 0x29a   : > { %v3812_v44 = vpop.f32.mrf.mxu1  ;;  %v3243_v48 = vpop.f32.mrf.mxu0  ;;  %v3311_v49 = vld [vmem:[#allocation4 + $0x118] sm:$0xff]  ;;  %v2126_v39 = vadd.f32 %v2078_v46, %v2015_v45  ;;  %v15882_v45 = vld [vmem:[#allocation3 + $0x48] sm:$0xff] }
 0x29b   : > { %v3359_v54 = vadd.f32 %v3311_v49, %v3243_v48  ;;  %2690 = vst.msk [vmem:[#allocation4 + $0x120] sm:$0xff] %vm227_vm2, %v2642_v43  ;;  %v2595_v53 = vld [vmem:[#allocation4 + $0x128] sm:$0xff] }
 0x29c   : > { %v3881_v55 = vld [vmem:[#allocation4 + $0x110] sm:$0xff]  ;;  %2174 = vst.msk [vmem:[#allocation4 + $0x130] sm:$0xff] %vm227_vm2, %v2126_v39 }
 0x29d   : > { %3407 = vst.msk [vmem:[#allocation4 + $0x118] sm:$0xff] %vm227_vm2, %v3359_v54  ;;  %v3929_v47 = vadd.f32 %v3881_v55, %v3812_v44  ;;  %v2082_v39 = vld [vmem:[#allocation4 + $0x150] sm:$0xff]  ;;  %v15885_v54 = vld [vmem:[#allocation3 + $0x40] sm:$0xff] }
 0x29f   : > { %3977 = vst.msk [vmem:[#allocation4 + $0x110] sm:$0xff] %vm227_vm2, %v3929_v47  ;;  %v4727_v47 = vshrl.u32 %v15862_v11, 16 }
 0x2a0   : > { %v2530_v59 = vpop.f32.mrf.mxu3 }
 0x2a1   : > { %v2643_v60 = vadd.f32 %v2595_v53, %v2530_v59  ;;  %v2017_v62 = vpop.f32.mrf.mxu2  ;;  %v4731_v53 = vshll.u32 %v15882_v45, 16 }
 0x2a2   : > { %v3814_v61 = vpop.f32.mrf.mxu1  ;;  %v3246_v0 = vpop.f32.mrf.mxu0  ;;  %v3312_v1 = vld [vmem:[#allocation4 + $0x120] sm:$0xff]  ;;  %v2127_v5 = vadd.f32 %v2079_v63, %v2017_v62 }
 0x2a3   : > { %v3360_v7 = vadd.f32 %v3312_v1, %v3246_v0  ;;  %2691 = vst.msk [vmem:[#allocation4 + $0x128] sm:$0xff] %vm227_vm2, %v2643_v60  ;;  %v2596_v10 = vld [vmem:[#allocation4 + $0x130] sm:$0xff]  ;;  %v5410_v60 = vrot.slane %v15885_v54, 1  ;;  %v4733_v62 = vrot.slane %v4731_v53, 1 }
 0x2a4   : > { %v3882_v2 = vld [vmem:[#allocation4 + $0x118] sm:$0xff]  ;;  %2175 = vst.msk [vmem:[#allocation4 + $0x138] sm:$0xff] %vm227_vm2, %v2127_v5 }
 0x2a5   : > { %3408 = vst.msk [vmem:[#allocation4 + $0x120] sm:$0xff] %vm227_vm2, %v3360_v7  ;;  %13176 = vmatmul.msk.bf16.gmra.mxu0 %vm227_vm2, %v5407_v3  ;;  %13056 = vmatmul.msk.bf16.gmra.mxu3 %vm227_vm2, %v4718_v4  ;;  %v3930_v8 = vadd.f32 %v3882_v2, %v3814_v61  ;;  %v4729_v61 = vor.u32 %v4727_v47, %v4725_v28  ;;  %v2083_v4 = vld [vmem:[#allocation4 + $0x158] sm:$0xff] }
 0x2a6   : > { %12936 = vmatmul.msk.bf16.gmra.mxu2 %vm227_vm2, %v14438_v6  ;;  %v5411_v7 = vsel %vm1786_vm7, %v5408_v27, %v5410_v60 }
 0x2a7   : > { %3978 = vst.msk [vmem:[#allocation4 + $0x118] sm:$0xff] %vm227_vm2, %v3930_v8  ;;  %v4734_v2 = vsel %vm1067_vm6, %v4729_v61, %v4733_v62 }
 0x2a8   : > { %v2533_v13 = vpop.f32.mrf.mxu3 }
 0x2a9   : > { %v2644_v14 = vadd.f32 %v2596_v10, %v2533_v13  ;;  %v2020_v12 = vpop.f32.mrf.mxu2  ;;  %v14440_v10 = vld [vmem:[#allocation3 + $0x48] sm:$0xff] }
 0x2aa   : > { %v3817_v9 = vpop.f32.mrf.mxu1  ;;  %v3248_v16 = vpop.f32.mrf.mxu0  ;;  %v3313_v17 = vld [vmem:[#allocation4 + $0x128] sm:$0xff]  ;;  %v2128_v19 = vadd.f32 %v2080_v15, %v2020_v12  ;;  %v15902_v12 = vld [vmem:[#allocation3 + $0x50] sm:$0xff] }
 0x2ab   : > { %v3361_v22 = vadd.f32 %v3313_v17, %v3248_v16  ;;  %2692 = vst.msk [vmem:[#allocation4 + $0x130] sm:$0xff] %vm227_vm2, %v2644_v14  ;;  %v2597_v26 = vld [vmem:[#allocation4 + $0x138] sm:$0xff] }
 0x2ac   : > { %v3883_v23 = vld [vmem:[#allocation4 + $0x120] sm:$0xff]  ;;  %2176 = vst.msk [vmem:[#allocation4 + $0x140] sm:$0xff] %vm227_vm2, %v2128_v19 }
 0x2ad   : > { %3409 = vst.msk [vmem:[#allocation4 + $0x128] sm:$0xff] %vm227_vm2, %v3361_v22  ;;  %v3931_v24 = vadd.f32 %v3883_v23, %v3817_v9  ;;  %v2084_v19 = vld [vmem:[#allocation4 + $0x160] sm:$0xff]  ;;  %v15905_v22 = vld [vmem:[#allocation3 + $0x48] sm:$0xff] }
 0x2af   : > { %3979 = vst.msk [vmem:[#allocation4 + $0x120] sm:$0xff] %vm227_vm2, %v3931_v24  ;;  %v4735_v24 = vshrl.u32 %v15882_v45, 16 }
 0x2b0   : > { %v2535_v29 = vpop.f32.mrf.mxu3 }
 0x2b1   : > { %v2645_v30 = vadd.f32 %v2597_v26, %v2535_v29  ;;  %v2022_v32 = vpop.f32.mrf.mxu2  ;;  %v4739_v26 = vshll.u32 %v15902_v12, 16 }
 0x2b2   : > { %v3819_v31 = vpop.f32.mrf.mxu1  ;;  %v3251_v35 = vpop.f32.mrf.mxu0  ;;  %v3314_v36 = vld [vmem:[#allocation4 + $0x130] sm:$0xff]  ;;  %v2129_v33 = vadd.f32 %v2081_v34, %v2022_v32 }
 0x2b3   : > { %v3362_v42 = vadd.f32 %v3314_v36, %v3251_v35  ;;  %2693 = vst.msk [vmem:[#allocation4 + $0x138] sm:$0xff] %vm227_vm2, %v2645_v30  ;;  %v2598_v44 = vld [vmem:[#allocation4 + $0x140] sm:$0xff]  ;;  %v5412_v30 = vrot.slane %v15905_v22, 1  ;;  %v4741_v32 = vrot.slane %v4739_v26, 1 }
 0x2b4   : > { %v3884_v41 = vld [vmem:[#allocation4 + $0x128] sm:$0xff]  ;;  %2177 = vst.msk [vmem:[#allocation4 + $0x148] sm:$0xff] %vm227_vm2, %v2129_v33 }
 0x2b5   : > { %3410 = vst.msk [vmem:[#allocation4 + $0x130] sm:$0xff] %vm227_vm2, %v3362_v42  ;;  %13177 = vmatmul.msk.bf16.gmra.mxu0 %vm227_vm2, %v5409_v37  ;;  %13057 = vmatmul.msk.bf16.gmra.mxu3 %vm227_vm2, %v4726_v38  ;;  %v3932_v43 = vadd.f32 %v3884_v41, %v3819_v31  ;;  %v4737_v31 = vor.u32 %v4735_v24, %v4733_v62  ;;  %v2085_v38 = vld [vmem:[#allocation4 + $0x168] sm:$0xff] }
 0x2b6   : > { %12937 = vmatmul.msk.bf16.gmra.mxu2 %vm227_vm2, %v14439_v40  ;;  %v5413_v42 = vsel %vm1786_vm7, %v5410_v60, %v5412_v30 }
 0x2b7   : > { %3980 = vst.msk [vmem:[#allocation4 + $0x128] sm:$0xff] %vm227_vm2, %v3932_v43  ;;  %v4742_v41 = vsel %vm1067_vm6, %v4737_v31, %v4741_v32 }
 0x2b8   : > { %v2538_v46 = vpop.f32.mrf.mxu3 }
 0x2b9   : > { %v2646_v48 = vadd.f32 %v2598_v44, %v2538_v46  ;;  %v2025_v50 = vpop.f32.mrf.mxu2  ;;  %v14441_v44 = vld [vmem:[#allocation3 + $0x50] sm:$0xff] }
 0x2ba   : > { %v3822_v49 = vpop.f32.mrf.mxu1  ;;  %v3253_v51 = vpop.f32.mrf.mxu0  ;;  %v3315_v52 = vld [vmem:[#allocation4 + $0x138] sm:$0xff]  ;;  %v2130_v55 = vadd.f32 %v2082_v39, %v2025_v50 }
 0x2bb   : > { %v3363_v56 = vadd.f32 %v3315_v52, %v3253_v51  ;;  %2694 = vst.msk [vmem:[#allocation4 + $0x140] sm:$0xff] %vm227_vm2, %v2646_v48  ;;  %v2599_v59 = vld [vmem:[#allocation4 + $0x148] sm:$0xff]  ;;  %v15922_v50 = vld [vmem:[#allocation3 + $0x58] sm:$0xff] }
 0x2bc   : > { %v3885_v57 = vld [vmem:[#allocation4 + $0x130] sm:$0xff]  ;;  %2178 = vst.msk [vmem:[#allocation4 + $0x150] sm:$0xff] %vm227_vm2, %v2130_v55 }
 0x2bd   : > { %3411 = vst.msk [vmem:[#allocation4 + $0x138] sm:$0xff] %vm227_vm2, %v3363_v56  ;;  %v3933_v58 = vadd.f32 %v3885_v57, %v3822_v49  ;;  %v2086_v55 = vld [vmem:[#allocation4 + $0x170] sm:$0xff] }
 0x2be   : > { %v15925_v56 = vld [vmem:[#allocation3 + $0x50] sm:$0xff] }
 0x2bf   : > { %3981 = vst.msk [vmem:[#allocation4 + $0x130] sm:$0xff] %vm227_vm2, %v3933_v58  ;;  %v4743_v58 = vshrl.u32 %v15902_v12, 16 }
 0x2c0   : > { %v2540_v63 = vpop.f32.mrf.mxu3 }
 0x2c1   : > { %v2647_v0 = vadd.f32 %v2599_v59, %v2540_v63  ;;  %v2027_v3 = vpop.f32.mrf.mxu2  ;;  %v4747_v59 = vshll.u32 %v15922_v50, 16 }
 0x2c2   : > { %v3824_v1 = vpop.f32.mrf.mxu1  ;;  %v3256_v5 = vpop.f32.mrf.mxu0  ;;  %v3316_v6 = vld [vmem:[#allocation4 + $0x140] sm:$0xff]  ;;  %v2131_v8 = vadd.f32 %v2083_v4, %v2027_v3 }
 0x2c3   : > { %v3364_v11 = vadd.f32 %v3316_v6, %v3256_v5  ;;  %2695 = vst.msk [vmem:[#allocation4 + $0x148] sm:$0xff] %vm227_vm2, %v2647_v0  ;;  %v2600_v9 = vld [vmem:[#allocation4 + $0x150] sm:$0xff]  ;;  %v5414_v0 = vrot.slane %v15925_v56, 1  ;;  %v4749_v3 = vrot.slane %v4747_v59, 1 }
 0x2c4   : > { %v3886_v13 = vld [vmem:[#allocation4 + $0x138] sm:$0xff]  ;;  %2179 = vst.msk [vmem:[#allocation4 + $0x158] sm:$0xff] %vm227_vm2, %v2131_v8 }
 0x2c5   : > { %3412 = vst.msk [vmem:[#allocation4 + $0x140] sm:$0xff] %vm227_vm2, %v3364_v11  ;;  %13178 = vmatmul.msk.bf16.gmra.mxu0 %vm227_vm2, %v5411_v7  ;;  %13058 = vmatmul.msk.bf16.gmra.mxu3 %vm227_vm2, %v4734_v2  ;;  %v3934_v14 = vadd.f32 %v3886_v13, %v3824_v1  ;;  %v4745_v1 = vor.u32 %v4743_v58, %v4741_v32  ;;  %v2087_v2 = vld [vmem:[#allocation4 + $0x178] sm:$0xff] }
 0x2c6   : > { %12938 = vmatmul.msk.bf16.gmra.mxu2 %vm227_vm2, %v14440_v10  ;;  %v5415_v11 = vsel %vm1786_vm7, %v5412_v30, %v5414_v0 }
 0x2c7   : > { %3982 = vst.msk [vmem:[#allocation4 + $0x138] sm:$0xff] %vm227_vm2, %v3934_v14  ;;  %v4750_v13 = vsel %vm1067_vm6, %v4745_v1, %v4749_v3 }
 0x2c8   : > { %v2543_v15 = vpop.f32.mrf.mxu3 }
 0x2c9   : > { %v2648_v16 = vadd.f32 %v2600_v9, %v2543_v15  ;;  %v2030_v18 = vpop.f32.mrf.mxu2  ;;  %v14442_v9 = vld [vmem:[#allocation3 + $0x58] sm:$0xff] }
 0x2ca   : > { %v3827_v17 = vpop.f32.mrf.mxu1  ;;  %v3258_v20 = vpop.f32.mrf.mxu0  ;;  %v3317_v21 = vld [vmem:[#allocation4 + $0x148] sm:$0xff]  ;;  %v2132_v23 = vadd.f32 %v2084_v19, %v2030_v18  ;;  %v15942_v18 = vld [vmem:[#allocation3 + $0x60] sm:$0xff] }
 0x2cb   : > { %v3365_v27 = vadd.f32 %v3317_v21, %v3258_v20  ;;  %2696 = vst.msk [vmem:[#allocation4 + $0x150] sm:$0xff] %vm227_vm2, %v2648_v16  ;;  %v2601_v29 = vld [vmem:[#allocation4 + $0x158] sm:$0xff] }
 0x2cc   : > { %v3887_v25 = vld [vmem:[#allocation4 + $0x140] sm:$0xff]  ;;  %2180 = vst.msk [vmem:[#allocation4 + $0x160] sm:$0xff] %vm227_vm2, %v2132_v23 }
 0x2cd   : > { %3413 = vst.msk [vmem:[#allocation4 + $0x148] sm:$0xff] %vm227_vm2, %v3365_v27  ;;  %v3935_v28 = vadd.f32 %v3887_v25, %v3827_v17  ;;  %v4365_v23 = vld [vmem:[#allocation4] sm:$0xff]  ;;  %v15945_v27 = vld [vmem:[#allocation3 + $0x58] sm:$0xff] }
 0x2cf   : > { %3983 = vst.msk [vmem:[#allocation4 + $0x140] sm:$0xff] %vm227_vm2, %v3935_v28  ;;  %v4751_v28 = vshrl.u32 %v15922_v50, 16 }
 0x2d0   : > { %v2545_v34 = vpop.f32.mrf.mxu3 }
 0x2d1   : > { %v2649_v35 = vadd.f32 %v2601_v29, %v2545_v34  ;;  %v2032_v37 = vpop.f32.mrf.mxu2  ;;  %v4755_v29 = vshll.u32 %v15942_v18, 16 }
 0x2d2   : > { %v3829_v36 = vpop.f32.mrf.mxu1  ;;  %v3261_v33 = vpop.f32.mrf.mxu0  ;;  %v3318_v40 = vld [vmem:[#allocation4 + $0x150] sm:$0xff]  ;;  %v2133_v43 = vadd.f32 %v2085_v38, %v2032_v37 }
 0x2d3   : > { %v3366_v45 = vadd.f32 %v3318_v40, %v3261_v33  ;;  %2697 = vst.msk [vmem:[#allocation4 + $0x158] sm:$0xff] %vm227_vm2, %v2649_v35  ;;  %v2602_v49 = vld [vmem:[#allocation4 + $0x160] sm:$0xff]  ;;  %v5416_v35 = vrot.slane %v15945_v27, 1  ;;  %v4757_v37 = vrot.slane %v4755_v29, 1  ;;  %v14492_v29 = vld [vmem:[#allocation3 + $0x68] sm:$0xff] }
 0x2d4   : > { %v3888_v46 = vld [vmem:[#allocation4 + $0x148] sm:$0xff]  ;;  %2181 = vst.msk [vmem:[#allocation4 + $0x168] sm:$0xff] %vm227_vm2, %v2133_v43  ;;  %v4369_v27 = vld [vmem:[#allocation4 + $0x20] sm:$0xff] }
 0x2d5   : > { %3414 = vst.msk [vmem:[#allocation4 + $0x150] sm:$0xff] %vm227_vm2, %v3366_v45  ;;  %13179 = vmatmul.msk.bf16.gmra.mxu0 %vm227_vm2, %v5413_v42  ;;  %13059 = vmatmul.msk.bf16.gmra.mxu3 %vm227_vm2, %v4742_v41  ;;  %v3936_v48 = vadd.f32 %v3888_v46, %v3829_v36  ;;  %v4753_v36 = vor.u32 %v4751_v28, %v4749_v3  ;;  %v4366_v41 = vld [vmem:[#allocation4 + $0x8] sm:$0xff] }
 0x2d6   : > { %12939 = vmatmul.msk.bf16.gmra.mxu2 %vm227_vm2, %v14441_v44  ;;  %v5417_v45 = vsel %vm1786_vm7, %v5414_v0, %v5416_v35 }
 0x2d7   : > { %3984 = vst.msk [vmem:[#allocation4 + $0x148] sm:$0xff] %vm227_vm2, %v3936_v48  ;;  %v4758_v46 = vsel %vm1067_vm6, %v4753_v36, %v4757_v37  ;;  %v5420_v36 = vrot.slane %v14492_v29, 1 }
 0x2d8   : > { %v2548_v39 = vpop.f32.mrf.mxu3 }
 0x2d9   : > { %v2650_v51 = vadd.f32 %v2602_v49, %v2548_v39  ;;  %v2035_v54 = vpop.f32.mrf.mxu2  ;;  %v14443_v49 = vld [vmem:[#allocation3 + $0x60] sm:$0xff] }
 0x2da   : > { %v3832_v52 = vpop.f32.mrf.mxu1  ;;  %v3263_v47 = vpop.f32.mrf.mxu0  ;;  %v3319_v53 = vld [vmem:[#allocation4 + $0x158] sm:$0xff]  ;;  %v2134_v57 = vadd.f32 %v2086_v55, %v2035_v54  ;;  %v15962_v54 = vld [vmem:[#allocation3 + $0x68] sm:$0xff] }
 0x2db   : > { %v3367_v60 = vadd.f32 %v3319_v53, %v3263_v47  ;;  %2698 = vst.msk [vmem:[#allocation4 + $0x160] sm:$0xff] %vm227_vm2, %v2650_v51  ;;  %v2603_v63 = vld [vmem:[#allocation4 + $0x168] sm:$0xff] }
 0x2dc   : > { %v3889_v61 = vld [vmem:[#allocation4 + $0x150] sm:$0xff]  ;;  %2182 = vst.msk [vmem:[#allocation4 + $0x170] sm:$0xff] %vm227_vm2, %v2134_v57 }
 0x2dd   : > { %3415 = vst.msk [vmem:[#allocation4 + $0x158] sm:$0xff] %vm227_vm2, %v3367_v60  ;;  %v3937_v62 = vadd.f32 %v3889_v61, %v3832_v52  ;;  %v4367_v57 = vld [vmem:[#allocation4 + $0x10] sm:$0xff]  ;;  %v15965_v60 = vld [vmem:[#allocation3 + $0x60] sm:$0xff] }
 0x2df   : > { %3985 = vst.msk [vmem:[#allocation4 + $0x150] sm:$0xff] %vm227_vm2, %v3937_v62  ;;  %v4759_v62 = vshrl.u32 %v15942_v18, 16 }
 0x2e0   : > { %v2550_v4 = vpop.f32.mrf.mxu3 }
 0x2e1   : > { %v2651_v5 = vadd.f32 %v2603_v63, %v2550_v4  ;;  %v2037_v7 = vpop.f32.mrf.mxu2  ;;  %v4763_v63 = vshll.u32 %v15962_v54, 16 }
 0x2e2   : > { %v3834_v6 = vpop.f32.mrf.mxu1  ;;  %v3266_v8 = vpop.f32.mrf.mxu0  ;;  %v3320_v10 = vld [vmem:[#allocation4 + $0x160] sm:$0xff]  ;;  %v2135_v14 = vadd.f32 %v2087_v2, %v2037_v7 }
 0x2e3   : > { %v3368_v12 = vadd.f32 %v3320_v10, %v3266_v8  ;;  %2699 = vst.msk [vmem:[#allocation4 + $0x168] sm:$0xff] %vm227_vm2, %v2651_v5  ;;  %v2604_v17 = vld [vmem:[#allocation4 + $0x170] sm:$0xff]  ;;  %v5418_v5 = vrot.slane %v15965_v60, 1  ;;  %v4765_v7 = vrot.slane %v4763_v63, 1 }
 0x2e4   : > { %v3890_v15 = vld [vmem:[#allocation4 + $0x158] sm:$0xff]  ;;  %2183 = vst.msk [vmem:[#allocation4 + $0x178] sm:$0xff] %vm227_vm2, %v2135_v14 }
 0x2e5   : > { %3416 = vst.msk [vmem:[#allocation4 + $0x160] sm:$0xff] %vm227_vm2, %v3368_v12  ;;  %13180 = vmatmul.msk.bf16.gmra.mxu0 %vm227_vm2, %v5415_v11  ;;  %13060 = vmatmul.msk.bf16.gmra.mxu3 %vm227_vm2, %v4750_v13  ;;  %v3938_v16 = vadd.f32 %v3890_v15, %v3834_v6  ;;  %v4761_v6 = vor.u32 %v4759_v62, %v4757_v37  ;;  %v4368_v11 = vld [vmem:[#allocation4 + $0x18] sm:$0xff] }
 0x2e6   : > { %12940 = vmatmul.msk.bf16.gmra.mxu2 %vm227_vm2, %v14442_v9  ;;  %v5419_v9 = vsel %vm1786_vm7, %v5416_v35, %v5418_v5 }
 0x2e7   : > { %3986 = vst.msk [vmem:[#allocation4 + $0x158] sm:$0xff] %vm227_vm2, %v3938_v16  ;;  %v4766_v12 = vsel %vm1067_vm6, %v4761_v6, %v4765_v7  ;;  %v4372_v6 = vld [vmem:[#allocation4 + $0x38] sm:$0xff] }
 0x2e8   : > { %v2553_v19 = vpop.f32.mrf.mxu3 }
 0x2e9   : > { %v2652_v20 = vadd.f32 %v2604_v17, %v2553_v19  ;;  %v4245_v22 = vpop.f32.mrf.mxu2  ;;  %v14444_v17 = vld [vmem:[#allocation3 + $0x68] sm:$0xff] }
 0x2ea   : > { %v3837_v21 = vpop.f32.mrf.mxu1  ;;  %v3268_v24 = vpop.f32.mrf.mxu0  ;;  %v3321_v26 = vld [vmem:[#allocation4 + $0x168] sm:$0xff]  ;;  %v4413_v25 = vadd.f32 %v4365_v23, %v4245_v22  ;;  %v14469_v22 = vld [vmem:[#allocation3 + $0x70] sm:$0xff] }
 0x2eb   : > { %v3369_v30 = vadd.f32 %v3321_v26, %v3268_v24  ;;  %2700 = vst.msk [vmem:[#allocation4 + $0x170] sm:$0xff] %vm227_vm2, %v2652_v20  ;;  %v2605_v34 = vld [vmem:[#allocation4 + $0x178] sm:$0xff] }
 0x2ec   : > { %v3891_v31 = vld [vmem:[#allocation4 + $0x160] sm:$0xff]  ;;  %4461 = vst.msk [vmem:[#allocation4] sm:$0xff] %vm227_vm2, %v4413_v25 }
 0x2ed   : > { %3417 = vst.msk [vmem:[#allocation4 + $0x168] sm:$0xff] %vm227_vm2, %v3369_v30  ;;  %v3939_v32 = vadd.f32 %v3891_v31, %v3837_v21  ;;  %v4767_v31 = vshrl.u32 %v15962_v54, 16 }
 0x2ef   : > { %3987 = vst.msk [vmem:[#allocation4 + $0x160] sm:$0xff] %vm227_vm2, %v3939_v32  ;;  %v4771_v32 = vshll.u32 %v14469_v22, 16  ;;  %v4769_v37 = vor.u32 %v4767_v31, %v4765_v7 }
 0x2f0   : > { %v2555_v38 = vpop.f32.mrf.mxu3 }
 0x2f1   : > { %v2653_v33 = vadd.f32 %v2605_v34, %v2555_v38  ;;  %v4247_v42 = vpop.f32.mrf.mxu2  ;;  %v4773_v38 = vrot.slane %v4771_v32, 1 }
 0x2f2   : > { %v3839_v40 = vpop.f32.mrf.mxu1  ;;  %v3271_v43 = vpop.f32.mrf.mxu0  ;;  %v3322_v44 = vld [vmem:[#allocation4 + $0x170] sm:$0xff]  ;;  %v4414_v48 = vadd.f32 %v4366_v41, %v4247_v42  ;;  %v4370_v41 = vld [vmem:[#allocation4 + $0x28] sm:$0xff] }
 0x2f3   : > { %v3370_v50 = vadd.f32 %v3322_v44, %v3271_v43  ;;  %2701 = vst.msk [vmem:[#allocation4 + $0x178] sm:$0xff] %vm227_vm2, %v2653_v33  ;;  %v5083_v52 = vld [vmem:[#allocation4] sm:$0xff] }
 0x2f4   : > { %v3892_v39 = vld [vmem:[#allocation4 + $0x168] sm:$0xff]  ;;  %4462 = vst.msk [vmem:[#allocation4 + $0x8] sm:$0xff] %vm227_vm2, %v4414_v48 }
 0x2f5   : > { %3418 = vst.msk [vmem:[#allocation4 + $0x170] sm:$0xff] %vm227_vm2, %v3370_v50  ;;  %13181 = vmatmul.msk.bf16.gmra.mxu0 %vm227_vm2, %v5417_v45  ;;  %13061 = vmatmul.msk.bf16.gmra.mxu3 %vm227_vm2, %v4758_v46  ;;  %v3940_v51 = vadd.f32 %v3892_v39, %v3839_v40  ;;  %v5421_v45 = vsel %vm1786_vm7, %v5418_v5, %v5420_v36 }
 0x2f6   : > { %12941 = vmatmul.msk.bf16.gmra.mxu2 %vm227_vm2, %v14443_v49  ;;  %v4774_v46 = vsel %vm1067_vm6, %v4769_v37, %v4773_v38  ;;  %v14445_v49 = vld [vmem:[#allocation3 + $0x70] sm:$0xff] }
 0x2f7   : > { %3988 = vst.msk [vmem:[#allocation4 + $0x168] sm:$0xff] %vm227_vm2, %v3940_v51  ;;  %v14470_v51 = vld [vmem:[#allocation3 + $0x78] sm:$0xff] }
 0x2f8   : > { %v4963_v55 = vpop.f32.mrf.mxu3  ;;  %v4779_v60 = vshll.u32 %v14470_v51, 16 }
 0x2f9   : > { %v5131_v47 = vadd.f32 %v5083_v52, %v4963_v55  ;;  %v4250_v56 = vpop.f32.mrf.mxu2 }
 0x2fa   : > { %v3842_v53 = vpop.f32.mrf.mxu1  ;;  %v3273_v58 = vpop.f32.mrf.mxu0  ;;  %v3323_v59 = vld [vmem:[#allocation4 + $0x178] sm:$0xff]  ;;  %v4415_v61 = vadd.f32 %v4367_v57, %v4250_v56  ;;  %v14493_v57 = vld [vmem:[#allocation3 + $0x70] sm:$0xff] }
 0x2fb   : > { %v3371_v0 = vadd.f32 %v3323_v59, %v3273_v58  ;;  %5179 = vst.msk [vmem:[#allocation4] sm:$0xff] %vm227_vm2, %v5131_v47  ;;  %v5084_v4 = vld [vmem:[#allocation4 + $0x8] sm:$0xff]  ;;  %v4371_v47 = vld [vmem:[#allocation4 + $0x30] sm:$0xff]  ;;  %v4775_v59 = vshrl.u32 %v14469_v22, 16  ;;  %v5422_v63 = vrot.slane %v14493_v57, 1 }
 0x2fc   : > { %v3893_v1 = vld [vmem:[#allocation4 + $0x170] sm:$0xff]  ;;  %4463 = vst.msk [vmem:[#allocation4 + $0x10] sm:$0xff] %vm227_vm2, %v4415_v61 }
 0x2fd   : > { %3419 = vst.msk [vmem:[#allocation4 + $0x178] sm:$0xff] %vm227_vm2, %v3371_v0  ;;  %v3941_v3 = vadd.f32 %v3893_v1, %v3842_v53  ;;  %v4777_v0 = vor.u32 %v4775_v59, %v4773_v38  ;;  %v4781_v1 = vrot.slane %v4779_v60, 1 }
 0x2ff   : > { %3989 = vst.msk [vmem:[#allocation4 + $0x170] sm:$0xff] %vm227_vm2, %v3941_v3 }
 0x300   : > { %v4965_v2 = vpop.f32.mrf.mxu3 }
 0x301   : > { %v5132_v8 = vadd.f32 %v5084_v4, %v4965_v2  ;;  %v4252_v10 = vpop.f32.mrf.mxu2 }
 0x302   : > { %v5534_v13 = vpop.f32.mrf.mxu0  ;;  %v5654_v14 = vld [vmem:[#allocation4] sm:$0xff]  ;;  %v3844_v15 = vpop.f32.mrf.mxu1  ;;  %v4416_v16 = vadd.f32 %v4368_v11, %v4252_v10  ;;  %v4782_v10 = vsel %vm1067_vm6, %v4777_v0, %v4781_v1 }
 0x303   : > { %v5702_v18 = vadd.f32 %v5654_v14, %v5534_v13  ;;  %5180 = vst.msk [vmem:[#allocation4 + $0x8] sm:$0xff] %vm227_vm2, %v5132_v8  ;;  %v5085_v21 = vld [vmem:[#allocation4 + $0x10] sm:$0xff]  ;;  %v5423_v8 = vsel %vm1786_vm7, %v5420_v36, %v5422_v63  ;;  %v14446_v13 = vld [vmem:[#allocation3 + $0x78] sm:$0xff] }
 0x304   : > { %v3894_v19 = vld [vmem:[#allocation4 + $0x178] sm:$0xff]  ;;  %4464 = vst.msk [vmem:[#allocation4 + $0x18] sm:$0xff] %vm227_vm2, %v4416_v16 }
 0x305   : > { %5750 = vst.msk [vmem:[#allocation4] sm:$0xff] %vm227_vm2, %v5702_v18  ;;  %13182 = vmatmul.msk.bf16.gmra.mxu0 %vm227_vm2, %v5419_v9  ;;  %13062 = vmatmul.msk.bf16.gmra.mxu3 %vm227_vm2, %v4766_v12  ;;  %v3942_v20 = vadd.f32 %v3894_v19, %v3844_v15  ;;  %v14471_v12 = vld [vmem:[#allocation3 + $0x80] sm:$0xff] }
 0x306   : > { %12942 = vmatmul.msk.bf16.gmra.mxu2 %vm227_vm2, %v14444_v17  ;;  %v4373_v18 = vld [vmem:[#allocation4 + $0x40] sm:$0xff] }
 0x307   : > { %3990 = vst.msk [vmem:[#allocation4 + $0x178] sm:$0xff] %vm227_vm2, %v3942_v20 }
 0x308   : > { %v4968_v23 = vpop.f32.mrf.mxu3 }
 0x309   : > { %v5133_v24 = vadd.f32 %v5085_v21, %v4968_v23  ;;  %v4255_v26 = vpop.f32.mrf.mxu2  ;;  %v14494_v21 = vld [vmem:[#allocation3 + $0x78] sm:$0xff]  ;;  %v4783_v23 = vshrl.u32 %v14470_v51, 16 }
 0x30a   : > { %v5536_v25 = vpop.f32.mrf.mxu0  ;;  %v5655_v28 = vld [vmem:[#allocation4 + $0x8] sm:$0xff]  ;;  %v4417_v30 = vadd.f32 %v4369_v27, %v4255_v26 }
 0x30b   : > { %v5703_v34 = vadd.f32 %v5655_v28, %v5536_v25  ;;  %5181 = vst.msk [vmem:[#allocation4 + $0x10] sm:$0xff] %vm227_vm2, %v5133_v24  ;;  %v5086_v35 = vld [vmem:[#allocation4 + $0x18] sm:$0xff]  ;;  %v4787_v24 = vshll.u32 %v14471_v12, 16  ;;  %v5424_v25 = vrot.slane %v14494_v21, 1  ;;  %v4785_v28 = vor.u32 %v4783_v23, %v4781_v1 }
 0x30c   : > { %4465 = vst.msk [vmem:[#allocation4 + $0x20] sm:$0xff] %vm227_vm2, %v4417_v30 }
 0x30d   : > { %5751 = vst.msk [vmem:[#allocation4 + $0x8] sm:$0xff] %vm227_vm2, %v5703_v34  ;;  %v4789_v29 = vrot.slane %v4787_v24, 1  ;;  %v4374_v34 = vld [vmem:[#allocation4 + $0x48] sm:$0xff]  ;;  %v5425_v37 = vsel %vm1786_vm7, %v5422_v63, %v5424_v25 }
 0x30f   : > { %v4790_v38 = vsel %vm1067_vm6, %v4785_v28, %v4789_v29 }
 0x310   : > { %v4970_v33 = vpop.f32.mrf.mxu3 }
 0x311   : > { %v5134_v40 = vadd.f32 %v5086_v35, %v4970_v33  ;;  %v4257_v42 = vpop.f32.mrf.mxu2 }
 0x312   : > { %v5539_v43 = vpop.f32.mrf.mxu0  ;;  %v5656_v44 = vld [vmem:[#allocation4 + $0x10] sm:$0xff]  ;;  %v4418_v48 = vadd.f32 %v4370_v41, %v4257_v42 }
 0x313   : > { %v5704_v50 = vadd.f32 %v5656_v44, %v5539_v43  ;;  %5182 = vst.msk [vmem:[#allocation4 + $0x18] sm:$0xff] %vm227_vm2, %v5134_v40  ;;  %v5087_v39 = vld [vmem:[#allocation4 + $0x20] sm:$0xff]  ;;  %v14472_v43 = vld [vmem:[#allocation3 + $0x88] sm:$0xff] }
 0x314   : > { %4466 = vst.msk [vmem:[#allocation4 + $0x28] sm:$0xff] %vm227_vm2, %v4418_v48  ;;  %v14447_v40 = vld [vmem:[#allocation3 + $0x80] sm:$0xff]  ;;  %v4375_v48 = vld [vmem:[#allocation4 + $0x50] sm:$0xff] }
 0x315   : > { %5752 = vst.msk [vmem:[#allocation4 + $0x10] sm:$0xff] %vm227_vm2, %v5704_v50  ;;  %13183 = vmatmul.msk.bf16.gmra.mxu0 %vm227_vm2, %v5421_v45  ;;  %13063 = vmatmul.msk.bf16.gmra.mxu3 %vm227_vm2, %v4774_v46 }
 0x316   : > { %12943 = vmatmul.msk.bf16.gmra.mxu2 %vm227_vm2, %v14445_v49 }
 0x318   : > { %v4973_v52 = vpop.f32.mrf.mxu3 }
 0x319   : > { %v5135_v54 = vadd.f32 %v5087_v39, %v4973_v52  ;;  %v4260_v55 = vpop.f32.mrf.mxu2  ;;  %v14495_v39 = vld [vmem:[#allocation3 + $0x80] sm:$0xff]  ;;  %v4791_v52 = vshrl.u32 %v14471_v12, 16 }
 0x31a   : > { %v5541_v53 = vpop.f32.mrf.mxu0  ;;  %v5657_v56 = vld [vmem:[#allocation4 + $0x18] sm:$0xff]  ;;  %v4419_v58 = vadd.f32 %v4371_v47, %v4260_v55 }
 0x31b   : > { %v5705_v61 = vadd.f32 %v5657_v56, %v5541_v53  ;;  %5183 = vst.msk [vmem:[#allocation4 + $0x20] sm:$0xff] %vm227_vm2, %v5135_v54  ;;  %v5088_v62 = vld [vmem:[#allocation4 + $0x28] sm:$0xff]  ;;  %v4795_v54 = vshll.u32 %v14472_v43, 16  ;;  %v5426_v53 = vrot.slane %v14495_v39, 1  ;;  %v4793_v56 = vor.u32 %v4791_v52, %v4789_v29 }
 0x31c   : > { %4467 = vst.msk [vmem:[#allocation4 + $0x30] sm:$0xff] %vm227_vm2, %v4419_v58 }
 0x31d   : > { %5753 = vst.msk [vmem:[#allocation4 + $0x18] sm:$0xff] %vm227_vm2, %v5705_v61  ;;  %v4797_v57 = vrot.slane %v4795_v54, 1  ;;  %v4376_v61 = vld [vmem:[#allocation4 + $0x58] sm:$0xff]  ;;  %v5427_v0 = vsel %vm1786_vm7, %v5424_v25, %v5426_v53 }
 0x31f   : > { %v4798_v1 = vsel %vm1067_vm6, %v4793_v56, %v4797_v57 }
 0x320   : > { %v4975_v3 = vpop.f32.mrf.mxu3 }
 0x321   : > { %v5136_v4 = vadd.f32 %v5088_v62, %v4975_v3  ;;  %v4262_v5 = vpop.f32.mrf.mxu2 }
 0x322   : > { %v5544_v7 = vpop.f32.mrf.mxu0  ;;  %v5658_v2 = vld [vmem:[#allocation4 + $0x20] sm:$0xff]  ;;  %v4420_v11 = vadd.f32 %v4372_v6, %v4262_v5 }
 0x323   : > { %v5706_v14 = vadd.f32 %v5658_v2, %v5544_v7  ;;  %5184 = vst.msk [vmem:[#allocation4 + $0x28] sm:$0xff] %vm227_vm2, %v5136_v4  ;;  %v5089_v9 = vld [vmem:[#allocation4 + $0x30] sm:$0xff]  ;;  %v14448_v4 = vld [vmem:[#allocation3 + $0x88] sm:$0xff] }
 0x324   : > { %4468 = vst.msk [vmem:[#allocation4 + $0x38] sm:$0xff] %vm227_vm2, %v4420_v11  ;;  %v14473_v7 = vld [vmem:[#allocation3 + $0x90] sm:$0xff]  ;;  %v4377_v11 = vld [vmem:[#allocation4 + $0x60] sm:$0xff] }
 0x325   : > { %5754 = vst.msk [vmem:[#allocation4 + $0x20] sm:$0xff] %vm227_vm2, %v5706_v14  ;;  %13184 = vmatmul.msk.bf16.gmra.mxu0 %vm227_vm2, %v5423_v8  ;;  %13064 = vmatmul.msk.bf16.gmra.mxu3 %vm227_vm2, %v4782_v10 }
 0x326   : > { %12944 = vmatmul.msk.bf16.gmra.mxu2 %vm227_vm2, %v14446_v13 }
 0x328   : > { %v4978_v15 = vpop.f32.mrf.mxu3 }
 0x329   : > { %v5137_v16 = vadd.f32 %v5089_v9, %v4978_v15  ;;  %v4265_v17 = vpop.f32.mrf.mxu2  ;;  %v14496_v9 = vld [vmem:[#allocation3 + $0x88] sm:$0xff]  ;;  %v4799_v15 = vshrl.u32 %v14472_v43, 16 }
 0x32a   : > { %v5546_v19 = vpop.f32.mrf.mxu0  ;;  %v5659_v20 = vld [vmem:[#allocation4 + $0x28] sm:$0xff]  ;;  %v4421_v22 = vadd.f32 %v4373_v18, %v4265_v17 }
 0x32b   : > { %v5707_v26 = vadd.f32 %v5659_v20, %v5546_v19  ;;  %5185 = vst.msk [vmem:[#allocation4 + $0x30] sm:$0xff] %vm227_vm2, %v5137_v16  ;;  %v5090_v27 = vld [vmem:[#allocation4 + $0x38] sm:$0xff]  ;;  %v4803_v16 = vshll.u32 %v14473_v7, 16  ;;  %v5428_v19 = vrot.slane %v14496_v9, 1  ;;  %v4801_v20 = vor.u32 %v4799_v15, %v4797_v57 }
 0x32c   : > { %4469 = vst.msk [vmem:[#allocation4 + $0x40] sm:$0xff] %vm227_vm2, %v4421_v22 }
 0x32d   : > { %5755 = vst.msk [vmem:[#allocation4 + $0x28] sm:$0xff] %vm227_vm2, %v5707_v26  ;;  %v4805_v21 = vrot.slane %v4803_v16, 1  ;;  %v4378_v26 = vld [vmem:[#allocation4 + $0x68] sm:$0xff]  ;;  %v5429_v28 = vsel %vm1786_vm7, %v5426_v53, %v5428_v19 }
 0x32f   : > { %v4806_v29 = vsel %vm1067_vm6, %v4801_v20, %v4805_v21 }
 0x330   : > { %v4980_v30 = vpop.f32.mrf.mxu3 }
 0x331   : > { %v5138_v31 = vadd.f32 %v5090_v27, %v4980_v30  ;;  %v4267_v32 = vpop.f32.mrf.mxu2 }
 0x332   : > { %v5549_v35 = vpop.f32.mrf.mxu0  ;;  %v5660_v36 = vld [vmem:[#allocation4 + $0x30] sm:$0xff]  ;;  %v4422_v33 = vadd.f32 %v4374_v34, %v4267_v32 }
 0x333   : > { %v5708_v42 = vadd.f32 %v5660_v36, %v5549_v35  ;;  %5186 = vst.msk [vmem:[#allocation4 + $0x38] sm:$0xff] %vm227_vm2, %v5138_v31  ;;  %v5091_v41 = vld [vmem:[#allocation4 + $0x40] sm:$0xff]  ;;  %v14449_v31 = vld [vmem:[#allocation3 + $0x90] sm:$0xff]  ;;  %v14474_v35 = vld [vmem:[#allocation3 + $0x98] sm:$0xff] }
 0x334   : > { %4470 = vst.msk [vmem:[#allocation4 + $0x48] sm:$0xff] %vm227_vm2, %v4422_v33  ;;  %v4379_v33 = vld [vmem:[#allocation4 + $0x70] sm:$0xff] }
 0x335   : > { %5756 = vst.msk [vmem:[#allocation4 + $0x30] sm:$0xff] %vm227_vm2, %v5708_v42  ;;  %13185 = vmatmul.msk.bf16.gmra.mxu0 %vm227_vm2, %v5425_v37  ;;  %13065 = vmatmul.msk.bf16.gmra.mxu3 %vm227_vm2, %v4790_v38 }
 0x336   : > { %12945 = vmatmul.msk.bf16.gmra.mxu2 %vm227_vm2, %v14447_v40 }
 0x338   : > { %v4983_v44 = vpop.f32.mrf.mxu3 }
 0x339   : > { %v5139_v45 = vadd.f32 %v5091_v41, %v4983_v44  ;;  %v4270_v46 = vpop.f32.mrf.mxu2  ;;  %v14497_v41 = vld [vmem:[#allocation3 + $0x90] sm:$0xff]  ;;  %v4807_v44 = vshrl.u32 %v14473_v7, 16 }
 0x33a   : > { %v5551_v49 = vpop.f32.mrf.mxu0  ;;  %v5661_v50 = vld [vmem:[#allocation4 + $0x38] sm:$0xff]  ;;  %v4423_v51 = vadd.f32 %v4375_v48, %v4270_v46 }
 0x33b   : > { %v5709_v55 = vadd.f32 %v5661_v50, %v5551_v49  ;;  %5187 = vst.msk [vmem:[#allocation4 + $0x40] sm:$0xff] %vm227_vm2, %v5139_v45  ;;  %v5092_v47 = vld [vmem:[#allocation4 + $0x48] sm:$0xff]  ;;  %v4811_v45 = vshll.u32 %v14474_v35, 16  ;;  %v5430_v49 = vrot.slane %v14497_v41, 1  ;;  %v4809_v50 = vor.u32 %v4807_v44, %v4805_v21 }
 0x33c   : > { %4471 = vst.msk [vmem:[#allocation4 + $0x50] sm:$0xff] %vm227_vm2, %v4423_v51 }
 0x33d   : > { %5757 = vst.msk [vmem:[#allocation4 + $0x38] sm:$0xff] %vm227_vm2, %v5709_v55  ;;  %v4813_v39 = vrot.slane %v4811_v45, 1  ;;  %v4380_v55 = vld [vmem:[#allocation4 + $0x78] sm:$0xff]  ;;  %v5431_v56 = vsel %vm1786_vm7, %v5428_v19, %v5430_v49 }
 0x33f   : > { %v4814_v57 = vsel %vm1067_vm6, %v4809_v50, %v4813_v39 }
 0x340   : > { %v4985_v58 = vpop.f32.mrf.mxu3 }
 0x341   : > { %v5140_v59 = vadd.f32 %v5092_v47, %v4985_v58  ;;  %v4272_v60 = vpop.f32.mrf.mxu2 }
 0x342   : > { %v5554_v62 = vpop.f32.mrf.mxu0  ;;  %v5662_v63 = vld [vmem:[#allocation4 + $0x40] sm:$0xff]  ;;  %v4424_v3 = vadd.f32 %v4376_v61, %v4272_v60 }
 0x343   : > { %v5710_v5 = vadd.f32 %v5662_v63, %v5554_v62  ;;  %5188 = vst.msk [vmem:[#allocation4 + $0x48] sm:$0xff] %vm227_vm2, %v5140_v59  ;;  %v5093_v6 = vld [vmem:[#allocation4 + $0x50] sm:$0xff]  ;;  %v14450_v59 = vld [vmem:[#allocation3 + $0x98] sm:$0xff]  ;;  %v14475_v62 = vld [vmem:[#allocation3 + $0xa0] sm:$0xff] }
 0x344   : > { %4472 = vst.msk [vmem:[#allocation4 + $0x58] sm:$0xff] %vm227_vm2, %v4424_v3  ;;  %v4381_v3 = vld [vmem:[#allocation4 + $0x80] sm:$0xff] }
 0x345   : > { %5758 = vst.msk [vmem:[#allocation4 + $0x40] sm:$0xff] %vm227_vm2, %v5710_v5  ;;  %13186 = vmatmul.msk.bf16.gmra.mxu0 %vm227_vm2, %v5427_v0  ;;  %13066 = vmatmul.msk.bf16.gmra.mxu3 %vm227_vm2, %v4798_v1 }
 0x346   : > { %12946 = vmatmul.msk.bf16.gmra.mxu2 %vm227_vm2, %v14448_v4 }
 0x348   : > { %v4988_v2 = vpop.f32.mrf.mxu3 }
 0x349   : > { %v5141_v8 = vadd.f32 %v5093_v6, %v4988_v2  ;;  %v4275_v10 = vpop.f32.mrf.mxu2  ;;  %v14498_v6 = vld [vmem:[#allocation3 + $0x98] sm:$0xff]  ;;  %v4815_v2 = vshrl.u32 %v14474_v35, 16 }
 0x34a   : > { %v5556_v13 = vpop.f32.mrf.mxu0  ;;  %v5663_v14 = vld [vmem:[#allocation4 + $0x48] sm:$0xff]  ;;  %v4425_v12 = vadd.f32 %v4377_v11, %v4275_v10 }
 0x34b   : > { %v5711_v17 = vadd.f32 %v5663_v14, %v5556_v13  ;;  %5189 = vst.msk [vmem:[#allocation4 + $0x50] sm:$0xff] %vm227_vm2, %v5141_v8  ;;  %v5094_v18 = vld [vmem:[#allocation4 + $0x58] sm:$0xff]  ;;  %v4819_v8 = vshll.u32 %v14475_v62, 16  ;;  %v5432_v13 = vrot.slane %v14498_v6, 1  ;;  %v4817_v14 = vor.u32 %v4815_v2, %v4813_v39 }
 0x34c   : > { %4473 = vst.msk [vmem:[#allocation4 + $0x60] sm:$0xff] %vm227_vm2, %v4425_v12 }
 0x34d   : > { %5759 = vst.msk [vmem:[#allocation4 + $0x48] sm:$0xff] %vm227_vm2, %v5711_v17  ;;  %v4821_v9 = vrot.slane %v4819_v8, 1  ;;  %v4382_v17 = vld [vmem:[#allocation4 + $0x88] sm:$0xff]  ;;  %v5433_v20 = vsel %vm1786_vm7, %v5430_v49, %v5432_v13 }
 0x34f   : > { %v4822_v21 = vsel %vm1067_vm6, %v4817_v14, %v4821_v9 }
 0x350   : > { %v4990_v22 = vpop.f32.mrf.mxu3 }
 0x351   : > { %v5142_v23 = vadd.f32 %v5094_v18, %v4990_v22  ;;  %v4277_v24 = vpop.f32.mrf.mxu2 }
 0x352   : > { %v5559_v27 = vpop.f32.mrf.mxu0  ;;  %v5664_v25 = vld [vmem:[#allocation4 + $0x50] sm:$0xff]  ;;  %v4426_v30 = vadd.f32 %v4378_v26, %v4277_v24 }
 0x353   : > { %v5712_v32 = vadd.f32 %v5664_v25, %v5559_v27  ;;  %5190 = vst.msk [vmem:[#allocation4 + $0x58] sm:$0xff] %vm227_vm2, %v5142_v23  ;;  %v5095_v34 = vld [vmem:[#allocation4 + $0x60] sm:$0xff]  ;;  %v14476_v27 = vld [vmem:[#allocation3 + $0xa8] sm:$0xff] }
 0x354   : > { %4474 = vst.msk [vmem:[#allocation4 + $0x68] sm:$0xff] %vm227_vm2, %v4426_v30  ;;  %v14451_v23 = vld [vmem:[#allocation3 + $0xa0] sm:$0xff]  ;;  %v4383_v30 = vld [vmem:[#allocation4 + $0x90] sm:$0xff] }
 0x355   : > { %5760 = vst.msk [vmem:[#allocation4 + $0x50] sm:$0xff] %vm227_vm2, %v5712_v32  ;;  %13187 = vmatmul.msk.bf16.gmra.mxu0 %vm227_vm2, %v5429_v28  ;;  %13067 = vmatmul.msk.bf16.gmra.mxu3 %vm227_vm2, %v4806_v29 }
 0x356   : > { %12947 = vmatmul.msk.bf16.gmra.mxu2 %vm227_vm2, %v14449_v31 }
 0x358   : > { %v4993_v36 = vpop.f32.mrf.mxu3 }
 0x359   : > { %v5143_v37 = vadd.f32 %v5095_v34, %v4993_v36  ;;  %v4280_v38 = vpop.f32.mrf.mxu2  ;;  %v14499_v34 = vld [vmem:[#allocation3 + $0xa0] sm:$0xff]  ;;  %v4823_v36 = vshrl.u32 %v14475_v62, 16 }
 0x35a   : > { %v5561_v40 = vpop.f32.mrf.mxu0  ;;  %v5665_v42 = vld [vmem:[#allocation4 + $0x58] sm:$0xff]  ;;  %v4427_v43 = vadd.f32 %v4379_v33, %v4280_v38 }
 0x35b   : > { %v5713_v46 = vadd.f32 %v5665_v42, %v5561_v40  ;;  %5191 = vst.msk [vmem:[#allocation4 + $0x60] sm:$0xff] %vm227_vm2, %v5143_v37  ;;  %v5096_v48 = vld [vmem:[#allocation4 + $0x68] sm:$0xff]  ;;  %v4827_v37 = vshll.u32 %v14476_v27, 16  ;;  %v5434_v40 = vrot.slane %v14499_v34, 1  ;;  %v4825_v42 = vor.u32 %v4823_v36, %v4821_v9 }
 0x35c   : > { %4475 = vst.msk [vmem:[#allocation4 + $0x70] sm:$0xff] %vm227_vm2, %v4427_v43 }
 0x35d   : > { %5761 = vst.msk [vmem:[#allocation4 + $0x58] sm:$0xff] %vm227_vm2, %v5713_v46  ;;  %v4829_v41 = vrot.slane %v4827_v37, 1  ;;  %v4384_v46 = vld [vmem:[#allocation4 + $0x98] sm:$0xff]  ;;  %v5435_v50 = vsel %vm1786_vm7, %v5432_v13, %v5434_v40  ;;  %v4386_v13 = vld [vmem:[#allocation4 + $0xa8] sm:$0xff] }
 0x35f   : > { %v4830_v39 = vsel %vm1067_vm6, %v4825_v42, %v4829_v41  ;;  %v303_v42 = vld [vmem:[#allocation2 + $0x170] sm:$0xff] }
 0x360   : > { %v4995_v51 = vpop.f32.mrf.mxu3  ;;  %307 = vst.msk [vmem:[#allocation2 + $0x1a0] sm:$0xff] %vm227_vm2, %v303_v42 }
 0x361   : > { %v5144_v52 = vadd.f32 %v5096_v48, %v4995_v51  ;;  %v4282_v54 = vpop.f32.mrf.mxu2 }
 0x362   : > { %v5564_v47 = vpop.f32.mrf.mxu0  ;;  %v5666_v53 = vld [vmem:[#allocation4 + $0x60] sm:$0xff]  ;;  %v4428_v58 = vadd.f32 %v4380_v55, %v4282_v54 }
 0x363   : > { %v5714_v60 = vadd.f32 %v5666_v53, %v5564_v47  ;;  %5192 = vst.msk [vmem:[#allocation4 + $0x68] sm:$0xff] %vm227_vm2, %v5144_v52  ;;  %v5097_v61 = vld [vmem:[#allocation4 + $0x70] sm:$0xff]  ;;  %v14452_v52 = vld [vmem:[#allocation3 + $0xa8] sm:$0xff] }
 0x364   : > { %4476 = vst.msk [vmem:[#allocation4 + $0x78] sm:$0xff] %vm227_vm2, %v4428_v58  ;;  %v14477_v47 = vld [vmem:[#allocation3 + $0xb0] sm:$0xff] }
 0x365   : > { %5762 = vst.msk [vmem:[#allocation4 + $0x60] sm:$0xff] %vm227_vm2, %v5714_v60  ;;  %13188 = vmatmul.msk.bf16.gmra.mxu0 %vm227_vm2, %v5431_v56  ;;  %13068 = vmatmul.msk.bf16.gmra.mxu3 %vm227_vm2, %v4814_v57  ;;  %v6395_v53 = vld [vmem:[%s18866_s2] sm:$0x3]  ;;  %v4385_v60 = vld [vmem:[#allocation4 + $0xa0] sm:$0xff] }
 0x366   : > { %12948 = vmatmul.msk.bf16.gmra.mxu2 %vm227_vm2, %v14450_v59  ;;  %v6589_v56 = vsel %vm712_vm0, %v6395_v53, 0 }
 0x367   : > { %6598 = vmatpush.bf16.msra.mxu1 %v6589_v56  ;;  %v361_v53 = vld [vmem:[#allocation2 + $0x1a0] sm:$0xff] }
 0x368   : > { %v4998_v63 = vpop.f32.mrf.mxu3 }
 0x369   : > { %v5145_v0 = vadd.f32 %v5097_v61, %v4998_v63  ;;  %v4285_v1 = vpop.f32.mrf.mxu2  ;;  %v14500_v63 = vld [vmem:[#allocation3 + $0xa8] sm:$0xff] }
 0x36a   : > { %v5566_v4 = vpop.f32.mrf.mxu0  ;;  %v5667_v5 = vld [vmem:[#allocation4 + $0x68] sm:$0xff]  ;;  %v4429_v7 = vadd.f32 %v4381_v3, %v4285_v1  ;;  %v4831_v1 = vshrl.u32 %v14476_v27, 16  ;;  %v4835_v3 = vshll.u32 %v14477_v47, 16  ;;  %v5436_v6 = vrot.slane %v14500_v63, 1 }
 0x36b   : > { %v5715_v10 = vadd.f32 %v5667_v5, %v5566_v4  ;;  %5193 = vst.msk [vmem:[#allocation4 + $0x70] sm:$0xff] %vm227_vm2, %v5145_v0  ;;  %v5098_v11 = vld [vmem:[#allocation4 + $0x78] sm:$0xff] }
 0x36c   : > { %4477 = vst.msk [vmem:[#allocation4 + $0x80] sm:$0xff] %vm227_vm2, %v4429_v7  ;;  %v4833_v7 = vor.u32 %v4831_v1, %v4829_v41  ;;  %v4837_v2 = vrot.slane %v4835_v3, 1 }
 0x36d   : > { %5763 = vst.msk [vmem:[#allocation4 + $0x68] sm:$0xff] %vm227_vm2, %v5715_v10 }
 0x370   : > { %v5000_v12 = vpop.f32.mrf.mxu3 }
 0x371   : > { %v5146_v15 = vadd.f32 %v5098_v11, %v5000_v12  ;;  %v4287_v16 = vpop.f32.mrf.mxu2  ;;  %v5437_v12 = vsel %vm1786_vm7, %v5434_v40, %v5436_v6  ;;  %v4388_v40 = vld [vmem:[#allocation4 + $0xb8] sm:$0xff] }
 0x372   : > { %v5569_v18 = vpop.f32.mrf.mxu0  ;;  %v5668_v19 = vld [vmem:[#allocation4 + $0x70] sm:$0xff]  ;;  %v4430_v22 = vadd.f32 %v4382_v17, %v4287_v16 }
 0x373   : > { %v5716_v24 = vadd.f32 %v5668_v19, %v5569_v18  ;;  %5194 = vst.msk [vmem:[#allocation4 + $0x78] sm:$0xff] %vm227_vm2, %v5146_v15  ;;  %v5099_v26 = vld [vmem:[#allocation4 + $0x80] sm:$0xff]  ;;  %v4838_v15 = vsel %vm1067_vm6, %v4833_v7, %v4837_v2  ;;  %v14453_v17 = vld [vmem:[#allocation3 + $0xb0] sm:$0xff] }
 0x374   : > { %4478 = vst.msk [vmem:[#allocation4 + $0x88] sm:$0xff] %vm227_vm2, %v4430_v22 }
 0x375   : > { %5764 = vst.msk [vmem:[#allocation4 + $0x70] sm:$0xff] %vm227_vm2, %v5716_v24  ;;  %13189 = vmatmul.msk.bf16.gmra.mxu0 %vm227_vm2, %v5433_v20  ;;  %13069 = vmatmul.msk.bf16.gmra.mxu3 %vm227_vm2, %v4822_v21  ;;  %v14478_v20 = vld [vmem:[#allocation3 + $0xb8] sm:$0xff]  ;;  %v4387_v24 = vld [vmem:[#allocation4 + $0xb0] sm:$0xff] }
 0x376   : > { %12949 = vmatmul.msk.bf16.gmra.mxu2 %vm227_vm2, %v14451_v23 }
 0x378   : > { %v5003_v25 = vpop.f32.mrf.mxu3 }
 0x379   : > { %v5147_v28 = vadd.f32 %v5099_v26, %v5003_v25  ;;  %v4290_v29 = vpop.f32.mrf.mxu2  ;;  %v16087_v25 = vld [vmem:[#allocation3 + $0xb0] sm:$0xff] }
 0x37a   : > { %v5571_v31 = vpop.f32.mrf.mxu0  ;;  %v5669_v32 = vld [vmem:[#allocation4 + $0x78] sm:$0xff]  ;;  %v4431_v35 = vadd.f32 %v4383_v30, %v4290_v29  ;;  %v4839_v29 = vshrl.u32 %v14477_v47, 16  ;;  %v4843_v30 = vshll.u32 %v14478_v20, 16  ;;  %v5438_v34 = vrot.slane %v16087_v25, 1  ;;  %v4389_v47 = vld [vmem:[#allocation4 + $0xc0] sm:$0xff] }
 0x37b   : > { %v5717_v38 = vadd.f32 %v5669_v32, %v5571_v31  ;;  %5195 = vst.msk [vmem:[#allocation4 + $0x80] sm:$0xff] %vm227_vm2, %v5147_v28  ;;  %v5100_v33 = vld [vmem:[#allocation4 + $0x88] sm:$0xff] }
 0x37c   : > { %4479 = vst.msk [vmem:[#allocation4 + $0x90] sm:$0xff] %vm227_vm2, %v4431_v35  ;;  %v4841_v35 = vor.u32 %v4839_v29, %v4837_v2  ;;  %v4845_v36 = vrot.slane %v4843_v30, 1 }
 0x37d   : > { %5765 = vst.msk [vmem:[#allocation4 + $0x78] sm:$0xff] %vm227_vm2, %v5717_v38 }
 0x380   : > { %v5005_v43 = vpop.f32.mrf.mxu3 }
 0x381   : > { %v5148_v44 = vadd.f32 %v5100_v33, %v5005_v43  ;;  %v4292_v45 = vpop.f32.mrf.mxu2 }
 0x382   : > { %v5574_v48 = vpop.f32.mrf.mxu0  ;;  %v5670_v49 = vld [vmem:[#allocation4 + $0x80] sm:$0xff]  ;;  %v4432_v51 = vadd.f32 %v4384_v46, %v4292_v45  ;;  %v4846_v45 = vsel %vm1067_vm6, %v4841_v35, %v4845_v36 }
 0x383   : > { %v5718_v54 = vadd.f32 %v5670_v49, %v5574_v48  ;;  %5196 = vst.msk [vmem:[#allocation4 + $0x88] sm:$0xff] %vm227_vm2, %v5148_v44  ;;  %v5101_v55 = vld [vmem:[#allocation4 + $0x90] sm:$0xff]  ;;  %v5439_v44 = vsel %vm1786_vm7, %v5436_v6, %v5438_v34  ;;  %v14454_v48 = vld [vmem:[#allocation3 + $0xb8] sm:$0xff] }
 0x384   : > { %4480 = vst.msk [vmem:[#allocation4 + $0x98] sm:$0xff] %vm227_vm2, %v4432_v51  ;;  %v16102_v51 = vld [vmem:[#allocation3 + $0xc0] sm:$0xff] }
 0x385   : > { %5766 = vst.msk [vmem:[#allocation4 + $0x80] sm:$0xff] %vm227_vm2, %v5718_v54  ;;  %13190 = vmatmul.msk.bf16.gmra.mxu0 %vm227_vm2, %v5435_v50  ;;  %13070 = vmatmul.msk.bf16.gmra.mxu3 %vm227_vm2, %v4830_v39  ;;  %v304_v50 = vld [vmem:[#allocation2 + $0x178] sm:$0xff] }
 0x386   : > { %12950 = vmatmul.msk.bf16.gmra.mxu2 %vm227_vm2, %v14452_v52  ;;  %308 = vst.msk [vmem:[#allocation2 + $0x1a8] sm:$0xff] %vm227_vm2, %v304_v50 }
 0x388   : > { %v5008_v57 = vpop.f32.mrf.mxu3 }
 0x389   : > { %v5149_v58 = vadd.f32 %v5101_v55, %v5008_v57  ;;  %v4295_v59 = vpop.f32.mrf.mxu2 }
 0x38a   : > { %v5576_v61 = vpop.f32.mrf.mxu0  ;;  %v5671_v62 = vld [vmem:[#allocation4 + $0x88] sm:$0xff]  ;;  %v4433_v0 = vadd.f32 %v4385_v60, %v4295_v59  ;;  %v4847_v60 = vshrl.u32 %v14478_v20, 16 }
 0x38b   : > { %v5719_v4 = vadd.f32 %v5671_v62, %v5576_v61  ;;  %5197 = vst.msk [vmem:[#allocation4 + $0x90] sm:$0xff] %vm227_vm2, %v5149_v58  ;;  %v5102_v5 = vld [vmem:[#allocation4 + $0x98] sm:$0xff]  ;;  %v4851_v61 = vshll.u32 %v16102_v51, 16  ;;  %v415_v62 = vpack.c.bf16 %v361_v53, %v361_v53 }
 0x38c   : > { %4481 = vst.msk [vmem:[#allocation4 + $0xa0] sm:$0xff] %vm227_vm2, %v4433_v0  ;;  %v16105_v58 = vld [vmem:[#allocation3 + $0xb8] sm:$0xff] }
 0x38d   : > { %5767 = vst.msk [vmem:[#allocation4 + $0x88] sm:$0xff] %vm227_vm2, %v5719_v4  ;;  %v362_v0 = vld [vmem:[#allocation2 + $0x1a8] sm:$0xff]  ;;  %v5440_v3 = vrot.slane %v16105_v58, 1  ;;  %v4849_v4 = vor.u32 %v4847_v60, %v4845_v36 }
 0x38e   : > { %v416_v6 = vpack.c.bf16 %v362_v0, %v362_v0  ;;  %469 = vst.msk [vmem:[#allocation3 + $0xd0] sm:$0xf] %vm191_vm5, %v415_v62 }
 0x390   : > { %v5010_v8 = vpop.f32.mrf.mxu3  ;;  %470 = vst.msk [vmem:[#allocation3 + $0xd4] sm:$0xf] %vm191_vm5, %v416_v6 }
 0x391   : > { %v5150_v10 = vadd.f32 %v5102_v5, %v5010_v8  ;;  %v4297_v11 = vpop.f32.mrf.mxu2  ;;  %v4853_v5 = vrot.slane %v4851_v61, 1 }
 0x392   : > { %v5579_v14 = vpop.f32.mrf.mxu0  ;;  %v5672_v9 = vld [vmem:[#allocation4 + $0x90] sm:$0xff]  ;;  %v4434_v16 = vadd.f32 %v4386_v13, %v4297_v11 }
 0x393   : > { %v5720_v18 = vadd.f32 %v5672_v9, %v5579_v14  ;;  %5198 = vst.msk [vmem:[#allocation4 + $0x98] sm:$0xff] %vm227_vm2, %v5150_v10  ;;  %v5103_v19 = vld [vmem:[#allocation4 + $0xa0] sm:$0xff]  ;;  %v4390_v10 = vld [vmem:[#allocation4 + $0xc8] sm:$0xff]  ;;  %v5441_v14 = vsel %vm1786_vm7, %v5438_v34, %v5440_v3  ;;  %v4854_v9 = vsel %vm1067_vm6, %v4849_v4, %v4853_v5 }
 0x394   : > { %4482 = vst.msk [vmem:[#allocation4 + $0xa8] sm:$0xff] %vm227_vm2, %v4434_v16  ;;  %v4394_v4 = vld [vmem:[#allocation4 + $0xe8] sm:$0xff] }
 0x395   : > { %5768 = vst.msk [vmem:[#allocation4 + $0x90] sm:$0xff] %vm227_vm2, %v5720_v18  ;;  %13191 = vmatmul.msk.bf16.gmra.mxu0 %vm227_vm2, %v5437_v12  ;;  %13071 = vmatmul.msk.bf16.gmra.mxu3 %vm227_vm2, %v4838_v15  ;;  %v14455_v15 = vld [vmem:[#allocation3 + $0xc0] sm:$0xff]  ;;  %v14480_v18 = vld [vmem:[#allocation3 + $0xc8] sm:$0xff] }
 0x396   : > { %12951 = vmatmul.msk.bf16.gmra.mxu2 %vm227_vm2, %v14453_v17  ;;  %v4859_v29 = vshll.u32 %v14480_v18, 16 }
 0x398   : > { %v5013_v21 = vpop.f32.mrf.mxu3  ;;  %v4861_v35 = vrot.slane %v4859_v29, 1 }
 0x399   : > { %v5151_v22 = vadd.f32 %v5103_v19, %v5013_v21  ;;  %v4300_v23 = vpop.f32.mrf.mxu2 }
 0x39a   : > { %v5581_v26 = vpop.f32.mrf.mxu0  ;;  %v5673_v27 = vld [vmem:[#allocation4 + $0x98] sm:$0xff]  ;;  %v4435_v28 = vadd.f32 %v4387_v24, %v4300_v23  ;;  %v14747_v23 = vmov 0  }
 0x39b   : > { %v5721_v31 = vadd.f32 %v5673_v27, %v5581_v26  ;;  %5199 = vst.msk [vmem:[#allocation4 + $0xa0] sm:$0xff] %vm227_vm2, %v5151_v22  ;;  %v5104_v32 = vld [vmem:[#allocation4 + $0xa8] sm:$0xff]  ;;  %v4391_v22 = vld [vmem:[#allocation4 + $0xd0] sm:$0xff]  ;;  %v14503_v27 = vld [vmem:[#allocation3 + $0xc0] sm:$0xff] }
 0x39c   : > { %4483 = vst.msk [vmem:[#allocation4 + $0xb0] sm:$0xff] %vm227_vm2, %v4435_v28  ;;  %v4855_v28 = vshrl.u32 %v16102_v51, 16 }
 0x39d   : > { %5769 = vst.msk [vmem:[#allocation4 + $0x98] sm:$0xff] %vm227_vm2, %v5721_v31 }
 0x39e   : > { %192 = vst.msk [vmem:[#allocation3 + $0xd8] sm:$0xf] %vm191_vm5, %v14747_v23  ;;  %v4857_v34 = vor.u32 %v4855_v28, %v4853_v5 }
 0x3a0   : > { %v5015_v37 = vpop.f32.mrf.mxu3 }
 0x3a1   : > { %v5152_v38 = vadd.f32 %v5104_v32, %v5015_v37  ;;  %v4302_v33 = vpop.f32.mrf.mxu2  ;;  %v5442_v32 = vrot.slane %v14503_v27, 1 }
 0x3a2   : > { %v5584_v41 = vpop.f32.mrf.mxu0  ;;  %v5674_v43 = vld [vmem:[#allocation4 + $0xa0] sm:$0xff]  ;;  %v4436_v46 = vadd.f32 %v4388_v40, %v4302_v33  ;;  %v4392_v33 = vld [vmem:[#allocation4 + $0xd8] sm:$0xff] }
 0x3a3   : > { %v5722_v49 = vadd.f32 %v5674_v43, %v5584_v41  ;;  %5200 = vst.msk [vmem:[#allocation4 + $0xa8] sm:$0xff] %vm227_vm2, %v5152_v38  ;;  %v5105_v39 = vld [vmem:[#allocation4 + $0xb0] sm:$0xff]  ;;  %v5443_v41 = vsel %vm1786_vm7, %v5440_v3, %v5442_v32  ;;  %v4862_v43 = vsel %vm1067_vm6, %v4857_v34, %v4861_v35 }
 0x3a4   : > { %4484 = vst.msk [vmem:[#allocation4 + $0xb8] sm:$0xff] %vm227_vm2, %v4436_v46 }
 0x3a5   : > { %5770 = vst.msk [vmem:[#allocation4 + $0xa0] sm:$0xff] %vm227_vm2, %v5722_v49  ;;  %13192 = vmatmul.msk.bf16.gmra.mxu0 %vm227_vm2, %v5439_v44  ;;  %13072 = vmatmul.msk.bf16.gmra.mxu3 %vm227_vm2, %v4846_v45  ;;  %v14456_v45 = vld [vmem:[#allocation3 + $0xc8] sm:$0xff]  ;;  %v14481_v49 = vld [vmem:[#allocation3 + $0xd0] sm:$0xff] }
 0x3a6   : > { %12952 = vmatmul.msk.bf16.gmra.mxu2 %vm227_vm2, %v14454_v48 }
 0x3a8   : > { %v5018_v52 = vpop.f32.mrf.mxu3 }
 0x3a9   : > { %v5153_v54 = vadd.f32 %v5105_v39, %v5018_v52  ;;  %v4305_v55 = vpop.f32.mrf.mxu2  ;;  %v4393_v52 = vld [vmem:[#allocation4 + $0xe0] sm:$0xff] }
 0x3aa   : > { %v5586_v56 = vpop.f32.mrf.mxu0  ;;  %v5675_v57 = vld [vmem:[#allocation4 + $0xa8] sm:$0xff]  ;;  %v4437_v59 = vadd.f32 %v4389_v47, %v4305_v55 }
 0x3ab   : > { %v5723_v63 = vadd.f32 %v5675_v57, %v5586_v56  ;;  %5201 = vst.msk [vmem:[#allocation4 + $0xb0] sm:$0xff] %vm227_vm2, %v5153_v54  ;;  %v5106_v1 = vld [vmem:[#allocation4 + $0xb8] sm:$0xff]  ;;  %v14504_v47 = vld [vmem:[#allocation3 + $0xc8] sm:$0xff]  ;;  %v4863_v56 = vshrl.u32 %v14480_v18, 16  ;;  %v4867_v57 = vshll.u32 %v14481_v49, 16 }
 0x3ac   : > { %4485 = vst.msk [vmem:[#allocation4 + $0xc0] sm:$0xff] %vm227_vm2, %v4437_v59  ;;  %v5444_v60 = vrot.slane %v14504_v47, 1 }
 0x3ad   : > { %5771 = vst.msk [vmem:[#allocation4 + $0xa8] sm:$0xff] %vm227_vm2, %v5723_v63  ;;  %v4865_v61 = vor.u32 %v4863_v56, %v4861_v35  ;;  %v4869_v62 = vrot.slane %v4867_v57, 1  ;;  %v4557_v63 = vld [vmem:[#allocation3 + $0xd8] sm:$0x1]  ;;  %v4398_v56 = vld [vmem:[#allocation4 + $0x108] sm:$0xff] }
 0x3b0   : > { %v5020_v7 = vpop.f32.mrf.mxu3 }
 0x3b1   : > { %v5154_v2 = vadd.f32 %v5106_v1, %v5020_v7  ;;  %v4307_v8 = vpop.f32.mrf.mxu2  ;;  %v5445_v7 = vsel %vm1786_vm7, %v5442_v32, %v5444_v60  ;;  %v4396_v32 = vld [vmem:[#allocation4 + $0xf8] sm:$0xff] }
 0x3b2   : > { %v5589_v11 = vpop.f32.mrf.mxu0  ;;  %v5676_v13 = vld [vmem:[#allocation4 + $0xb0] sm:$0xff]  ;;  %v4438_v12 = vadd.f32 %v4390_v10, %v4307_v8 }
 0x3b3   : > { %v5724_v16 = vadd.f32 %v5676_v13, %v5589_v11  ;;  %5202 = vst.msk [vmem:[#allocation4 + $0xb8] sm:$0xff] %vm227_vm2, %v5154_v2  ;;  %v5107_v17 = vld [vmem:[#allocation4 + $0xc0] sm:$0xff]  ;;  %v4870_v2 = vsel %vm1067_vm6, %v4865_v61, %v4869_v62  ;;  %v14457_v10 = vld [vmem:[#allocation3 + $0xd0] sm:$0xff]  ;;  %v4657_v11 = vunpack.c.l.b16 %v4557_v63 }
 0x3b4   : > { %4486 = vst.msk [vmem:[#allocation4 + $0xc8] sm:$0xff] %vm227_vm2, %v4438_v12 }
 0x3b5   : > { %5772 = vst.msk [vmem:[#allocation4 + $0xb0] sm:$0xff] %vm227_vm2, %v5724_v16  ;;  %13193 = vmatmul.msk.bf16.gmra.mxu0 %vm227_vm2, %v5441_v14  ;;  %13073 = vmatmul.msk.bf16.gmra.mxu3 %vm227_vm2, %v4854_v9  ;;  %v4682_v9 = vpack.c.b16 %v4657_v11, %v4657_v11 }
 0x3b6   : > { %12953 = vmatmul.msk.bf16.gmra.mxu2 %vm227_vm2, %v14455_v15 }
 0x3b7   : > { %v4875_v23 = vshll.u32 %v4682_v9, 16 }
 0x3b8   : > { %v5023_v19 = vpop.f32.mrf.mxu3 }
 0x3b9   : > { %v5155_v20 = vadd.f32 %v5107_v17, %v5023_v19  ;;  %v4310_v21 = vpop.f32.mrf.mxu2  ;;  %v4395_v17 = vld [vmem:[#allocation4 + $0xf0] sm:$0xff]  ;;  %v4877_v28 = vrot.slane %v4875_v23, 1 }
 0x3ba   : > { %v5591_v24 = vpop.f32.mrf.mxu0  ;;  %v5677_v26 = vld [vmem:[#allocation4 + $0xb8] sm:$0xff]  ;;  %v4439_v25 = vadd.f32 %v4391_v22, %v4310_v21  ;;  %v4871_v22 = vshrl.u32 %v14481_v49, 16 }
 0x3bb   : > { %v5725_v30 = vadd.f32 %v5677_v26, %v5591_v24  ;;  %5203 = vst.msk [vmem:[#allocation4 + $0xc0] sm:$0xff] %vm227_vm2, %v5155_v20  ;;  %v5108_v31 = vld [vmem:[#allocation4 + $0xc8] sm:$0xff]  ;;  %v14505_v20 = vld [vmem:[#allocation3 + $0xd0] sm:$0xff] }
 0x3bc   : > { %4487 = vst.msk [vmem:[#allocation4 + $0xd0] sm:$0xff] %vm227_vm2, %v4439_v25  ;;  %v5446_v27 = vrot.slane %v14505_v20, 1  ;;  %v4873_v25 = vor.u32 %v4871_v22, %v4869_v62  ;;  %v4401_v20 = vld [vmem:[#allocation4 + $0x120] sm:$0xff] }
 0x3bd   : > { %5773 = vst.msk [vmem:[#allocation4 + $0xb8] sm:$0xff] %vm227_vm2, %v5725_v30 }
 0x3c0   : > { %v5025_v36 = vpop.f32.mrf.mxu3 }
 0x3c1   : > { %v5156_v37 = vadd.f32 %v5108_v31, %v5025_v36  ;;  %v4312_v38 = vpop.f32.mrf.mxu2  ;;  %v5447_v36 = vsel %vm1786_vm7, %v5444_v60, %v5446_v27 }
 0x3c2   : > { %v5594_v40 = vpop.f32.mrf.mxu0  ;;  %v5678_v42 = vld [vmem:[#allocation4 + $0xc0] sm:$0xff]  ;;  %v4440_v44 = vadd.f32 %v4392_v33, %v4312_v38 }
 0x3c3   : > { %v5726_v46 = vadd.f32 %v5678_v42, %v5594_v40  ;;  %5204 = vst.msk [vmem:[#allocation4 + $0xc8] sm:$0xff] %vm227_vm2, %v5156_v37  ;;  %v5109_v48 = vld [vmem:[#allocation4 + $0xd0] sm:$0xff]  ;;  %v4878_v37 = vsel %vm1067_vm6, %v4873_v25, %v4877_v28  ;;  %v5275_v40 = vld [vmem:[#allocation3 + $0xd8] sm:$0x1] }
 0x3c4   : > { %4488 = vst.msk [vmem:[#allocation4 + $0xd8] sm:$0xff] %vm227_vm2, %v4440_v44 }
 0x3c5   : > { %5774 = vst.msk [vmem:[#allocation4 + $0xc0] sm:$0xff] %vm227_vm2, %v5726_v46  ;;  %13194 = vmatmul.msk.bf16.gmra.mxu0 %vm227_vm2, %v5443_v41  ;;  %13074 = vmatmul.msk.bf16.gmra.mxu3 %vm227_vm2, %v4862_v43  ;;  %v5375_v41 = vunpack.c.l.b16 %v5275_v40  ;;  %v4397_v46 = vld [vmem:[#allocation4 + $0x100] sm:$0xff] }
 0x3c6   : > { %12954 = vmatmul.msk.bf16.gmra.mxu2 %vm227_vm2, %v14456_v45 }
 0x3c8   : > { %v5028_v50 = vpop.f32.mrf.mxu3 }
 0x3c9   : > { %v5157_v39 = vadd.f32 %v5109_v48, %v5028_v50  ;;  %v4315_v51 = vpop.f32.mrf.mxu2  ;;  %v5400_v50 = vpack.c.b16 %v5375_v41, %v5375_v41 }
 0x3ca   : > { %v5596_v54 = vpop.f32.mrf.mxu0  ;;  %v5679_v55 = vld [vmem:[#allocation4 + $0xc8] sm:$0xff]  ;;  %v4441_v53 = vadd.f32 %v4393_v52, %v4315_v51 }
 0x3cb   : > { %v5727_v58 = vadd.f32 %v5679_v55, %v5596_v54  ;;  %5205 = vst.msk [vmem:[#allocation4 + $0xd0] sm:$0xff] %vm227_vm2, %v5157_v39  ;;  %v5110_v59 = vld [vmem:[#allocation4 + $0xd8] sm:$0xff]  ;;  %v5448_v54 = vrot.slane %v5400_v50, 1 }
 0x3cc   : > { %4489 = vst.msk [vmem:[#allocation4 + $0xe0] sm:$0xff] %vm227_vm2, %v4441_v53 }
 0x3cd   : > { %5775 = vst.msk [vmem:[#allocation4 + $0xc8] sm:$0xff] %vm227_vm2, %v5727_v58 }
 0x3d0   : > { %v5030_v0 = vpop.f32.mrf.mxu3 }
 0x3d1   : > { %v5158_v1 = vadd.f32 %v5110_v59, %v5030_v0  ;;  %v4317_v3 = vpop.f32.mrf.mxu2  ;;  %v5449_v59 = vsel %vm1786_vm7, %v5446_v27, %v5448_v54 }
 0x3d2   : > { %v5599_v5 = vpop.f32.mrf.mxu0  ;;  %v5680_v6 = vld [vmem:[#allocation4 + $0xd0] sm:$0xff]  ;;  %v4442_v8 = vadd.f32 %v4394_v4, %v4317_v3 }
 0x3d3   : > { %v5728_v13 = vadd.f32 %v5680_v6, %v5599_v5  ;;  %5206 = vst.msk [vmem:[#allocation4 + $0xd8] sm:$0xff] %vm227_vm2, %v5158_v1  ;;  %v5111_v14 = vld [vmem:[#allocation4 + $0xe0] sm:$0xff]  ;;  %v4399_v3 = vld [vmem:[#allocation4 + $0x110] sm:$0xff] }
 0x3d4   : > { %4490 = vst.msk [vmem:[#allocation4 + $0xe8] sm:$0xff] %vm227_vm2, %v4442_v8 }
 0x3d5   : > { %5776 = vst.msk [vmem:[#allocation4 + $0xd0] sm:$0xff] %vm227_vm2, %v5728_v13  ;;  %13195 = vmatmul.msk.bf16.gmra.mxu0 %vm227_vm2, %v5445_v7  ;;  %13075 = vmatmul.msk.bf16.gmra.mxu3 %vm227_vm2, %v4870_v2  ;;  %v4400_v13 = vld [vmem:[#allocation4 + $0x118] sm:$0xff] }
 0x3d6   : > { %12955 = vmatmul.msk.bf16.gmra.mxu2 %vm227_vm2, %v14457_v10 }
 0x3d8   : > { %v5033_v12 = vpop.f32.mrf.mxu3 }
 0x3d9   : > { %v5159_v15 = vadd.f32 %v5111_v14, %v5033_v12  ;;  %v4320_v16 = vpop.f32.mrf.mxu2 }
 0x3da   : > { %v5601_v18 = vpop.f32.mrf.mxu0  ;;  %v5681_v19 = vld [vmem:[#allocation4 + $0xd8] sm:$0xff]  ;;  %v4443_v21 = vadd.f32 %v4395_v17, %v4320_v16 }
 0x3db   : > { %v5729_v24 = vadd.f32 %v5681_v19, %v5601_v18  ;;  %5207 = vst.msk [vmem:[#allocation4 + $0xe0] sm:$0xff] %vm227_vm2, %v5159_v15  ;;  %v5112_v26 = vld [vmem:[#allocation4 + $0xe8] sm:$0xff] }
 0x3dc   : > { %4491 = vst.msk [vmem:[#allocation4 + $0xf0] sm:$0xff] %vm227_vm2, %v4443_v21 }
 0x3dd   : > { %5777 = vst.msk [vmem:[#allocation4 + $0xd8] sm:$0xff] %vm227_vm2, %v5729_v24 }
 0x3e0   : > { %v5035_v29 = vpop.f32.mrf.mxu3 }
 0x3e1   : > { %v5160_v30 = vadd.f32 %v5112_v26, %v5035_v29  ;;  %v4322_v31 = vpop.f32.mrf.mxu2  ;;  %v4402_v29 = vld [vmem:[#allocation4 + $0x128] sm:$0xff] }
 0x3e2   : > { %v5604_v34 = vpop.f32.mrf.mxu0  ;;  %v5682_v35 = vld [vmem:[#allocation4 + $0xe0] sm:$0xff]  ;;  %v4444_v38 = vadd.f32 %v4396_v32, %v4322_v31 }
 0x3e3   : > { %v5730_v33 = vadd.f32 %v5682_v35, %v5604_v34  ;;  %5208 = vst.msk [vmem:[#allocation4 + $0xe8] sm:$0xff] %vm227_vm2, %v5160_v30  ;;  %v5113_v42 = vld [vmem:[#allocation4 + $0xf0] sm:$0xff] }
 0x3e4   : > { %4492 = vst.msk [vmem:[#allocation4 + $0xf8] sm:$0xff] %vm227_vm2, %v4444_v38 }
 0x3e5   : > { %5778 = vst.msk [vmem:[#allocation4 + $0xe0] sm:$0xff] %vm227_vm2, %v5730_v33  ;;  %13196 = vmatmul.msk.bf16.gmra.mxu0 %vm227_vm2, %v5447_v36  ;;  %13076 = vmatmul.msk.bf16.gmra.mxu3 %vm227_vm2, %v4878_v37  ;;  %v4403_v33 = vld [vmem:[#allocation4 + $0x130] sm:$0xff] }
 0x3e8   : > { %v5038_v43 = vpop.f32.mrf.mxu3 }
 0x3e9   : > { %v5161_v44 = vadd.f32 %v5113_v42, %v5038_v43  ;;  %v4325_v45 = vpop.f32.mrf.mxu2 }
 0x3ea   : > { %v5606_v48 = vpop.f32.mrf.mxu0  ;;  %v5683_v49 = vld [vmem:[#allocation4 + $0xe8] sm:$0xff]  ;;  %v4445_v39 = vadd.f32 %v4397_v46, %v4325_v45 }
 0x3eb   : > { %v5731_v51 = vadd.f32 %v5683_v49, %v5606_v48  ;;  %5209 = vst.msk [vmem:[#allocation4 + $0xf0] sm:$0xff] %vm227_vm2, %v5161_v44  ;;  %v5114_v52 = vld [vmem:[#allocation4 + $0xf8] sm:$0xff] }
 0x3ec   : > { %4493 = vst.msk [vmem:[#allocation4 + $0x100] sm:$0xff] %vm227_vm2, %v4445_v39  ;;  %v4404_v49 = vld [vmem:[#allocation4 + $0x138] sm:$0xff] }
 0x3ed   : > { %5779 = vst.msk [vmem:[#allocation4 + $0xe8] sm:$0xff] %vm227_vm2, %v5731_v51 }
 0x3f0   : > { %v5040_v55 = vpop.f32.mrf.mxu3 }
 0x3f1   : > { %v5162_v47 = vadd.f32 %v5114_v52, %v5040_v55  ;;  %v4327_v53 = vpop.f32.mrf.mxu2 }
 0x3f2   : > { %v5609_v57 = vpop.f32.mrf.mxu0  ;;  %v5684_v58 = vld [vmem:[#allocation4 + $0xf0] sm:$0xff]  ;;  %v4446_v60 = vadd.f32 %v4398_v56, %v4327_v53  ;;  %v4405_v56 = vld [vmem:[#allocation4 + $0x140] sm:$0xff] }
 0x3f3   : > { %v5732_v61 = vadd.f32 %v5684_v58, %v5609_v57  ;;  %5210 = vst.msk [vmem:[#allocation4 + $0xf8] sm:$0xff] %vm227_vm2, %v5162_v47  ;;  %v5115_v62 = vld [vmem:[#allocation4 + $0x100] sm:$0xff] }
 0x3f4   : > { %4494 = vst.msk [vmem:[#allocation4 + $0x108] sm:$0xff] %vm227_vm2, %v4446_v60 }
 0x3f5   : > { %5780 = vst.msk [vmem:[#allocation4 + $0xf0] sm:$0xff] %vm227_vm2, %v5732_v61  ;;  %13197 = vmatmul.msk.bf16.gmra.mxu0 %vm227_vm2, %v5449_v59 }
 0x3f8   : > { %v5043_v63 = vpop.f32.mrf.mxu3 }
 0x3f9   : > { %v5163_v0 = vadd.f32 %v5115_v62, %v5043_v63  ;;  %v4330_v1 = vpop.f32.mrf.mxu2 }
 0x3fa   : > { %v5611_v4 = vpop.f32.mrf.mxu0  ;;  %v5685_v5 = vld [vmem:[#allocation4 + $0xf8] sm:$0xff]  ;;  %v4447_v6 = vadd.f32 %v4399_v3, %v4330_v1  ;;  %v4406_v1 = vld [vmem:[#allocation4 + $0x148] sm:$0xff] }
 0x3fb   : > { %v5733_v7 = vadd.f32 %v5685_v5, %v5611_v4  ;;  %5211 = vst.msk [vmem:[#allocation4 + $0x100] sm:$0xff] %vm227_vm2, %v5163_v0  ;;  %v5116_v2 = vld [vmem:[#allocation4 + $0x108] sm:$0xff] }
 0x3fc   : > { %4495 = vst.msk [vmem:[#allocation4 + $0x110] sm:$0xff] %vm227_vm2, %v4447_v6 }
 0x3fd   : > { %5781 = vst.msk [vmem:[#allocation4 + $0xf8] sm:$0xff] %vm227_vm2, %v5733_v7 }
 0x400   : > { %v5045_v8 = vpop.f32.mrf.mxu3 }
 0x401   : > { %v5164_v10 = vadd.f32 %v5116_v2, %v5045_v8  ;;  %v4332_v11 = vpop.f32.mrf.mxu2 }
 0x402   : > { %v5614_v14 = vpop.f32.mrf.mxu0  ;;  %v5686_v9 = vld [vmem:[#allocation4 + $0x100] sm:$0xff]  ;;  %v4448_v12 = vadd.f32 %v4400_v13, %v4332_v11  ;;  %v4407_v11 = vld [vmem:[#allocation4 + $0x150] sm:$0xff] }
 0x403   : > { %v5734_v15 = vadd.f32 %v5686_v9, %v5614_v14  ;;  %5212 = vst.msk [vmem:[#allocation4 + $0x108] sm:$0xff] %vm227_vm2, %v5164_v10  ;;  %v5117_v16 = vld [vmem:[#allocation4 + $0x110] sm:$0xff] }
 0x404   : > { %4496 = vst.msk [vmem:[#allocation4 + $0x118] sm:$0xff] %vm227_vm2, %v4448_v12 }
 0x405   : > { %5782 = vst.msk [vmem:[#allocation4 + $0x100] sm:$0xff] %vm227_vm2, %v5734_v15  ;;  %v16189_v15 = vld [vmem:[#allocation4 + $0x8] sm:$0xff] }
 0x408   : > { %v5048_v17 = vpop.f32.mrf.mxu3 }
 0x409   : > { %v5165_v18 = vadd.f32 %v5117_v16, %v5048_v17  ;;  %v4335_v19 = vpop.f32.mrf.mxu2  ;;  %v16193_v16 = vld [vmem:[#allocation4] sm:$0xff]  ;;  %v16195_v17 = vld [vmem:[#allocation4 + $0x18] sm:$0xff] }
 0x40a   : > { %v5616_v21 = vpop.f32.mrf.mxu0  ;;  %v5687_v22 = vld [vmem:[#allocation4 + $0x108] sm:$0xff]  ;;  %v4449_v23 = vadd.f32 %v4401_v20, %v4335_v19  ;;  %v5831_v19 = vsel %vm227_vm2, %v16189_v15, 0.0  ;;  %v16199_v20 = vld [vmem:[#allocation4 + $0x20] sm:$0xff] }
 0x40b   : > { %v5735_v24 = vadd.f32 %v5687_v22, %v5616_v21  ;;  %5213 = vst.msk [vmem:[#allocation4 + $0x110] sm:$0xff] %vm227_vm2, %v5165_v18  ;;  %v5118_v26 = vld [vmem:[#allocation4 + $0x118] sm:$0xff]  ;;  %v5830_v22 = vsel %vm227_vm2, %v16193_v16, 0.0 }
 0x40c   : > { %4497 = vst.msk [vmem:[#allocation4 + $0x120] sm:$0xff] %vm227_vm2, %v4449_v23  ;;  %v5833_v23 = vsel %vm227_vm2, %v16195_v17, 0.0 }
 0x40d   : > { %5783 = vst.msk [vmem:[#allocation4 + $0x108] sm:$0xff] %vm227_vm2, %v5735_v24 }
 0x410   : > { %v5050_v27 = vpop.f32.mrf.mxu3 }
 0x411   : > { %v5166_v25 = vadd.f32 %v5118_v26, %v5050_v27  ;;  %v4337_v28 = vpop.f32.mrf.mxu2  ;;  %v4408_v27 = vld [vmem:[#allocation4 + $0x158] sm:$0xff] }
 0x412   : > { %v5619_v30 = vpop.f32.mrf.mxu0  ;;  %v5688_v31 = vld [vmem:[#allocation4 + $0x110] sm:$0xff]  ;;  %v4450_v32 = vadd.f32 %v4402_v29, %v4337_v28 }
 0x413   : > { %v5736_v34 = vadd.f32 %v5688_v31, %v5619_v30  ;;  %5214 = vst.msk [vmem:[#allocation4 + $0x118] sm:$0xff] %vm227_vm2, %v5166_v25  ;;  %v5119_v35 = vld [vmem:[#allocation4 + $0x120] sm:$0xff]  ;;  %v5832_v25 = vadd.f32 %v5831_v19, %v5830_v22  ;;  %v16205_v28 = vld [vmem:[#allocation4 + $0x30] sm:$0xff]  ;;  %v16254_v19 = vld [vmem:[#allocation4 + $0xa8] sm:$0xff] }
 0x414   : > { %4498 = vst.msk [vmem:[#allocation4 + $0x128] sm:$0xff] %vm227_vm2, %v4450_v32  ;;  %v5835_v32 = vsel %vm227_vm2, %v16199_v20, 0.0 }
 0x415   : > { %5784 = vst.msk [vmem:[#allocation4 + $0x110] sm:$0xff] %vm227_vm2, %v5736_v34 }
 0x418   : > { %v5053_v36 = vpop.f32.mrf.mxu3 }
 0x419   : > { %v5167_v37 = vadd.f32 %v5119_v35, %v5053_v36  ;;  %v4340_v38 = vpop.f32.mrf.mxu2  ;;  %v5834_v35 = vadd.f32 %v5833_v23, %v5832_v25  ;;  %v16210_v36 = vld [vmem:[#allocation4 + $0x38] sm:$0xff] }
 0x41a   : > { %v5621_v40 = vpop.f32.mrf.mxu0  ;;  %v5689_v42 = vld [vmem:[#allocation4 + $0x118] sm:$0xff]  ;;  %v4451_v41 = vadd.f32 %v4403_v33, %v4340_v38  ;;  %v16216_v33 = vld [vmem:[#allocation4 + $0x48] sm:$0xff] }
 0x41b   : > { %v5737_v43 = vadd.f32 %v5689_v42, %v5621_v40  ;;  %5215 = vst.msk [vmem:[#allocation4 + $0x120] sm:$0xff] %vm227_vm2, %v5167_v37  ;;  %v5120_v44 = vld [vmem:[#allocation4 + $0x128] sm:$0xff]  ;;  %v5837_v37 = vsel %vm227_vm2, %v16205_v28, 0.0  ;;  %v5836_v38 = vadd.f32 %v5835_v32, %v5834_v35  ;;  %v5839_v42 = vsel %vm227_vm2, %v16210_v36, 0.0  ;;  %v16262_v32 = vld [vmem:[#allocation4 + $0xc0] sm:$0xff] }
 0x41c   : > { %4499 = vst.msk [vmem:[#allocation4 + $0x130] sm:$0xff] %vm227_vm2, %v4451_v41 }
 0x41d   : > { %5785 = vst.msk [vmem:[#allocation4 + $0x118] sm:$0xff] %vm227_vm2, %v5737_v43  ;;  %v5838_v41 = vadd.f32 %v5837_v37, %v5836_v38  ;;  %v16220_v43 = vld [vmem:[#allocation4 + $0x50] sm:$0xff] }
 0x420   : > { %v5055_v45 = vpop.f32.mrf.mxu3 }
 0x421   : > { %v5168_v46 = vadd.f32 %v5120_v44, %v5055_v45  ;;  %v4342_v48 = vpop.f32.mrf.mxu2  ;;  %v5841_v45 = vsel %vm227_vm2, %v16216_v33, 0.0 }
 0x422   : > { %v5624_v50 = vpop.f32.mrf.mxu0  ;;  %v5690_v39 = vld [vmem:[#allocation4 + $0x120] sm:$0xff]  ;;  %v4452_v51 = vadd.f32 %v4404_v49, %v4342_v48 }
 0x423   : > { %v5738_v52 = vadd.f32 %v5690_v39, %v5624_v50  ;;  %5216 = vst.msk [vmem:[#allocation4 + $0x128] sm:$0xff] %vm227_vm2, %v5168_v46  ;;  %v5121_v54 = vld [vmem:[#allocation4 + $0x130] sm:$0xff]  ;;  %v4409_v49 = vld [vmem:[#allocation4 + $0x160] sm:$0xff]  ;;  %v5840_v50 = vadd.f32 %v5839_v42, %v5838_v41  ;;  %v16267_v41 = vld [vmem:[#allocation4 + $0xc8] sm:$0xff] }
 0x424   : > { %4500 = vst.msk [vmem:[#allocation4 + $0x138] sm:$0xff] %vm227_vm2, %v4452_v51  ;;  %v16224_v39 = vld [vmem:[#allocation4 + $0x60] sm:$0xff] }
 0x425   : > { %5786 = vst.msk [vmem:[#allocation4 + $0x120] sm:$0xff] %vm227_vm2, %v5738_v52 }
 0x428   : > { %v5058_v55 = vpop.f32.mrf.mxu3 }
 0x429   : > { %v5169_v47 = vadd.f32 %v5121_v54, %v5058_v55  ;;  %v4345_v53 = vpop.f32.mrf.mxu2  ;;  %v5843_v55 = vsel %vm227_vm2, %v16220_v43, 0.0 }
 0x42a   : > { %v5626_v57 = vpop.f32.mrf.mxu0  ;;  %v5691_v58 = vld [vmem:[#allocation4 + $0x128] sm:$0xff]  ;;  %v4453_v59 = vadd.f32 %v4405_v56, %v4345_v53  ;;  %v5842_v53 = vadd.f32 %v5841_v45, %v5840_v50 }
 0x42b   : > { %v5739_v60 = vadd.f32 %v5691_v58, %v5626_v57  ;;  %5217 = vst.msk [vmem:[#allocation4 + $0x130] sm:$0xff] %vm227_vm2, %v5169_v47  ;;  %v5122_v61 = vld [vmem:[#allocation4 + $0x138] sm:$0xff]  ;;  %v16229_v56 = vld [vmem:[#allocation4 + $0x68] sm:$0xff]  ;;  %v5845_v57 = vsel %vm227_vm2, %v16224_v39, 0.0 }
 0x42c   : > { %4501 = vst.msk [vmem:[#allocation4 + $0x140] sm:$0xff] %vm227_vm2, %v4453_v59  ;;  %v5844_v58 = vadd.f32 %v5843_v55, %v5842_v53  ;;  %v16235_v59 = vld [vmem:[#allocation4 + $0x78] sm:$0xff] }
 0x42d   : > { %5787 = vst.msk [vmem:[#allocation4 + $0x128] sm:$0xff] %vm227_vm2, %v5739_v60  ;;  %v4412_v53 = vld [vmem:[#allocation4 + $0x178] sm:$0xff] }
 0x430   : > { %v5060_v62 = vpop.f32.mrf.mxu3 }
 0x431   : > { %v5170_v63 = vadd.f32 %v5122_v61, %v5060_v62  ;;  %v4347_v0 = vpop.f32.mrf.mxu2  ;;  %v5847_v61 = vsel %vm227_vm2, %v16229_v56, 0.0  ;;  %v5846_v62 = vadd.f32 %v5845_v57, %v5844_v58  ;;  %v16281_v58 = vld [vmem:[#allocation4 + $0xf0] sm:$0xff] }
 0x432   : > { %v5629_v3 = vpop.f32.mrf.mxu0  ;;  %v5692_v4 = vld [vmem:[#allocation4 + $0x130] sm:$0xff]  ;;  %v4454_v5 = vadd.f32 %v4406_v1, %v4347_v0  ;;  %v5849_v1 = vsel %vm227_vm2, %v16235_v59, 0.0 }
 0x433   : > { %v5740_v6 = vadd.f32 %v5692_v4, %v5629_v3  ;;  %5218 = vst.msk [vmem:[#allocation4 + $0x138] sm:$0xff] %vm227_vm2, %v5170_v63  ;;  %v5123_v7 = vld [vmem:[#allocation4 + $0x140] sm:$0xff] }
 0x434   : > { %4502 = vst.msk [vmem:[#allocation4 + $0x148] sm:$0xff] %vm227_vm2, %v4454_v5  ;;  %v16239_v63 = vld [vmem:[#allocation4 + $0x80] sm:$0xff]  ;;  %v4410_v5 = vld [vmem:[#allocation4 + $0x168] sm:$0xff] }
 0x435   : > { %5788 = vst.msk [vmem:[#allocation4 + $0x130] sm:$0xff] %vm227_vm2, %v5740_v6  ;;  %v5848_v6 = vadd.f32 %v5847_v61, %v5846_v62 }
 0x438   : > { %v5063_v2 = vpop.f32.mrf.mxu3 }
 0x439   : > { %v5171_v8 = vadd.f32 %v5123_v7, %v5063_v2  ;;  %v4350_v10 = vpop.f32.mrf.mxu2  ;;  %v16243_v7 = vld [vmem:[#allocation4 + $0x90] sm:$0xff] }
 0x43a   : > { %v5631_v13 = vpop.f32.mrf.mxu0  ;;  %v5693_v14 = vld [vmem:[#allocation4 + $0x138] sm:$0xff]  ;;  %v4455_v9 = vadd.f32 %v4407_v11, %v4350_v10  ;;  %v5851_v11 = vsel %vm227_vm2, %v16239_v63, 0.0 }
 0x43b   : > { %v5741_v12 = vadd.f32 %v5693_v14, %v5631_v13  ;;  %5219 = vst.msk [vmem:[#allocation4 + $0x140] sm:$0xff] %vm227_vm2, %v5171_v8  ;;  %v5124_v18 = vld [vmem:[#allocation4 + $0x148] sm:$0xff]  ;;  %v5850_v14 = vadd.f32 %v5849_v1, %v5848_v6 }
 0x43c   : > { %4503 = vst.msk [vmem:[#allocation4 + $0x150] sm:$0xff] %vm227_vm2, %v4455_v9  ;;  %v16248_v9 = vld [vmem:[#allocation4 + $0x98] sm:$0xff] }
 0x43d   : > { %5789 = vst.msk [vmem:[#allocation4 + $0x138] sm:$0xff] %vm227_vm2, %v5741_v12  ;;  %v5853_v12 = vsel %vm227_vm2, %v16243_v7, 0.0  ;;  %v5855_v22 = vsel %vm227_vm2, %v16248_v9, 0.0 }
 0x440   : > { %v5065_v21 = vpop.f32.mrf.mxu3 }
 0x441   : > { %v5172_v24 = vadd.f32 %v5124_v18, %v5065_v21  ;;  %v4352_v26 = vpop.f32.mrf.mxu2  ;;  %v5852_v18 = vadd.f32 %v5851_v11, %v5850_v14 }
 0x442   : > { %v5634_v29 = vpop.f32.mrf.mxu0  ;;  %v5694_v30 = vld [vmem:[#allocation4 + $0x140] sm:$0xff]  ;;  %v4456_v31 = vadd.f32 %v4408_v27, %v4352_v26  ;;  %v5857_v27 = vsel %vm227_vm2, %v16254_v19, 0.0 }
 0x443   : > { %v5742_v34 = vadd.f32 %v5694_v30, %v5634_v29  ;;  %5220 = vst.msk [vmem:[#allocation4 + $0x148] sm:$0xff] %vm227_vm2, %v5172_v24  ;;  %v5125_v40 = vld [vmem:[#allocation4 + $0x150] sm:$0xff]  ;;  %v5854_v23 = vadd.f32 %v5853_v12, %v5852_v18 }
 0x444   : > { %4504 = vst.msk [vmem:[#allocation4 + $0x158] sm:$0xff] %vm227_vm2, %v4456_v31  ;;  %v16258_v24 = vld [vmem:[#allocation4 + $0xb0] sm:$0xff] }
 0x445   : > { %5790 = vst.msk [vmem:[#allocation4 + $0x140] sm:$0xff] %vm227_vm2, %v5742_v34  ;;  %v4411_v30 = vld [vmem:[#allocation4 + $0x170] sm:$0xff]  ;;  %v5856_v31 = vadd.f32 %v5855_v22, %v5854_v23  ;;  %v5859_v38 = vsel %vm227_vm2, %v16258_v24, 0.0  ;;  %v16300_v22 = vld [vmem:[#allocation4 + $0x120] sm:$0xff] }
 0x447   : > { %v5858_v42 = vadd.f32 %v5857_v27, %v5856_v31  ;;  %v5877_v31 = vsel %vm227_vm2, %v16300_v22, 0.0 }
 0x448   : > { %v5068_v44 = vpop.f32.mrf.mxu3 }
 0x449   : > { %v5173_v46 = vadd.f32 %v5125_v40, %v5068_v44  ;;  %v4355_v48 = vpop.f32.mrf.mxu2  ;;  %v5861_v44 = vsel %vm227_vm2, %v16262_v32, 0.0  ;;  %v5860_v45 = vadd.f32 %v5859_v38, %v5858_v42 }
 0x44a   : > { %v5636_v51 = vpop.f32.mrf.mxu0  ;;  %v5695_v52 = vld [vmem:[#allocation4 + $0x148] sm:$0xff]  ;;  %v4457_v54 = vadd.f32 %v4409_v49, %v4355_v48  ;;  %v5863_v49 = vsel %vm227_vm2, %v16267_v41, 0.0 }
 0x44b   : > { %v5743_v47 = vadd.f32 %v5695_v52, %v5636_v51  ;;  %5221 = vst.msk [vmem:[#allocation4 + $0x150] sm:$0xff] %vm227_vm2, %v5173_v46  ;;  %v5126_v60 = vld [vmem:[#allocation4 + $0x158] sm:$0xff]  ;;  %v5862_v50 = vadd.f32 %v5861_v44, %v5860_v45  ;;  %v16277_v51 = vld [vmem:[#allocation4 + $0xe0] sm:$0xff] }
 0x44c   : > { %4505 = vst.msk [vmem:[#allocation4 + $0x160] sm:$0xff] %vm227_vm2, %v4457_v54  ;;  %v16273_v46 = vld [vmem:[#allocation4 + $0xd8] sm:$0xff]  ;;  %v16314_v42 = vld [vmem:[#allocation4 + $0x140] sm:$0xff] }
 0x44d   : > { %5791 = vst.msk [vmem:[#allocation4 + $0x148] sm:$0xff] %vm227_vm2, %v5743_v47  ;;  %v5865_v54 = vsel %vm227_vm2, %v16273_v46, 0.0  ;;  %v5864_v57 = vadd.f32 %v5863_v49, %v5862_v50 }
 0x450   : > { %v5070_v0 = vpop.f32.mrf.mxu3 }
 0x451   : > { %v5174_v3 = vadd.f32 %v5126_v60, %v5070_v0  ;;  %v4357_v4 = vpop.f32.mrf.mxu2  ;;  %v5867_v0 = vsel %vm227_vm2, %v16277_v51, 0.0 }
 0x452   : > { %v5639_v2 = vpop.f32.mrf.mxu0  ;;  %v5696_v8 = vld [vmem:[#allocation4 + $0x150] sm:$0xff]  ;;  %v4458_v10 = vadd.f32 %v4410_v5, %v4357_v4  ;;  %v16286_v4 = vld [vmem:[#allocation4 + $0xf8] sm:$0xff]  ;;  %v5869_v5 = vsel %vm227_vm2, %v16281_v58, 0.0 }
 0x453   : > { %v5744_v13 = vadd.f32 %v5696_v8, %v5639_v2  ;;  %5222 = vst.msk [vmem:[#allocation4 + $0x158] sm:$0xff] %vm227_vm2, %v5174_v3  ;;  %v5127_v21 = vld [vmem:[#allocation4 + $0x160] sm:$0xff]  ;;  %v5866_v3 = vadd.f32 %v5865_v54, %v5864_v57  ;;  %v16292_v2 = vld [vmem:[#allocation4 + $0x108] sm:$0xff] }
 0x454   : > { %4506 = vst.msk [vmem:[#allocation4 + $0x168] sm:$0xff] %vm227_vm2, %v4458_v10  ;;  %v5871_v10 = vsel %vm227_vm2, %v16286_v4, 0.0  ;;  %v5873_v12 = vsel %vm227_vm2, %v16292_v2, 0.0 }
 0x455   : > { %5792 = vst.msk [vmem:[#allocation4 + $0x150] sm:$0xff] %vm227_vm2, %v5744_v13  ;;  %v5868_v6 = vadd.f32 %v5867_v0, %v5866_v3  ;;  %v16296_v13 = vld [vmem:[#allocation4 + $0x110] sm:$0xff] }
 0x456   : > { %v5875_v27 = vsel %vm227_vm2, %v16296_v13, 0.0 }
 0x457   : > { %v5870_v11 = vadd.f32 %v5869_v5, %v5868_v6 }
 0x458   : > { %v5073_v26 = vpop.f32.mrf.mxu3 }
 0x459   : > { %v5175_v25 = vadd.f32 %v5127_v21, %v5073_v26  ;;  %v4360_v29 = vpop.f32.mrf.mxu2  ;;  %v5872_v21 = vadd.f32 %v5871_v10, %v5870_v11 }
 0x45a   : > { %v5641_v34 = vpop.f32.mrf.mxu0  ;;  %v5697_v35 = vld [vmem:[#allocation4 + $0x158] sm:$0xff]  ;;  %v4459_v37 = vadd.f32 %v4411_v30, %v4360_v29  ;;  %v16305_v30 = vld [vmem:[#allocation4 + $0x128] sm:$0xff] }
 0x45b   : > { %v5745_v40 = vadd.f32 %v5697_v35, %v5641_v34  ;;  %5223 = vst.msk [vmem:[#allocation4 + $0x160] sm:$0xff] %vm227_vm2, %v5175_v25  ;;  %v5128_v48 = vld [vmem:[#allocation4 + $0x168] sm:$0xff]  ;;  %v5874_v29 = vadd.f32 %v5873_v12, %v5872_v21  ;;  %v16310_v35 = vld [vmem:[#allocation4 + $0x138] sm:$0xff]  ;;  %v5879_v38 = vsel %vm227_vm2, %v16305_v30, 0.0 }
 0x45c   : > { %4507 = vst.msk [vmem:[#allocation4 + $0x170] sm:$0xff] %vm227_vm2, %v4459_v37  ;;  %v5881_v45 = vsel %vm227_vm2, %v16310_v35, 0.0  ;;  %v16318_v50 = vld [vmem:[#allocation4 + $0x150] sm:$0xff] }
 0x45d   : > { %5793 = vst.msk [vmem:[#allocation4 + $0x158] sm:$0xff] %vm227_vm2, %v5745_v40  ;;  %v5876_v34 = vadd.f32 %v5875_v27, %v5874_v29 }
 0x45f   : > { %v5878_v40 = vadd.f32 %v5877_v31, %v5876_v34 }
 0x460   : > { %v5075_v52 = vpop.f32.mrf.mxu3 }
 0x461   : > { %v5176_v55 = vadd.f32 %v5128_v48, %v5075_v52  ;;  %v4362_v47 = vpop.f32.mrf.mxu2  ;;  %v5880_v49 = vadd.f32 %v5879_v38, %v5878_v40 }
 0x462   : > { %v5644_v60 = vpop.f32.mrf.mxu0  ;;  %v5698_v61 = vld [vmem:[#allocation4 + $0x160] sm:$0xff]  ;;  %v4460_v62 = vadd.f32 %v4412_v53, %v4362_v47 }
 0x463   : > { %v5746_v1 = vadd.f32 %v5698_v61, %v5644_v60  ;;  %5224 = vst.msk [vmem:[#allocation4 + $0x168] sm:$0xff] %vm227_vm2, %v5176_v55  ;;  %v5129_v8 = vld [vmem:[#allocation4 + $0x170] sm:$0xff]  ;;  %v5883_v55 = vsel %vm227_vm2, %v16314_v42, 0.0  ;;  %v5882_v53 = vadd.f32 %v5881_v45, %v5880_v49  ;;  %v5885_v60 = vsel %vm227_vm2, %v16318_v50, 0.0 }
 0x464   : > { %4508 = vst.msk [vmem:[#allocation4 + $0x178] sm:$0xff] %vm227_vm2, %v4460_v62  ;;  %v16323_v57 = vld [vmem:[#allocation4 + $0x158] sm:$0xff] }
 0x465   : > { %5794 = vst.msk [vmem:[#allocation4 + $0x160] sm:$0xff] %vm227_vm2, %v5746_v1  ;;  %v5884_v61 = vadd.f32 %v5883_v55, %v5882_v53  ;;  %v5887_v0 = vsel %vm227_vm2, %v16323_v57, 0.0 }
 0x467   : > { %v5886_v1 = vadd.f32 %v5885_v60, %v5884_v61 }
 0x468   : > { %v5078_v14 = vpop.f32.mrf.mxu3 }
 0x469   : > { %v5177_v18 = vadd.f32 %v5129_v8, %v5078_v14  ;;  %v5888_v5 = vadd.f32 %v5887_v0, %v5886_v1 }
 0x46a   : > { %v5646_v23 = vpop.f32.mrf.mxu0  ;;  %v5699_v26 = vld [vmem:[#allocation4 + $0x168] sm:$0xff] }
 0x46b   : > { %v5747_v25 = vadd.f32 %v5699_v26, %v5646_v23  ;;  %5225 = vst.msk [vmem:[#allocation4 + $0x170] sm:$0xff] %vm227_vm2, %v5177_v18  ;;  %v5130_v37 = vld [vmem:[#allocation4 + $0x178] sm:$0xff] }
 0x46d   : > { %5795 = vst.msk [vmem:[#allocation4 + $0x168] sm:$0xff] %vm227_vm2, %v5747_v25 }
 0x470   : > { %v5080_v44 = vpop.f32.mrf.mxu3 }
 0x471   : > { %v5178_v48 = vadd.f32 %v5130_v37, %v5080_v44 }
 0x472   : > { %v5649_v52 = vpop.f32.mrf.mxu0  ;;  %v5700_v54 = vld [vmem:[#allocation4 + $0x170] sm:$0xff] }
 0x473   : > { %v5748_v47 = vadd.f32 %v5700_v54, %v5649_v52  ;;  %5226 = vst.msk [vmem:[#allocation4 + $0x178] sm:$0xff] %vm227_vm2, %v5178_v48 }
 0x474   : > { %v16328_v62 = vld [vmem:[#allocation4 + $0x168] sm:$0xff] }
 0x475   : > { %5796 = vst.msk [vmem:[#allocation4 + $0x170] sm:$0xff] %vm227_vm2, %v5748_v47  ;;  %v5889_v3 = vsel %vm227_vm2, %v16328_v62, 0.0 }
 0x476   : > { %v5890_v11 = vadd.f32 %v5889_v3, %v5888_v5 }
 0x47a   : > { %v5651_v6 = vpop.f32.mrf.mxu0  ;;  %v5701_v8 = vld [vmem:[#allocation4 + $0x178] sm:$0xff] }
 0x47b   : > { %v5749_v10 = vadd.f32 %v5701_v8, %v5651_v6 }
 0x47c   : > { %v16334_v14 = vld [vmem:[#allocation4 + $0x170] sm:$0xff] }
 0x47d   : > { %v5891_v12 = vsel %vm227_vm2, %v16334_v14, 0.0  ;;  %5797 = vst.msk [vmem:[#allocation4 + $0x178] sm:$0xff] %vm227_vm2, %v5749_v10 }
 0x47e   : > { %v5892_v18 = vadd.f32 %v5891_v12, %v5890_v11 }
 0x480   : > { %v5893_v21 = vrot.slane %v5892_v18, 4 }
 0x482   : > { %v5894_v23 = vadd.f32 %v5893_v21, %v5892_v18 }
 0x484   : > { %v5895_v26 = vrot.slane %v5894_v23, 2 }
 0x486   : > { %v5896_v27 = vadd.f32 %v5895_v26, %v5894_v23 }
 0x488   : > { %v5897_v25 = vrot.slane %v5896_v27, 1 }
 0x48a   : > { %v5898_v29 = vadd.f32 %v5897_v25, %v5896_v27 }
 0x48c   : > { %v16339_v31 = vmul.f32 0.00390625, %v5898_v29 }
 0x48e   : > { %v16343_v34 = vsub.f32 %v16193_v16, %v16339_v31  ;;  %v16347_v37 = vsub.f32 %v16189_v15, %v16339_v31  ;;  %v16351_v38 = vsub.f32 %v16195_v17, %v16339_v31  ;;  %v16355_v40 = vsub.f32 %v16199_v20, %v16339_v31 }
 0x48f   : > { %v16363_v16 = vsub.f32 %v16205_v28, %v16339_v31  ;;  %v16369_v17 = vsub.f32 %v16210_v36, %v16339_v31  ;;  %v16377_v54 = vsub.f32 %v16216_v33, %v16339_v31  ;;  %v16384_v36 = vsub.f32 %v16220_v43, %v16339_v31 }
 0x490   : > { %v5932_v44 = vmul.f32 %v16343_v34, %v16343_v34  ;;  %v5933_v45 = vmul.f32 %v16347_v37, %v16347_v37  ;;  %v5934_v15 = vmul.f32 %v16351_v38, %v16351_v38  ;;  %v5935_v20 = vmul.f32 %v16355_v40, %v16355_v40 }
 0x491   : > { %v5936_v28 = vmul.f32 %v16363_v16, %v16363_v16  ;;  %v5937_v53 = vmul.f32 %v16369_v17, %v16369_v17  ;;  %v16391_v33 = vsub.f32 %v16224_v39, %v16339_v31  ;;  %v5938_v0 = vmul.f32 %v16377_v54, %v16377_v54 }
 0x492   : > { %v5964_v48 = vsel %vm227_vm2, %v5932_v44, 0.0  ;;  %v5965_v49 = vsel %vm227_vm2, %v5933_v45, 0.0  ;;  %v5967_v55 = vsel %vm227_vm2, %v5934_v15, 0.0  ;;  %v5969_v60 = vsel %vm227_vm2, %v5935_v20, 0.0 }
 0x493   : > { %v5966_v52 = vadd.f32 %v5965_v49, %v5964_v48  ;;  %v5971_v1 = vsel %vm227_vm2, %v5936_v28, 0.0  ;;  %v16398_v43 = vsub.f32 %v16229_v56, %v16339_v31  ;;  %v5939_v5 = vmul.f32 %v16384_v36, %v16384_v36 }
 0x494   : > { %v5973_v6 = vsel %vm227_vm2, %v5937_v53, 0.0  ;;  %v16405_v39 = vsub.f32 %v16235_v59, %v16339_v31  ;;  %v5940_v10 = vmul.f32 %v16391_v33, %v16391_v33  ;;  %v5975_v11 = vsel %vm227_vm2, %v5938_v0, 0.0 }
 0x495   : > { %v5968_v47 = vadd.f32 %v5967_v55, %v5966_v52  ;;  %v16412_v56 = vsub.f32 %v16239_v63, %v16339_v31  ;;  %v5941_v18 = vmul.f32 %v16398_v43, %v16398_v43  ;;  %v5977_v21 = vsel %vm227_vm2, %v5939_v5, 0.0 }
 0x496   : > { %v16419_v59 = vsub.f32 %v16243_v7, %v16339_v31  ;;  %v5942_v26 = vmul.f32 %v16405_v39, %v16405_v39  ;;  %v5979_v27 = vsel %vm227_vm2, %v5940_v10, 0.0  ;;  %v16426_v63 = vsub.f32 %v16248_v9, %v16339_v31 }
 0x497   : > { %v5970_v61 = vadd.f32 %v5969_v60, %v5968_v47  ;;  %v5943_v29 = vmul.f32 %v16412_v56, %v16412_v56  ;;  %v5981_v44 = vsel %vm227_vm2, %v5941_v18, 0.0  ;;  %v16433_v7 = vsub.f32 %v16254_v19, %v16339_v31 }
 0x498   : > { %v5944_v15 = vmul.f32 %v16419_v59, %v16419_v59  ;;  %v5983_v20 = vsel %vm227_vm2, %v5942_v26, 0.0  ;;  %v16440_v9 = vsub.f32 %v16258_v24, %v16339_v31  ;;  %v5945_v49 = vmul.f32 %v16426_v63, %v16426_v63 }
 0x499   : > { %v5972_v3 = vadd.f32 %v5971_v1, %v5970_v61  ;;  %v5985_v52 = vsel %vm227_vm2, %v5943_v29, 0.0  ;;  %v16447_v19 = vsub.f32 %v16262_v32, %v16339_v31  ;;  %v5946_v55 = vmul.f32 %v16433_v7, %v16433_v7 }
 0x49a   : > { %v5987_v47 = vsel %vm227_vm2, %v5944_v15, 0.0  ;;  %v16454_v24 = vsub.f32 %v16267_v41, %v16339_v31  ;;  %v5947_v60 = vmul.f32 %v16440_v9, %v16440_v9  ;;  %v5989_v61 = vsel %vm227_vm2, %v5945_v49, 0.0 }
 0x49b   : > { %v5974_v8 = vadd.f32 %v5973_v6, %v5972_v3  ;;  %v16461_v32 = vsub.f32 %v16273_v46, %v16339_v31  ;;  %v5948_v1 = vmul.f32 %v16447_v19, %v16447_v19  ;;  %v5991_v3 = vsel %vm227_vm2, %v5946_v55, 0.0 }
 0x49c   : > { %v16468_v41 = vsub.f32 %v16277_v51, %v16339_v31  ;;  %v5949_v6 = vmul.f32 %v16454_v24, %v16454_v24  ;;  %v16475_v46 = vsub.f32 %v16281_v58, %v16339_v31  ;;  %v16482_v51 = vsub.f32 %v16286_v4, %v16339_v31 }
 0x49d   : > { %v5976_v12 = vadd.f32 %v5975_v11, %v5974_v8  ;;  %v5993_v8 = vsel %vm227_vm2, %v5947_v60, 0.0  ;;  %v5950_v11 = vmul.f32 %v16461_v32, %v16461_v32  ;;  %v16489_v58 = vsub.f32 %v16292_v2, %v16339_v31 }
 0x49e   : > { %v16496_v4 = vsub.f32 %v16296_v13, %v16339_v31  ;;  %v16503_v2 = vsub.f32 %v16300_v22, %v16339_v31  ;;  %v16510_v13 = vsub.f32 %v16305_v30, %v16339_v31  ;;  %v16517_v22 = vsub.f32 %v16310_v35, %v16339_v31 }
 0x49f   : > { %v5978_v23 = vadd.f32 %v5977_v21, %v5976_v12  ;;  %v5995_v12 = vsel %vm227_vm2, %v5948_v1, 0.0  ;;  %v5951_v21 = vmul.f32 %v16468_v41, %v16468_v41  ;;  %v16524_v30 = vsub.f32 %v16314_v42, %v16339_v31 }
 0x4a0   : > { %v16531_v35 = vsub.f32 %v16318_v50, %v16339_v31  ;;  %v16538_v42 = vsub.f32 %v16323_v57, %v16339_v31  ;;  %v16545_v50 = vsub.f32 %v16328_v62, %v16339_v31  ;;  %v5931_v57 = vsub.f32 %v16334_v14, %v16339_v31 }
 0x4a1   : > { %v5980_v25 = vadd.f32 %v5979_v27, %v5978_v23  ;;  %v5997_v23 = vsel %vm227_vm2, %v5949_v6, 0.0  ;;  %v5952_v27 = vmul.f32 %v16475_v46, %v16475_v46 }
 0x4a3   : > { %v5982_v45 = vadd.f32 %v5981_v44, %v5980_v25  ;;  %v5999_v25 = vsel %vm227_vm2, %v5950_v11, 0.0  ;;  %v5953_v44 = vmul.f32 %v16482_v51, %v16482_v51 }
 0x4a5   : > { %v5984_v48 = vadd.f32 %v5983_v20, %v5982_v45  ;;  %v6001_v45 = vsel %vm227_vm2, %v5951_v21, 0.0  ;;  %v5954_v20 = vmul.f32 %v16489_v58, %v16489_v58 }
 0x4a7   : > { %v5986_v28 = vadd.f32 %v5985_v52, %v5984_v48  ;;  %v6003_v48 = vsel %vm227_vm2, %v5952_v27, 0.0  ;;  %v5955_v52 = vmul.f32 %v16496_v4, %v16496_v4 }
 0x4a9   : > { %v5988_v53 = vadd.f32 %v5987_v47, %v5986_v28  ;;  %v6005_v28 = vsel %vm227_vm2, %v5953_v44, 0.0  ;;  %v5956_v47 = vmul.f32 %v16503_v2, %v16503_v2  ;;  %v5963_v44 = vmul.f32 %v5931_v57, %v5931_v57 }
 0x4ab   : > { %v5990_v0 = vadd.f32 %v5989_v61, %v5988_v53  ;;  %v6007_v53 = vsel %vm227_vm2, %v5954_v20, 0.0  ;;  %v5957_v61 = vmul.f32 %v16510_v13, %v16510_v13  ;;  %v6025_v14 = vsel %vm227_vm2, %v5963_v44, 0.0 }
 0x4ad   : > { %v5992_v5 = vadd.f32 %v5991_v3, %v5990_v0  ;;  %v6009_v0 = vsel %vm227_vm2, %v5955_v52, 0.0  ;;  %v5958_v3 = vmul.f32 %v16517_v22, %v16517_v22 }
 0x4af   : > { %v5994_v10 = vadd.f32 %v5993_v8, %v5992_v5  ;;  %v6011_v5 = vsel %vm227_vm2, %v5956_v47, 0.0  ;;  %v5959_v8 = vmul.f32 %v16524_v30, %v16524_v30 }
 0x4b1   : > { %v5996_v18 = vadd.f32 %v5995_v12, %v5994_v10  ;;  %v6013_v10 = vsel %vm227_vm2, %v5957_v61, 0.0  ;;  %v5960_v12 = vmul.f32 %v16531_v35, %v16531_v35 }
 0x4b3   : > { %v5998_v26 = vadd.f32 %v5997_v23, %v5996_v18  ;;  %v6015_v18 = vsel %vm227_vm2, %v5958_v3, 0.0  ;;  %v5961_v23 = vmul.f32 %v16538_v42, %v16538_v42  ;;  %v6019_v62 = vsel %vm227_vm2, %v5960_v12, 0.0 }
 0x4b5   : > { %v6000_v29 = vadd.f32 %v5999_v25, %v5998_v26  ;;  %v6017_v26 = vsel %vm227_vm2, %v5959_v8, 0.0  ;;  %v5962_v25 = vmul.f32 %v16545_v50, %v16545_v50 }
 0x4b7   : > { %v6002_v15 = vadd.f32 %v6001_v45, %v6000_v29  ;;  %v6021_v45 = vsel %vm227_vm2, %v5961_v23, 0.0  ;;  %v6023_v20 = vsel %vm227_vm2, %v5962_v25, 0.0 }
 0x4b9   : > { %v6004_v49 = vadd.f32 %v6003_v48, %v6002_v15 }
 0x4bb   : > { %v6006_v55 = vadd.f32 %v6005_v28, %v6004_v49 }
 0x4bd   : > { %v6008_v60 = vadd.f32 %v6007_v53, %v6006_v55 }
 0x4bf   : > { %v6010_v1 = vadd.f32 %v6009_v0, %v6008_v60 }
 0x4c1   : > { %v6012_v6 = vadd.f32 %v6011_v5, %v6010_v1 }
 0x4c3   : > { %v6014_v11 = vadd.f32 %v6013_v10, %v6012_v6 }
 0x4c5   : > { %v6016_v21 = vadd.f32 %v6015_v18, %v6014_v11 }
 0x4c7   : > { %v6018_v27 = vadd.f32 %v6017_v26, %v6016_v21 }
 0x4c9   : > { %v6020_v29 = vadd.f32 %v6019_v62, %v6018_v27 }
 0x4cb   : > { %v6022_v15 = vadd.f32 %v6021_v45, %v6020_v29 }
 0x4cd   : > { %v6024_v48 = vadd.f32 %v6023_v20, %v6022_v15 }
 0x4cf   : > { %v6026_v31 = vadd.f32 %v6025_v14, %v6024_v48 }
 0x4d1   : > { %v6027_v49 = vrot.slane %v6026_v31, 4 }
 0x4d3   : > { %v6028_v52 = vadd.f32 %v6027_v49, %v6026_v31 }
 0x4d5   : > { %v6029_v28 = vrot.slane %v6028_v52, 2 }
 0x4d7   : > { %v6030_v55 = vadd.f32 %v6029_v28, %v6028_v52 }
 0x4d9   : > { %v6031_v47 = vrot.slane %v6030_v55, 1 }
 0x4db   : > { %v6032_v53 = vadd.f32 %v6031_v47, %v6030_v55 }
 0x4dd   : > { %v6033_v60 = vmul.f32 0.00390625, %v6032_v53 }
 0x4df   : > { %v6034_v61 = vadd.f32 1e-05, %v6033_v60 }
 0x4e1   : > { %14734 = vrsqrt.f32 %v6034_v61  ;;  %vm6041_vm9 = vweird.f32 %v6034_v61 }
 0x4e7   : > { %v14735_v0 = vpop.eup %14734 }
 0x4e8   : > { %v6036_v1 = vmul.f32 %v14735_v0, %v6034_v61  ;;  %vm6042_vm8 = vweird.f32 %v14735_v0 }
 0x4e9   : > { %vm6043_vm10 = vmor %vm6041_vm9, %vm6042_vm8 }
 0x4ea   : > { %v6037_v3 = vmul.f32 %v14735_v0, %v6036_v1 }
 0x4ec   : > { %v6038_v5 = vmul.f32 0.5, %v6037_v3 }
 0x4ee   : > { %v6039_v6 = vsub.f32 1.5, %v6038_v5 }
 0x4f0   : > { %v6040_v8 = vmul.f32 %v14735_v0, %v6039_v6 }
 0x4f2   : > { %v16561_v10 = vsel %vm6043_vm10, %v14735_v0, %v6040_v8 }
 0x4f3   : > { %v6076_v11 = vmul.f32 %v16561_v10, %v5931_v57  ;;  %v16567_v18 = vmul.f32 %v16561_v10, %v16343_v34  ;;  %v16571_v21 = vmul.f32 %v16561_v10, %v16347_v37  ;;  %v16575_v23 = vmul.f32 %v16561_v10, %v16351_v38 }
 0x4f4   : > { %v16580_v57 = vmul.f32 %v16561_v10, %v16355_v40  ;;  %v16584_v26 = vmul.f32 %v16561_v10, %v16363_v16  ;;  %v16588_v34 = vmul.f32 %v16561_v10, %v16369_v17  ;;  %v16592_v37 = vmul.f32 %v16561_v10, %v16377_v54 }
 0x4f5   : > { %v6108_v12 = vmax.f32 %v6076_v11, 0.0  ;;  %v6077_v38 = vmax.f32 %v16567_v18, 0.0  ;;  %v6078_v27 = vmax.f32 %v16571_v21, 0.0  ;;  %v6079_v25 = vmax.f32 %v16575_v23, 0.0  ;;  %v13439_v18 = vld [vmem:[%s18866_s2 + $0x4] sm:$0x3] }
 0x4f6   : > { %v16599_v40 = vmul.f32 %v16561_v10, %v16384_v36  ;;  %v6080_v16 = vmax.f32 %v16580_v57, 0.0  ;;  %v16604_v17 = vmul.f32 %v16561_v10, %v16391_v33  ;;  %v6081_v62 = vmax.f32 %v16584_v26, 0.0  ;;  %v13560_v26 = vld [vmem:[%s18866_s2 + $0x6] sm:$0x3] }
 0x4f7   : > { %6140 = vst.msk [vmem:[#allocation2 + $0x189] sm:$0xff] %vm227_vm2, %v6108_v12  ;;  %v16612_v54 = vmul.f32 %v16561_v10, %v16398_v43  ;;  %v6082_v29 = vmax.f32 %v16588_v34, 0.0  ;;  %v16620_v36 = vmul.f32 %v16561_v10, %v16405_v39  ;;  %v6083_v33 = vmax.f32 %v16592_v37, 0.0 }
 0x4f8   : > { %6172 = vst.msk [vmem:[#allocation2 + $0x18b] sm:$0x40] %vm277_vm4, %v6108_v12  ;;  %v16628_v43 = vmul.f32 %v16561_v10, %v16412_v56  ;;  %v6084_v44 = vmax.f32 %v16599_v40, 0.0  ;;  %v16636_v39 = vmul.f32 %v16561_v10, %v16419_v59  ;;  %v6085_v45 = vmax.f32 %v16604_v17, 0.0 }
 0x4f9   : > { %6109 = vst.msk [vmem:[#allocation2 + $0x19] sm:$0xff] %vm227_vm2, %v6077_v38  ;;  %v16644_v56 = vmul.f32 %v16561_v10, %v16426_v63  ;;  %v6086_v15 = vmax.f32 %v16612_v54, 0.0  ;;  %v16652_v59 = vmul.f32 %v16561_v10, %v16433_v7  ;;  %v6087_v20 = vmax.f32 %v16620_v36, 0.0 }
 0x4fa   : > { %6110 = vst.msk [vmem:[#allocation2 + $0x21] sm:$0xff] %vm227_vm2, %v6078_v27  ;;  %v16660_v63 = vmul.f32 %v16561_v10, %v16440_v9  ;;  %v6088_v48 = vmax.f32 %v16628_v43, 0.0  ;;  %v16668_v7 = vmul.f32 %v16561_v10, %v16447_v19  ;;  %v6089_v14 = vmax.f32 %v16636_v39, 0.0 }
 0x4fb   : > { %6111 = vst.msk [vmem:[#allocation2 + $0x31] sm:$0xff] %vm227_vm2, %v6079_v25  ;;  %v16676_v9 = vmul.f32 %v16561_v10, %v16454_v24  ;;  %v6090_v31 = vmax.f32 %v16644_v56, 0.0  ;;  %v16684_v19 = vmul.f32 %v16561_v10, %v16461_v32  ;;  %v6091_v49 = vmax.f32 %v16652_v59, 0.0 }
 0x4fc   : > { %6112 = vst.msk [vmem:[#allocation2 + $0x39] sm:$0xff] %vm227_vm2, %v6080_v16  ;;  %v16692_v24 = vmul.f32 %v16561_v10, %v16468_v41  ;;  %v6092_v52 = vmax.f32 %v16660_v63, 0.0  ;;  %v6065_v32 = vmul.f32 %v16561_v10, %v16475_v46  ;;  %v6093_v28 = vmax.f32 %v16668_v7, 0.0 }
 0x4fd   : > { %6113 = vst.msk [vmem:[#allocation2 + $0x49] sm:$0xff] %vm227_vm2, %v6081_v62  ;;  %v16706_v55 = vmul.f32 %v16561_v10, %v16482_v51  ;;  %v6094_v41 = vmax.f32 %v16676_v9, 0.0  ;;  %v6067_v47 = vmul.f32 %v16561_v10, %v16489_v58  ;;  %v6095_v46 = vmax.f32 %v16684_v19, 0.0 }
 0x4fe   : > { %6114 = vst.msk [vmem:[#allocation2 + $0x51] sm:$0xff] %vm227_vm2, %v6082_v29  ;;  %v16718_v53 = vmul.f32 %v16561_v10, %v16496_v4  ;;  %v6096_v51 = vmax.f32 %v16692_v24, 0.0  ;;  %v6069_v60 = vmul.f32 %v16561_v10, %v16503_v2  ;;  %v6097_v61 = vmax.f32 %v6065_v32, 0.0 }
 0x4ff   : > { %6115 = vst.msk [vmem:[#allocation2 + $0x61] sm:$0xff] %vm227_vm2, %v6083_v33  ;;  %v16729_v58 = vmul.f32 %v16561_v10, %v16510_v13  ;;  %v6098_v0 = vmax.f32 %v16706_v55, 0.0  ;;  %v6071_v4 = vmul.f32 %v16561_v10, %v16517_v22  ;;  %v6099_v1 = vmax.f32 %v6067_v47, 0.0 }
 0x500   : > { %6116 = vst.msk [vmem:[#allocation2 + $0x69] sm:$0xff] %vm227_vm2, %v6084_v44  ;;  %v16740_v2 = vmul.f32 %v16561_v10, %v16524_v30  ;;  %v6100_v3 = vmax.f32 %v16718_v53, 0.0  ;;  %v6073_v13 = vmul.f32 %v16561_v10, %v16531_v35  ;;  %v6101_v5 = vmax.f32 %v6069_v60, 0.0 }
 0x501   : > { %6117 = vst.msk [vmem:[#allocation2 + $0x79] sm:$0xff] %vm227_vm2, %v6085_v45  ;;  %v6074_v22 = vmul.f32 %v16561_v10, %v16538_v42  ;;  %v6102_v6 = vmax.f32 %v16729_v58, 0.0  ;;  %v6075_v30 = vmul.f32 %v16561_v10, %v16545_v50  ;;  %v6103_v8 = vmax.f32 %v6071_v4, 0.0  ;;  %v13318_v50 = vld [vmem:[%s18866_s2 + $0x2] sm:$0x3] }
 0x502   : > { %6118 = vst.msk [vmem:[#allocation2 + $0x81] sm:$0xff] %vm227_vm2, %v6086_v15  ;;  %v6104_v35 = vmax.f32 %v16740_v2, 0.0  ;;  %v6105_v11 = vmax.f32 %v6073_v13, 0.0  ;;  %v7211_v10 = vsel %vm712_vm0, %v13318_v50, 0  ;;  %v7782_v23 = vsel %vm712_vm0, %v13439_v18, 0 }
 0x503   : > { %6119 = vst.msk [vmem:[#allocation2 + $0x91] sm:$0xff] %vm227_vm2, %v6087_v20  ;;  %v6106_v42 = vmax.f32 %v6074_v22, 0.0  ;;  %v6107_v12 = vmax.f32 %v6075_v30, 0.0  ;;  %7220 = vmatpush.bf16.msrb.mxu2 %v7211_v10  ;;  %7791 = vmatpush.bf16.msrb.mxu3 %v7782_v23  ;;  %v8300_v37 = vsel %vm712_vm0, %v13560_v26, 0  ;;  %v6174_v34 = vld [vmem:[#allocation2 + $0x38] sm:$0xff] }
 0x504   : > { %6120 = vst.msk [vmem:[#allocation2 + $0x99] sm:$0xff] %vm227_vm2, %v6088_v48  ;;  %8309 = vmatpush.bf16.msrb.mxu0 %v8300_v37  ;;  %v13681_v26 = vld [vmem:[%s18866_s2 + $0x8] sm:$0x3] }
 0x505   : > { %6121 = vst.msk [vmem:[#allocation2 + $0xa9] sm:$0xff] %vm227_vm2, %v6089_v14  ;;  %v6195_v54 = vld [vmem:[#allocation2 + $0x50] sm:$0xff] }
 0x506   : > { %6122 = vst.msk [vmem:[#allocation2 + $0xb1] sm:$0xff] %vm227_vm2, %v6090_v31  ;;  %v6249_v56 = vpack.c.bf16 %v6195_v54, %v6195_v54 }
 0x507   : > { %6123 = vst.msk [vmem:[#allocation2 + $0xc1] sm:$0xff] %vm227_vm2, %v6091_v49 }
 0x508   : > { %6124 = vst.msk [vmem:[#allocation2 + $0xc9] sm:$0xff] %vm227_vm2, %v6092_v52 }
 0x509   : > { %6125 = vst.msk [vmem:[#allocation2 + $0xd9] sm:$0xff] %vm227_vm2, %v6093_v28 }
 0x50a   : > { %6126 = vst.msk [vmem:[#allocation2 + $0xe1] sm:$0xff] %vm227_vm2, %v6094_v41 }
 0x50b   : > { %6127 = vst.msk [vmem:[#allocation2 + $0xf1] sm:$0xff] %vm227_vm2, %v6095_v46 }
 0x50c   : > { %6128 = vst.msk [vmem:[#allocation2 + $0xf9] sm:$0xff] %vm227_vm2, %v6096_v51 }
 0x50d   : > { %6129 = vst.msk [vmem:[#allocation2 + $0x109] sm:$0xff] %vm227_vm2, %v6097_v61 }
 0x50e   : > { %6130 = vst.msk [vmem:[#allocation2 + $0x111] sm:$0xff] %vm227_vm2, %v6098_v0 }
 0x50f   : > { %6131 = vst.msk [vmem:[#allocation2 + $0x121] sm:$0xff] %vm227_vm2, %v6099_v1  ;;  %v6210_v58 = vld [vmem:[#allocation2 + $0xc8] sm:$0xff] }
 0x510   : > { %6132 = vst.msk [vmem:[#allocation2 + $0x129] sm:$0xff] %vm227_vm2, %v6100_v3 }
 0x511   : > { %6133 = vst.msk [vmem:[#allocation2 + $0x139] sm:$0xff] %vm227_vm2, %v6101_v5  ;;  %v6213_v13 = vld [vmem:[#allocation2 + $0xe0] sm:$0xff] }
 0x512   : > { %6134 = vst.msk [vmem:[#allocation2 + $0x141] sm:$0xff] %vm227_vm2, %v6102_v6 }
 0x513   : > { %6135 = vst.msk [vmem:[#allocation2 + $0x151] sm:$0xff] %vm227_vm2, %v6103_v8 }
 0x514   : > { %6136 = vst.msk [vmem:[#allocation2 + $0x159] sm:$0xff] %vm227_vm2, %v6104_v35 }
 0x515   : > { %6137 = vst.msk [vmem:[#allocation2 + $0x169] sm:$0xff] %vm227_vm2, %v6105_v11  ;;  %v6219_v18 = vld [vmem:[#allocation2 + $0x110] sm:$0xff] }
 0x516   : > { %6138 = vst.msk [vmem:[#allocation2 + $0x171] sm:$0xff] %vm227_vm2, %v6106_v42 }
 0x517   : > { %6139 = vst.msk [vmem:[#allocation2 + $0x181] sm:$0xff] %vm227_vm2, %v6107_v12 }
 0x518   : > { %6141 = vst.msk [vmem:[#allocation2 + $0x17] sm:$0x2] %vm260_vm3, %v6077_v38  ;;  %v6189_v38 = vld [vmem:[#allocation2 + $0x20] sm:$0xff] }
 0x519   : > { %6142 = vst.msk [vmem:[#allocation2 + $0x2f] sm:$0x2] %vm260_vm3, %v6079_v25 }
 0x51a   : > { %6143 = vst.msk [vmem:[#allocation2 + $0x47] sm:$0x2] %vm260_vm3, %v6081_v62 }
 0x51b   : > { %6144 = vst.msk [vmem:[#allocation2 + $0x5f] sm:$0x2] %vm260_vm3, %v6083_v33 }
 0x51c   : > { %6145 = vst.msk [vmem:[#allocation2 + $0x77] sm:$0x2] %vm260_vm3, %v6085_v45  ;;  %v6198_v45 = vld [vmem:[#allocation2 + $0x68] sm:$0xff] }
 0x51d   : > { %6146 = vst.msk [vmem:[#allocation2 + $0x8f] sm:$0x2] %vm260_vm3, %v6087_v20  ;;  %v6252_v7 = vpack.c.bf16 %v6198_v45, %v6198_v45 }
 0x51e   : > { %6147 = vst.msk [vmem:[#allocation2 + $0xa7] sm:$0x2] %vm260_vm3, %v6089_v14 }
 0x51f   : > { %6148 = vst.msk [vmem:[#allocation2 + $0xbf] sm:$0x2] %vm260_vm3, %v6091_v49  ;;  %v6188_v57 = vld [vmem:[#allocation2 + $0x18] sm:$0xff] }
 0x520   : > { %6149 = vst.msk [vmem:[#allocation2 + $0xd7] sm:$0x2] %vm260_vm3, %v6093_v28  ;;  %v6173_v21 = vld [vmem:[#allocation2 + $0x30] sm:$0xff]  ;;  %v6242_v40 = vpack.c.bf16 %v6188_v57, %v6188_v57  ;;  %v6204_v49 = vld [vmem:[#allocation2 + $0x98] sm:$0xff]  ;;  %v9018_v57 = vsel %vm712_vm0, %v13681_v26, 0 }
 0x521   : > { %6150 = vst.msk [vmem:[#allocation2 + $0xef] sm:$0x2] %vm260_vm3, %v6095_v46  ;;  %v6245_v17 = vpack.c.bf16 %v6173_v21, %v6173_v21  ;;  %v6194_v62 = vld [vmem:[#allocation2 + $0x48] sm:$0xff]  ;;  %v6258_v47 = vpack.c.bf16 %v6204_v49, %v6204_v49  ;;  %9027 = vmatpush.bf16.msrb.mxu1 %v9018_v57 }
 0x522   : > { %6151 = vst.msk [vmem:[#allocation2 + $0x107] sm:$0x2] %vm260_vm3, %v6097_v61  ;;  %v6248_v39 = vpack.c.bf16 %v6194_v62, %v6194_v62 }
 0x523   : > { %6152 = vst.msk [vmem:[#allocation2 + $0x11f] sm:$0x2] %vm260_vm3, %v6099_v1  ;;  %v6200_v20 = vld [vmem:[#allocation2 + $0x78] sm:$0xff] }
 0x524   : > { %6153 = vst.msk [vmem:[#allocation2 + $0x137] sm:$0x2] %vm260_vm3, %v6101_v5  ;;  %v6254_v19 = vpack.c.bf16 %v6200_v20, %v6200_v20  ;;  %v6264_v5 = vpack.c.bf16 %v6210_v58, %v6210_v58 }
 0x525   : > { %6154 = vst.msk [vmem:[#allocation2 + $0x14f] sm:$0x2] %vm260_vm3, %v6103_v8  ;;  %v6206_v28 = vld [vmem:[#allocation2 + $0xa8] sm:$0xff] }
 0x526   : > { %6155 = vst.msk [vmem:[#allocation2 + $0x167] sm:$0x2] %vm260_vm3, %v6105_v11  ;;  %v6209_v60 = vld [vmem:[#allocation2 + $0xc0] sm:$0xff]  ;;  %v6260_v61 = vpack.c.bf16 %v6206_v28, %v6206_v28  ;;  %v6267_v11 = vpack.c.bf16 %v6213_v13, %v6213_v13 }
 0x527   : > { %6156 = vst.msk [vmem:[#allocation2 + $0x17f] sm:$0x2] %vm260_vm3, %v6107_v12  ;;  %v6212_v2 = vld [vmem:[#allocation2 + $0xd8] sm:$0xff] }
 0x528   : > { %6157 = vst.msk [vmem:[#allocation2 + $0x23] sm:$0x40] %vm277_vm4, %v6078_v27  ;;  %v6215_v30 = vld [vmem:[#allocation2 + $0xf0] sm:$0xff]  ;;  %v6266_v8 = vpack.c.bf16 %v6212_v2, %v6212_v2 }
 0x529   : > { %6158 = vst.msk [vmem:[#allocation2 + $0x3b] sm:$0x40] %vm277_vm4, %v6080_v16  ;;  %v6243_v16 = vpack.c.bf16 %v6189_v38, %v6189_v38  ;;  %v6218_v50 = vld [vmem:[#allocation2 + $0x108] sm:$0xff]  ;;  %v6269_v10 = vpack.c.bf16 %v6215_v30, %v6215_v30 }
 0x52a   : > { %6159 = vst.msk [vmem:[#allocation2 + $0x53] sm:$0x40] %vm277_vm4, %v6082_v29  ;;  %v6246_v29 = vpack.c.bf16 %v6174_v34, %v6174_v34  ;;  %v6272_v38 = vpack.c.bf16 %v6218_v50, %v6218_v50  ;;  %v6235_v50 = vld [vmem:[#allocation2 + $0x190] sm:$0xff] }
 0x52b   : > { %6160 = vst.msk [vmem:[#allocation2 + $0x6b] sm:$0x40] %vm277_vm4, %v6084_v44  ;;  %v6197_v44 = vld [vmem:[#allocation2 + $0x60] sm:$0xff]  ;;  %v6224_v62 = vld [vmem:[#allocation2 + $0x138] sm:$0xff] }
 0x52c   : > { %6161 = vst.msk [vmem:[#allocation2 + $0x83] sm:$0x40] %vm277_vm4, %v6086_v15  ;;  %v6251_v63 = vpack.c.bf16 %v6197_v44, %v6197_v44  ;;  %v6278_v45 = vpack.c.bf16 %v6224_v62, %v6224_v62 }
 0x52d   : > { %6162 = vst.msk [vmem:[#allocation2 + $0x9b] sm:$0x40] %vm277_vm4, %v6088_v48  ;;  %v16846_v25 = vld [vmem:[#allocation2 + $0x168] sm:$0xff]  ;;  %v6201_v48 = vld [vmem:[#allocation2 + $0x80] sm:$0xff] }
 0x52e   : > { %6163 = vst.msk [vmem:[#allocation2 + $0xb3] sm:$0x40] %vm277_vm4, %v6090_v31  ;;  %v6203_v31 = vld [vmem:[#allocation2 + $0x90] sm:$0xff]  ;;  %v6255_v24 = vpack.c.bf16 %v6201_v48, %v6201_v48 }
 0x52f   : > { %6164 = vst.msk [vmem:[#allocation2 + $0xcb] sm:$0x40] %vm277_vm4, %v6092_v52  ;;  %v6257_v55 = vpack.c.bf16 %v6203_v31, %v6203_v31  ;;  %v6231_v48 = vld [vmem:[#allocation2 + $0x170] sm:$0xff]  ;;  %v6284_v31 = vpack.c.bf16 %v16846_v25, %v16846_v25 }
 0x530   : > { %6165 = vst.msk [vmem:[#allocation2 + $0xe3] sm:$0x40] %vm277_vm4, %v6094_v41  ;;  %v6175_v27 = vld [vmem:[#allocation2 + $0x40] sm:$0xff]  ;;  %v6207_v41 = vld [vmem:[#allocation2 + $0xb0] sm:$0xff] }
 0x531   : > { %6166 = vst.msk [vmem:[#allocation2 + $0xfb] sm:$0x40] %vm277_vm4, %v6096_v51  ;;  %v6196_v36 = vld [vmem:[#allocation2 + $0x58] sm:$0xff]  ;;  %v6247_v33 = vpack.c.bf16 %v6175_v27, %v6175_v27 }
 0x532   : > { %6167 = vst.msk [vmem:[#allocation2 + $0x113] sm:$0x40] %vm277_vm4, %v6098_v0  ;;  %v6199_v15 = vld [vmem:[#allocation2 + $0x70] sm:$0xff]  ;;  %v6250_v59 = vpack.c.bf16 %v6196_v36, %v6196_v36  ;;  %v6261_v0 = vpack.c.bf16 %v6207_v41, %v6207_v41 }
 0x533   : > { %6168 = vst.msk [vmem:[#allocation2 + $0x12b] sm:$0x40] %vm277_vm4, %v6100_v3  ;;  %v6202_v14 = vld [vmem:[#allocation2 + $0x88] sm:$0xff]  ;;  %v6253_v9 = vpack.c.bf16 %v6199_v15, %v6199_v15  ;;  %v6263_v3 = vpack.c.bf16 %v6209_v60, %v6209_v60 }
 0x534   : > { %6169 = vst.msk [vmem:[#allocation2 + $0x143] sm:$0x40] %vm277_vm4, %v6102_v6  ;;  %v6205_v52 = vld [vmem:[#allocation2 + $0xa0] sm:$0xff]  ;;  %v6256_v32 = vpack.c.bf16 %v6202_v14, %v6202_v14 }
 0x535   : > { %6170 = vst.msk [vmem:[#allocation2 + $0x15b] sm:$0x40] %vm277_vm4, %v6104_v35  ;;  %v6208_v46 = vld [vmem:[#allocation2 + $0xb8] sm:$0xff]  ;;  %v6259_v53 = vpack.c.bf16 %v6205_v52, %v6205_v52 }
 0x536   : > { %6171 = vst.msk [vmem:[#allocation2 + $0x173] sm:$0x40] %vm277_vm4, %v6106_v42  ;;  %v6211_v4 = vld [vmem:[#allocation2 + $0xd0] sm:$0xff]  ;;  %v6262_v1 = vpack.c.bf16 %v6208_v46, %v6208_v46  ;;  %v6216_v35 = vld [vmem:[#allocation2 + $0xf8] sm:$0xff] }
 0x537   : > { %6176 = vst.msk [vmem:[#allocation2] sm:$0xff] %vm227_vm2, %v6173_v21  ;;  %v6214_v22 = vld [vmem:[#allocation2 + $0xe8] sm:$0xff]  ;;  %v6265_v6 = vpack.c.bf16 %v6211_v4, %v6211_v4  ;;  %v6270_v23 = vpack.c.bf16 %v6216_v35, %v6216_v35 }
 0x538   : > { %6177 = vst.msk [vmem:[#allocation2 + $0x8] sm:$0xff] %vm227_vm2, %v6174_v34  ;;  %v6217_v42 = vld [vmem:[#allocation2 + $0x100] sm:$0xff]  ;;  %v6268_v12 = vpack.c.bf16 %v6214_v22, %v6214_v22 }
 0x539   : > { %6178 = vst.msk [vmem:[#allocation2 + $0x10] sm:$0xff] %vm227_vm2, %v6175_v27  ;;  %v6220_v37 = vld [vmem:[#allocation2 + $0x118] sm:$0xff]  ;;  %v6271_v21 = vpack.c.bf16 %v6217_v42, %v6217_v42  ;;  %v6221_v34 = vld [vmem:[#allocation2 + $0x120] sm:$0xff]  ;;  %v6222_v27 = vld [vmem:[#allocation2 + $0x128] sm:$0xff] }
 0x53a   : > { %6182 = vst.msk [vmem:[#allocation2 + $0x198] sm:$0xff] %vm227_vm2, %v16846_v25  ;;  %v6275_v54 = vpack.c.bf16 %v6221_v34, %v6221_v34  ;;  %v6276_v36 = vpack.c.bf16 %v6222_v27, %v6222_v27  ;;  %v6190_v25 = vld [vmem:[#allocation2 + $0x28] sm:$0xff] }
 0x53b   : > { %6296 = vst.msk [vmem:[#allocation3 + $0xc] sm:$0xf] %vm191_vm5, %v6242_v40  ;;  %v6273_v40 = vpack.c.bf16 %v6219_v18, %v6219_v18  ;;  %v6234_v42 = vld [vmem:[#allocation2 + $0x188] sm:$0xff] }
 0x53c   : > { %6297 = vst.msk [vmem:[#allocation3 + $0x10] sm:$0xf] %vm191_vm5, %v6243_v16  ;;  %v6223_v16 = vld [vmem:[#allocation2 + $0x130] sm:$0xff]  ;;  %v6288_v18 = vpack.c.bf16 %v6234_v42, %v6234_v42 }
 0x53d   : > { %v16855_v43 = vld [vmem:[#allocation2 + $0x178] sm:$0xff]  ;;  %6299 = vst.msk [vmem:[#allocation3 + $0x18] sm:$0xf] %vm191_vm5, %v6245_v17  ;;  %v6274_v17 = vpack.c.bf16 %v6220_v37, %v6220_v37  ;;  %v6277_v44 = vpack.c.bf16 %v6223_v16, %v6223_v16 }
 0x53e   : > { %6184 = vst.msk [vmem:[#allocation2 + $0x1a8] sm:$0xff] %vm227_vm2, %v16855_v43  ;;  %v6185_v49 = vld [vmem:[#allocation2] sm:$0xff] }
 0x53f   : > { %6300 = vst.msk [vmem:[#allocation3 + $0x1c] sm:$0xf] %vm191_vm5, %v6246_v29  ;;  %v6225_v29 = vld [vmem:[#allocation2 + $0x140] sm:$0xff]  ;;  %v6186_v52 = vld [vmem:[#allocation2 + $0x8] sm:$0xff] }
 0x540   : > { %6301 = vst.msk [vmem:[#allocation3 + $0x20] sm:$0xf] %vm191_vm5, %v6247_v33  ;;  %v6226_v33 = vld [vmem:[#allocation2 + $0x148] sm:$0xff]  ;;  %v6279_v15 = vpack.c.bf16 %v6225_v29, %v6225_v29  ;;  %v6187_v28 = vld [vmem:[#allocation2 + $0x10] sm:$0xff]  ;;  %v6240_v41 = vpack.c.bf16 %v6186_v52, %v6186_v52 }
 0x541   : > { %6302 = vst.msk [vmem:[#allocation3 + $0x24] sm:$0xf] %vm191_vm5, %v6248_v39  ;;  %v6227_v39 = vld [vmem:[#allocation2 + $0x150] sm:$0xff]  ;;  %v6280_v20 = vpack.c.bf16 %v6226_v33, %v6226_v33 }
 0x542   : > { %6303 = vst.msk [vmem:[#allocation3 + $0x28] sm:$0xf] %vm191_vm5, %v6249_v56  ;;  %v6228_v56 = vld [vmem:[#allocation2 + $0x158] sm:$0xff] }
 0x543   : > { %6304 = vst.msk [vmem:[#allocation3 + $0x2c] sm:$0xf] %vm191_vm5, %v6250_v59  ;;  %v14578_v51 = vld [vmem:[#allocation3 + $0xc] sm:$0xff] }
 0x544   : > { %6305 = vst.msk [vmem:[#allocation3 + $0x30] sm:$0xf] %vm191_vm5, %v6251_v63  ;;  %13657 = vmatmul.msk.bf16.vlgmr.msrb.gmra.mxu0 %vm227_vm2, %v14578_v51  ;;  %v6229_v59 = vld [vmem:[#allocation2 + $0x160] sm:$0xff]  ;;  %v6281_v63 = vpack.c.bf16 %v6227_v39, %v6227_v39 }
 0x545   : > { %6306 = vst.msk [vmem:[#allocation3 + $0x34] sm:$0xf] %vm191_vm5, %v6252_v7  ;;  %v6282_v7 = vpack.c.bf16 %v6228_v56, %v6228_v56  ;;  %v6283_v14 = vpack.c.bf16 %v6229_v59, %v6229_v59 }
 0x546   : > { %6307 = vst.msk [vmem:[#allocation3 + $0x38] sm:$0xf] %vm191_vm5, %v6253_v9  ;;  %v6233_v9 = vld [vmem:[#allocation2 + $0x180] sm:$0xff]  ;;  %v14557_v16 = vld [vmem:[#allocation3 + $0x18] sm:$0xff] }
 0x547   : > { %6308 = vst.msk [vmem:[#allocation3 + $0x3c] sm:$0xf] %vm191_vm5, %v6254_v19  ;;  %v6285_v19 = vpack.c.bf16 %v6231_v48, %v6231_v48  ;;  %v14580_v37 = vld [vmem:[#allocation3 + $0x1c] sm:$0xff] }
 0x548   : > { %6309 = vst.msk [vmem:[#allocation3 + $0x40] sm:$0xf] %vm191_vm5, %v6255_v24  ;;  %v6286_v24 = vpack.c.bf16 %v16855_v43, %v16855_v43  ;;  %v6244_v43 = vpack.c.bf16 %v6190_v25, %v6190_v25  ;;  %v14558_v59 = vld [vmem:[#allocation3 + $0x20] sm:$0xff] }
 0x549   : > { %6310 = vst.msk [vmem:[#allocation3 + $0x44] sm:$0xf] %vm191_vm5, %v6256_v32  ;;  %v6287_v32 = vpack.c.bf16 %v6233_v9, %v6233_v9  ;;  %v14581_v33 = vld [vmem:[#allocation3 + $0x24] sm:$0xff]  ;;  %v7667_v48 = vrot.slane %v14558_v59, 1 }
 0x54a   : > { %6311 = vst.msk [vmem:[#allocation3 + $0x48] sm:$0xf] %vm191_vm5, %v6257_v55  ;;  %v6239_v55 = vpack.c.bf16 %v6185_v49, %v6185_v49  ;;  %v14559_v52 = vld [vmem:[#allocation3 + $0x28] sm:$0xff] }
 0x54b   : > { %6312 = vst.msk [vmem:[#allocation3 + $0x4c] sm:$0xf] %vm191_vm5, %v6258_v47  ;;  %v6241_v47 = vpack.c.bf16 %v6187_v28, %v6187_v28  ;;  %v14582_v9 = vld [vmem:[#allocation3 + $0x2c] sm:$0xff]  ;;  %v14510_v28 = vld [vmem:[#allocation3 + $0x20] sm:$0xff] }
 0x54c   : > { %6313 = vst.msk [vmem:[#allocation3 + $0x50] sm:$0xf] %vm191_vm5, %v6259_v53 }
 0x54d   : > { %6314 = vst.msk [vmem:[#allocation3 + $0x54] sm:$0xf] %vm191_vm5, %v6260_v61 }
 0x54e   : > { %6315 = vst.msk [vmem:[#allocation3 + $0x58] sm:$0xf] %vm191_vm5, %v6261_v0 }
 0x54f   : > { %6316 = vst.msk [vmem:[#allocation3 + $0x5c] sm:$0xf] %vm191_vm5, %v6262_v1 }
 0x550   : > { %6317 = vst.msk [vmem:[#allocation3 + $0x60] sm:$0xf] %vm191_vm5, %v6263_v3 }
 0x551   : > { %6318 = vst.msk [vmem:[#allocation3 + $0x64] sm:$0xf] %vm191_vm5, %v6264_v5 }
 0x552   : > { %6319 = vst.msk [vmem:[#allocation3 + $0x68] sm:$0xf] %vm191_vm5, %v6265_v6  ;;  %v14539_v59 = vld [vmem:[#allocation3 + $0x48] sm:$0xff] }
 0x553   : > { %6320 = vst.msk [vmem:[#allocation3 + $0x6c] sm:$0xf] %vm191_vm5, %v6266_v8 }
 0x554   : > { %6321 = vst.msk [vmem:[#allocation3 + $0x70] sm:$0xf] %vm191_vm5, %v6267_v11 }
 0x555   : > { %6322 = vst.msk [vmem:[#allocation3 + $0x74] sm:$0xf] %vm191_vm5, %v6268_v12 }
 0x556   : > { %6323 = vst.msk [vmem:[#allocation3 + $0x78] sm:$0xf] %vm191_vm5, %v6269_v10 }
 0x557   : > { %6324 = vst.msk [vmem:[#allocation3 + $0x7c] sm:$0xf] %vm191_vm5, %v6270_v23 }
 0x558   : > { %6325 = vst.msk [vmem:[#allocation3 + $0x80] sm:$0xf] %vm191_vm5, %v6271_v21  ;;  %v6289_v21 = vpack.c.bf16 %v6235_v50, %v6235_v50  ;;  %v14537_v50 = vld [vmem:[#allocation3 + $0x38] sm:$0xff] }
 0x559   : > { %6326 = vst.msk [vmem:[#allocation3 + $0x84] sm:$0xf] %vm191_vm5, %v6272_v38 }
 0x55a   : > { %6327 = vst.msk [vmem:[#allocation3 + $0x88] sm:$0xf] %vm191_vm5, %v6273_v40 }
 0x55b   : > { %6328 = vst.msk [vmem:[#allocation3 + $0x8c] sm:$0xf] %vm191_vm5, %v6274_v17  ;;  %v14533_v17 = vld [vmem:[#allocation3 + $0x18] sm:$0xff] }
 0x55c   : > { %6329 = vst.msk [vmem:[#allocation3 + $0x90] sm:$0xf] %vm191_vm5, %v6275_v54  ;;  %v7665_v54 = vrot.slane %v14557_v16, 1  ;;  %v14538_v16 = vld [vmem:[#allocation3 + $0x40] sm:$0xff] }
 0x55d   : > { %6330 = vst.msk [vmem:[#allocation3 + $0x94] sm:$0xf] %vm191_vm5, %v6276_v36  ;;  %v6966_v36 = vshll.u32 %v14533_v17, 16 }
 0x55e   : > { %6331 = vst.msk [vmem:[#allocation3 + $0x98] sm:$0xf] %vm191_vm5, %v6277_v44 }
 0x55f   : > { %6332 = vst.msk [vmem:[#allocation3 + $0x9c] sm:$0xf] %vm191_vm5, %v6278_v45  ;;  %v6968_v45 = vrot.slane %v6966_v36, 1  ;;  %v14586_v36 = vld [vmem:[#allocation3 + $0x4c] sm:$0xff] }
 0x560   : > { %6333 = vst.msk [vmem:[#allocation3 + $0xa0] sm:$0xf] %vm191_vm5, %v6279_v15  ;;  %v6180_v15 = vld [vmem:[#allocation2 + $0x170] sm:$0xff] }
 0x561   : > { %6334 = vst.msk [vmem:[#allocation3 + $0xa4] sm:$0xf] %vm191_vm5, %v6280_v20  ;;  %v14534_v20 = vld [vmem:[#allocation3 + $0x20] sm:$0xff] }
 0x562   : > { %6335 = vst.msk [vmem:[#allocation3 + $0xa8] sm:$0xf] %vm191_vm5, %v6281_v63  ;;  %v14509_v63 = vld [vmem:[#allocation3 + $0x18] sm:$0xff]  ;;  %v6978_v25 = vshrl.u32 %v14534_v20, 16 }
 0x563   : > { %6336 = vst.msk [vmem:[#allocation3 + $0xac] sm:$0xf] %vm191_vm5, %v6282_v7  ;;  %v6970_v7 = vshrl.u32 %v14533_v17, 16  ;;  %v14513_v17 = vld [vmem:[#allocation3 + $0x38] sm:$0xff] }
 0x564   : > { %6337 = vst.msk [vmem:[#allocation3 + $0xb0] sm:$0xf] %vm191_vm5, %v6283_v14  ;;  %v6974_v14 = vshll.u32 %v14534_v20, 16 }
 0x565   : > { %6338 = vst.msk [vmem:[#allocation3 + $0xb4] sm:$0xf] %vm191_vm5, %v6284_v31  ;;  %v6972_v31 = vor.u32 %v6970_v7, %v6968_v45 }
 0x566   : > { %6339 = vst.msk [vmem:[#allocation3 + $0xb8] sm:$0xf] %vm191_vm5, %v6285_v19  ;;  %v7668_v19 = vsel %vm1786_vm7, %v7665_v54, %v7667_v48  ;;  %v6976_v49 = vrot.slane %v6974_v14, 1  ;;  %v7010_v14 = vshrl.u32 %v14538_v16, 16 }
 0x567   : > { %6340 = vst.msk [vmem:[#allocation3 + $0xbc] sm:$0xf] %vm191_vm5, %v6286_v24 }
 0x568   : > { %6341 = vst.msk [vmem:[#allocation3 + $0xc0] sm:$0xf] %vm191_vm5, %v6287_v32  ;;  %v6977_v24 = vsel %vm1067_vm6, %v6972_v31, %v6976_v49  ;;  %v14535_v32 = vld [vmem:[#allocation3 + $0x28] sm:$0xff]  ;;  %v14587_v31 = vld [vmem:[#allocation3 + $0x54] sm:$0xff] }
 0x569   : > { %6293 = vst.msk [vmem:[#allocation3] sm:$0xf] %vm191_vm5, %v6239_v55  ;;  %v7669_v55 = vrot.slane %v14559_v52, 1 }
 0x56a   : > { %6294 = vst.msk [vmem:[#allocation3 + $0x4] sm:$0xf] %vm191_vm5, %v6240_v41  ;;  %v6982_v41 = vshll.u32 %v14535_v32, 16 }
 0x56b   : > { %6295 = vst.msk [vmem:[#allocation3 + $0x8] sm:$0xf] %vm191_vm5, %v6241_v47  ;;  %v14583_v47 = vld [vmem:[#allocation3 + $0x34] sm:$0xff] }
 0x56c   : > { %6298 = vst.msk [vmem:[#allocation3 + $0x14] sm:$0xf] %vm191_vm5, %v6244_v43  ;;  %v6980_v43 = vor.u32 %v6978_v25, %v6976_v49 }
 0x56d   : > { %6342 = vst.msk [vmem:[#allocation3 + $0xc4] sm:$0xf] %vm191_vm5, %v6288_v18 }
 0x56e   : > { %6343 = vst.msk [vmem:[#allocation3 + $0xc8] sm:$0xf] %vm191_vm5, %v6289_v21 }
 0x56f   : > { %6183 = vst.msk [vmem:[#allocation2 + $0x1a0] sm:$0xff] %vm227_vm2, %v6180_v15  ;;  %v14563_v15 = vld [vmem:[#allocation3 + $0x48] sm:$0xff] }
 0x570   : > { %v13442_v46 = vld [vmem:[#allocation3] sm:$0xe] }
 0x571   : > { %v14506_v53 = vld [vmem:[#allocation3] sm:$0xff] }
 0x572   : > { %v14554_v51 = vld [vmem:[#allocation3] sm:$0xf0]  ;;  %v14555_v61 = vld [vmem:[#allocation3 + $0x8] sm:$0xff]  ;;  %13294 = vmatmul.msk.bf16.vlgmr.msra.gmra.mxu1 %vm227_vm2, %v14506_v53  ;;  %v6984_v53 = vrot.slane %v6982_v41, 1 }
 0x573   : > { %v14530_v60 = vld [vmem:[#allocation3] sm:$0xff]  ;;  %v13443_v58 = vor.u32 %v14554_v51, %v13442_v46  ;;  %v14531_v0 = vld [vmem:[#allocation3 + $0x8] sm:$0xff]  ;;  %v14579_v1 = vld [vmem:[#allocation3 + $0x14] sm:$0xff]  ;;  %v7661_v3 = vrot.slane %v14555_v61, 1  ;;  %v7670_v46 = vsel %vm1786_vm7, %v7667_v48, %v7669_v55  ;;  %v7677_v48 = vrot.slane %v14563_v15, 1 }
 0x574   : > { %v6945_v4 = vshll.u32 %v14530_v60, 16  ;;  %v6950_v13 = vshll.u32 %v14531_v0, 16  ;;  %v6943_v5 = vshrl.u32 %v14530_v60, 16  ;;  %13658 = vmatmul.msk.bf16.gmra.mxu0 %vm227_vm2, %v14579_v1  ;;  %v14532_v11 = vld [vmem:[#allocation3 + $0x10] sm:$0xff]  ;;  %v14507_v10 = vld [vmem:[#allocation3 + $0x8] sm:$0xff]  ;;  %v6954_v23 = vshrl.u32 %v14531_v0, 16 }
 0x575   : > { %v7660_v2 = vrot.slane %v13443_v58, 1  ;;  %v14556_v12 = vld [vmem:[#allocation3 + $0x10] sm:$0xff]  ;;  %v6958_v26 = vshll.u32 %v14532_v11, 16  ;;  %v6962_v29 = vshrl.u32 %v14532_v11, 16  ;;  %v6985_v51 = vsel %vm1067_vm6, %v6980_v43, %v6984_v53  ;;  %v14511_v58 = vld [vmem:[#allocation3 + $0x28] sm:$0xff] }
 0x576   : > { %v6947_v22 = vrot.slane %v6945_v4, 1  ;;  %v6952_v8 = vrot.slane %v6950_v13, 1  ;;  %v7663_v57 = vrot.slane %v14556_v12, 1  ;;  %v14508_v62 = vld [vmem:[#allocation3 + $0x10] sm:$0xff]  ;;  %v6986_v4 = vshrl.u32 %v14535_v32, 16  ;;  %v14561_v12 = vld [vmem:[#allocation3 + $0x38] sm:$0xff] }
 0x577   : > { %v7662_v6 = vsel %vm1786_vm7, %v7660_v2, %v7661_v3  ;;  %v6960_v27 = vrot.slane %v6958_v26, 1  ;;  %v14560_v60 = vld [vmem:[#allocation3 + $0x30] sm:$0xff]  ;;  %v14584_v2 = vld [vmem:[#allocation3 + $0x3c] sm:$0xff]  ;;  %v7673_v18 = vrot.slane %v14561_v12, 1  ;;  %v6998_v26 = vshll.u32 %v14537_v50, 16 }
 0x578   : > { %13536 = vmatmul.msk.bf16.vlgmr.msrb.gmra.mxu3 %vm227_vm2, %v7662_v6  ;;  %v6948_v30 = vor.u32 %v6947_v22, %v6943_v5  ;;  %v6956_v34 = vor.u32 %v6954_v23, %v6952_v8  ;;  %v7664_v38 = vsel %vm1786_vm7, %v7661_v3, %v7663_v57  ;;  %v7666_v39 = vsel %vm1786_vm7, %v7663_v57, %v7665_v54  ;;  %v14536_v61 = vld [vmem:[#allocation3 + $0x30] sm:$0xff]  ;;  %v6236_v3 = vld [vmem:[#allocation2 + $0x198] sm:$0xff] }
 0x579   : > { %v6964_v44 = vor.u32 %v6962_v29, %v6960_v27  ;;  %v7671_v0 = vrot.slane %v14560_v60, 1  ;;  %v6990_v1 = vshll.u32 %v14536_v61, 16  ;;  %v6988_v13 = vor.u32 %v6986_v4, %v6984_v53  ;;  %v6237_v5 = vld [vmem:[#allocation2 + $0x1a0] sm:$0xff] }
 0x57a   : > { %v6953_v35 = vsel %vm1067_vm6, %v6948_v30, %v6952_v8  ;;  %v6961_v40 = vsel %vm1067_vm6, %v6956_v34, %v6960_v27  ;;  %v6290_v6 = vpack.c.bf16 %v6236_v3, %v6236_v3  ;;  %v6238_v30 = vld [vmem:[#allocation2 + $0x1a8] sm:$0xff]  ;;  %v6994_v23 = vshrl.u32 %v14536_v61, 16  ;;  %v14562_v27 = vld [vmem:[#allocation3 + $0x40] sm:$0xff]  ;;  %v14564_v43 = vld [vmem:[#allocation3 + $0x50] sm:$0xff] }
 0x57b   : > { %13415 = vmatmul.msk.bf16.vlgmr.msrb.gmra.mxu2 %vm227_vm2, %v6953_v35  ;;  %v6969_v56 = vsel %vm1067_vm6, %v6964_v44, %v6968_v45  ;;  %v7672_v22 = vsel %vm1786_vm7, %v7669_v55, %v7671_v0  ;;  %v6992_v8 = vrot.slane %v6990_v1, 1  ;;  %v6291_v35 = vpack.c.bf16 %v6237_v5, %v6237_v5  ;;  %v14588_v1 = vld [vmem:[#allocation3 + $0x5c] sm:$0xff] }
 0x57c   : > { %6344 = vst.msk [vmem:[#allocation3 + $0xcc] sm:$0xf] %vm191_vm5, %v6290_v6  ;;  %v6292_v42 = vpack.c.bf16 %v6238_v30, %v6238_v30  ;;  %v7674_v57 = vsel %vm1786_vm7, %v7671_v0, %v7673_v18  ;;  %v7000_v34 = vrot.slane %v6998_v26, 1  ;;  %v7002_v54 = vshrl.u32 %v14537_v50, 16 }
 0x57d   : > { %v6993_v11 = vsel %vm1067_vm6, %v6988_v13, %v6992_v8  ;;  %6345 = vst.msk [vmem:[#allocation3 + $0xd0] sm:$0xf] %vm191_vm5, %v6291_v35  ;;  %v6996_v21 = vor.u32 %v6994_v23, %v6992_v8  ;;  %v7006_v29 = vshll.u32 %v14538_v16, 16  ;;  %v7679_v61 = vrot.slane %v14564_v43, 1  ;;  %v14565_v23 = vld [vmem:[#allocation3 + $0x58] sm:$0xff] }
 0x57e   : > { %6346 = vst.msk [vmem:[#allocation3 + $0xd4] sm:$0xf] %vm191_vm5, %v6292_v42  ;;  %v7018_v0 = vshrl.u32 %v14539_v59, 16 }
 0x582   : > { %13295 = vmatmul.msk.bf16.gmra.mxu1 %vm227_vm2, %v14507_v10  ;;  %v14512_v10 = vld [vmem:[#allocation3 + $0x30] sm:$0xff] }
 0x584   : > { %13659 = vmatmul.msk.bf16.gmra.mxu0 %vm227_vm2, %v14580_v37  ;;  %v14585_v37 = vld [vmem:[#allocation3 + $0x44] sm:$0xff] }
 0x588   : > { %13537 = vmatmul.msk.bf16.gmra.mxu3 %vm227_vm2, %v7664_v38  ;;  %v7001_v38 = vsel %vm1067_vm6, %v6996_v21, %v7000_v34 }
 0x58b   : > { %13416 = vmatmul.msk.bf16.gmra.mxu2 %vm227_vm2, %v6961_v40 }
 0x592   : > { %13296 = vmatmul.msk.bf16.gmra.mxu1 %vm227_vm2, %v14508_v62  ;;  %v7675_v62 = vrot.slane %v14562_v27, 1  ;;  %v7681_v27 = vrot.slane %v14565_v23, 1  ;;  %v14543_v23 = vld [vmem:[#allocation3 + $0x68] sm:$0xff] }
 0x594   : > { %13660 = vmatmul.msk.bf16.gmra.mxu0 %vm227_vm2, %v14581_v33  ;;  %v7004_v33 = vor.u32 %v7002_v54, %v7000_v34  ;;  %v7676_v44 = vsel %vm1786_vm7, %v7673_v18, %v7675_v62  ;;  %v7678_v49 = vsel %vm1786_vm7, %v7675_v62, %v7677_v48  ;;  %v14516_v34 = vld [vmem:[#allocation3 + $0x50] sm:$0xff]  ;;  %v14589_v54 = vld [vmem:[#allocation3 + $0x64] sm:$0xff] }
 0x598   : > { %13538 = vmatmul.msk.bf16.gmra.mxu3 %vm227_vm2, %v7666_v39  ;;  %v7008_v39 = vrot.slane %v7006_v29, 1 }
 0x59b   : > { %13417 = vmatmul.msk.bf16.gmra.mxu2 %vm227_vm2, %v6969_v56  ;;  %v7009_v56 = vsel %vm1067_vm6, %v7004_v33, %v7008_v39 }
 0x5a2   : > { %13297 = vmatmul.msk.bf16.gmra.mxu1 %vm227_vm2, %v14509_v63  ;;  %v14514_v63 = vld [vmem:[#allocation3 + $0x40] sm:$0xff] }
 0x5a4   : > { %13661 = vmatmul.msk.bf16.gmra.mxu0 %vm227_vm2, %v14582_v9  ;;  %v7014_v9 = vshll.u32 %v14539_v59, 16 }
 0x5a8   : > { %13539 = vmatmul.msk.bf16.gmra.mxu3 %vm227_vm2, %v7668_v19  ;;  %v7012_v19 = vor.u32 %v7010_v14, %v7008_v39  ;;  %v7682_v39 = vsel %vm1786_vm7, %v7679_v61, %v7681_v27 }
 0x5ab   : > { %13418 = vmatmul.msk.bf16.gmra.mxu2 %vm227_vm2, %v6977_v24  ;;  %v7016_v24 = vrot.slane %v7014_v9, 1 }
 0x5ad   : > { %v7017_v32 = vsel %vm1067_vm6, %v7012_v19, %v7016_v24  ;;  %v7020_v13 = vor.u32 %v7018_v0, %v7016_v24 }
 0x5b2   : > { %13298 = vmatmul.msk.bf16.gmra.mxu1 %vm227_vm2, %v14510_v28 }
 0x5b4   : > { %13662 = vmatmul.msk.bf16.gmra.mxu0 %vm227_vm2, %v14583_v47 }
 0x5b8   : > { %13540 = vmatmul.msk.bf16.gmra.mxu3 %vm227_vm2, %v7670_v46  ;;  %v14540_v46 = vld [vmem:[#allocation3 + $0x50] sm:$0xff] }
 0x5b9   : > { %v7022_v4 = vshll.u32 %v14540_v46, 16 }
 0x5bb   : > { %13419 = vmatmul.msk.bf16.gmra.mxu2 %vm227_vm2, %v6985_v51  ;;  %v14515_v51 = vld [vmem:[#allocation3 + $0x48] sm:$0xff]  ;;  %v7024_v30 = vrot.slane %v7022_v4, 1 }
 0x5c1   : > { %v16963_v40 = vpop.f32.mrf.mxu0 }
 0x5c2   : > { %13299 = vmatmul.msk.bf16.gmra.mxu1 %vm227_vm2, %v14511_v58 }
 0x5c4   : > { %13663 = vmatmul.msk.bf16.gmra.mxu0 %vm227_vm2, %v14584_v2 }
 0x5c8   : > { %13541 = vmatmul.msk.bf16.gmra.mxu3 %vm227_vm2, %v7672_v22  ;;  %v7680_v22 = vsel %vm1786_vm7, %v7677_v48, %v7679_v61 }
 0x5c9   : > { %v16969_v45 = vpop.f32.mrf.mxu0 }
 0x5cb   : > { %13420 = vmatmul.msk.bf16.gmra.mxu2 %vm227_vm2, %v6993_v11  ;;  %v7025_v11 = vsel %vm1067_vm6, %v7020_v13, %v7024_v30 }
 0x5d2   : > { %13300 = vmatmul.msk.bf16.gmra.mxu1 %vm227_vm2, %v14512_v10 }
 0x5d4   : > { %13664 = vmatmul.msk.bf16.gmra.mxu0 %vm227_vm2, %v14585_v37  ;;  %v14541_v37 = vld [vmem:[#allocation3 + $0x58] sm:$0xff] }
 0x5d5   : > { %v7030_v62 = vshll.u32 %v14541_v37, 16 }
 0x5d7   : > { %v7032_v15 = vrot.slane %v7030_v62, 1  ;;  %v7046_v62 = vshll.u32 %v14543_v23, 16 }
 0x5d8   : > { %13542 = vmatmul.msk.bf16.gmra.mxu3 %vm227_vm2, %v7674_v57 }
 0x5db   : > { %13421 = vmatmul.msk.bf16.gmra.mxu2 %vm227_vm2, %v7001_v38 }
 0x5e2   : > { %13301 = vmatmul.msk.bf16.gmra.mxu1 %vm227_vm2, %v14513_v17  ;;  %v7026_v17 = vshrl.u32 %v14540_v46, 16  ;;  %v7034_v46 = vshrl.u32 %v14541_v37, 16 }
 0x5e4   : > { %13665 = vmatmul.msk.bf16.gmra.mxu0 %vm227_vm2, %v14586_v36  ;;  %v7028_v33 = vor.u32 %v7026_v17, %v7024_v30  ;;  %v7036_v0 = vor.u32 %v7034_v46, %v7032_v15 }
 0x5e8   : > { %13543 = vmatmul.msk.bf16.gmra.mxu3 %vm227_vm2, %v7676_v44 }
 0x5eb   : > { %13422 = vmatmul.msk.bf16.gmra.mxu2 %vm227_vm2, %v7009_v56 }
 0x5ef   : > { %v6600_v20 = vpop.f32.mrf.mxu1 }
 0x5f0   : > { %6720 = vst.msk [vmem:[#allocation4] sm:$0xff] %vm227_vm2, %v6600_v20 }
 0x5f1   : > { %v16974_v7 = vpop.f32.mrf.mxu0 }
 0x5f2   : > { %13302 = vmatmul.msk.bf16.gmra.mxu1 %vm227_vm2, %v14514_v63  ;;  %v7033_v63 = vsel %vm1067_vm6, %v7028_v33, %v7032_v15 }
 0x5f4   : > { %13666 = vmatmul.msk.bf16.gmra.mxu0 %vm227_vm2, %v14587_v31 }
 0x5f7   : > { %v6602_v52 = vpop.f32.mrf.mxu1  ;;  %v7342_v41 = vld [vmem:[#allocation4] sm:$0xff] }
 0x5f8   : > { %13544 = vmatmul.msk.bf16.gmra.mxu3 %vm227_vm2, %v7678_v49  ;;  %6721 = vst.msk [vmem:[#allocation4 + $0x8] sm:$0xff] %vm227_vm2, %v6602_v52  ;;  %v17016_v49 = vld [vmem:[#allocation3 + $0x60] sm:$0xff] }
 0x5f9   : > { %v16983_v55 = vpop.f32.mrf.mxu0  ;;  %v14542_v52 = vld [vmem:[#allocation3 + $0x60] sm:$0xff] }
 0x5fa   : > { %v7042_v17 = vshrl.u32 %v14542_v52, 16 }
 0x5fb   : > { %v7793_v28 = vpop.f32.mrf.mxu3  ;;  %13423 = vmatmul.msk.bf16.gmra.mxu2 %vm227_vm2, %v7017_v32 }
 0x5fe   : > { %v7222_v25 = vpop.f32.mrf.mxu2 }
 0x5ff   : > { %v7390_v47 = vadd.f32 %v7342_v41, %v7222_v25  ;;  %v6605_v53 = vpop.f32.mrf.mxu1  ;;  %v7343_v3 = vld [vmem:[#allocation4 + $0x8] sm:$0xff]  ;;  %v14517_v25 = vld [vmem:[#allocation3 + $0x58] sm:$0xff] }
 0x600   : > { %6722 = vst.msk [vmem:[#allocation4 + $0x10] sm:$0xff] %vm227_vm2, %v6605_v53  ;;  %v7038_v53 = vshll.u32 %v14542_v52, 16  ;;  %v17060_v52 = vld [vmem:[#allocation3 + $0x70] sm:$0xff] }
 0x601   : > { %7438 = vst.msk [vmem:[#allocation4] sm:$0xff] %vm227_vm2, %v7390_v47  ;;  %v16987_v58 = vpop.f32.mrf.mxu0  ;;  %v7683_v47 = vrot.slane %v17016_v49, 1 }
 0x602   : > { %13303 = vmatmul.msk.bf16.gmra.mxu1 %vm227_vm2, %v14515_v51  ;;  %v14590_v51 = vld [vmem:[#allocation3 + $0x6c] sm:$0xff]  ;;  %v7040_v13 = vrot.slane %v7038_v53, 1  ;;  %v7687_v53 = vrot.slane %v17060_v52, 1 }
 0x603   : > { %v7795_v60 = vpop.f32.mrf.mxu3 }
 0x604   : > { %13667 = vmatmul.msk.bf16.gmra.mxu0 %vm227_vm2, %v14588_v1  ;;  %v7684_v1 = vsel %vm1786_vm7, %v7681_v27, %v7683_v47  ;;  %v7041_v30 = vsel %vm1067_vm6, %v7036_v0, %v7040_v13 }
 0x606   : > { %v7224_v2 = vpop.f32.mrf.mxu2 }
 0x607   : > { %v7391_v5 = vadd.f32 %v7343_v3, %v7224_v2  ;;  %v6607_v35 = vpop.f32.mrf.mxu1  ;;  %v7344_v10 = vld [vmem:[#allocation4 + $0x10] sm:$0xff] }
 0x608   : > { %v7913_v6 = vld [vmem:[#allocation4] sm:$0xff]  ;;  %13545 = vmatmul.msk.bf16.gmra.mxu3 %vm227_vm2, %v7680_v22  ;;  %6723 = vst.msk [vmem:[#allocation4 + $0x18] sm:$0xff] %vm227_vm2, %v6607_v35 }
 0x609   : > { %v7961_v8 = vadd.f32 %v7913_v6, %v7793_v28  ;;  %7439 = vst.msk [vmem:[#allocation4 + $0x8] sm:$0xff] %vm227_vm2, %v7391_v5  ;;  %v16998_v12 = vpop.f32.mrf.mxu0 }
 0x60b   : > { %8009 = vst.msk [vmem:[#allocation4] sm:$0xff] %vm227_vm2, %v7961_v8  ;;  %v7798_v42 = vpop.f32.mrf.mxu3  ;;  %13424 = vmatmul.msk.bf16.gmra.mxu2 %vm227_vm2, %v7025_v11 }
 0x60e   : > { %v7227_v50 = vpop.f32.mrf.mxu2 }
 0x60f   : > { %v7392_v18 = vadd.f32 %v7344_v10, %v7227_v50  ;;  %v6610_v57 = vpop.f32.mrf.mxu1  ;;  %v7345_v36 = vld [vmem:[#allocation4 + $0x18] sm:$0xff]  ;;  %v17037_v50 = vld [vmem:[#allocation3 + $0x68] sm:$0xff] }
 0x610   : > { %v7914_v26 = vld [vmem:[#allocation4 + $0x8] sm:$0xff]  ;;  %6724 = vst.msk [vmem:[#allocation4 + $0x20] sm:$0xff] %vm227_vm2, %v6610_v57  ;;  %v14518_v57 = vld [vmem:[#allocation3 + $0x60] sm:$0xff] }
 0x611   : > { %v7962_v21 = vadd.f32 %v7914_v26, %v7795_v60  ;;  %7440 = vst.msk [vmem:[#allocation4 + $0x10] sm:$0xff] %vm227_vm2, %v7392_v18  ;;  %v17003_v16 = vpop.f32.mrf.mxu0 }
 0x612   : > { %13304 = vmatmul.msk.bf16.gmra.mxu1 %vm227_vm2, %v14516_v34  ;;  %v8431_v2 = vld [vmem:[#allocation4] sm:$0xff] }
 0x613   : > { %8010 = vst.msk [vmem:[#allocation4 + $0x8] sm:$0xff] %vm227_vm2, %v7962_v21  ;;  %v7800_v38 = vpop.f32.mrf.mxu3  ;;  %v8479_v5 = vadd.f32 %v8431_v2, %v16963_v40 }
 0x614   : > { %13668 = vmatmul.msk.bf16.gmra.mxu0 %vm227_vm2, %v14589_v54  ;;  %v14591_v54 = vld [vmem:[#allocation3 + $0x74] sm:$0xff] }
 0x615   : > { %8527 = vst.msk [vmem:[#allocation4] sm:$0xff] %vm227_vm2, %v8479_v5 }
 0x616   : > { %v7229_v29 = vpop.f32.mrf.mxu2 }
 0x617   : > { %v7393_v44 = vadd.f32 %v7345_v36, %v7229_v29  ;;  %v6612_v20 = vpop.f32.mrf.mxu1  ;;  %v7346_v31 = vld [vmem:[#allocation4 + $0x20] sm:$0xff]  ;;  %v7044_v36 = vor.u32 %v7042_v17, %v7040_v13 }
 0x618   : > { %v7915_v56 = vld [vmem:[#allocation4 + $0x10] sm:$0xff]  ;;  %13546 = vmatmul.msk.bf16.gmra.mxu3 %vm227_vm2, %v7682_v39  ;;  %6725 = vst.msk [vmem:[#allocation4 + $0x28] sm:$0xff] %vm227_vm2, %v6612_v20 }
 0x619   : > { %v7963_v59 = vadd.f32 %v7915_v56, %v7798_v42  ;;  %7441 = vst.msk [vmem:[#allocation4 + $0x18] sm:$0xff] %vm227_vm2, %v7393_v44  ;;  %v17014_v14 = vpop.f32.mrf.mxu0  ;;  %v7048_v56 = vrot.slane %v7046_v62, 1 }
 0x61a   : > { %v8432_v10 = vld [vmem:[#allocation4 + $0x8] sm:$0xff] }
 0x61b   : > { %8011 = vst.msk [vmem:[#allocation4 + $0x10] sm:$0xff] %vm227_vm2, %v7963_v59  ;;  %v7803_v48 = vpop.f32.mrf.mxu3  ;;  %13425 = vmatmul.msk.bf16.gmra.mxu2 %vm227_vm2, %v7033_v63  ;;  %v8480_v26 = vadd.f32 %v8432_v10, %v16969_v45  ;;  %v7049_v20 = vsel %vm1067_vm6, %v7044_v36, %v7048_v56 }
 0x61d   : > { %8528 = vst.msk [vmem:[#allocation4 + $0x8] sm:$0xff] %vm227_vm2, %v8480_v26  ;;  %v17082_v26 = vld [vmem:[#allocation3 + $0x78] sm:$0xff] }
 0x61e   : > { %v7232_v9 = vpop.f32.mrf.mxu2  ;;  %v7689_v62 = vrot.slane %v17082_v26, 1 }
 0x61f   : > { %v7394_v19 = vadd.f32 %v7346_v31, %v7232_v9  ;;  %v6615_v28 = vpop.f32.mrf.mxu1  ;;  %v7347_v61 = vld [vmem:[#allocation4 + $0x28] sm:$0xff] }
 0x620   : > { %v7916_v24 = vld [vmem:[#allocation4 + $0x18] sm:$0xff]  ;;  %6726 = vst.msk [vmem:[#allocation4 + $0x30] sm:$0xff] %vm227_vm2, %v6615_v28  ;;  %v14544_v28 = vld [vmem:[#allocation3 + $0x70] sm:$0xff] }
 0x621   : > { %v7964_v32 = vadd.f32 %v7916_v24, %v7800_v38  ;;  %7442 = vst.msk [vmem:[#allocation4 + $0x20] sm:$0xff] %vm227_vm2, %v7394_v19  ;;  %v17022_v43 = vpop.f32.mrf.mxu0  ;;  %v7685_v38 = vrot.slane %v17037_v50, 1  ;;  %v7054_v0 = vshll.u32 %v14544_v28, 16 }
 0x622   : > { %13305 = vmatmul.msk.bf16.gmra.mxu1 %vm227_vm2, %v14517_v25  ;;  %v8433_v63 = vld [vmem:[#allocation4 + $0x10] sm:$0xff] }
 0x623   : > { %8012 = vst.msk [vmem:[#allocation4 + $0x18] sm:$0xff] %vm227_vm2, %v7964_v32  ;;  %v7805_v41 = vpop.f32.mrf.mxu3  ;;  %v7686_v44 = vsel %vm1786_vm7, %v7683_v47, %v7685_v38  ;;  %v8481_v31 = vadd.f32 %v8433_v63, %v16974_v7  ;;  %v14519_v47 = vld [vmem:[#allocation3 + $0x68] sm:$0xff]  ;;  %v7688_v5 = vsel %vm1786_vm7, %v7685_v38, %v7687_v53  ;;  %v14520_v38 = vld [vmem:[#allocation3 + $0x70] sm:$0xff] }
 0x624   : > { %13669 = vmatmul.msk.bf16.gmra.mxu0 %vm227_vm2, %v14590_v51 }
 0x625   : > { %8529 = vst.msk [vmem:[#allocation4 + $0x10] sm:$0xff] %vm227_vm2, %v8481_v31 }
 0x626   : > { %v7234_v60 = vpop.f32.mrf.mxu2 }
 0x627   : > { %v7395_v4 = vadd.f32 %v7347_v61, %v7234_v60  ;;  %v6617_v6 = vpop.f32.mrf.mxu1  ;;  %v7348_v42 = vld [vmem:[#allocation4 + $0x30] sm:$0xff]  ;;  %v7050_v61 = vshrl.u32 %v14543_v23, 16 }
 0x628   : > { %v7917_v3 = vld [vmem:[#allocation4 + $0x20] sm:$0xff]  ;;  %13547 = vmatmul.msk.bf16.gmra.mxu3 %vm227_vm2, %v7684_v1  ;;  %6727 = vst.msk [vmem:[#allocation4 + $0x38] sm:$0xff] %vm227_vm2, %v6617_v6  ;;  %v7056_v6 = vrot.slane %v7054_v0, 1 }
 0x629   : > { %v7965_v22 = vadd.f32 %v7917_v3, %v7803_v48  ;;  %7443 = vst.msk [vmem:[#allocation4 + $0x28] sm:$0xff] %vm227_vm2, %v7395_v4  ;;  %v17034_v35 = vpop.f32.mrf.mxu0  ;;  %v14592_v4 = vld [vmem:[#allocation3 + $0x7c] sm:$0xff]  ;;  %v7052_v3 = vor.u32 %v7050_v61, %v7048_v56 }
 0x62a   : > { %v8434_v46 = vld [vmem:[#allocation4 + $0x18] sm:$0xff] }
 0x62b   : > { %8013 = vst.msk [vmem:[#allocation4 + $0x20] sm:$0xff] %vm227_vm2, %v7965_v22  ;;  %v7808_v8 = vpop.f32.mrf.mxu3  ;;  %13426 = vmatmul.msk.bf16.gmra.mxu2 %vm227_vm2, %v7041_v30  ;;  %v8482_v60 = vadd.f32 %v8434_v46, %v16983_v55 }
 0x62d   : > { %8530 = vst.msk [vmem:[#allocation4 + $0x18] sm:$0xff] %vm227_vm2, %v8482_v60  ;;  %v14521_v60 = vld [vmem:[#allocation3 + $0x78] sm:$0xff] }
 0x62e   : > { %v7237_v11 = vpop.f32.mrf.mxu2 }
 0x62f   : > { %v7396_v40 = vadd.f32 %v7348_v42, %v7237_v11  ;;  %v6620_v21 = vpop.f32.mrf.mxu1  ;;  %v7349_v29 = vld [vmem:[#allocation4 + $0x38] sm:$0xff] }
 0x630   : > { %v7918_v18 = vld [vmem:[#allocation4 + $0x28] sm:$0xff]  ;;  %6728 = vst.msk [vmem:[#allocation4 + $0x40] sm:$0xff] %vm227_vm2, %v6620_v21  ;;  %v14545_v21 = vld [vmem:[#allocation3 + $0x78] sm:$0xff] }
 0x631   : > { %v7966_v37 = vadd.f32 %v7918_v18, %v7805_v41  ;;  %7444 = vst.msk [vmem:[#allocation4 + $0x30] sm:$0xff] %vm227_vm2, %v7396_v40  ;;  %v17044_v27 = vpop.f32.mrf.mxu0 }
 0x632   : > { %13306 = vmatmul.msk.bf16.gmra.mxu1 %vm227_vm2, %v14518_v57  ;;  %v8435_v40 = vld [vmem:[#allocation4 + $0x20] sm:$0xff] }
 0x633   : > { %8014 = vst.msk [vmem:[#allocation4 + $0x28] sm:$0xff] %vm227_vm2, %v7966_v37  ;;  %v7810_v34 = vpop.f32.mrf.mxu3  ;;  %v8483_v18 = vadd.f32 %v8435_v40, %v16987_v58 }
 0x634   : > { %13670 = vmatmul.msk.bf16.gmra.mxu0 %vm227_vm2, %v14591_v54  ;;  %v7058_v54 = vshrl.u32 %v14544_v28, 16  ;;  %v17104_v28 = vld [vmem:[#allocation3 + $0x80] sm:$0xff] }
 0x635   : > { %8531 = vst.msk [vmem:[#allocation4 + $0x20] sm:$0xff] %vm227_vm2, %v8483_v18  ;;  %v7691_v0 = vrot.slane %v17104_v28, 1 }
 0x636   : > { %v7239_v45 = vpop.f32.mrf.mxu2 }
 0x637   : > { %v7397_v33 = vadd.f32 %v7349_v29, %v7239_v45  ;;  %v6622_v59 = vpop.f32.mrf.mxu1  ;;  %v7350_v49 = vld [vmem:[#allocation4 + $0x40] sm:$0xff]  ;;  %v7062_v45 = vshll.u32 %v14545_v21, 16 }
 0x638   : > { %v7919_v39 = vld [vmem:[#allocation4 + $0x30] sm:$0xff]  ;;  %13548 = vmatmul.msk.bf16.gmra.mxu3 %vm227_vm2, %v7686_v44  ;;  %6729 = vst.msk [vmem:[#allocation4 + $0x48] sm:$0xff] %vm227_vm2, %v6622_v59  ;;  %v14593_v29 = vld [vmem:[#allocation3 + $0x84] sm:$0xff]  ;;  %v7690_v59 = vsel %vm1786_vm7, %v7687_v53, %v7689_v62 }
 0x639   : > { %v7967_v15 = vadd.f32 %v7919_v39, %v7808_v8  ;;  %7445 = vst.msk [vmem:[#allocation4 + $0x38] sm:$0xff] %vm227_vm2, %v7397_v33  ;;  %v17056_v9 = vpop.f32.mrf.mxu0  ;;  %v7057_v8 = vsel %vm1067_vm6, %v7052_v3, %v7056_v6  ;;  %v7060_v39 = vor.u32 %v7058_v54, %v7056_v6  ;;  %v7064_v63 = vrot.slane %v7062_v45, 1  ;;  %v14594_v3 = vld [vmem:[#allocation3 + $0x8c] sm:$0xff] }
 0x63a   : > { %v8436_v36 = vld [vmem:[#allocation4 + $0x28] sm:$0xff]  ;;  %v7692_v6 = vsel %vm1786_vm7, %v7689_v62, %v7691_v0  ;;  %v14522_v62 = vld [vmem:[#allocation3 + $0x80] sm:$0xff] }
 0x63b   : > { %8015 = vst.msk [vmem:[#allocation4 + $0x30] sm:$0xff] %vm227_vm2, %v7967_v15  ;;  %v7813_v48 = vpop.f32.mrf.mxu3  ;;  %13427 = vmatmul.msk.bf16.gmra.mxu2 %vm227_vm2, %v7049_v20  ;;  %v8484_v56 = vadd.f32 %v8436_v36, %v16998_v12 }
 0x63d   : > { %8532 = vst.msk [vmem:[#allocation4 + $0x28] sm:$0xff] %vm227_vm2, %v8484_v56 }
 0x63e   : > { %v7242_v19 = vpop.f32.mrf.mxu2 }
 0x63f   : > { %v7398_v24 = vadd.f32 %v7350_v49, %v7242_v19  ;;  %v6625_v41 = vpop.f32.mrf.mxu1  ;;  %v7351_v2 = vld [vmem:[#allocation4 + $0x48] sm:$0xff]  ;;  %v7065_v19 = vsel %vm1067_vm6, %v7060_v39, %v7064_v63  ;;  %v14595_v39 = vld [vmem:[#allocation3 + $0x94] sm:$0xff] }
 0x640   : > { %v7920_v32 = vld [vmem:[#allocation4 + $0x38] sm:$0xff]  ;;  %6730 = vst.msk [vmem:[#allocation4 + $0x50] sm:$0xff] %vm227_vm2, %v6625_v41  ;;  %v14546_v41 = vld [vmem:[#allocation3 + $0x80] sm:$0xff] }
 0x641   : > { %v7968_v25 = vadd.f32 %v7920_v32, %v7810_v34  ;;  %7446 = vst.msk [vmem:[#allocation4 + $0x40] sm:$0xff] %vm227_vm2, %v7398_v24  ;;  %v17066_v51 = vpop.f32.mrf.mxu0 }
 0x642   : > { %13307 = vmatmul.msk.bf16.gmra.mxu1 %vm227_vm2, %v14519_v47  ;;  %v8437_v47 = vld [vmem:[#allocation4 + $0x30] sm:$0xff] }
 0x643   : > { %8016 = vst.msk [vmem:[#allocation4 + $0x38] sm:$0xff] %vm227_vm2, %v7968_v25  ;;  %v7815_v7 = vpop.f32.mrf.mxu3  ;;  %v8485_v53 = vadd.f32 %v8437_v47, %v17003_v16 }
 0x644   : > { %13671 = vmatmul.msk.bf16.gmra.mxu0 %vm227_vm2, %v14592_v4 }
 0x645   : > { %8533 = vst.msk [vmem:[#allocation4 + $0x30] sm:$0xff] %vm227_vm2, %v8485_v53 }
 0x646   : > { %v7244_v1 = vpop.f32.mrf.mxu2 }
 0x647   : > { %v7399_v13 = vadd.f32 %v7351_v2, %v7244_v1  ;;  %v6627_v30 = vpop.f32.mrf.mxu1  ;;  %v7352_v10 = vld [vmem:[#allocation4 + $0x50] sm:$0xff]  ;;  %v7066_v1 = vshrl.u32 %v14545_v21, 16  ;;  %v7070_v2 = vshll.u32 %v14546_v41, 16 }
 0x648   : > { %v7921_v22 = vld [vmem:[#allocation4 + $0x40] sm:$0xff]  ;;  %13549 = vmatmul.msk.bf16.gmra.mxu3 %vm227_vm2, %v7688_v5  ;;  %6731 = vst.msk [vmem:[#allocation4 + $0x58] sm:$0xff] %vm227_vm2, %v6627_v30 }
 0x649   : > { %v7969_v55 = vadd.f32 %v7921_v22, %v7813_v48  ;;  %7447 = vst.msk [vmem:[#allocation4 + $0x48] sm:$0xff] %vm227_vm2, %v7399_v13  ;;  %v17079_v42 = vpop.f32.mrf.mxu0  ;;  %v7068_v16 = vor.u32 %v7066_v1, %v7064_v63  ;;  %v7072_v30 = vrot.slane %v7070_v2, 1  ;;  %v14523_v1 = vld [vmem:[#allocation3 + $0x88] sm:$0xff] }
 0x64b   : > { %8017 = vst.msk [vmem:[#allocation4 + $0x40] sm:$0xff] %vm227_vm2, %v7969_v55  ;;  %v7818_v11 = vpop.f32.mrf.mxu3  ;;  %13428 = vmatmul.msk.bf16.gmra.mxu2 %vm227_vm2, %v7057_v8  ;;  %v8438_v8 = vld [vmem:[#allocation4 + $0x38] sm:$0xff] }
 0x64e   : > { %v7247_v50 = vpop.f32.mrf.mxu2 }
 0x64f   : > { %v7400_v23 = vadd.f32 %v7352_v10, %v7247_v50  ;;  %v6630_v34 = vpop.f32.mrf.mxu1  ;;  %v7353_v44 = vld [vmem:[#allocation4 + $0x58] sm:$0xff]  ;;  %v8486_v50 = vadd.f32 %v8438_v8, %v17014_v14  ;;  %v7073_v10 = vsel %vm1067_vm6, %v7068_v16, %v7072_v30  ;;  %v14547_v14 = vld [vmem:[#allocation3 + $0x88] sm:$0xff] }
 0x650   : > { %v7922_v37 = vld [vmem:[#allocation4 + $0x48] sm:$0xff]  ;;  %6732 = vst.msk [vmem:[#allocation4 + $0x60] sm:$0xff] %vm227_vm2, %v6630_v34  ;;  %v14596_v16 = vld [vmem:[#allocation3 + $0x9c] sm:$0xff] }
 0x651   : > { %v7970_v57 = vadd.f32 %v7922_v37, %v7815_v7  ;;  %7448 = vst.msk [vmem:[#allocation4 + $0x50] sm:$0xff] %vm227_vm2, %v7400_v23  ;;  %v17089_v58 = vpop.f32.mrf.mxu0 }
 0x652   : > { %13308 = vmatmul.msk.bf16.gmra.mxu1 %vm227_vm2, %v14520_v38  ;;  %8534 = vst.msk [vmem:[#allocation4 + $0x38] sm:$0xff] %vm227_vm2, %v8486_v50  ;;  %v8439_v36 = vld [vmem:[#allocation4 + $0x40] sm:$0xff] }
 0x653   : > { %8018 = vst.msk [vmem:[#allocation4 + $0x48] sm:$0xff] %vm227_vm2, %v7970_v57  ;;  %v7820_v17 = vpop.f32.mrf.mxu3  ;;  %v17127_v57 = vld [vmem:[#allocation3 + $0x88] sm:$0xff]  ;;  %v8487_v56 = vadd.f32 %v8439_v36, %v17022_v43 }
 0x654   : > { %13672 = vmatmul.msk.bf16.gmra.mxu0 %vm227_vm2, %v14593_v29  ;;  %v7693_v45 = vrot.slane %v17127_v57, 1 }
 0x655   : > { %8535 = vst.msk [vmem:[#allocation4 + $0x40] sm:$0xff] %vm227_vm2, %v8487_v56 }
 0x656   : > { %v7249_v33 = vpop.f32.mrf.mxu2 }
 0x657   : > { %v7401_v15 = vadd.f32 %v7353_v44, %v7249_v33  ;;  %v6632_v31 = vpop.f32.mrf.mxu1  ;;  %v7354_v52 = vld [vmem:[#allocation4 + $0x60] sm:$0xff]  ;;  %v7074_v33 = vshrl.u32 %v14546_v41, 16  ;;  %v7078_v44 = vshll.u32 %v14547_v14, 16 }
 0x658   : > { %v7923_v20 = vld [vmem:[#allocation4 + $0x50] sm:$0xff]  ;;  %13550 = vmatmul.msk.bf16.gmra.mxu3 %vm227_vm2, %v7690_v59  ;;  %6733 = vst.msk [vmem:[#allocation4 + $0x68] sm:$0xff] %vm227_vm2, %v6632_v31 }
 0x659   : > { %v7971_v48 = vadd.f32 %v7923_v20, %v7818_v11  ;;  %7449 = vst.msk [vmem:[#allocation4 + $0x58] sm:$0xff] %vm227_vm2, %v7401_v15  ;;  %v17102_v49 = vpop.f32.mrf.mxu0  ;;  %v7076_v20 = vor.u32 %v7074_v33, %v7072_v30 }
 0x65a   : > { %v8440_v28 = vld [vmem:[#allocation4 + $0x48] sm:$0xff] }
 0x65b   : > { %8019 = vst.msk [vmem:[#allocation4 + $0x50] sm:$0xff] %vm227_vm2, %v7971_v48  ;;  %v7823_v12 = vpop.f32.mrf.mxu3  ;;  %13429 = vmatmul.msk.bf16.gmra.mxu2 %vm227_vm2, %v7065_v19  ;;  %v7694_v48 = vsel %vm1786_vm7, %v7691_v0, %v7693_v45  ;;  %v7080_v19 = vrot.slane %v7078_v44, 1  ;;  %v14524_v44 = vld [vmem:[#allocation3 + $0x90] sm:$0xff] }
 0x65d   : > { %v7081_v43 = vsel %vm1067_vm6, %v7076_v20, %v7080_v19 }
 0x65e   : > { %v7252_v24 = vpop.f32.mrf.mxu2 }
 0x65f   : > { %v7402_v32 = vadd.f32 %v7354_v52, %v7252_v24  ;;  %v6635_v7 = vpop.f32.mrf.mxu1  ;;  %v7355_v5 = vld [vmem:[#allocation4 + $0x68] sm:$0xff] }
 0x660   : > { %v7924_v25 = vld [vmem:[#allocation4 + $0x58] sm:$0xff]  ;;  %6734 = vst.msk [vmem:[#allocation4 + $0x70] sm:$0xff] %vm227_vm2, %v6635_v7  ;;  %v17150_v7 = vld [vmem:[#allocation3 + $0x90] sm:$0xff] }
 0x661   : > { %v7972_v46 = vadd.f32 %v7924_v25, %v7820_v17  ;;  %7450 = vst.msk [vmem:[#allocation4 + $0x60] sm:$0xff] %vm227_vm2, %v7402_v32  ;;  %v17111_v4 = vpop.f32.mrf.mxu0  ;;  %v8488_v25 = vadd.f32 %v8440_v28, %v17034_v35  ;;  %v7695_v35 = vrot.slane %v17150_v7, 1 }
 0x662   : > { %13309 = vmatmul.msk.bf16.gmra.mxu1 %vm227_vm2, %v14521_v60  ;;  %v14548_v60 = vld [vmem:[#allocation3 + $0x90] sm:$0xff] }
 0x663   : > { %8020 = vst.msk [vmem:[#allocation4 + $0x58] sm:$0xff] %vm227_vm2, %v7972_v46  ;;  %v7825_v61 = vpop.f32.mrf.mxu3  ;;  %v8441_v30 = vld [vmem:[#allocation4 + $0x50] sm:$0xff] }
 0x664   : > { %13673 = vmatmul.msk.bf16.gmra.mxu0 %vm227_vm2, %v14594_v3  ;;  %8536 = vst.msk [vmem:[#allocation4 + $0x48] sm:$0xff] %vm227_vm2, %v8488_v25 }
 0x666   : > { %v7254_v13 = vpop.f32.mrf.mxu2 }
 0x667   : > { %v7403_v22 = vadd.f32 %v7355_v5, %v7254_v13  ;;  %v6637_v40 = vpop.f32.mrf.mxu1  ;;  %v7356_v37 = vld [vmem:[#allocation4 + $0x70] sm:$0xff]  ;;  %v7082_v13 = vshrl.u32 %v14547_v14, 16  ;;  %v7086_v5 = vshll.u32 %v14548_v60, 16 }
 0x668   : > { %v7925_v55 = vld [vmem:[#allocation4 + $0x60] sm:$0xff]  ;;  %13551 = vmatmul.msk.bf16.gmra.mxu3 %vm227_vm2, %v7692_v6  ;;  %6735 = vst.msk [vmem:[#allocation4 + $0x78] sm:$0xff] %vm227_vm2, %v6637_v40 }
 0x669   : > { %v7973_v11 = vadd.f32 %v7925_v55, %v7823_v12  ;;  %7451 = vst.msk [vmem:[#allocation4 + $0x68] sm:$0xff] %vm227_vm2, %v7403_v22  ;;  %v17124_v23 = vpop.f32.mrf.mxu0  ;;  %v7084_v55 = vor.u32 %v7082_v13, %v7080_v19  ;;  %v7088_v50 = vrot.slane %v7086_v5, 1  ;;  %v14525_v5 = vld [vmem:[#allocation3 + $0x98] sm:$0xff] }
 0x66b   : > { %8021 = vst.msk [vmem:[#allocation4 + $0x60] sm:$0xff] %vm227_vm2, %v7973_v11  ;;  %v7828_v18 = vpop.f32.mrf.mxu3  ;;  %13430 = vmatmul.msk.bf16.gmra.mxu2 %vm227_vm2, %v7073_v10  ;;  %v7696_v11 = vsel %vm1786_vm7, %v7693_v45, %v7695_v35  ;;  %v8489_v10 = vadd.f32 %v8441_v30, %v17044_v27  ;;  %v8442_v27 = vld [vmem:[#allocation4 + $0x58] sm:$0xff] }
 0x66c   : > { %v8490_v45 = vadd.f32 %v8442_v27, %v17056_v9 }
 0x66d   : > { %8537 = vst.msk [vmem:[#allocation4 + $0x50] sm:$0xff] %vm227_vm2, %v8489_v10 }
 0x66e   : > { %v7257_v26 = vpop.f32.mrf.mxu2  ;;  %8538 = vst.msk [vmem:[#allocation4 + $0x58] sm:$0xff] %vm227_vm2, %v8490_v45 }
 0x66f   : > { %v7404_v21 = vadd.f32 %v7356_v37, %v7257_v26  ;;  %v6640_v17 = vpop.f32.mrf.mxu1  ;;  %v7357_v59 = vld [vmem:[#allocation4 + $0x78] sm:$0xff]  ;;  %v7089_v37 = vsel %vm1067_vm6, %v7084_v55, %v7088_v50 }
 0x670   : > { %v7926_v34 = vld [vmem:[#allocation4 + $0x68] sm:$0xff]  ;;  %6736 = vst.msk [vmem:[#allocation4 + $0x80] sm:$0xff] %vm227_vm2, %v6640_v17  ;;  %v17171_v17 = vld [vmem:[#allocation3 + $0x98] sm:$0xff] }
 0x671   : > { %v7974_v38 = vadd.f32 %v7926_v34, %v7825_v61  ;;  %7452 = vst.msk [vmem:[#allocation4 + $0x70] sm:$0xff] %vm227_vm2, %v7404_v21  ;;  %v17133_v29 = vpop.f32.mrf.mxu0  ;;  %v7697_v56 = vrot.slane %v17171_v17, 1 }
 0x672   : > { %13310 = vmatmul.msk.bf16.gmra.mxu1 %vm227_vm2, %v14522_v62  ;;  %v8443_v25 = vld [vmem:[#allocation4 + $0x60] sm:$0xff] }
 0x673   : > { %8022 = vst.msk [vmem:[#allocation4 + $0x68] sm:$0xff] %vm227_vm2, %v7974_v38  ;;  %v7830_v54 = vpop.f32.mrf.mxu3 }
 0x674   : > { %13674 = vmatmul.msk.bf16.gmra.mxu0 %vm227_vm2, %v14595_v39 }
 0x676   : > { %v7259_v15 = vpop.f32.mrf.mxu2 }
 0x677   : > { %v7405_v63 = vadd.f32 %v7357_v59, %v7259_v15  ;;  %v6642_v24 = vpop.f32.mrf.mxu1  ;;  %v7358_v47 = vld [vmem:[#allocation4 + $0x80] sm:$0xff]  ;;  %v7090_v59 = vshrl.u32 %v14548_v60, 16 }
 0x678   : > { %v7927_v31 = vld [vmem:[#allocation4 + $0x70] sm:$0xff]  ;;  %13552 = vmatmul.msk.bf16.gmra.mxu3 %vm227_vm2, %v7694_v48  ;;  %6737 = vst.msk [vmem:[#allocation4 + $0x88] sm:$0xff] %vm227_vm2, %v6642_v24 }
 0x679   : > { %v7975_v12 = vadd.f32 %v7927_v31, %v7828_v18  ;;  %7453 = vst.msk [vmem:[#allocation4 + $0x78] sm:$0xff] %vm227_vm2, %v7405_v63  ;;  %v17146_v32 = vpop.f32.mrf.mxu0  ;;  %v14597_v63 = vld [vmem:[#allocation3 + $0xa4] sm:$0xff]  ;;  %v7092_v31 = vor.u32 %v7090_v59, %v7088_v50 }
 0x67a   : > { %v8444_v13 = vld [vmem:[#allocation4 + $0x68] sm:$0xff] }
 0x67b   : > { %8023 = vst.msk [vmem:[#allocation4 + $0x70] sm:$0xff] %vm227_vm2, %v7975_v12  ;;  %v7833_v52 = vpop.f32.mrf.mxu3  ;;  %13431 = vmatmul.msk.bf16.gmra.mxu2 %vm227_vm2, %v7081_v43  ;;  %v7698_v12 = vsel %vm1786_vm7, %v7695_v35, %v7697_v56 }
 0x67e   : > { %v7262_v41 = vpop.f32.mrf.mxu2 }
 0x67f   : > { %v7406_v46 = vadd.f32 %v7358_v47, %v7262_v41  ;;  %v6645_v0 = vpop.f32.mrf.mxu1  ;;  %v7359_v6 = vld [vmem:[#allocation4 + $0x88] sm:$0xff]  ;;  %v8491_v47 = vadd.f32 %v8443_v25, %v17066_v51 }
 0x680   : > { %v7928_v53 = vld [vmem:[#allocation4 + $0x78] sm:$0xff]  ;;  %6738 = vst.msk [vmem:[#allocation4 + $0x90] sm:$0xff] %vm227_vm2, %v6645_v0  ;;  %v17194_v0 = vld [vmem:[#allocation3 + $0xa0] sm:$0xff] }
 0x681   : > { %v7976_v61 = vadd.f32 %v7928_v53, %v7830_v54  ;;  %7454 = vst.msk [vmem:[#allocation4 + $0x80] sm:$0xff] %vm227_vm2, %v7406_v46  ;;  %v17156_v3 = vpop.f32.mrf.mxu0  ;;  %v14549_v54 = vld [vmem:[#allocation3 + $0x98] sm:$0xff] }
 0x682   : > { %13311 = vmatmul.msk.bf16.gmra.mxu1 %vm227_vm2, %v14523_v1  ;;  %v7094_v20 = vshll.u32 %v14549_v54, 16  ;;  %8539 = vst.msk [vmem:[#allocation4 + $0x60] sm:$0xff] %vm227_vm2, %v8491_v47  ;;  %v7098_v30 = vshrl.u32 %v14549_v54, 16  ;;  %v8445_v17 = vld [vmem:[#allocation4 + $0x70] sm:$0xff] }
 0x683   : > { %8024 = vst.msk [vmem:[#allocation4 + $0x78] sm:$0xff] %vm227_vm2, %v7976_v61  ;;  %v7835_v2 = vpop.f32.mrf.mxu3 }
 0x684   : > { %13675 = vmatmul.msk.bf16.gmra.mxu0 %vm227_vm2, %v14596_v16  ;;  %v7096_v43 = vrot.slane %v7094_v20, 1  ;;  %v8492_v16 = vadd.f32 %v8444_v13, %v17079_v42  ;;  %v14526_v20 = vld [vmem:[#allocation3 + $0xa0] sm:$0xff] }
 0x686   : > { %v7264_v22 = vpop.f32.mrf.mxu2  ;;  %v7097_v41 = vsel %vm1067_vm6, %v7092_v31, %v7096_v43  ;;  %8540 = vst.msk [vmem:[#allocation4 + $0x68] sm:$0xff] %vm227_vm2, %v8492_v16  ;;  %v7100_v10 = vor.u32 %v7098_v30, %v7096_v43 }
 0x687   : > { %v7407_v8 = vadd.f32 %v7359_v6, %v7264_v22  ;;  %v6647_v26 = vpop.f32.mrf.mxu1  ;;  %v7360_v14 = vld [vmem:[#allocation4 + $0x90] sm:$0xff]  ;;  %v7699_v6 = vrot.slane %v17194_v0, 1 }
 0x688   : > { %v7929_v40 = vld [vmem:[#allocation4 + $0x80] sm:$0xff]  ;;  %13553 = vmatmul.msk.bf16.gmra.mxu3 %vm227_vm2, %v7696_v11  ;;  %6739 = vst.msk [vmem:[#allocation4 + $0x98] sm:$0xff] %vm227_vm2, %v6647_v26  ;;  %v14598_v11 = vld [vmem:[#allocation3 + $0xac] sm:$0xff] }
 0x689   : > { %v7977_v18 = vadd.f32 %v7929_v40, %v7833_v52  ;;  %7455 = vst.msk [vmem:[#allocation4 + $0x88] sm:$0xff] %vm227_vm2, %v7407_v8  ;;  %v17168_v57 = vpop.f32.mrf.mxu0 }
 0x68b   : > { %8025 = vst.msk [vmem:[#allocation4 + $0x80] sm:$0xff] %vm227_vm2, %v7977_v18  ;;  %v7838_v21 = vpop.f32.mrf.mxu3  ;;  %13432 = vmatmul.msk.bf16.gmra.mxu2 %vm227_vm2, %v7089_v37  ;;  %v7700_v18 = vsel %vm1786_vm7, %v7697_v56, %v7699_v6 }
 0x68e   : > { %v7267_v34 = vpop.f32.mrf.mxu2 }
 0x68f   : > { %v7408_v38 = vadd.f32 %v7360_v14, %v7267_v34  ;;  %v6650_v33 = vpop.f32.mrf.mxu1  ;;  %v7361_v48 = vld [vmem:[#allocation4 + $0x98] sm:$0xff] }
 0x690   : > { %v7930_v62 = vld [vmem:[#allocation4 + $0x88] sm:$0xff]  ;;  %6740 = vst.msk [vmem:[#allocation4 + $0xa0] sm:$0xff] %vm227_vm2, %v6650_v33 }
 0x691   : > { %v7978_v36 = vadd.f32 %v7930_v62, %v7835_v2  ;;  %7456 = vst.msk [vmem:[#allocation4 + $0x90] sm:$0xff] %vm227_vm2, %v7408_v38  ;;  %v17178_v15 = vpop.f32.mrf.mxu0  ;;  %v14550_v2 = vld [vmem:[#allocation3 + $0xa0] sm:$0xff]  ;;  %v8493_v62 = vadd.f32 %v8445_v17, %v17089_v58  ;;  %v17216_v33 = vld [vmem:[#allocation3 + $0xa8] sm:$0xff] }
 0x692   : > { %13312 = vmatmul.msk.bf16.gmra.mxu1 %vm227_vm2, %v14524_v44  ;;  %v7102_v8 = vshll.u32 %v14550_v2, 16  ;;  %v8447_v16 = vld [vmem:[#allocation4 + $0x80] sm:$0xff] }
 0x693   : > { %8026 = vst.msk [vmem:[#allocation4 + $0x88] sm:$0xff] %vm227_vm2, %v7978_v36  ;;  %v7840_v39 = vpop.f32.mrf.mxu3  ;;  %v8495_v30 = vadd.f32 %v8447_v16, %v17111_v4  ;;  %v6816_v16 = vld [vmem:[#allocation3 + $0xc0] sm:$0x1] }
 0x694   : > { %13676 = vmatmul.msk.bf16.gmra.mxu0 %vm227_vm2, %v14597_v63  ;;  %v7104_v37 = vrot.slane %v7102_v8, 1  ;;  %8541 = vst.msk [vmem:[#allocation4 + $0x70] sm:$0xff] %vm227_vm2, %v8493_v62  ;;  %v7701_v63 = vrot.slane %v17216_v33, 1 }
 0x695   : > { %8543 = vst.msk [vmem:[#allocation4 + $0x80] sm:$0xff] %vm227_vm2, %v8495_v30  ;;  %v7534_v30 = vld [vmem:[#allocation3 + $0xc0] sm:$0x1] }
 0x696   : > { %v7269_v9 = vpop.f32.mrf.mxu2  ;;  %v7105_v14 = vsel %vm1067_vm6, %v7100_v10, %v7104_v37 }
 0x697   : > { %v7409_v19 = vadd.f32 %v7361_v48, %v7269_v9  ;;  %v6652_v28 = vpop.f32.mrf.mxu1  ;;  %v7362_v60 = vld [vmem:[#allocation4 + $0xa0] sm:$0xff]  ;;  %v7106_v48 = vshrl.u32 %v14550_v2, 16 }
 0x698   : > { %v7931_v24 = vld [vmem:[#allocation4 + $0x90] sm:$0xff]  ;;  %13554 = vmatmul.msk.bf16.gmra.mxu3 %vm227_vm2, %v7698_v12  ;;  %6741 = vst.msk [vmem:[#allocation4 + $0xa8] sm:$0xff] %vm227_vm2, %v6652_v28  ;;  %v8446_v12 = vld [vmem:[#allocation4 + $0x78] sm:$0xff] }
 0x699   : > { %v7979_v52 = vadd.f32 %v7931_v24, %v7838_v21  ;;  %7457 = vst.msk [vmem:[#allocation4 + $0x98] sm:$0xff] %vm227_vm2, %v7409_v19  ;;  %v17191_v7 = vpop.f32.mrf.mxu0  ;;  %v14599_v19 = vld [vmem:[#allocation3 + $0xb4] sm:$0xff]  ;;  %v8494_v24 = vadd.f32 %v8446_v12, %v17102_v49  ;;  %v7108_v28 = vor.u32 %v7106_v48, %v7104_v37  ;;  %v14600_v37 = vld [vmem:[#allocation3 + $0xbc] sm:$0xff] }
 0x69a   : > { %v17278_v48 = vld [vmem:[#allocation3 + $0xb8] sm:$0xff] }
 0x69b   : > { %8027 = vst.msk [vmem:[#allocation4 + $0x90] sm:$0xff] %vm227_vm2, %v7979_v52  ;;  %v7843_v46 = vpop.f32.mrf.mxu3  ;;  %13433 = vmatmul.msk.bf16.gmra.mxu2 %vm227_vm2, %v7097_v41  ;;  %v7702_v41 = vsel %vm1786_vm7, %v7699_v6, %v7701_v63  ;;  %v17247_v6 = vld [vmem:[#allocation3 + $0xb0] sm:$0xff] }
 0x69c   : > { %8542 = vst.msk [vmem:[#allocation4 + $0x78] sm:$0xff] %vm227_vm2, %v8494_v24 }
 0x69e   : > { %v7272_v53 = vpop.f32.mrf.mxu2 }
 0x69f   : > { %v7410_v61 = vadd.f32 %v7362_v60, %v7272_v53  ;;  %v6655_v51 = vpop.f32.mrf.mxu1  ;;  %v7363_v50 = vld [vmem:[#allocation4 + $0xa8] sm:$0xff] }
 0x6a0   : > { %v7932_v1 = vld [vmem:[#allocation4 + $0x98] sm:$0xff]  ;;  %6742 = vst.msk [vmem:[#allocation4 + $0xb0] sm:$0xff] %vm227_vm2, %v6655_v51 }
 0x6a1   : > { %v7980_v35 = vadd.f32 %v7932_v1, %v7840_v39  ;;  %7458 = vst.msk [vmem:[#allocation4 + $0xa0] sm:$0xff] %vm227_vm2, %v7410_v61  ;;  %v17201_v55 = vpop.f32.mrf.mxu0  ;;  %v17219_v39 = vld [vmem:[#allocation3 + $0xa8] sm:$0xff]  ;;  %v13802_v1 = vld [vmem:[%s18866_s2 + $0xa] sm:$0x3] }
 0x6a2   : > { %13313 = vmatmul.msk.bf16.gmra.mxu1 %vm227_vm2, %v14525_v5  ;;  %v7110_v31 = vshll.u32 %v17219_v39, 16  ;;  %v9589_v2 = vsel %vm712_vm0, %v13802_v1, 0  ;;  %v17245_v5 = vld [vmem:[#allocation3 + $0xb0] sm:$0xff]  ;;  %v7114_v4 = vshrl.u32 %v17219_v39, 16  ;;  %v14674_v1 = vld [vmem:[#allocation3 + $0x18] sm:$0xff] }
 0x6a3   : > { %8028 = vst.msk [vmem:[#allocation4 + $0x98] sm:$0xff] %vm227_vm2, %v7980_v35  ;;  %v7845_v22 = vpop.f32.mrf.mxu3  ;;  %9598 = vmatpush.bf16.msra.mxu2 %v9589_v2  ;;  %v7703_v10 = vrot.slane %v17245_v5, 1 }
 0x6a4   : > { %13677 = vmatmul.msk.bf16.gmra.mxu0 %vm227_vm2, %v14598_v11 }
 0x6a5   : > { %v7704_v62 = vsel %vm1786_vm7, %v7701_v63, %v7703_v10 }
 0x6a6   : > { %v7274_v40 = vpop.f32.mrf.mxu2 }
 0x6a7   : > { %v7411_v42 = vadd.f32 %v7363_v50, %v7274_v40  ;;  %v6657_v34 = vpop.f32.mrf.mxu1  ;;  %v7364_v45 = vld [vmem:[#allocation4 + $0xb0] sm:$0xff]  ;;  %v14527_v40 = vld [vmem:[#allocation3 + $0xa8] sm:$0xff] }
 0x6a8   : > { %v7933_v26 = vld [vmem:[#allocation4 + $0xa0] sm:$0xff]  ;;  %13555 = vmatmul.msk.bf16.gmra.mxu3 %vm227_vm2, %v7700_v18  ;;  %6743 = vst.msk [vmem:[#allocation4 + $0xb8] sm:$0xff] %vm227_vm2, %v6657_v34  ;;  %v13923_v18 = vld [vmem:[%s18866_s2 + $0xc] sm:$0x3] }
 0x6a9   : > { %v7981_v21 = vadd.f32 %v7933_v26, %v7843_v46  ;;  %7459 = vst.msk [vmem:[#allocation4 + $0xa8] sm:$0xff] %vm227_vm2, %v7411_v42  ;;  %v17213_v38 = vpop.f32.mrf.mxu0  ;;  %v7112_v46 = vrot.slane %v7110_v31, 1  ;;  %v7118_v26 = vshll.u32 %v17247_v6, 16 }
 0x6ab   : > { %8029 = vst.msk [vmem:[#allocation4 + $0xa0] sm:$0xff] %vm227_vm2, %v7981_v21  ;;  %v7848_v27 = vpop.f32.mrf.mxu3  ;;  %13434 = vmatmul.msk.bf16.gmra.mxu2 %vm227_vm2, %v7105_v14  ;;  %v7113_v49 = vsel %vm1067_vm6, %v7108_v28, %v7112_v46  ;;  %v10107_v21 = vsel %vm712_vm0, %v13923_v18, 0  ;;  %v6916_v18 = vunpack.c.l.b16 %v6816_v16 }
 0x6ac   : > { %10116 = vmatpush.bf16.msra.mxu3 %v10107_v21  ;;  %v14165_v21 = vld [vmem:[%s18866_s2 + $0x10] sm:$0x3] }
 0x6ae   : > { %v7277_v54 = vpop.f32.mrf.mxu2 }
 0x6af   : > { %v7412_v36 = vadd.f32 %v7364_v45, %v7277_v54  ;;  %v6660_v59 = vpop.f32.mrf.mxu1  ;;  %v7365_v52 = vld [vmem:[#allocation4 + $0xb8] sm:$0xff]  ;;  %v8448_v54 = vld [vmem:[#allocation4 + $0x88] sm:$0xff] }
 0x6b0   : > { %v7934_v44 = vld [vmem:[#allocation4 + $0xa8] sm:$0xff]  ;;  %6744 = vst.msk [vmem:[#allocation4 + $0xc0] sm:$0xff] %vm227_vm2, %v6660_v59  ;;  %v8496_v33 = vadd.f32 %v8448_v54, %v17124_v23  ;;  %v6941_v54 = vpack.c.b16 %v6916_v18, %v6916_v18 }
 0x6b1   : > { %v7982_v56 = vadd.f32 %v7934_v44, %v7845_v22  ;;  %7460 = vst.msk [vmem:[#allocation4 + $0xb0] sm:$0xff] %vm227_vm2, %v7412_v36  ;;  %v17225_v9 = vpop.f32.mrf.mxu0  ;;  %v7120_v36 = vrot.slane %v7118_v26, 1  ;;  %v7634_v26 = vunpack.c.l.b16 %v7534_v30 }
 0x6b2   : > { %13314 = vmatmul.msk.bf16.gmra.mxu1 %vm227_vm2, %v14526_v20  ;;  %8544 = vst.msk [vmem:[#allocation4 + $0x88] sm:$0xff] %vm227_vm2, %v8496_v33  ;;  %v10557_v33 = vshrl.u32 %v14674_v1, 16 }
 0x6b3   : > { %8030 = vst.msk [vmem:[#allocation4 + $0xa8] sm:$0xff] %vm227_vm2, %v7982_v56  ;;  %v7850_v58 = vpop.f32.mrf.mxu3 }
 0x6b4   : > { %13678 = vmatmul.msk.bf16.gmra.mxu0 %vm227_vm2, %v14599_v19  ;;  %v17280_v19 = vld [vmem:[#allocation3 + $0xb8] sm:$0xff] }
 0x6b6   : > { %v7279_v43 = vpop.f32.mrf.mxu2 }
 0x6b7   : > { %v7413_v25 = vadd.f32 %v7365_v52, %v7279_v43  ;;  %v6662_v60 = vpop.f32.mrf.mxu1  ;;  %v7366_v51 = vld [vmem:[#allocation4 + $0xc0] sm:$0xff]  ;;  %v14528_v43 = vld [vmem:[#allocation3 + $0xb0] sm:$0xff] }
 0x6b8   : > { %v7935_v47 = vld [vmem:[#allocation4 + $0xb0] sm:$0xff]  ;;  %13556 = vmatmul.msk.bf16.gmra.mxu3 %vm227_vm2, %v7702_v41  ;;  %6745 = vst.msk [vmem:[#allocation4 + $0xc8] sm:$0xff] %vm227_vm2, %v6662_v60  ;;  %v7126_v60 = vshll.u32 %v17280_v19, 16 }
 0x6b9   : > { %v7983_v53 = vadd.f32 %v7935_v47, %v7848_v27  ;;  %7461 = vst.msk [vmem:[#allocation4 + $0xb8] sm:$0xff] %vm227_vm2, %v7413_v25  ;;  %v17239_v0 = vpop.f32.mrf.mxu0  ;;  %v7116_v27 = vor.u32 %v7114_v4, %v7112_v46  ;;  %v8449_v52 = vld [vmem:[#allocation4 + $0x90] sm:$0xff]  ;;  %v7705_v25 = vrot.slane %v17278_v48, 1  ;;  %v14044_v47 = vld [vmem:[%s18866_s2 + $0xe] sm:$0x3] }
 0x6ba   : > { %v8497_v46 = vadd.f32 %v8449_v52, %v17133_v29  ;;  %v8450_v4 = vld [vmem:[#allocation4 + $0x98] sm:$0xff]  ;;  %v7130_v52 = vshrl.u32 %v17280_v19, 16 }
 0x6bb   : > { %8031 = vst.msk [vmem:[#allocation4 + $0xb0] sm:$0xff] %vm227_vm2, %v7983_v53  ;;  %v7853_v61 = vpop.f32.mrf.mxu3  ;;  %13435 = vmatmul.msk.bf16.gmra.mxu2 %vm227_vm2, %v7113_v49  ;;  %v7121_v56 = vsel %vm1067_vm6, %v7116_v27, %v7120_v36  ;;  %v7122_v53 = vshrl.u32 %v17247_v6, 16  ;;  %v14601_v49 = vld [vmem:[#allocation3 + $0xc4] sm:$0xff]  ;;  %v7706_v29 = vsel %vm1786_vm7, %v7703_v10, %v7705_v25  ;;  %v7128_v6 = vrot.slane %v7126_v60, 1 }
 0x6bc   : > { %8545 = vst.msk [vmem:[#allocation4 + $0x90] sm:$0xff] %vm227_vm2, %v8497_v46 }
 0x6bd   : > { %v7132_v60 = vor.u32 %v7130_v52, %v7128_v6 }
 0x6be   : > { %v7282_v35 = vpop.f32.mrf.mxu2 }
 0x6bf   : > { %v7414_v13 = vadd.f32 %v7366_v51, %v7282_v35  ;;  %v6665_v11 = vpop.f32.mrf.mxu1  ;;  %v7367_v14 = vld [vmem:[#allocation4 + $0xc8] sm:$0xff]  ;;  %v7124_v51 = vor.u32 %v7122_v53, %v7120_v36  ;;  %v7659_v36 = vpack.c.b16 %v7634_v26, %v7634_v26  ;;  %v14626_v26 = vld [vmem:[#allocation3 + $0xc] sm:$0xf0] }
 0x6c0   : > { %v7936_v22 = vld [vmem:[#allocation4 + $0xb8] sm:$0xff]  ;;  %6746 = vst.msk [vmem:[#allocation4 + $0xd0] sm:$0xff] %vm227_vm2, %v6665_v11 }
 0x6c1   : > { %v7984_v8 = vadd.f32 %v7936_v22, %v7850_v58  ;;  %7462 = vst.msk [vmem:[#allocation4 + $0xc0] sm:$0xff] %vm227_vm2, %v7414_v13  ;;  %v17254_v42 = vpop.f32.mrf.mxu0 }
 0x6c2   : > { %13315 = vmatmul.msk.bf16.gmra.mxu1 %vm227_vm2, %v14527_v40  ;;  %v10559_v40 = vshll.u32 %v14674_v1, 16 }
 0x6c3   : > { %8032 = vst.msk [vmem:[#allocation4 + $0xb8] sm:$0xff] %vm227_vm2, %v7984_v8  ;;  %v7855_v50 = vpop.f32.mrf.mxu3 }
 0x6c4   : > { %13679 = vmatmul.msk.bf16.gmra.mxu0 %vm227_vm2, %v14600_v37  ;;  %v17311_v37 = vld [vmem:[#allocation3 + $0x20] sm:$0xff]  ;;  %v10561_v27 = vrot.slane %v10559_v40, 1 }
 0x6c6   : > { %v7284_v34 = vpop.f32.mrf.mxu2 }
 0x6c7   : > { %v7415_v17 = vadd.f32 %v7367_v14, %v7284_v34  ;;  %v6667_v39 = vpop.f32.mrf.mxu1  ;;  %v7368_v63 = vld [vmem:[#allocation4 + $0xd0] sm:$0xff]  ;;  %v8498_v34 = vadd.f32 %v8450_v4, %v17146_v32  ;;  %v11396_v14 = vsel %vm712_vm0, %v14165_v21, 0  ;;  %v10562_v32 = vor.u32 %v10561_v27, %v10557_v33 }
 0x6c8   : > { %v7937_v45 = vld [vmem:[#allocation4 + $0xc0] sm:$0xff]  ;;  %13557 = vmatmul.msk.bf16.gmra.mxu3 %vm227_vm2, %v7704_v62  ;;  %6747 = vst.msk [vmem:[#allocation4 + $0xd8] sm:$0xff] %vm227_vm2, %v6667_v39  ;;  %11405 = vmatpush.bf16.msra.mxu1 %v11396_v14  ;;  %v10568_v21 = vshrl.u32 %v17311_v37, 16 }
 0x6c9   : > { %v7985_v44 = vadd.f32 %v7937_v45, %v7853_v61  ;;  %7463 = vst.msk [vmem:[#allocation4 + $0xc8] sm:$0xff] %vm227_vm2, %v7415_v17  ;;  %v17275_v20 = vpop.f32.mrf.mxu0  ;;  %v10825_v61 = vsel %vm712_vm0, %v14044_v47, 0  ;;  %v8451_v47 = vld [vmem:[#allocation4 + $0xa0] sm:$0xff] }
 0x6ca   : > { %10834 = vmatpush.bf16.msra.mxu0 %v10825_v61  ;;  %8546 = vst.msk [vmem:[#allocation4 + $0x98] sm:$0xff] %vm227_vm2, %v8498_v34  ;;  %v8499_v61 = vadd.f32 %v8451_v47, %v17156_v3 }
 0x6cb   : > { %8033 = vst.msk [vmem:[#allocation4 + $0xc0] sm:$0xff] %vm227_vm2, %v7985_v44  ;;  %v7858_v59 = vpop.f32.mrf.mxu3  ;;  %13436 = vmatmul.msk.bf16.gmra.mxu2 %vm227_vm2, %v7121_v56  ;;  %v10564_v44 = vshll.u32 %v17311_v37, 16 }
 0x6cc   : > { %8547 = vst.msk [vmem:[#allocation4 + $0xa0] sm:$0xff] %vm227_vm2, %v8499_v61 }
 0x6ce   : > { %v7287_v58 = vpop.f32.mrf.mxu2 }
 0x6cf   : > { %v7416_v23 = vadd.f32 %v7368_v63, %v7287_v58  ;;  %v6670_v24 = vpop.f32.mrf.mxu1  ;;  %v7369_v35 = vld [vmem:[#allocation4 + $0xd8] sm:$0xff]  ;;  %v7134_v63 = vshll.u32 %v6941_v54, 16 }
 0x6d0   : > { %v7938_v31 = vld [vmem:[#allocation4 + $0xc8] sm:$0xff]  ;;  %6748 = vst.msk [vmem:[#allocation4 + $0xe0] sm:$0xff] %vm227_vm2, %v6670_v24  ;;  %v14529_v58 = vld [vmem:[#allocation3 + $0xb8] sm:$0xff]  ;;  %v10566_v24 = vrot.slane %v10564_v44, 1 }
 0x6d1   : > { %v7986_v12 = vadd.f32 %v7938_v31, %v7855_v50  ;;  %7464 = vst.msk [vmem:[#allocation4 + $0xd0] sm:$0xff] %vm227_vm2, %v7416_v23  ;;  %v17286_v41 = vpop.f32.mrf.mxu0  ;;  %v7129_v50 = vsel %vm1067_vm6, %v7124_v51, %v7128_v6  ;;  %v7707_v31 = vrot.slane %v7659_v36, 1 }
 0x6d2   : > { %13316 = vmatmul.msk.bf16.gmra.mxu1 %vm227_vm2, %v14528_v43  ;;  %v14602_v43 = vld [vmem:[#allocation3 + $0xc] sm:$0xff]  ;;  %v10570_v54 = vor.u32 %v10568_v21, %v10566_v24 }
 0x6d3   : > { %8034 = vst.msk [vmem:[#allocation4 + $0xc8] sm:$0xff] %vm227_vm2, %v7986_v12  ;;  %v7860_v28 = vpop.f32.mrf.mxu3  ;;  %v8750_v6 = vshrl.u32 %v14602_v43, 16 }
 0x6d4   : > { %13680 = vmatmul.msk.bf16.gmra.mxu0 %vm227_vm2, %v14601_v49  ;;  %v7136_v49 = vrot.slane %v7134_v63, 1 }
 0x6d6   : > { %v7289_v2 = vpop.f32.mrf.mxu2  ;;  %v7137_v3 = vsel %vm1067_vm6, %v7132_v60, %v7136_v49  ;;  %v17374_v49 = vld [vmem:[#allocation3 + $0x30] sm:$0xff] }
 0x6d7   : > { %v7417_v13 = vadd.f32 %v7369_v35, %v7289_v2  ;;  %v6672_v11 = vpop.f32.mrf.mxu1  ;;  %v7370_v62 = vld [vmem:[#allocation4 + $0xe0] sm:$0xff]  ;;  %v7708_v2 = vsel %vm1786_vm7, %v7705_v25, %v7707_v31  ;;  %v8752_v35 = vshll.u32 %v14602_v43, 16 }
 0x6d8   : > { %v7939_v22 = vld [vmem:[#allocation4 + $0xd0] sm:$0xff]  ;;  %13558 = vmatmul.msk.bf16.gmra.mxu3 %vm227_vm2, %v7706_v29  ;;  %6749 = vst.msk [vmem:[#allocation4 + $0xe8] sm:$0xff] %vm227_vm2, %v6672_v11 }
 0x6d9   : > { %v7987_v8 = vadd.f32 %v7939_v22, %v7858_v59  ;;  %7465 = vst.msk [vmem:[#allocation4 + $0xd8] sm:$0xff] %vm227_vm2, %v7417_v13  ;;  %v17309_v10 = vpop.f32.mrf.mxu0  ;;  %v17336_v29 = vld [vmem:[#allocation3 + $0x14] sm:$0xff]  ;;  %v8754_v16 = vrot.slane %v8752_v35, 1  ;;  %v17344_v22 = vld [vmem:[#allocation3 + $0x28] sm:$0xff] }
 0x6da   : > { %v8757_v30 = vshll.u32 %v17336_v29, 16  ;;  %v10572_v34 = vshll.u32 %v17344_v22, 16  ;;  %v8761_v61 = vshrl.u32 %v17336_v29, 16 }
 0x6db   : > { %8035 = vst.msk [vmem:[#allocation4 + $0xd0] sm:$0xff] %vm227_vm2, %v7987_v8  ;;  %v7863_v5 = vpop.f32.mrf.mxu3  ;;  %13437 = vmatmul.msk.bf16.gmra.mxu2 %vm227_vm2, %v7129_v50  ;;  %v8452_v8 = vld [vmem:[#allocation4 + $0xa8] sm:$0xff]  ;;  %v8755_v4 = vor.u32 %v8754_v16, %v8750_v6 }
 0x6dc   : > { %v8500_v50 = vadd.f32 %v8452_v8, %v17168_v57  ;;  %v17353_v57 = vld [vmem:[#allocation3 + $0x14] sm:$0xff]  ;;  %v10574_v44 = vrot.slane %v10572_v34, 1 }
 0x6dd   : > { %v9468_v63 = vrot.slane %v17353_v57, 1 }
 0x6de   : > { %v7292_v17 = vpop.f32.mrf.mxu2  ;;  %8548 = vst.msk [vmem:[#allocation4 + $0xa8] sm:$0xff] %vm227_vm2, %v8500_v50 }
 0x6df   : > { %v7418_v45 = vadd.f32 %v7370_v62, %v7292_v17  ;;  %v6675_v59 = vpop.f32.mrf.mxu1  ;;  %v7371_v53 = vld [vmem:[#allocation4 + $0xe8] sm:$0xff]  ;;  %v8759_v62 = vrot.slane %v8757_v30, 1 }
 0x6e0   : > { %v7940_v39 = vld [vmem:[#allocation4 + $0xd8] sm:$0xff]  ;;  %6750 = vst.msk [vmem:[#allocation4 + $0xf0] sm:$0xff] %vm227_vm2, %v6675_v59 }
 0x6e1   : > { %v7988_v56 = vadd.f32 %v7940_v39, %v7860_v28  ;;  %7466 = vst.msk [vmem:[#allocation4 + $0xe0] sm:$0xff] %vm227_vm2, %v7418_v45  ;;  %v17323_v12 = vpop.f32.mrf.mxu0  ;;  %v10567_v28 = vsel %vm1067_vm6, %v10562_v32, %v10566_v24  ;;  %v8760_v37 = vsel %vm1067_vm6, %v8755_v4, %v8759_v62  ;;  %v10575_v39 = vsel %vm1067_vm6, %v10570_v54, %v10574_v44  ;;  %v14650_v32 = vld [vmem:[#allocation3 + $0x18] sm:$0xff]  ;;  %v8453_v24 = vld [vmem:[#allocation4 + $0xb0] sm:$0xff] }
 0x6e2   : > { %13317 = vmatmul.msk.bf16.gmra.mxu1 %vm227_vm2, %v14529_v58  ;;  %v8501_v47 = vadd.f32 %v8453_v24, %v17178_v15 }
 0x6e3   : > { %8036 = vst.msk [vmem:[#allocation4 + $0xd8] sm:$0xff] %vm227_vm2, %v7988_v56  ;;  %v7865_v23 = vpop.f32.mrf.mxu3 }
 0x6e4   : > { %14141 = vmatmul.msk.bf16.vlgmr.msra.gmra.mxu0 %vm227_vm2, %v10567_v28  ;;  %v17365_v28 = vld [vmem:[#allocation3 + $0x1c] sm:$0xff]  ;;  %8549 = vst.msk [vmem:[#allocation4 + $0xb0] sm:$0xff] %vm227_vm2, %v8501_v47 }
 0x6e6   : > { %v7294_v46 = vpop.f32.mrf.mxu2 }
 0x6e7   : > { %v7419_v1 = vadd.f32 %v7371_v53, %v7294_v46  ;;  %v6677_v13 = vpop.f32.mrf.mxu1  ;;  %v7372_v40 = vld [vmem:[#allocation4 + $0xf0] sm:$0xff] }
 0x6e8   : > { %v7941_v51 = vld [vmem:[#allocation4 + $0xe0] sm:$0xff]  ;;  %13559 = vmatmul.msk.bf16.gmra.mxu3 %vm227_vm2, %v7708_v2  ;;  %6751 = vst.msk [vmem:[#allocation4 + $0xf8] sm:$0xff] %vm227_vm2, %v6677_v13  ;;  %v10580_v13 = vshll.u32 %v17374_v49, 16 }
 0x6e9   : > { %v7989_v19 = vadd.f32 %v7941_v51, %v7863_v5  ;;  %7467 = vst.msk [vmem:[#allocation4 + $0xe8] sm:$0xff] %vm227_vm2, %v7419_v1  ;;  %v17342_v25 = vpop.f32.mrf.mxu0  ;;  %v13805_v5 = vld [vmem:[#allocation3 + $0xc] sm:$0xe]  ;;  %v8765_v1 = vshll.u32 %v17365_v28, 16  ;;  %v8763_v51 = vor.u32 %v8761_v61, %v8759_v62  ;;  %v14605_v62 = vld [vmem:[#allocation3 + $0x24] sm:$0xff] }
 0x6ea   : > { %v13806_v45 = vor.u32 %v14626_v26, %v13805_v5  ;;  %v14651_v26 = vld [vmem:[#allocation3 + $0x20] sm:$0xff] }
 0x6eb   : > { %8037 = vst.msk [vmem:[#allocation4 + $0xe0] sm:$0xff] %vm227_vm2, %v7989_v19  ;;  %v7868_v48 = vpop.f32.mrf.mxu3  ;;  %13438 = vmatmul.msk.bf16.gmra.mxu2 %vm227_vm2, %v7137_v3  ;;  %v10576_v19 = vshrl.u32 %v17344_v22, 16  ;;  %v8767_v30 = vrot.slane %v8765_v1, 1  ;;  %v8456_v1 = vld [vmem:[#allocation4 + $0xc8] sm:$0xff] }
 0x6ec   : > { %v9467_v58 = vrot.slane %v13806_v45, 1 }
 0x6ed   : > { %v10578_v8 = vor.u32 %v10576_v19, %v10574_v44  ;;  %v8768_v22 = vsel %vm1067_vm6, %v8763_v51, %v8767_v30  ;;  %v14652_v19 = vld [vmem:[#allocation3 + $0x28] sm:$0xff] }
 0x6ee   : > { %v7297_v11 = vpop.f32.mrf.mxu2  ;;  %v9469_v46 = vsel %vm1786_vm7, %v9467_v58, %v9468_v63 }
 0x6ef   : > { %v7420_v18 = vadd.f32 %v7372_v40, %v7297_v11  ;;  %v6680_v17 = vpop.f32.mrf.mxu1  ;;  %v7373_v59 = vld [vmem:[#allocation4 + $0xf8] sm:$0xff] }
 0x6f0   : > { %v7942_v14 = vld [vmem:[#allocation4 + $0xe8] sm:$0xff]  ;;  %6752 = vst.msk [vmem:[#allocation4 + $0x100] sm:$0xff] %vm227_vm2, %v6680_v17  ;;  %v17384_v11 = vld [vmem:[#allocation3 + $0x1c] sm:$0xff] }
 0x6f1   : > { %v7990_v27 = vadd.f32 %v7942_v14, %v7865_v23  ;;  %7468 = vst.msk [vmem:[#allocation4 + $0xf0] sm:$0xff] %vm227_vm2, %v7420_v18  ;;  %v17357_v33 = vpop.f32.mrf.mxu0  ;;  %v10582_v18 = vrot.slane %v10580_v13, 1  ;;  %v9470_v21 = vrot.slane %v17384_v11, 1  ;;  %v17432_v11 = vld [vmem:[#allocation3 + $0x40] sm:$0xff] }
 0x6f2   : > { %13778 = vmatmul.msk.bf16.vlgmr.msrb.gmra.mxu1 %vm227_vm2, %v8760_v37  ;;  %v8455_v37 = vld [vmem:[#allocation4 + $0xc0] sm:$0xff] }
 0x6f3   : > { %8038 = vst.msk [vmem:[#allocation4 + $0xe8] sm:$0xff] %vm227_vm2, %v7990_v27  ;;  %v7870_v36 = vpop.f32.mrf.mxu3  ;;  %v10583_v4 = vsel %vm1067_vm6, %v10578_v8, %v10582_v18  ;;  %v9471_v54 = vsel %vm1786_vm7, %v9468_v63, %v9470_v21  ;;  %v8503_v44 = vadd.f32 %v8455_v37, %v17201_v55 }
 0x6f4   : > { %14142 = vmatmul.msk.bf16.gmra.mxu0 %vm227_vm2, %v10575_v39  ;;  %v8769_v39 = vshrl.u32 %v17365_v28, 16  ;;  %v17412_v28 = vld [vmem:[#allocation3 + $0x24] sm:$0xff] }
 0x6f5   : > { %8551 = vst.msk [vmem:[#allocation4 + $0xc0] sm:$0xff] %vm227_vm2, %v8503_v44  ;;  %v9472_v13 = vrot.slane %v17412_v28, 1 }
 0x6f6   : > { %v7299_v56 = vpop.f32.mrf.mxu2  ;;  %v8771_v63 = vor.u32 %v8769_v39, %v8767_v30 }
 0x6f7   : > { %v7421_v23 = vadd.f32 %v7373_v59, %v7299_v56  ;;  %v6682_v52 = vpop.f32.mrf.mxu1  ;;  %v7374_v2 = vld [vmem:[#allocation4 + $0x100] sm:$0xff]  ;;  %v8773_v56 = vshll.u32 %v14605_v62, 16  ;;  %v9473_v30 = vsel %vm1786_vm7, %v9470_v21, %v9472_v13 }
 0x6f8   : > { %v7943_v31 = vld [vmem:[#allocation4 + $0xf0] sm:$0xff]  ;;  %14020 = vmatmul.msk.bf16.vlgmr.msra.gmra.mxu3 %vm227_vm2, %v14650_v32  ;;  %6753 = vst.msk [vmem:[#allocation4 + $0x108] sm:$0xff] %vm227_vm2, %v6682_v52 }
 0x6f9   : > { %v7991_v43 = vadd.f32 %v7943_v31, %v7868_v48  ;;  %7469 = vst.msk [vmem:[#allocation4 + $0xf8] sm:$0xff] %vm227_vm2, %v7421_v23  ;;  %v17372_v60 = vpop.f32.mrf.mxu0  ;;  %v8454_v48 = vld [vmem:[#allocation4 + $0xb8] sm:$0xff]  ;;  %v10584_v23 = vshrl.u32 %v17374_v49, 16  ;;  %v8775_v47 = vrot.slane %v8773_v56, 1 }
 0x6fa   : > { %v8502_v29 = vadd.f32 %v8454_v48, %v17191_v7 }
 0x6fb   : > { %8039 = vst.msk [vmem:[#allocation4 + $0xf0] sm:$0xff] %vm227_vm2, %v7991_v43  ;;  %v7873_v53 = vpop.f32.mrf.mxu3  ;;  %13899 = vmatmul.msk.bf16.vlgmr.msra.gmra.mxu2 %vm227_vm2, %v9469_v46  ;;  %v10586_v55 = vor.u32 %v10584_v23, %v10582_v18 }
 0x6fc   : > { %8550 = vst.msk [vmem:[#allocation4 + $0xb8] sm:$0xff] %vm227_vm2, %v8502_v29 }
 0x6fe   : > { %v7302_v15 = vpop.f32.mrf.mxu2 }
 0x6ff   : > { %v7422_v35 = vadd.f32 %v7374_v2, %v7302_v15  ;;  %v6685_v6 = vpop.f32.mrf.mxu1  ;;  %v7375_v7 = vld [vmem:[#allocation4 + $0x108] sm:$0xff]  ;;  %v8504_v15 = vadd.f32 %v8456_v1, %v17213_v38 }
 0x700   : > { %v7944_v3 = vld [vmem:[#allocation4 + $0xf8] sm:$0xff]  ;;  %6754 = vst.msk [vmem:[#allocation4 + $0x110] sm:$0xff] %vm227_vm2, %v6685_v6  ;;  %v14606_v38 = vld [vmem:[#allocation3 + $0x2c] sm:$0xff] }
 0x701   : > { %v7992_v16 = vadd.f32 %v7944_v3, %v7870_v36  ;;  %7470 = vst.msk [vmem:[#allocation4 + $0x100] sm:$0xff] %vm227_vm2, %v7422_v35  ;;  %v17388_v50 = vpop.f32.mrf.mxu0  ;;  %v17403_v36 = vld [vmem:[#allocation3 + $0x38] sm:$0xff]  ;;  %v8785_v1 = vshrl.u32 %v14606_v38, 16 }
 0x702   : > { %13779 = vmatmul.msk.bf16.gmra.mxu1 %vm227_vm2, %v8768_v22  ;;  %v10588_v31 = vshll.u32 %v17403_v36, 16  ;;  %8552 = vst.msk [vmem:[#allocation4 + $0xc8] sm:$0xff] %vm227_vm2, %v8504_v15  ;;  %v8781_v22 = vshll.u32 %v14606_v38, 16  ;;  %v17469_v38 = vld [vmem:[#allocation3 + $0x34] sm:$0xff] }
 0x703   : > { %8040 = vst.msk [vmem:[#allocation4 + $0xf8] sm:$0xff] %vm227_vm2, %v7992_v16  ;;  %v7875_v40 = vpop.f32.mrf.mxu3 }
 0x704   : > { %14143 = vmatmul.msk.bf16.gmra.mxu0 %vm227_vm2, %v10583_v4  ;;  %v10590_v49 = vrot.slane %v10588_v31, 1 }
 0x706   : > { %v7304_v5 = vpop.f32.mrf.mxu2  ;;  %v10591_v2 = vsel %vm1067_vm6, %v10586_v55, %v10590_v49 }
 0x707   : > { %v7423_v34 = vadd.f32 %v7375_v7, %v7304_v5  ;;  %v6687_v17 = vpop.f32.mrf.mxu1  ;;  %v7376_v32 = vld [vmem:[#allocation4 + $0x110] sm:$0xff] }
 0x708   : > { %v7945_v14 = vld [vmem:[#allocation4 + $0x100] sm:$0xff]  ;;  %14021 = vmatmul.msk.bf16.gmra.mxu3 %vm227_vm2, %v14651_v26  ;;  %6755 = vst.msk [vmem:[#allocation4 + $0x118] sm:$0xff] %vm227_vm2, %v6687_v17  ;;  %v10592_v26 = vshrl.u32 %v17403_v36, 16 }
 0x709   : > { %v7993_v27 = vadd.f32 %v7945_v14, %v7873_v53  ;;  %7471 = vst.msk [vmem:[#allocation4 + $0x108] sm:$0xff] %vm227_vm2, %v7423_v34  ;;  %v17401_v45 = vpop.f32.mrf.mxu0  ;;  %v8776_v53 = vsel %vm1067_vm6, %v8771_v63, %v8775_v47  ;;  %v10596_v34 = vshll.u32 %v17432_v11, 16  ;;  %v8457_v14 = vld [vmem:[#allocation4 + $0xd0] sm:$0xff] }
 0x70a   : > { %v8505_v37 = vadd.f32 %v8457_v14, %v17225_v9 }
 0x70b   : > { %8041 = vst.msk [vmem:[#allocation4 + $0x100] sm:$0xff] %vm227_vm2, %v7993_v27  ;;  %v7878_v57 = vpop.f32.mrf.mxu3  ;;  %13900 = vmatmul.msk.bf16.gmra.mxu2 %vm227_vm2, %v9471_v54  ;;  %v8783_v54 = vrot.slane %v8781_v22, 1  ;;  %v10598_v56 = vrot.slane %v10596_v34, 1  ;;  %v14654_v34 = vld [vmem:[#allocation3 + $0x38] sm:$0xff] }
 0x70c   : > { %8553 = vst.msk [vmem:[#allocation4 + $0xd0] sm:$0xff] %vm227_vm2, %v8505_v37 }
 0x70e   : > { %v7307_v59 = vpop.f32.mrf.mxu2 }
 0x70f   : > { %v7424_v58 = vadd.f32 %v7376_v32, %v7307_v59  ;;  %v6690_v52 = vpop.f32.mrf.mxu1  ;;  %v7377_v51 = vld [vmem:[#allocation4 + $0x118] sm:$0xff] }
 0x710   : > { %v7946_v24 = vld [vmem:[#allocation4 + $0x108] sm:$0xff]  ;;  %6756 = vst.msk [vmem:[#allocation4 + $0x120] sm:$0xff] %vm227_vm2, %v6690_v52 }
 0x711   : > { %v7994_v43 = vadd.f32 %v7946_v24, %v7875_v40  ;;  %7472 = vst.msk [vmem:[#allocation4 + $0x110] sm:$0xff] %vm227_vm2, %v7424_v58  ;;  %v17416_v61 = vpop.f32.mrf.mxu0  ;;  %v8777_v40 = vshrl.u32 %v14605_v62, 16  ;;  %v17439_v62 = vld [vmem:[#allocation3 + $0x2c] sm:$0xff]  ;;  %v8458_v24 = vld [vmem:[#allocation4 + $0xd8] sm:$0xff] }
 0x712   : > { %13780 = vmatmul.msk.bf16.gmra.mxu1 %vm227_vm2, %v8776_v53  ;;  %v14653_v58 = vld [vmem:[#allocation3 + $0x30] sm:$0xff]  ;;  %v9474_v63 = vrot.slane %v17439_v62, 1  ;;  %v8506_v55 = vadd.f32 %v8458_v24, %v17239_v0 }
 0x713   : > { %8042 = vst.msk [vmem:[#allocation4 + $0x108] sm:$0xff] %vm227_vm2, %v7994_v43  ;;  %v7880_v46 = vpop.f32.mrf.mxu3  ;;  %v8779_v7 = vor.u32 %v8777_v40, %v8775_v47  ;;  %v17452_v47 = vld [vmem:[#allocation3 + $0x34] sm:$0xff] }
 0x714   : > { %14144 = vmatmul.msk.bf16.gmra.mxu0 %vm227_vm2, %v10591_v2  ;;  %v9475_v28 = vsel %vm1786_vm7, %v9472_v13, %v9474_v63  ;;  %8554 = vst.msk [vmem:[#allocation4 + $0xd8] sm:$0xff] %vm227_vm2, %v8506_v55  ;;  %v8789_v15 = vshll.u32 %v17452_v47, 16  ;;  %v17489_v62 = vld [vmem:[#allocation3 + $0x50] sm:$0xff] }
 0x715   : > { %v8784_v36 = vsel %vm1067_vm6, %v8779_v7, %v8783_v54  ;;  %v10612_v24 = vshll.u32 %v17489_v62, 16 }
 0x716   : > { %v7309_v35 = vpop.f32.mrf.mxu2 }
 0x717   : > { %v7425_v3 = vadd.f32 %v7377_v51, %v7309_v35  ;;  %v6692_v6 = vpop.f32.mrf.mxu1  ;;  %v7378_v4 = vld [vmem:[#allocation4 + $0x120] sm:$0xff]  ;;  %v8787_v51 = vor.u32 %v8785_v1, %v8783_v54 }
 0x718   : > { %v7947_v48 = vld [vmem:[#allocation4 + $0x110] sm:$0xff]  ;;  %14022 = vmatmul.msk.bf16.gmra.mxu3 %vm227_vm2, %v14652_v19  ;;  %6757 = vst.msk [vmem:[#allocation4 + $0x128] sm:$0xff] %vm227_vm2, %v6692_v6  ;;  %v10600_v19 = vshrl.u32 %v17432_v11, 16  ;;  %v8791_v6 = vrot.slane %v8789_v15, 1  ;;  %v8459_v11 = vld [vmem:[#allocation4 + $0xe0] sm:$0xff]  ;;  %v10614_v15 = vrot.slane %v10612_v24, 1 }
 0x719   : > { %v7995_v16 = vadd.f32 %v7947_v48, %v7878_v57  ;;  %7473 = vst.msk [vmem:[#allocation4 + $0x118] sm:$0xff] %vm227_vm2, %v7425_v3  ;;  %v17430_v29 = vpop.f32.mrf.mxu0  ;;  %v10594_v57 = vor.u32 %v10592_v26, %v10590_v49  ;;  %v17461_v49 = vld [vmem:[#allocation3 + $0x48] sm:$0xff] }
 0x71a   : > { %v10604_v13 = vshll.u32 %v17461_v49, 16  ;;  %v8792_v40 = vsel %vm1067_vm6, %v8787_v51, %v8791_v6 }
 0x71b   : > { %8043 = vst.msk [vmem:[#allocation4 + $0x110] sm:$0xff] %vm227_vm2, %v7995_v16  ;;  %v7883_v8 = vpop.f32.mrf.mxu3  ;;  %13901 = vmatmul.msk.bf16.gmra.mxu2 %vm227_vm2, %v9473_v30  ;;  %v10599_v59 = vsel %vm1067_vm6, %v10594_v57, %v10598_v56  ;;  %v10602_v30 = vor.u32 %v10600_v19, %v10598_v56  ;;  %v8793_v56 = vshrl.u32 %v17452_v47, 16  ;;  %v14655_v19 = vld [vmem:[#allocation3 + $0x40] sm:$0xff] }
 0x71c   : > { %v10606_v22 = vrot.slane %v10604_v13, 1 }
 0x71e   : > { %v7312_v18 = vpop.f32.mrf.mxu2 }
 0x71f   : > { %v7426_v5 = vadd.f32 %v7378_v4, %v7312_v18  ;;  %v6695_v17 = vpop.f32.mrf.mxu1  ;;  %v7379_v9 = vld [vmem:[#allocation4 + $0x128] sm:$0xff]  ;;  %v8507_v4 = vadd.f32 %v8459_v11, %v17254_v42  ;;  %v17483_v42 = vld [vmem:[#allocation3 + $0x3c] sm:$0xff] }
 0x720   : > { %v7948_v21 = vld [vmem:[#allocation4 + $0x118] sm:$0xff]  ;;  %6758 = vst.msk [vmem:[#allocation4 + $0x130] sm:$0xff] %vm227_vm2, %v6695_v17 }
 0x721   : > { %v7996_v27 = vadd.f32 %v7948_v21, %v7880_v46  ;;  %7474 = vst.msk [vmem:[#allocation4 + $0x120] sm:$0xff] %vm227_vm2, %v7426_v5  ;;  %v17443_v39 = vpop.f32.mrf.mxu0  ;;  %v10607_v5 = vsel %vm1067_vm6, %v10602_v30, %v10606_v22  ;;  %v9476_v21 = vrot.slane %v17469_v38, 1  ;;  %v17515_v30 = vld [vmem:[#allocation3 + $0x44] sm:$0xff] }
 0x722   : > { %13781 = vmatmul.msk.bf16.gmra.mxu1 %vm227_vm2, %v8784_v36  ;;  %8555 = vst.msk [vmem:[#allocation4 + $0xe0] sm:$0xff] %vm227_vm2, %v8507_v4  ;;  %v8801_v4 = vshrl.u32 %v17483_v42, 16 }
 0x723   : > { %8044 = vst.msk [vmem:[#allocation4 + $0x118] sm:$0xff] %vm227_vm2, %v7996_v27  ;;  %v7885_v44 = vpop.f32.mrf.mxu3  ;;  %v9477_v57 = vsel %vm1786_vm7, %v9474_v63, %v9476_v21 }
 0x724   : > { %14145 = vmatmul.msk.bf16.gmra.mxu0 %vm227_vm2, %v10599_v59  ;;  %v8797_v59 = vshll.u32 %v17483_v42, 16 }
 0x726   : > { %v7314_v32 = vpop.f32.mrf.mxu2  ;;  %v8799_v47 = vrot.slane %v8797_v59, 1  ;;  %v8463_v59 = vld [vmem:[#allocation4 + $0x100] sm:$0xff] }
 0x727   : > { %v7427_v23 = vadd.f32 %v7379_v9, %v7314_v32  ;;  %v6697_v52 = vpop.f32.mrf.mxu1  ;;  %v7380_v0 = vld [vmem:[#allocation4 + $0x130] sm:$0xff] }
 0x728   : > { %v7949_v31 = vld [vmem:[#allocation4 + $0x120] sm:$0xff]  ;;  %14023 = vmatmul.msk.bf16.gmra.mxu3 %vm227_vm2, %v14653_v58  ;;  %6759 = vst.msk [vmem:[#allocation4 + $0x138] sm:$0xff] %vm227_vm2, %v6697_v52 }
 0x729   : > { %v7997_v43 = vadd.f32 %v7949_v31, %v7883_v8  ;;  %7475 = vst.msk [vmem:[#allocation4 + $0x128] sm:$0xff] %vm227_vm2, %v7427_v23  ;;  %v17459_v53 = vpop.f32.mrf.mxu0  ;;  %v8795_v23 = vor.u32 %v8793_v56, %v8791_v6  ;;  %v10608_v31 = vshrl.u32 %v17461_v49, 16  ;;  %v8461_v49 = vld [vmem:[#allocation4 + $0xf0] sm:$0xff] }
 0x72b   : > { %8045 = vst.msk [vmem:[#allocation4 + $0x120] sm:$0xff] %vm227_vm2, %v7997_v43  ;;  %v7888_v46 = vpop.f32.mrf.mxu3  ;;  %13902 = vmatmul.msk.bf16.gmra.mxu2 %vm227_vm2, %v9475_v28  ;;  %v10610_v55 = vor.u32 %v10608_v31, %v10606_v22  ;;  %v17501_v28 = vld [vmem:[#allocation3 + $0x3c] sm:$0xff]  ;;  %v8800_v1 = vsel %vm1067_vm6, %v8795_v23, %v8799_v47  ;;  %v14656_v31 = vld [vmem:[#allocation3 + $0x48] sm:$0xff] }
 0x72c   : > { %v9478_v13 = vrot.slane %v17501_v28, 1  ;;  %v8462_v22 = vld [vmem:[#allocation4 + $0xf8] sm:$0xff] }
 0x72d   : > { %v8510_v11 = vadd.f32 %v8462_v22, %v17309_v10 }
 0x72e   : > { %v7317_v2 = vpop.f32.mrf.mxu2  ;;  %v9479_v38 = vsel %vm1786_vm7, %v9476_v21, %v9478_v13  ;;  %v8803_v21 = vor.u32 %v8801_v4, %v8799_v47 }
 0x72f   : > { %v7428_v35 = vadd.f32 %v7380_v0, %v7317_v2  ;;  %v6700_v16 = vpop.f32.mrf.mxu1  ;;  %v7381_v26 = vld [vmem:[#allocation4 + $0x138] sm:$0xff]  ;;  %v8509_v2 = vadd.f32 %v8461_v49, %v17286_v41  ;;  %v10615_v0 = vsel %vm1067_vm6, %v10610_v55, %v10614_v15  ;;  %8558 = vst.msk [vmem:[#allocation4 + $0xf8] sm:$0xff] %vm227_vm2, %v8510_v11 }
 0x730   : > { %v7950_v3 = vld [vmem:[#allocation4 + $0x128] sm:$0xff]  ;;  %6760 = vst.msk [vmem:[#allocation4 + $0x140] sm:$0xff] %vm227_vm2, %v6700_v16 }
 0x731   : > { %v7998_v48 = vadd.f32 %v7950_v3, %v7885_v44  ;;  %7476 = vst.msk [vmem:[#allocation4 + $0x130] sm:$0xff] %vm227_vm2, %v7428_v35  ;;  %v17474_v18 = vpop.f32.mrf.mxu0  ;;  %v8460_v44 = vld [vmem:[#allocation4 + $0xe8] sm:$0xff] }
 0x732   : > { %13782 = vmatmul.msk.bf16.gmra.mxu1 %vm227_vm2, %v8792_v40  ;;  %v8508_v36 = vadd.f32 %v8460_v44, %v17275_v20  ;;  %8557 = vst.msk [vmem:[#allocation4 + $0xf0] sm:$0xff] %vm227_vm2, %v8509_v2  ;;  %v17521_v40 = vld [vmem:[#allocation3 + $0x58] sm:$0xff]  ;;  %v17533_v44 = vld [vmem:[#allocation3 + $0x44] sm:$0xff]  ;;  %v8809_v2 = vshrl.u32 %v17515_v30, 16 }
 0x733   : > { %8046 = vst.msk [vmem:[#allocation4 + $0x128] sm:$0xff] %vm227_vm2, %v7998_v48  ;;  %v7890_v8 = vpop.f32.mrf.mxu3  ;;  %v9480_v24 = vrot.slane %v17533_v44, 1 }
 0x734   : > { %14146 = vmatmul.msk.bf16.gmra.mxu0 %vm227_vm2, %v10607_v5  ;;  %8556 = vst.msk [vmem:[#allocation4 + $0xe8] sm:$0xff] %vm227_vm2, %v8508_v36  ;;  %v8805_v5 = vshll.u32 %v17515_v30, 16  ;;  %v17563_v30 = vld [vmem:[#allocation3 + $0x4c] sm:$0xff] }
 0x735   : > { %v9481_v55 = vsel %vm1786_vm7, %v9478_v13, %v9480_v24 }
 0x736   : > { %v7319_v7 = vpop.f32.mrf.mxu2  ;;  %v8807_v10 = vrot.slane %v8805_v5, 1 }
 0x737   : > { %v7429_v14 = vadd.f32 %v7381_v26, %v7319_v7  ;;  %v6702_v54 = vpop.f32.mrf.mxu1  ;;  %v7382_v9 = vld [vmem:[#allocation4 + $0x140] sm:$0xff] }
 0x738   : > { %v7951_v27 = vld [vmem:[#allocation4 + $0x130] sm:$0xff]  ;;  %14024 = vmatmul.msk.bf16.gmra.mxu3 %vm227_vm2, %v14654_v34  ;;  %6761 = vst.msk [vmem:[#allocation4 + $0x148] sm:$0xff] %vm227_vm2, %v6702_v54  ;;  %v8811_v13 = vor.u32 %v8809_v2, %v8807_v10 }
 0x739   : > { %v7999_v17 = vadd.f32 %v7951_v27, %v7888_v46  ;;  %7477 = vst.msk [vmem:[#allocation4 + $0x138] sm:$0xff] %vm227_vm2, %v7429_v14  ;;  %v17494_v58 = vpop.f32.mrf.mxu0  ;;  %v10616_v14 = vshrl.u32 %v17489_v62, 16  ;;  %v10620_v27 = vshll.u32 %v17521_v40, 16  ;;  %v8808_v62 = vsel %vm1067_vm6, %v8803_v21, %v8807_v10  ;;  %v17577_v10 = vld [vmem:[#allocation3 + $0x54] sm:$0xff] }
 0x73b   : > { %8047 = vst.msk [vmem:[#allocation4 + $0x130] sm:$0xff] %vm227_vm2, %v7999_v17  ;;  %v7893_v37 = vpop.f32.mrf.mxu3  ;;  %13903 = vmatmul.msk.bf16.gmra.mxu2 %vm227_vm2, %v9477_v57  ;;  %v10622_v56 = vrot.slane %v10620_v27, 1  ;;  %v9482_v27 = vrot.slane %v17563_v30, 1 }
 0x73e   : > { %v7322_v32 = vpop.f32.mrf.mxu2 }
 0x73f   : > { %v7430_v63 = vadd.f32 %v7382_v9, %v7322_v32  ;;  %v6705_v20 = vpop.f32.mrf.mxu1  ;;  %v7383_v51 = vld [vmem:[#allocation4 + $0x148] sm:$0xff]  ;;  %v8511_v32 = vadd.f32 %v8463_v59, %v17323_v12  ;;  %v8821_v59 = vshll.u32 %v17577_v10, 16 }
 0x740   : > { %v7952_v43 = vld [vmem:[#allocation4 + $0x138] sm:$0xff]  ;;  %6762 = vst.msk [vmem:[#allocation4 + $0x150] sm:$0xff] %vm227_vm2, %v6705_v20  ;;  %v17545_v12 = vld [vmem:[#allocation3 + $0x4c] sm:$0xff] }
 0x741   : > { %v8000_v52 = vadd.f32 %v7952_v43, %v7890_v8  ;;  %7478 = vst.msk [vmem:[#allocation4 + $0x140] sm:$0xff] %vm227_vm2, %v7430_v63  ;;  %v17512_v16 = vpop.f32.mrf.mxu0 }
 0x742   : > { %13783 = vmatmul.msk.bf16.gmra.mxu1 %vm227_vm2, %v8800_v1  ;;  %8559 = vst.msk [vmem:[#allocation4 + $0x100] sm:$0xff] %vm227_vm2, %v8511_v32  ;;  %v8464_v1 = vld [vmem:[#allocation4 + $0x108] sm:$0xff] }
 0x743   : > { %8048 = vst.msk [vmem:[#allocation4 + $0x138] sm:$0xff] %vm227_vm2, %v8000_v52  ;;  %v7895_v46 = vpop.f32.mrf.mxu3  ;;  %v8512_v49 = vadd.f32 %v8464_v1, %v17342_v25 }
 0x744   : > { %14147 = vmatmul.msk.bf16.gmra.mxu0 %vm227_vm2, %v10615_v0  ;;  %v8813_v0 = vshll.u32 %v17545_v12, 16 }
 0x745   : > { %8560 = vst.msk [vmem:[#allocation4 + $0x108] sm:$0xff] %vm227_vm2, %v8512_v49  ;;  %v17596_v49 = vld [vmem:[#allocation3 + $0x54] sm:$0xff] }
 0x746   : > { %v7324_v35 = vpop.f32.mrf.mxu2  ;;  %v8815_v25 = vrot.slane %v8813_v0, 1 }
 0x747   : > { %v7431_v3 = vadd.f32 %v7383_v51, %v7324_v35  ;;  %v6707_v41 = vpop.f32.mrf.mxu1  ;;  %v7384_v26 = vld [vmem:[#allocation4 + $0x150] sm:$0xff] }
 0x748   : > { %v7953_v48 = vld [vmem:[#allocation4 + $0x140] sm:$0xff]  ;;  %14025 = vmatmul.msk.bf16.gmra.mxu3 %vm227_vm2, %v14655_v19  ;;  %6763 = vst.msk [vmem:[#allocation4 + $0x158] sm:$0xff] %vm227_vm2, %v6707_v41  ;;  %v8816_v11 = vsel %vm1067_vm6, %v8811_v13, %v8815_v25 }
 0x749   : > { %v8001_v6 = vadd.f32 %v7953_v48, %v7893_v37  ;;  %7479 = vst.msk [vmem:[#allocation4 + $0x148] sm:$0xff] %vm227_vm2, %v7431_v3  ;;  %v10618_v37 = vor.u32 %v10616_v14, %v10614_v15  ;;  %v17531_v42 = vpop.f32.mrf.mxu0  ;;  %v10624_v3 = vshrl.u32 %v17521_v40, 16  ;;  %v8465_v40 = vld [vmem:[#allocation4 + $0x110] sm:$0xff] }
 0x74a   : > { %v8513_v5 = vadd.f32 %v8465_v40, %v17357_v33  ;;  %v14657_v14 = vld [vmem:[#allocation3 + $0x50] sm:$0xff] }
 0x74b   : > { %8049 = vst.msk [vmem:[#allocation4 + $0x140] sm:$0xff] %vm227_vm2, %v8001_v6  ;;  %v7898_v8 = vpop.f32.mrf.mxu3  ;;  %13904 = vmatmul.msk.bf16.gmra.mxu2 %vm227_vm2, %v9479_v38  ;;  %v10623_v9 = vsel %vm1067_vm6, %v10618_v37, %v10622_v56  ;;  %v9483_v37 = vsel %vm1786_vm7, %v9480_v24, %v9482_v27 }
 0x74c   : > { %8561 = vst.msk [vmem:[#allocation4 + $0x110] sm:$0xff] %vm227_vm2, %v8513_v5 }
 0x74e   : > { %v7327_v7 = vpop.f32.mrf.mxu2 }
 0x74f   : > { %v7432_v34 = vadd.f32 %v7384_v26, %v7327_v7  ;;  %v6710_v57 = vpop.f32.mrf.mxu1  ;;  %v7385_v23 = vld [vmem:[#allocation4 + $0x158] sm:$0xff] }
 0x750   : > { %v7954_v17 = vld [vmem:[#allocation4 + $0x148] sm:$0xff]  ;;  %6764 = vst.msk [vmem:[#allocation4 + $0x160] sm:$0xff] %vm227_vm2, %v6710_v57 }
 0x751   : > { %v8002_v54 = vadd.f32 %v7954_v17, %v7895_v46  ;;  %7480 = vst.msk [vmem:[#allocation4 + $0x150] sm:$0xff] %vm227_vm2, %v7432_v34  ;;  %v17551_v46 = vld [vmem:[#allocation3 + $0x60] sm:$0xff]  ;;  %v17553_v15 = vpop.f32.mrf.mxu0 }
 0x752   : > { %13784 = vmatmul.msk.bf16.gmra.mxu1 %vm227_vm2, %v8808_v62  ;;  %v10628_v48 = vshll.u32 %v17551_v46, 16  ;;  %v8466_v62 = vld [vmem:[#allocation4 + $0x118] sm:$0xff]  ;;  %v10632_v24 = vshrl.u32 %v17551_v46, 16 }
 0x753   : > { %8050 = vst.msk [vmem:[#allocation4 + $0x148] sm:$0xff] %vm227_vm2, %v8002_v54  ;;  %v7900_v36 = vpop.f32.mrf.mxu3  ;;  %v8514_v32 = vadd.f32 %v8466_v62, %v17372_v60 }
 0x754   : > { %14148 = vmatmul.msk.bf16.gmra.mxu0 %vm227_vm2, %v10623_v9  ;;  %v10630_v4 = vrot.slane %v10628_v48, 1  ;;  %v14658_v48 = vld [vmem:[#allocation3 + $0x58] sm:$0xff] }
 0x755   : > { %8562 = vst.msk [vmem:[#allocation4 + $0x118] sm:$0xff] %vm227_vm2, %v8514_v32 }
 0x756   : > { %v7329_v63 = vpop.f32.mrf.mxu2  ;;  %v10634_v60 = vor.u32 %v10632_v24, %v10630_v4  ;;  %v8469_v24 = vld [vmem:[#allocation4 + $0x130] sm:$0xff] }
 0x757   : > { %v7433_v43 = vadd.f32 %v7385_v23, %v7329_v63  ;;  %v6712_v47 = vpop.f32.mrf.mxu1  ;;  %v7386_v51 = vld [vmem:[#allocation4 + $0x160] sm:$0xff] }
 0x758   : > { %v7955_v52 = vld [vmem:[#allocation4 + $0x150] sm:$0xff]  ;;  %14026 = vmatmul.msk.bf16.gmra.mxu3 %vm227_vm2, %v14656_v31  ;;  %6765 = vst.msk [vmem:[#allocation4 + $0x168] sm:$0xff] %vm227_vm2, %v6712_v47 }
 0x759   : > { %v8003_v20 = vadd.f32 %v7955_v52, %v7898_v8  ;;  %7481 = vst.msk [vmem:[#allocation4 + $0x158] sm:$0xff] %vm227_vm2, %v7433_v43  ;;  %v10626_v8 = vor.u32 %v10624_v3, %v10622_v56  ;;  %v17570_v26 = vpop.f32.mrf.mxu0  ;;  %v8817_v56 = vshrl.u32 %v17545_v12, 16 }
 0x75b   : > { %8051 = vst.msk [vmem:[#allocation4 + $0x150] sm:$0xff] %vm227_vm2, %v8003_v20  ;;  %v7903_v28 = vpop.f32.mrf.mxu3  ;;  %13905 = vmatmul.msk.bf16.gmra.mxu2 %vm227_vm2, %v9481_v55  ;;  %v10631_v7 = vsel %vm1067_vm6, %v10626_v8, %v10630_v4  ;;  %v8819_v31 = vor.u32 %v8817_v56, %v8815_v25  ;;  %v9149_v55 = vld [vmem:[#allocation4] sm:$0xff] }
 0x75e   : > { %v7332_v35 = vpop.f32.mrf.mxu2 }
 0x75f   : > { %v7434_v19 = vadd.f32 %v7386_v51, %v7332_v35  ;;  %v6715_v38 = vpop.f32.mrf.mxu1  ;;  %v7387_v21 = vld [vmem:[#allocation4 + $0x168] sm:$0xff]  ;;  %v8467_v35 = vld [vmem:[#allocation4 + $0x120] sm:$0xff] }
 0x760   : > { %v7956_v6 = vld [vmem:[#allocation4 + $0x158] sm:$0xff]  ;;  %6766 = vst.msk [vmem:[#allocation4 + $0x170] sm:$0xff] %vm227_vm2, %v6715_v38 }
 0x761   : > { %v8004_v41 = vadd.f32 %v7956_v6, %v7900_v36  ;;  %7482 = vst.msk [vmem:[#allocation4 + $0x160] sm:$0xff] %vm227_vm2, %v7434_v19  ;;  %v17585_v36 = vld [vmem:[#allocation3 + $0x68] sm:$0xff]  ;;  %v17593_v20 = vpop.f32.mrf.mxu0  ;;  %v8515_v19 = vadd.f32 %v8467_v35, %v17388_v50  ;;  %v9484_v6 = vrot.slane %v17596_v49, 1 }
 0x762   : > { %13785 = vmatmul.msk.bf16.gmra.mxu1 %vm227_vm2, %v8816_v11  ;;  %v10636_v43 = vshll.u32 %v17585_v36, 16  ;;  %v17609_v11 = vld [vmem:[#allocation3 + $0x5c] sm:$0xff]  ;;  %v17645_v35 = vld [vmem:[#allocation3 + $0x64] sm:$0xff] }
 0x763   : > { %8052 = vst.msk [vmem:[#allocation4 + $0x158] sm:$0xff] %vm227_vm2, %v8004_v41  ;;  %v7905_v22 = vpop.f32.mrf.mxu3  ;;  %v9485_v40 = vsel %vm1786_vm7, %v9482_v27, %v9484_v6 }
 0x764   : > { %14149 = vmatmul.msk.bf16.gmra.mxu0 %vm227_vm2, %v10631_v7  ;;  %v10638_v0 = vrot.slane %v10636_v43, 1  ;;  %8563 = vst.msk [vmem:[#allocation4 + $0x120] sm:$0xff] %vm227_vm2, %v8515_v19  ;;  %v17620_v7 = vld [vmem:[#allocation3 + $0x70] sm:$0xff] }
 0x766   : > { %v7334_v34 = vpop.f32.mrf.mxu2  ;;  %v10639_v51 = vsel %vm1067_vm6, %v10634_v60, %v10638_v0 }
 0x767   : > { %v7435_v17 = vadd.f32 %v7387_v21, %v7334_v34  ;;  %v6717_v33 = vpop.f32.mrf.mxu1  ;;  %v7388_v63 = vld [vmem:[#allocation4 + $0x170] sm:$0xff]  ;;  %v8468_v34 = vld [vmem:[#allocation4 + $0x128] sm:$0xff]  ;;  %v8825_v21 = vshrl.u32 %v17577_v10, 16 }
 0x768   : > { %v7957_v54 = vld [vmem:[#allocation4 + $0x160] sm:$0xff]  ;;  %14027 = vmatmul.msk.bf16.gmra.mxu3 %vm227_vm2, %v14657_v14  ;;  %6767 = vst.msk [vmem:[#allocation4 + $0x178] sm:$0xff] %vm227_vm2, %v6717_v33  ;;  %v8829_v14 = vshll.u32 %v17609_v11, 16  ;;  %v10640_v33 = vshrl.u32 %v17585_v36, 16  ;;  %v9151_v10 = vld [vmem:[#allocation4 + $0x10] sm:$0xff] }
 0x769   : > { %v8005_v57 = vadd.f32 %v7957_v54, %v7903_v28  ;;  %7483 = vst.msk [vmem:[#allocation4 + $0x168] sm:$0xff] %vm227_vm2, %v7435_v17  ;;  %v8823_v28 = vrot.slane %v8821_v59, 1  ;;  %v17611_v50 = vpop.f32.mrf.mxu0  ;;  %v8516_v17 = vadd.f32 %v8468_v34, %v17401_v45  ;;  %v17630_v45 = vld [vmem:[#allocation3 + $0x5c] sm:$0xff] }
 0x76a   : > { %v8831_v59 = vrot.slane %v8829_v14, 1  ;;  %v10642_v32 = vor.u32 %v10640_v33, %v10638_v0  ;;  %v9152_v0 = vld [vmem:[#allocation4 + $0x18] sm:$0xff]  ;;  %v8471_v33 = vld [vmem:[#allocation4 + $0x140] sm:$0xff] }
 0x76b   : > { %8053 = vst.msk [vmem:[#allocation4 + $0x160] sm:$0xff] %vm227_vm2, %v8005_v57  ;;  %v7908_v44 = vpop.f32.mrf.mxu3  ;;  %13906 = vmatmul.msk.bf16.gmra.mxu2 %vm227_vm2, %v9483_v37  ;;  %v8824_v2 = vsel %vm1067_vm6, %v8819_v31, %v8823_v28  ;;  %v8827_v27 = vor.u32 %v8825_v21, %v8823_v28  ;;  %v10644_v37 = vshll.u32 %v17620_v7, 16  ;;  %v9486_v28 = vrot.slane %v17630_v45, 1  ;;  %v9153_v21 = vld [vmem:[#allocation4 + $0x20] sm:$0xff] }
 0x76c   : > { %8564 = vst.msk [vmem:[#allocation4 + $0x128] sm:$0xff] %vm227_vm2, %v8516_v17 }
 0x76d   : > { %v8832_v36 = vsel %vm1067_vm6, %v8827_v27, %v8831_v59 }
 0x76e   : > { %v7337_v9 = vpop.f32.mrf.mxu2 }
 0x76f   : > { %v7436_v23 = vadd.f32 %v7388_v63, %v7337_v9  ;;  %v9029_v12 = vpop.f32.mrf.mxu1  ;;  %v7389_v3 = vld [vmem:[#allocation4 + $0x178] sm:$0xff] }
 0x770   : > { %v7958_v52 = vld [vmem:[#allocation4 + $0x168] sm:$0xff]  ;;  %v9197_v1 = vadd.f32 %v9149_v55, %v9029_v12  ;;  %v14659_v55 = vld [vmem:[#allocation3 + $0x60] sm:$0xff] }
 0x771   : > { %v8006_v47 = vadd.f32 %v7958_v52, %v7905_v22  ;;  %7484 = vst.msk [vmem:[#allocation4 + $0x170] sm:$0xff] %vm227_vm2, %v7436_v23  ;;  %v9150_v22 = vld [vmem:[#allocation4 + $0x8] sm:$0xff]  ;;  %v10646_v23 = vrot.slane %v10644_v37, 1  ;;  %v17634_v31 = vpop.f32.mrf.mxu0  ;;  %v8517_v52 = vadd.f32 %v8469_v24, %v17416_v61 }
 0x772   : > { %9245 = vst.msk [vmem:[#allocation4] sm:$0xff] %vm227_vm2, %v9197_v1  ;;  %13786 = vmatmul.msk.bf16.gmra.mxu1 %vm227_vm2, %v8824_v2  ;;  %v17681_v24 = vld [vmem:[#allocation3 + $0x6c] sm:$0xff] }
 0x773   : > { %8054 = vst.msk [vmem:[#allocation4 + $0x168] sm:$0xff] %vm227_vm2, %v8006_v47  ;;  %v7910_v46 = vpop.f32.mrf.mxu3  ;;  %v10647_v43 = vsel %vm1067_vm6, %v10642_v32, %v10646_v23 }
 0x774   : > { %14150 = vmatmul.msk.bf16.gmra.mxu0 %vm227_vm2, %v10639_v51  ;;  %8565 = vst.msk [vmem:[#allocation4 + $0x130] sm:$0xff] %vm227_vm2, %v8517_v52  ;;  %v9487_v51 = vsel %vm1786_vm7, %v9484_v6, %v9486_v28 }
 0x776   : > { %v7339_v13 = vpop.f32.mrf.mxu2 }
 0x777   : > { %v7437_v41 = vadd.f32 %v7389_v3, %v7339_v13  ;;  %v9031_v8 = vpop.f32.mrf.mxu1  ;;  %v17654_v13 = vld [vmem:[#allocation3 + $0x78] sm:$0xff]  ;;  %v8833_v3 = vshrl.u32 %v17609_v11, 16 }
 0x778   : > { %v7959_v38 = vld [vmem:[#allocation4 + $0x170] sm:$0xff]  ;;  %14028 = vmatmul.msk.bf16.gmra.mxu3 %vm227_vm2, %v14658_v48  ;;  %v9198_v4 = vadd.f32 %v9150_v22, %v9031_v8  ;;  %v8837_v48 = vshll.u32 %v17645_v35, 16 }
 0x779   : > { %v8007_v25 = vadd.f32 %v7959_v38, %v7908_v44  ;;  %7485 = vst.msk [vmem:[#allocation4 + $0x178] sm:$0xff] %vm227_vm2, %v7437_v41  ;;  %v9720_v30 = vld [vmem:[#allocation4] sm:$0xff]  ;;  %v8470_v41 = vld [vmem:[#allocation4 + $0x138] sm:$0xff]  ;;  %v17659_v38 = vpop.f32.mrf.mxu0  ;;  %v8835_v22 = vor.u32 %v8833_v3, %v8831_v59  ;;  %v9155_v3 = vld [vmem:[#allocation4 + $0x30] sm:$0xff] }
 0x77a   : > { %9246 = vst.msk [vmem:[#allocation4 + $0x8] sm:$0xff] %vm227_vm2, %v9198_v4  ;;  %v8518_v6 = vadd.f32 %v8470_v41, %v17430_v29  ;;  %v10648_v4 = vshrl.u32 %v17620_v7, 16  ;;  %v8839_v14 = vrot.slane %v8837_v48, 1 }
 0x77b   : > { %8055 = vst.msk [vmem:[#allocation4 + $0x170] sm:$0xff] %vm227_vm2, %v8007_v25  ;;  %v10118_v5 = vpop.f32.mrf.mxu3  ;;  %13907 = vmatmul.msk.bf16.gmra.mxu2 %vm227_vm2, %v9485_v40  ;;  %v10652_v40 = vshll.u32 %v17654_v13, 16 }
 0x77c   : > { %8566 = vst.msk [vmem:[#allocation4 + $0x138] sm:$0xff] %vm227_vm2, %v8518_v6  ;;  %v10650_v17 = vor.u32 %v10648_v4, %v10646_v23  ;;  %v8840_v7 = vsel %vm1067_vm6, %v8835_v22, %v8839_v14  ;;  %v9154_v23 = vld [vmem:[#allocation4 + $0x28] sm:$0xff]  ;;  %v8473_v4 = vld [vmem:[#allocation4 + $0x150] sm:$0xff] }
 0x77e   : > { %v9600_v54 = vpop.f32.mrf.mxu2 }
 0x77f   : > { %v9768_v57 = vadd.f32 %v9720_v30, %v9600_v54  ;;  %v9034_v56 = vpop.f32.mrf.mxu1  ;;  %v17666_v30 = vld [vmem:[#allocation3 + $0x64] sm:$0xff] }
 0x780   : > { %v7960_v44 = vld [vmem:[#allocation4 + $0x178] sm:$0xff]  ;;  %v9199_v9 = vadd.f32 %v9151_v10, %v9034_v56  ;;  %v9488_v56 = vrot.slane %v17666_v30, 1  ;;  %v8519_v10 = vadd.f32 %v8471_v33, %v17443_v39 }
 0x781   : > { %v8008_v62 = vadd.f32 %v7960_v44, %v7910_v46  ;;  %9816 = vst.msk [vmem:[#allocation4] sm:$0xff] %vm227_vm2, %v9768_v57  ;;  %v9721_v12 = vld [vmem:[#allocation4 + $0x8] sm:$0xff]  ;;  %v10654_v57 = vrot.slane %v10652_v40, 1  ;;  %v17676_v32 = vpop.f32.mrf.mxu0 }
 0x782   : > { %9247 = vst.msk [vmem:[#allocation4 + $0x10] sm:$0xff] %vm227_vm2, %v9199_v9  ;;  %13787 = vmatmul.msk.bf16.gmra.mxu1 %vm227_vm2, %v8832_v36  ;;  %v9489_v39 = vsel %vm1786_vm7, %v9486_v28, %v9488_v56 }
 0x783   : > { %8056 = vst.msk [vmem:[#allocation4 + $0x178] sm:$0xff] %vm227_vm2, %v8008_v62  ;;  %v10120_v63 = vpop.f32.mrf.mxu3  ;;  %v10655_v27 = vsel %vm1067_vm6, %v10650_v17, %v10654_v57  ;;  %v14660_v62 = vld [vmem:[#allocation3 + $0x68] sm:$0xff] }
 0x784   : > { %14151 = vmatmul.msk.bf16.gmra.mxu0 %vm227_vm2, %v10647_v43  ;;  %8567 = vst.msk [vmem:[#allocation4 + $0x140] sm:$0xff] %vm227_vm2, %v8519_v10 }
 0x786   : > { %v9602_v47 = vpop.f32.mrf.mxu2 }
 0x787   : > { %v9769_v60 = vadd.f32 %v9721_v12, %v9602_v47  ;;  %v9036_v2 = vpop.f32.mrf.mxu1  ;;  %v17690_v47 = vld [vmem:[#allocation3 + $0x80] sm:$0xff]  ;;  %v8841_v12 = vshrl.u32 %v17645_v35, 16 }
 0x788   : > { %v10238_v1 = vld [vmem:[#allocation4] sm:$0xff]  ;;  %14029 = vmatmul.msk.bf16.gmra.mxu3 %vm227_vm2, %v14659_v55  ;;  %v9200_v61 = vadd.f32 %v9152_v0, %v9036_v2  ;;  %v8845_v55 = vshll.u32 %v17681_v24, 16  ;;  %v10656_v0 = vshrl.u32 %v17654_v13, 16 }
 0x789   : > { %v10286_v46 = vadd.f32 %v10238_v1, %v10118_v5  ;;  %9817 = vst.msk [vmem:[#allocation4 + $0x8] sm:$0xff] %vm227_vm2, %v9769_v60  ;;  %v9722_v49 = vld [vmem:[#allocation4 + $0x10] sm:$0xff]  ;;  %v8472_v60 = vld [vmem:[#allocation4 + $0x148] sm:$0xff]  ;;  %v8843_v28 = vor.u32 %v8841_v12, %v8839_v14 }
 0x78a   : > { %9248 = vst.msk [vmem:[#allocation4 + $0x18] sm:$0xff] %vm227_vm2, %v9200_v61  ;;  %v8520_v45 = vadd.f32 %v8472_v60, %v17459_v53  ;;  %v10660_v61 = vshll.u32 %v17690_v47, 16  ;;  %v8847_v48 = vrot.slane %v8845_v55, 1  ;;  %v10658_v41 = vor.u32 %v10656_v0, %v10654_v57  ;;  %v17702_v53 = vld [vmem:[#allocation3 + $0x6c] sm:$0xff]  ;;  %v17715_v57 = vld [vmem:[#allocation3 + $0x74] sm:$0xff]  ;;  %v9157_v55 = vld [vmem:[#allocation4 + $0x40] sm:$0xff] }
 0x78b   : > { %10334 = vst.msk [vmem:[#allocation4] sm:$0xff] %vm227_vm2, %v10286_v46  ;;  %v10123_v19 = vpop.f32.mrf.mxu3  ;;  %13908 = vmatmul.msk.bf16.gmra.mxu2 %vm227_vm2, %v9487_v51  ;;  %v8853_v10 = vshll.u32 %v17715_v57, 16 }
 0x78c   : > { %8568 = vst.msk [vmem:[#allocation4 + $0x148] sm:$0xff] %vm227_vm2, %v8520_v45  ;;  %v8848_v6 = vsel %vm1067_vm6, %v8843_v28, %v8847_v48 }
 0x78e   : > { %v9605_v25 = vpop.f32.mrf.mxu2 }
 0x78f   : > { %v9770_v8 = vadd.f32 %v9722_v49, %v9605_v25  ;;  %v9039_v11 = vpop.f32.mrf.mxu1  ;;  %v17700_v25 = vpop.f32.mrf.mxu0 }
 0x790   : > { %v10239_v5 = vld [vmem:[#allocation4 + $0x8] sm:$0xff]  ;;  %v9201_v54 = vadd.f32 %v9153_v21, %v9039_v11  ;;  %v9490_v11 = vrot.slane %v17702_v53, 1  ;;  %v8521_v21 = vadd.f32 %v8473_v4, %v17474_v18 }
 0x791   : > { %v10287_v34 = vadd.f32 %v10239_v5, %v10120_v63  ;;  %9818 = vst.msk [vmem:[#allocation4 + $0x10] sm:$0xff] %vm227_vm2, %v9770_v8  ;;  %v9723_v44 = vld [vmem:[#allocation4 + $0x18] sm:$0xff]  ;;  %v10662_v8 = vrot.slane %v10660_v61, 1 }
 0x792   : > { %9249 = vst.msk [vmem:[#allocation4 + $0x20] sm:$0xff] %vm227_vm2, %v9201_v54  ;;  %13788 = vmatmul.msk.bf16.gmra.mxu1 %vm227_vm2, %v8840_v7  ;;  %v9156_v7 = vld [vmem:[#allocation4 + $0x38] sm:$0xff]  ;;  %v9491_v18 = vsel %vm1786_vm7, %v9488_v56, %v9490_v11  ;;  %v10664_v56 = vshrl.u32 %v17690_v47, 16 }
 0x793   : > { %10335 = vst.msk [vmem:[#allocation4 + $0x8] sm:$0xff] %vm227_vm2, %v10287_v34  ;;  %v10125_v29 = vpop.f32.mrf.mxu3  ;;  %v10663_v22 = vsel %vm1067_vm6, %v10658_v41, %v10662_v8  ;;  %v14661_v34 = vld [vmem:[#allocation3 + $0x70] sm:$0xff] }
 0x794   : > { %14152 = vmatmul.msk.bf16.gmra.mxu0 %vm227_vm2, %v10655_v27  ;;  %8569 = vst.msk [vmem:[#allocation4 + $0x150] sm:$0xff] %vm227_vm2, %v8521_v21  ;;  %v10666_v60 = vor.u32 %v10664_v56, %v10662_v8  ;;  %v17750_v8 = vld [vmem:[#allocation3 + $0x7c] sm:$0xff] }
 0x796   : > { %v9607_v37 = vpop.f32.mrf.mxu2 }
 0x797   : > { %v9771_v59 = vadd.f32 %v9723_v44, %v9607_v37  ;;  %v9041_v36 = vpop.f32.mrf.mxu1  ;;  %v17724_v37 = vld [vmem:[#allocation3 + $0x88] sm:$0xff]  ;;  %v17726_v44 = vpop.f32.mrf.mxu0 }
 0x798   : > { %v10240_v9 = vld [vmem:[#allocation4 + $0x10] sm:$0xff]  ;;  %14030 = vmatmul.msk.bf16.gmra.mxu3 %vm227_vm2, %v14660_v62  ;;  %v9202_v43 = vadd.f32 %v9154_v23, %v9041_v36  ;;  %v8849_v62 = vshrl.u32 %v17681_v24, 16  ;;  %v10668_v36 = vshll.u32 %v17724_v37, 16  ;;  %v8474_v23 = vld [vmem:[#allocation4 + $0x158] sm:$0xff]  ;;  %v8855_v24 = vrot.slane %v8853_v10, 1  ;;  %v8476_v10 = vld [vmem:[#allocation4 + $0x168] sm:$0xff] }
 0x799   : > { %v10288_v63 = vadd.f32 %v10240_v9, %v10123_v19  ;;  %9819 = vst.msk [vmem:[#allocation4 + $0x18] sm:$0xff] %vm227_vm2, %v9771_v59  ;;  %v9724_v46 = vld [vmem:[#allocation4 + $0x20] sm:$0xff] }
 0x79a   : > { %9250 = vst.msk [vmem:[#allocation4 + $0x28] sm:$0xff] %vm227_vm2, %v9202_v43 }
 0x79b   : > { %10336 = vst.msk [vmem:[#allocation4 + $0x10] sm:$0xff] %vm227_vm2, %v10288_v63  ;;  %v10128_v52 = vpop.f32.mrf.mxu3  ;;  %13909 = vmatmul.msk.bf16.gmra.mxu2 %vm227_vm2, %v9489_v39  ;;  %v8851_v63 = vor.u32 %v8849_v62, %v8847_v48  ;;  %v8522_v39 = vadd.f32 %v8474_v23, %v17494_v58 }
 0x79d   : > { %8570 = vst.msk [vmem:[#allocation4 + $0x158] sm:$0xff] %vm227_vm2, %v8522_v39  ;;  %v8856_v45 = vsel %vm1067_vm6, %v8851_v63, %v8855_v24  ;;  %v14663_v39 = vld [vmem:[#allocation3 + $0x80] sm:$0xff] }
 0x79e   : > { %v9610_v1 = vpop.f32.mrf.mxu2 }
 0x79f   : > { %v9772_v2 = vadd.f32 %v9724_v46, %v9610_v1  ;;  %v9044_v35 = vpop.f32.mrf.mxu1  ;;  %v17735_v46 = vld [vmem:[#allocation3 + $0x74] sm:$0xff]  ;;  %v17743_v28 = vpop.f32.mrf.mxu0 }
 0x7a0   : > { %v10241_v51 = vld [vmem:[#allocation4 + $0x18] sm:$0xff]  ;;  %v9203_v49 = vadd.f32 %v9155_v3, %v9044_v35  ;;  %v8475_v3 = vld [vmem:[#allocation4 + $0x160] sm:$0xff] }
 0x7a1   : > { %v10289_v19 = vadd.f32 %v10241_v51, %v10125_v29  ;;  %9820 = vst.msk [vmem:[#allocation4 + $0x20] sm:$0xff] %vm227_vm2, %v9772_v2  ;;  %v9725_v5 = vld [vmem:[#allocation4 + $0x28] sm:$0xff]  ;;  %v10670_v2 = vrot.slane %v10668_v36, 1  ;;  %v14662_v51 = vld [vmem:[#allocation3 + $0x78] sm:$0xff]  ;;  %v8523_v41 = vadd.f32 %v8475_v3, %v17512_v16  ;;  %v17760_v16 = vld [vmem:[#allocation3 + $0x90] sm:$0xff] }
 0x7a2   : > { %9251 = vst.msk [vmem:[#allocation4 + $0x30] sm:$0xff] %vm227_vm2, %v9203_v49  ;;  %13789 = vmatmul.msk.bf16.gmra.mxu1 %vm227_vm2, %v8848_v6  ;;  %v9158_v6 = vld [vmem:[#allocation4 + $0x48] sm:$0xff] }
 0x7a3   : > { %10337 = vst.msk [vmem:[#allocation4 + $0x18] sm:$0xff] %vm227_vm2, %v10289_v19  ;;  %v10130_v13 = vpop.f32.mrf.mxu3  ;;  %v10671_v58 = vsel %vm1067_vm6, %v10666_v60, %v10670_v2  ;;  %v9492_v19 = vrot.slane %v17735_v46, 1  ;;  %v9160_v60 = vld [vmem:[#allocation4 + $0x58] sm:$0xff] }
 0x7a4   : > { %14153 = vmatmul.msk.bf16.gmra.mxu0 %vm227_vm2, %v10663_v22  ;;  %8571 = vst.msk [vmem:[#allocation4 + $0x160] sm:$0xff] %vm227_vm2, %v8523_v41 }
 0x7a5   : > { %v9493_v4 = vsel %vm1786_vm7, %v9490_v11, %v9492_v19  ;;  %v10672_v11 = vshrl.u32 %v17724_v37, 16 }
 0x7a6   : > { %v9612_v40 = vpop.f32.mrf.mxu2 }
 0x7a7   : > { %v9773_v14 = vadd.f32 %v9725_v5, %v9612_v40  ;;  %v9046_v29 = vpop.f32.mrf.mxu1  ;;  %v8857_v5 = vshrl.u32 %v17715_v57, 16  ;;  %v10674_v57 = vor.u32 %v10672_v11, %v10670_v2 }
 0x7a8   : > { %v10242_v17 = vld [vmem:[#allocation4 + $0x20] sm:$0xff]  ;;  %14031 = vmatmul.msk.bf16.gmra.mxu3 %vm227_vm2, %v14661_v34  ;;  %v9204_v27 = vadd.f32 %v9156_v7, %v9046_v29  ;;  %v8861_v34 = vshll.u32 %v17750_v8, 16  ;;  %v17767_v29 = vpop.f32.mrf.mxu0 }
 0x7a9   : > { %v10290_v54 = vadd.f32 %v10242_v17, %v10128_v52  ;;  %9821 = vst.msk [vmem:[#allocation4 + $0x28] sm:$0xff] %vm227_vm2, %v9773_v14  ;;  %v9726_v9 = vld [vmem:[#allocation4 + $0x30] sm:$0xff]  ;;  %v8859_v17 = vor.u32 %v8857_v5, %v8855_v24 }
 0x7aa   : > { %9252 = vst.msk [vmem:[#allocation4 + $0x38] sm:$0xff] %vm227_vm2, %v9204_v27  ;;  %v8863_v62 = vrot.slane %v8861_v34, 1  ;;  %v17804_v34 = vld [vmem:[#allocation3 + $0x84] sm:$0xff] }
 0x7ab   : > { %10338 = vst.msk [vmem:[#allocation4 + $0x20] sm:$0xff] %vm227_vm2, %v10290_v54  ;;  %v10133_v33 = vpop.f32.mrf.mxu3  ;;  %13910 = vmatmul.msk.bf16.gmra.mxu2 %vm227_vm2, %v9491_v18  ;;  %v10676_v54 = vshll.u32 %v17760_v16, 16 }
 0x7ac   : > { %v8864_v63 = vsel %vm1067_vm6, %v8859_v17, %v8863_v62 }
 0x7ad   : > { %v10678_v56 = vrot.slane %v10676_v54, 1 }
 0x7ae   : > { %v9615_v59 = vpop.f32.mrf.mxu2 }
 0x7af   : > { %v9774_v30 = vadd.f32 %v9726_v9, %v9615_v59  ;;  %v9049_v12 = vpop.f32.mrf.mxu1  ;;  %v17770_v9 = vld [vmem:[#allocation3 + $0x7c] sm:$0xff]  ;;  %v10679_v36 = vsel %vm1067_vm6, %v10674_v57, %v10678_v56 }
 0x7b0   : > { %v10243_v43 = vld [vmem:[#allocation4 + $0x28] sm:$0xff]  ;;  %v9205_v1 = vadd.f32 %v9157_v55, %v9049_v12 }
 0x7b1   : > { %v10291_v52 = vadd.f32 %v10243_v43, %v10130_v13  ;;  %9822 = vst.msk [vmem:[#allocation4 + $0x30] sm:$0xff] %vm227_vm2, %v9774_v30  ;;  %v9727_v61 = vld [vmem:[#allocation4 + $0x38] sm:$0xff]  ;;  %v8524_v30 = vadd.f32 %v8476_v10, %v17531_v42 }
 0x7b2   : > { %9253 = vst.msk [vmem:[#allocation4 + $0x40] sm:$0xff] %vm227_vm2, %v9205_v1  ;;  %13790 = vmatmul.msk.bf16.gmra.mxu1 %vm227_vm2, %v8856_v45  ;;  %v17783_v1 = vld [vmem:[#allocation3 + $0x84] sm:$0xff]  ;;  %v17785_v45 = vpop.f32.mrf.mxu0 }
 0x7b3   : > { %10339 = vst.msk [vmem:[#allocation4 + $0x28] sm:$0xff] %vm227_vm2, %v10291_v52  ;;  %v10135_v47 = vpop.f32.mrf.mxu3  ;;  %v9494_v52 = vrot.slane %v17770_v9, 1  ;;  %v8869_v3 = vshll.u32 %v17783_v1, 16 }
 0x7b4   : > { %14154 = vmatmul.msk.bf16.gmra.mxu0 %vm227_vm2, %v10671_v58  ;;  %8572 = vst.msk [vmem:[#allocation4 + $0x168] sm:$0xff] %vm227_vm2, %v8524_v30  ;;  %v17819_v30 = vld [vmem:[#allocation3 + $0x8c] sm:$0xff] }
 0x7b5   : > { %v9495_v58 = vsel %vm1786_vm7, %v9492_v19, %v9494_v52 }
 0x7b6   : > { %v9617_v0 = vpop.f32.mrf.mxu2 }
 0x7b7   : > { %v9775_v35 = vadd.f32 %v9727_v61, %v9617_v0  ;;  %v9051_v13 = vpop.f32.mrf.mxu1 }
 0x7b8   : > { %v10244_v48 = vld [vmem:[#allocation4 + $0x30] sm:$0xff]  ;;  %14032 = vmatmul.msk.bf16.gmra.mxu3 %vm227_vm2, %v14662_v51  ;;  %v9206_v22 = vadd.f32 %v9158_v6, %v9051_v13  ;;  %v17795_v51 = vld [vmem:[#allocation3 + $0x98] sm:$0xff] }
 0x7b9   : > { %v10292_v49 = vadd.f32 %v10244_v48, %v10133_v33  ;;  %9823 = vst.msk [vmem:[#allocation4 + $0x38] sm:$0xff] %vm227_vm2, %v9775_v35  ;;  %v9728_v14 = vld [vmem:[#allocation4 + $0x40] sm:$0xff]  ;;  %v9159_v33 = vld [vmem:[#allocation4 + $0x50] sm:$0xff]  ;;  %v8865_v35 = vshrl.u32 %v17750_v8, 16 }
 0x7ba   : > { %9254 = vst.msk [vmem:[#allocation4 + $0x48] sm:$0xff] %vm227_vm2, %v9206_v22  ;;  %v17809_v11 = vpop.f32.mrf.mxu0 }
 0x7bb   : > { %10340 = vst.msk [vmem:[#allocation4 + $0x30] sm:$0xff] %vm227_vm2, %v10292_v49  ;;  %v10138_v40 = vpop.f32.mrf.mxu3  ;;  %13911 = vmatmul.msk.bf16.gmra.mxu2 %vm227_vm2, %v9493_v4  ;;  %v8867_v41 = vor.u32 %v8865_v35, %v8863_v62  ;;  %v10684_v49 = vshll.u32 %v17795_v51, 16  ;;  %v9161_v4 = vld [vmem:[#allocation4 + $0x60] sm:$0xff] }
 0x7be   : > { %v9620_v21 = vpop.f32.mrf.mxu2 }
 0x7bf   : > { %v9776_v53 = vadd.f32 %v9728_v14, %v9620_v21  ;;  %v9054_v18 = vpop.f32.mrf.mxu1  ;;  %v8478_v21 = vld [vmem:[#allocation4 + $0x178] sm:$0xff] }
 0x7c0   : > { %v10245_v7 = vld [vmem:[#allocation4 + $0x38] sm:$0xff]  ;;  %v9207_v59 = vadd.f32 %v9159_v33, %v9054_v18  ;;  %v8526_v17 = vadd.f32 %v8478_v21, %v17570_v26  ;;  %v14664_v18 = vld [vmem:[#allocation3 + $0x88] sm:$0xff]  ;;  %v9496_v33 = vrot.slane %v17804_v34, 1 }
 0x7c1   : > { %v10293_v27 = vadd.f32 %v10245_v7, %v10135_v47  ;;  %9824 = vst.msk [vmem:[#allocation4 + $0x40] sm:$0xff] %vm227_vm2, %v9776_v53  ;;  %v9729_v43 = vld [vmem:[#allocation4 + $0x48] sm:$0xff]  ;;  %v8477_v47 = vld [vmem:[#allocation4 + $0x170] sm:$0xff]  ;;  %v9164_v21 = vld [vmem:[#allocation4 + $0x78] sm:$0xff] }
 0x7c2   : > { %9255 = vst.msk [vmem:[#allocation4 + $0x50] sm:$0xff] %vm227_vm2, %v9207_v59  ;;  %13791 = vmatmul.msk.bf16.gmra.mxu1 %vm227_vm2, %v8864_v63  ;;  %v8525_v0 = vadd.f32 %v8477_v47, %v17553_v15  ;;  %v10680_v15 = vshrl.u32 %v17760_v16, 16  ;;  %v10686_v16 = vrot.slane %v10684_v49, 1  ;;  %v9162_v59 = vld [vmem:[#allocation4 + $0x68] sm:$0xff]  ;;  %v9497_v63 = vsel %vm1786_vm7, %v9494_v52, %v9496_v33  ;;  %v17835_v9 = vpop.f32.mrf.mxu0 }
 0x7c3   : > { %10341 = vst.msk [vmem:[#allocation4 + $0x38] sm:$0xff] %vm227_vm2, %v10293_v27  ;;  %v10140_v37 = vpop.f32.mrf.mxu3 }
 0x7c4   : > { %14155 = vmatmul.msk.bf16.gmra.mxu0 %vm227_vm2, %v10679_v36  ;;  %8573 = vst.msk [vmem:[#allocation4 + $0x170] sm:$0xff] %vm227_vm2, %v8525_v0  ;;  %v10682_v8 = vor.u32 %v10680_v15, %v10678_v56  ;;  %v10956_v56 = vld [vmem:[#allocation4] sm:$0xff] }
 0x7c5   : > { %8574 = vst.msk [vmem:[#allocation4 + $0x178] sm:$0xff] %vm227_vm2, %v8526_v17 }
 0x7c6   : > { %v9622_v23 = vpop.f32.mrf.mxu2  ;;  %v10687_v54 = vsel %vm1067_vm6, %v10682_v8, %v10686_v16 }
 0x7c7   : > { %v9777_v42 = vadd.f32 %v9729_v43, %v9622_v23  ;;  %v9056_v24 = vpop.f32.mrf.mxu1  ;;  %v17828_v23 = vld [vmem:[#allocation3 + $0xa0] sm:$0xff]  ;;  %v11004_v43 = vadd.f32 %v10956_v56, %v17593_v20 }
 0x7c8   : > { %v10246_v12 = vld [vmem:[#allocation4 + $0x40] sm:$0xff]  ;;  %14033 = vmatmul.msk.bf16.gmra.mxu3 %vm227_vm2, %v14663_v39  ;;  %v9208_v2 = vadd.f32 %v9160_v60, %v9056_v24  ;;  %v8873_v39 = vshrl.u32 %v17783_v1, 16  ;;  %v10688_v60 = vshrl.u32 %v17795_v51, 16  ;;  %v10692_v47 = vshll.u32 %v17828_v23, 16  ;;  %v9163_v1 = vld [vmem:[#allocation4 + $0x70] sm:$0xff]  ;;  %v10957_v51 = vld [vmem:[#allocation4 + $0x8] sm:$0xff] }
 0x7c9   : > { %v10294_v55 = vadd.f32 %v10246_v12, %v10138_v40  ;;  %9825 = vst.msk [vmem:[#allocation4 + $0x48] sm:$0xff] %vm227_vm2, %v9777_v42  ;;  %v9730_v48 = vld [vmem:[#allocation4 + $0x50] sm:$0xff]  ;;  %v8871_v40 = vrot.slane %v8869_v3, 1  ;;  %v8877_v42 = vshll.u32 %v17819_v30, 16 }
 0x7ca   : > { %9256 = vst.msk [vmem:[#allocation4 + $0x58] sm:$0xff] %vm227_vm2, %v9208_v2  ;;  %v17840_v3 = vld [vmem:[#allocation3 + $0x8c] sm:$0xff] }
 0x7cb   : > { %10342 = vst.msk [vmem:[#allocation4 + $0x40] sm:$0xff] %vm227_vm2, %v10294_v55  ;;  %v10143_v61 = vpop.f32.mrf.mxu3  ;;  %13912 = vmatmul.msk.bf16.gmra.mxu2 %vm227_vm2, %v9495_v58  ;;  %v8872_v53 = vsel %vm1067_vm6, %v8867_v41, %v8871_v40  ;;  %v8875_v24 = vor.u32 %v8873_v39, %v8871_v40  ;;  %v8879_v0 = vrot.slane %v8877_v42, 1  ;;  %v11005_v41 = vadd.f32 %v10957_v51, %v17611_v50  ;;  %v17851_v40 = vpop.f32.mrf.mxu0  ;;  %v17876_v42 = vld [vmem:[#allocation3 + $0x94] sm:$0xff] }
 0x7cc   : > { %11052 = vst.msk [vmem:[#allocation4] sm:$0xff] %vm227_vm2, %v11004_v43 }
 0x7cd   : > { %11053 = vst.msk [vmem:[#allocation4 + $0x8] sm:$0xff] %vm227_vm2, %v11005_v41  ;;  %v17898_v41 = vld [vmem:[#allocation3 + $0xb0] sm:$0xff] }
 0x7ce   : > { %v9625_v46 = vpop.f32.mrf.mxu2 }
 0x7cf   : > { %v9778_v19 = vadd.f32 %v9730_v48, %v9625_v46  ;;  %v9059_v22 = vpop.f32.mrf.mxu1  ;;  %v8880_v48 = vsel %vm1067_vm6, %v8875_v24, %v8879_v0 }
 0x7d0   : > { %v10247_v13 = vld [vmem:[#allocation4 + $0x48] sm:$0xff]  ;;  %v9209_v5 = vadd.f32 %v9161_v4, %v9059_v22  ;;  %v9498_v22 = vrot.slane %v17840_v3, 1 }
 0x7d1   : > { %v10295_v6 = vadd.f32 %v10247_v13, %v10140_v37  ;;  %9826 = vst.msk [vmem:[#allocation4 + $0x50] sm:$0xff] %vm227_vm2, %v9778_v19  ;;  %v9731_v27 = vld [vmem:[#allocation4 + $0x58] sm:$0xff]  ;;  %v10694_v19 = vrot.slane %v10692_v47, 1 }
 0x7d2   : > { %9257 = vst.msk [vmem:[#allocation4 + $0x60] sm:$0xff] %vm227_vm2, %v9209_v5  ;;  %13792 = vmatmul.msk.bf16.gmra.mxu1 %vm227_vm2, %v8872_v53 }
 0x7d3   : > { %10343 = vst.msk [vmem:[#allocation4 + $0x48] sm:$0xff] %vm227_vm2, %v10295_v6  ;;  %v10145_v14 = vpop.f32.mrf.mxu3  ;;  %v14665_v6 = vld [vmem:[#allocation3 + $0x90] sm:$0xff]  ;;  %v17874_v43 = vpop.f32.mrf.mxu0 }
 0x7d4   : > { %14156 = vmatmul.msk.bf16.gmra.mxu0 %vm227_vm2, %v10687_v54  ;;  %v17864_v54 = vld [vmem:[#allocation3 + $0xa8] sm:$0xff] }
 0x7d6   : > { %v9627_v7 = vpop.f32.mrf.mxu2 }
 0x7d7   : > { %v9779_v62 = vadd.f32 %v9731_v27, %v9627_v7  ;;  %v9061_v10 = vpop.f32.mrf.mxu1  ;;  %v10958_v7 = vld [vmem:[#allocation4 + $0x10] sm:$0xff] }
 0x7d8   : > { %v10248_v57 = vld [vmem:[#allocation4 + $0x50] sm:$0xff]  ;;  %14034 = vmatmul.msk.bf16.gmra.mxu3 %vm227_vm2, %v14664_v18  ;;  %v9210_v37 = vadd.f32 %v9162_v59, %v9061_v10  ;;  %v11006_v27 = vadd.f32 %v10958_v7, %v17634_v31  ;;  %v8881_v18 = vshrl.u32 %v17819_v30, 16  ;;  %v10696_v10 = vshrl.u32 %v17828_v23, 16  ;;  %v9165_v31 = vld [vmem:[#allocation4 + $0x80] sm:$0xff] }
 0x7d9   : > { %v10296_v26 = vadd.f32 %v10248_v57, %v10143_v61  ;;  %9827 = vst.msk [vmem:[#allocation4 + $0x58] sm:$0xff] %vm227_vm2, %v9779_v62  ;;  %v9732_v12 = vld [vmem:[#allocation4 + $0x60] sm:$0xff]  ;;  %v10690_v61 = vor.u32 %v10688_v60, %v10686_v16  ;;  %v9499_v16 = vsel %vm1786_vm7, %v9496_v33, %v9498_v22  ;;  %v10700_v59 = vshll.u32 %v17864_v54, 16 }
 0x7da   : > { %9258 = vst.msk [vmem:[#allocation4 + $0x68] sm:$0xff] %vm227_vm2, %v9210_v37  ;;  %v10698_v30 = vor.u32 %v10696_v10, %v10694_v19 }
 0x7db   : > { %10344 = vst.msk [vmem:[#allocation4 + $0x50] sm:$0xff] %vm227_vm2, %v10296_v26  ;;  %v10148_v36 = vpop.f32.mrf.mxu3  ;;  %13913 = vmatmul.msk.bf16.gmra.mxu2 %vm227_vm2, %v9497_v63  ;;  %v10695_v15 = vsel %vm1067_vm6, %v10690_v61, %v10694_v19  ;;  %v8883_v26 = vor.u32 %v8881_v18, %v8879_v0  ;;  %v17910_v18 = vld [vmem:[#allocation3 + $0x9c] sm:$0xff] }
 0x7dc   : > { %11054 = vst.msk [vmem:[#allocation4 + $0x10] sm:$0xff] %vm227_vm2, %v11006_v27 }
 0x7de   : > { %v9630_v52 = vpop.f32.mrf.mxu2 }
 0x7df   : > { %v9780_v55 = vadd.f32 %v9732_v12, %v9630_v52  ;;  %v9064_v58 = vpop.f32.mrf.mxu1  ;;  %v10702_v12 = vrot.slane %v10700_v59, 1  ;;  %v14667_v59 = vld [vmem:[#allocation3 + $0xa0] sm:$0xff] }
 0x7e0   : > { %v10249_v2 = vld [vmem:[#allocation4 + $0x58] sm:$0xff]  ;;  %v9211_v35 = vadd.f32 %v9163_v1, %v9064_v58  ;;  %v9500_v58 = vrot.slane %v17876_v42, 1 }
 0x7e1   : > { %v10297_v20 = vadd.f32 %v10249_v2, %v10145_v14  ;;  %9828 = vst.msk [vmem:[#allocation4 + $0x60] sm:$0xff] %vm227_vm2, %v9780_v55  ;;  %v9733_v13 = vld [vmem:[#allocation4 + $0x68] sm:$0xff]  ;;  %v17855_v14 = vld [vmem:[#allocation3 + $0x94] sm:$0xff]  ;;  %v10703_v60 = vsel %vm1067_vm6, %v10698_v30, %v10702_v12 }
 0x7e2   : > { %9259 = vst.msk [vmem:[#allocation4 + $0x70] sm:$0xff] %vm227_vm2, %v9211_v35  ;;  %13793 = vmatmul.msk.bf16.gmra.mxu1 %vm227_vm2, %v8880_v48  ;;  %v8885_v62 = vshll.u32 %v17855_v14, 16  ;;  %v10959_v55 = vld [vmem:[#allocation4 + $0x18] sm:$0xff]  ;;  %v9501_v19 = vsel %vm1786_vm7, %v9498_v22, %v9500_v58 }
 0x7e3   : > { %10345 = vst.msk [vmem:[#allocation4 + $0x58] sm:$0xff] %vm227_vm2, %v10297_v20  ;;  %v10150_v46 = vpop.f32.mrf.mxu3  ;;  %v11007_v24 = vadd.f32 %v10959_v55, %v17659_v38  ;;  %v14666_v20 = vld [vmem:[#allocation3 + $0x98] sm:$0xff]  ;;  %v9166_v38 = vld [vmem:[#allocation4 + $0x88] sm:$0xff] }
 0x7e4   : > { %14157 = vmatmul.msk.bf16.gmra.mxu0 %vm227_vm2, %v10695_v15  ;;  %v10960_v15 = vld [vmem:[#allocation4 + $0x20] sm:$0xff] }
 0x7e5   : > { %11055 = vst.msk [vmem:[#allocation4 + $0x18] sm:$0xff] %vm227_vm2, %v11007_v24  ;;  %v17934_v24 = vld [vmem:[#allocation3 + $0xb8] sm:$0xff] }
 0x7e6   : > { %v9632_v49 = vpop.f32.mrf.mxu2 }
 0x7e7   : > { %v9781_v4 = vadd.f32 %v9733_v13, %v9632_v49  ;;  %v9066_v50 = vpop.f32.mrf.mxu1  ;;  %v17900_v49 = vpop.f32.mrf.mxu0  ;;  %v11008_v13 = vadd.f32 %v10960_v15, %v17676_v32  ;;  %v9167_v32 = vld [vmem:[#allocation4 + $0x90] sm:$0xff] }
 0x7e8   : > { %v10250_v8 = vld [vmem:[#allocation4 + $0x60] sm:$0xff]  ;;  %14035 = vmatmul.msk.bf16.gmra.mxu3 %vm227_vm2, %v14665_v6  ;;  %v9212_v53 = vadd.f32 %v9164_v21, %v9066_v50  ;;  %v8889_v6 = vshrl.u32 %v17855_v14, 16  ;;  %v10704_v50 = vshrl.u32 %v17864_v54, 16  ;;  %v10708_v21 = vshll.u32 %v17898_v41, 16 }
 0x7e9   : > { %v10298_v5 = vadd.f32 %v10250_v8, %v10148_v36  ;;  %9829 = vst.msk [vmem:[#allocation4 + $0x68] sm:$0xff] %vm227_vm2, %v9781_v4  ;;  %v9734_v34 = vld [vmem:[#allocation4 + $0x70] sm:$0xff]  ;;  %v8887_v36 = vrot.slane %v8885_v62, 1 }
 0x7ea   : > { %9260 = vst.msk [vmem:[#allocation4 + $0x78] sm:$0xff] %vm227_vm2, %v9212_v53  ;;  %v10706_v14 = vor.u32 %v10704_v50, %v10702_v12  ;;  %v14668_v50 = vld [vmem:[#allocation3 + $0xa8] sm:$0xff] }
 0x7eb   : > { %10346 = vst.msk [vmem:[#allocation4 + $0x60] sm:$0xff] %vm227_vm2, %v10298_v5  ;;  %v10153_v17 = vpop.f32.mrf.mxu3  ;;  %13914 = vmatmul.msk.bf16.gmra.mxu2 %vm227_vm2, %v9499_v16  ;;  %v8888_v23 = vsel %vm1067_vm6, %v8883_v26, %v8887_v36  ;;  %v8891_v5 = vor.u32 %v8889_v6, %v8887_v36 }
 0x7ec   : > { %11056 = vst.msk [vmem:[#allocation4 + $0x20] sm:$0xff] %vm227_vm2, %v11008_v13 }
 0x7ee   : > { %v9635_v57 = vpop.f32.mrf.mxu2 }
 0x7ef   : > { %v9782_v33 = vadd.f32 %v9734_v34, %v9635_v57  ;;  %v9069_v56 = vpop.f32.mrf.mxu1  ;;  %v10710_v34 = vrot.slane %v10708_v21, 1 }
 0x7f0   : > { %v10251_v37 = vld [vmem:[#allocation4 + $0x68] sm:$0xff]  ;;  %v9213_v39 = vadd.f32 %v9165_v31, %v9069_v56 }
 0x7f1   : > { %v10299_v63 = vadd.f32 %v10251_v37, %v10150_v46  ;;  %9830 = vst.msk [vmem:[#allocation4 + $0x70] sm:$0xff] %vm227_vm2, %v9782_v33  ;;  %v9735_v2 = vld [vmem:[#allocation4 + $0x78] sm:$0xff]  ;;  %v10711_v54 = vsel %vm1067_vm6, %v10706_v14, %v10710_v34  ;;  %v17917_v33 = vpop.f32.mrf.mxu0  ;;  %v9502_v37 = vrot.slane %v17910_v18, 1 }
 0x7f2   : > { %9261 = vst.msk [vmem:[#allocation4 + $0x80] sm:$0xff] %vm227_vm2, %v9213_v39  ;;  %13794 = vmatmul.msk.bf16.gmra.mxu1 %vm227_vm2, %v8888_v23  ;;  %v17889_v46 = vld [vmem:[#allocation3 + $0x9c] sm:$0xff]  ;;  %v17924_v23 = vld [vmem:[#allocation3 + $0xa4] sm:$0xff] }
 0x7f3   : > { %10347 = vst.msk [vmem:[#allocation4 + $0x68] sm:$0xff] %vm227_vm2, %v10299_v63  ;;  %v10155_v52 = vpop.f32.mrf.mxu3  ;;  %v8893_v3 = vshll.u32 %v17889_v46, 16  ;;  %v10961_v63 = vld [vmem:[#allocation4 + $0x28] sm:$0xff]  ;;  %v9503_v55 = vsel %vm1786_vm7, %v9500_v58, %v9502_v37 }
 0x7f4   : > { %14158 = vmatmul.msk.bf16.gmra.mxu0 %vm227_vm2, %v10703_v60  ;;  %v11009_v31 = vadd.f32 %v10961_v63, %v17700_v25  ;;  %v8897_v60 = vshrl.u32 %v17889_v46, 16 }
 0x7f5   : > { %v8895_v7 = vrot.slane %v8893_v3, 1  ;;  %v17945_v3 = vld [vmem:[#allocation3 + $0xa4] sm:$0xff] }
 0x7f6   : > { %v9637_v47 = vpop.f32.mrf.mxu2  ;;  %11057 = vst.msk [vmem:[#allocation4 + $0x28] sm:$0xff] %vm227_vm2, %v11009_v31  ;;  %v9504_v21 = vrot.slane %v17945_v3, 1  ;;  %v10964_v31 = vld [vmem:[#allocation4 + $0x40] sm:$0xff] }
 0x7f7   : > { %v9783_v1 = vadd.f32 %v9735_v2, %v9637_v47  ;;  %v9071_v35 = vpop.f32.mrf.mxu1  ;;  %v8896_v57 = vsel %vm1067_vm6, %v8891_v5, %v8895_v7  ;;  %v8901_v47 = vshll.u32 %v17924_v23, 16  ;;  %v8899_v42 = vor.u32 %v8897_v60, %v8895_v7 }
 0x7f8   : > { %v10252_v0 = vld [vmem:[#allocation4 + $0x70] sm:$0xff]  ;;  %14036 = vmatmul.msk.bf16.gmra.mxu3 %vm227_vm2, %v14666_v20  ;;  %v9214_v48 = vadd.f32 %v9166_v38, %v9071_v35 }
 0x7f9   : > { %v10300_v61 = vadd.f32 %v10252_v0, %v10153_v17  ;;  %9831 = vst.msk [vmem:[#allocation4 + $0x78] sm:$0xff] %vm227_vm2, %v9783_v1  ;;  %v9736_v22 = vld [vmem:[#allocation4 + $0x80] sm:$0xff]  ;;  %v10962_v1 = vld [vmem:[#allocation4 + $0x30] sm:$0xff]  ;;  %v10712_v0 = vshrl.u32 %v17898_v41, 16  ;;  %v17942_v38 = vpop.f32.mrf.mxu0  ;;  %v8903_v15 = vrot.slane %v8901_v47, 1 }
 0x7fa   : > { %9262 = vst.msk [vmem:[#allocation4 + $0x88] sm:$0xff] %vm227_vm2, %v9214_v48  ;;  %v11010_v35 = vadd.f32 %v10962_v1, %v17726_v44 }
 0x7fb   : > { %10348 = vst.msk [vmem:[#allocation4 + $0x70] sm:$0xff] %vm227_vm2, %v10300_v61  ;;  %v10158_v51 = vpop.f32.mrf.mxu3  ;;  %13915 = vmatmul.msk.bf16.gmra.mxu2 %vm227_vm2, %v9501_v19  ;;  %v10716_v61 = vshll.u32 %v17934_v24, 16  ;;  %v10714_v13 = vor.u32 %v10712_v0, %v10710_v34  ;;  %v8904_v44 = vsel %vm1067_vm6, %v8899_v42, %v8903_v15 }
 0x7fc   : > { %11058 = vst.msk [vmem:[#allocation4 + $0x30] sm:$0xff] %vm227_vm2, %v11010_v35 }
 0x7fe   : > { %v9640_v4 = vpop.f32.mrf.mxu2 }
 0x7ff   : > { %v9784_v8 = vadd.f32 %v9736_v22, %v9640_v4  ;;  %v9074_v17 = vpop.f32.mrf.mxu1  ;;  %v10718_v4 = vrot.slane %v10716_v61, 1  ;;  %v14669_v61 = vld [vmem:[#allocation3 + $0xb0] sm:$0xff] }
 0x800   : > { %v10253_v53 = vld [vmem:[#allocation4 + $0x78] sm:$0xff]  ;;  %v9215_v27 = vadd.f32 %v9167_v32, %v9074_v17 }
 0x801   : > { %v10301_v16 = vadd.f32 %v10253_v53, %v10155_v52  ;;  %9832 = vst.msk [vmem:[#allocation4 + $0x80] sm:$0xff] %vm227_vm2, %v9784_v8  ;;  %v9737_v10 = vld [vmem:[#allocation4 + $0x88] sm:$0xff]  ;;  %v9168_v52 = vld [vmem:[#allocation4 + $0x98] sm:$0xff]  ;;  %v10719_v22 = vsel %vm1067_vm6, %v10714_v13, %v10718_v4 }
 0x802   : > { %9263 = vst.msk [vmem:[#allocation4 + $0x90] sm:$0xff] %vm227_vm2, %v9215_v27  ;;  %13795 = vmatmul.msk.bf16.gmra.mxu1 %vm227_vm2, %v8896_v57  ;;  %v10963_v53 = vld [vmem:[#allocation4 + $0x38] sm:$0xff]  ;;  %v9170_v27 = vld [vmem:[#allocation4 + $0xa8] sm:$0xff]  ;;  %v17960_v57 = vpop.f32.mrf.mxu0 }
 0x803   : > { %10349 = vst.msk [vmem:[#allocation4 + $0x78] sm:$0xff] %vm227_vm2, %v10301_v16  ;;  %v10160_v62 = vpop.f32.mrf.mxu3  ;;  %v11011_v17 = vadd.f32 %v10963_v53, %v17743_v28 }
 0x804   : > { %14159 = vmatmul.msk.bf16.gmra.mxu0 %vm227_vm2, %v10711_v54  ;;  %v9505_v54 = vsel %vm1786_vm7, %v9502_v37, %v9504_v21 }
 0x805   : > { %11059 = vst.msk [vmem:[#allocation4 + $0x38] sm:$0xff] %vm227_vm2, %v11011_v17 }
 0x806   : > { %v9642_v26 = vpop.f32.mrf.mxu2 }
 0x807   : > { %v9785_v56 = vadd.f32 %v9737_v10, %v9642_v26  ;;  %v9076_v39 = vpop.f32.mrf.mxu1  ;;  %v17970_v26 = vld [vmem:[#allocation3 + $0xc0] sm:$0xff]  ;;  %v8905_v10 = vshrl.u32 %v17924_v23, 16 }
 0x808   : > { %v10254_v36 = vld [vmem:[#allocation4 + $0x80] sm:$0xff]  ;;  %14037 = vmatmul.msk.bf16.gmra.mxu3 %vm227_vm2, %v14667_v59  ;;  %v9216_v12 = vadd.f32 %v9168_v52, %v9076_v39  ;;  %v11012_v39 = vadd.f32 %v10964_v31, %v17767_v29 }
 0x809   : > { %v10302_v30 = vadd.f32 %v10254_v36, %v10158_v51  ;;  %9833 = vst.msk [vmem:[#allocation4 + $0x88] sm:$0xff] %vm227_vm2, %v9785_v56  ;;  %v9738_v20 = vld [vmem:[#allocation4 + $0x90] sm:$0xff]  ;;  %v9169_v51 = vld [vmem:[#allocation4 + $0xa0] sm:$0xff]  ;;  %v8907_v18 = vor.u32 %v8905_v10, %v8903_v15  ;;  %v10720_v36 = vshrl.u32 %v17934_v24, 16 }
 0x80a   : > { %9264 = vst.msk [vmem:[#allocation4 + $0x98] sm:$0xff] %vm227_vm2, %v9216_v12  ;;  %v17984_v29 = vpop.f32.mrf.mxu0 }
 0x80b   : > { %10350 = vst.msk [vmem:[#allocation4 + $0x80] sm:$0xff] %vm227_vm2, %v10302_v30  ;;  %v10163_v25 = vpop.f32.mrf.mxu3  ;;  %13916 = vmatmul.msk.bf16.gmra.mxu2 %vm227_vm2, %v9503_v55  ;;  %v10724_v30 = vshll.u32 %v17970_v26, 16  ;;  %v10722_v60 = vor.u32 %v10720_v36, %v10718_v4  ;;  %v14670_v36 = vld [vmem:[#allocation3 + $0xb8] sm:$0xff] }
 0x80c   : > { %11060 = vst.msk [vmem:[#allocation4 + $0x40] sm:$0xff] %vm227_vm2, %v11012_v39 }
 0x80d   : > { %v10726_v42 = vrot.slane %v10724_v30, 1 }
 0x80e   : > { %v9645_v2 = vpop.f32.mrf.mxu2 }
 0x80f   : > { %v9786_v58 = vadd.f32 %v9738_v20, %v9645_v2  ;;  %v9079_v46 = vpop.f32.mrf.mxu1  ;;  %v17979_v2 = vld [vmem:[#allocation3 + $0xac] sm:$0xff]  ;;  %v10727_v1 = vsel %vm1067_vm6, %v10722_v60, %v10726_v42 }
 0x810   : > { %v10255_v48 = vld [vmem:[#allocation4 + $0x88] sm:$0xff]  ;;  %v9217_v6 = vadd.f32 %v9169_v51, %v9079_v46  ;;  %v9506_v35 = vrot.slane %v17979_v2, 1 }
 0x811   : > { %v10303_v19 = vadd.f32 %v10255_v48, %v10160_v62  ;;  %9834 = vst.msk [vmem:[#allocation4 + $0x90] sm:$0xff] %vm227_vm2, %v9786_v58  ;;  %v9739_v5 = vld [vmem:[#allocation4 + $0x98] sm:$0xff]  ;;  %v17958_v62 = vld [vmem:[#allocation3 + $0xac] sm:$0xff] }
 0x812   : > { %9265 = vst.msk [vmem:[#allocation4 + $0xa0] sm:$0xff] %vm227_vm2, %v9217_v6  ;;  %13796 = vmatmul.msk.bf16.gmra.mxu1 %vm227_vm2, %v8904_v44  ;;  %v8909_v59 = vshll.u32 %v17958_v62, 16  ;;  %v10965_v48 = vld [vmem:[#allocation4 + $0x48] sm:$0xff]  ;;  %v9172_v6 = vld [vmem:[#allocation4 + $0xb8] sm:$0xff]  ;;  %v18010_v53 = vpop.f32.mrf.mxu0 }
 0x813   : > { %10351 = vst.msk [vmem:[#allocation4 + $0x88] sm:$0xff] %vm227_vm2, %v10303_v19  ;;  %v10165_v41 = vpop.f32.mrf.mxu3  ;;  %v11013_v46 = vadd.f32 %v10965_v48, %v17785_v45  ;;  %v17996_v44 = vld [vmem:[#allocation3 + $0xc8] sm:$0xff] }
 0x814   : > { %14160 = vmatmul.msk.bf16.gmra.mxu0 %vm227_vm2, %v10719_v22  ;;  %v8911_v23 = vrot.slane %v8909_v59, 1  ;;  %v9507_v22 = vsel %vm1786_vm7, %v9504_v21, %v9506_v35  ;;  %v10966_v21 = vld [vmem:[#allocation4 + $0x50] sm:$0xff] }
 0x815   : > { %11061 = vst.msk [vmem:[#allocation4 + $0x48] sm:$0xff] %vm227_vm2, %v11013_v46 }
 0x816   : > { %v9647_v8 = vpop.f32.mrf.mxu2  ;;  %v8912_v20 = vsel %vm1067_vm6, %v8907_v18, %v8911_v23 }
 0x817   : > { %v9787_v16 = vadd.f32 %v9739_v5, %v9647_v8  ;;  %v9081_v14 = vpop.f32.mrf.mxu1  ;;  %v8913_v8 = vshrl.u32 %v17958_v62, 16 }
 0x818   : > { %v10256_v32 = vld [vmem:[#allocation4 + $0x90] sm:$0xff]  ;;  %14038 = vmatmul.msk.bf16.gmra.mxu3 %vm227_vm2, %v14668_v50  ;;  %v9218_v34 = vadd.f32 %v9170_v27, %v9081_v14  ;;  %v10732_v50 = vshll.u32 %v17996_v44, 16 }
 0x819   : > { %v10304_v7 = vadd.f32 %v10256_v32, %v10163_v25  ;;  %9835 = vst.msk [vmem:[#allocation4 + $0x98] sm:$0xff] %vm227_vm2, %v9787_v16  ;;  %v9740_v56 = vld [vmem:[#allocation4 + $0xa0] sm:$0xff]  ;;  %v9171_v25 = vld [vmem:[#allocation4 + $0xb0] sm:$0xff]  ;;  %v8915_v32 = vor.u32 %v8913_v8, %v8911_v23 }
 0x81a   : > { %9266 = vst.msk [vmem:[#allocation4 + $0xa8] sm:$0xff] %vm227_vm2, %v9218_v34  ;;  %v10734_v10 = vrot.slane %v10732_v50, 1  ;;  %v18051_v50 = vld [vmem:[#allocation3 + $0xbc] sm:$0xff] }
 0x81b   : > { %10352 = vst.msk [vmem:[#allocation4 + $0x90] sm:$0xff] %vm227_vm2, %v10304_v7  ;;  %v10168_v28 = vpop.f32.mrf.mxu3  ;;  %13917 = vmatmul.msk.bf16.gmra.mxu2 %vm227_vm2, %v9505_v54  ;;  %v11014_v7 = vadd.f32 %v10966_v21, %v17809_v11  ;;  %v9173_v54 = vld [vmem:[#allocation4 + $0xc0] sm:$0xff] }
 0x81d   : > { %11062 = vst.msk [vmem:[#allocation4 + $0x50] sm:$0xff] %vm227_vm2, %v11014_v7 }
 0x81e   : > { %v9650_v63 = vpop.f32.mrf.mxu2 }
 0x81f   : > { %v9788_v37 = vadd.f32 %v9740_v56, %v9650_v63  ;;  %v9084_v55 = vpop.f32.mrf.mxu1  ;;  %v18015_v63 = vld [vmem:[#allocation3 + $0xb4] sm:$0xff] }
 0x820   : > { %v10257_v52 = vld [vmem:[#allocation4 + $0x98] sm:$0xff]  ;;  %v9219_v47 = vadd.f32 %v9171_v25, %v9084_v55  ;;  %v9508_v30 = vrot.slane %v18015_v63, 1 }
 0x821   : > { %v10305_v12 = vadd.f32 %v10257_v52, %v10165_v41  ;;  %9836 = vst.msk [vmem:[#allocation4 + $0xa0] sm:$0xff] %vm227_vm2, %v9788_v37  ;;  %v9741_v0 = vld [vmem:[#allocation4 + $0xa8] sm:$0xff]  ;;  %v17994_v41 = vld [vmem:[#allocation3 + $0xb4] sm:$0xff] }
 0x822   : > { %9267 = vst.msk [vmem:[#allocation4 + $0xb0] sm:$0xff] %vm227_vm2, %v9219_v47  ;;  %13797 = vmatmul.msk.bf16.gmra.mxu1 %vm227_vm2, %v8912_v20  ;;  %v8917_v5 = vshll.u32 %v17994_v41, 16  ;;  %v10967_v52 = vld [vmem:[#allocation4 + $0x58] sm:$0xff]  ;;  %v9174_v47 = vld [vmem:[#allocation4 + $0xc8] sm:$0xff] }
 0x823   : > { %10353 = vst.msk [vmem:[#allocation4 + $0x98] sm:$0xff] %vm227_vm2, %v10305_v12  ;;  %v10170_v24 = vpop.f32.mrf.mxu3  ;;  %v18025_v12 = vpop.f32.mrf.mxu0  ;;  %v11015_v25 = vadd.f32 %v10967_v52, %v17835_v9  ;;  %v18040_v9 = vld [vmem:[#allocation3 + $0xd0] sm:$0xff] }
 0x824   : > { %14161 = vmatmul.msk.bf16.gmra.mxu0 %vm227_vm2, %v10727_v1  ;;  %v8919_v62 = vrot.slane %v8917_v5, 1  ;;  %v10740_v46 = vshll.u32 %v18040_v9, 16 }
 0x825   : > { %11063 = vst.msk [vmem:[#allocation4 + $0x58] sm:$0xff] %vm227_vm2, %v11015_v25 }
 0x826   : > { %v9652_v58 = vpop.f32.mrf.mxu2  ;;  %v8920_v11 = vsel %vm1067_vm6, %v8915_v32, %v8919_v62 }
 0x827   : > { %v9789_v19 = vadd.f32 %v9741_v0, %v9652_v58  ;;  %v9086_v13 = vpop.f32.mrf.mxu1  ;;  %v8921_v58 = vshrl.u32 %v17994_v41, 16 }
 0x828   : > { %v10258_v51 = vld [vmem:[#allocation4 + $0xa0] sm:$0xff]  ;;  %14039 = vmatmul.msk.bf16.gmra.mxu3 %vm227_vm2, %v14669_v61  ;;  %v9220_v4 = vadd.f32 %v9172_v6, %v9086_v13 }
 0x829   : > { %v10306_v15 = vadd.f32 %v10258_v51, %v10168_v28  ;;  %9837 = vst.msk [vmem:[#allocation4 + $0xa8] sm:$0xff] %vm227_vm2, %v9789_v19  ;;  %v9742_v16 = vld [vmem:[#allocation4 + $0xb0] sm:$0xff]  ;;  %v10728_v28 = vshrl.u32 %v17970_v26, 16  ;;  %v8923_v19 = vor.u32 %v8921_v58, %v8919_v62  ;;  %v10968_v51 = vld [vmem:[#allocation4 + $0x60] sm:$0xff] }
 0x82a   : > { %9268 = vst.msk [vmem:[#allocation4 + $0xb8] sm:$0xff] %vm227_vm2, %v9220_v4  ;;  %v11016_v13 = vadd.f32 %v10968_v51, %v17851_v40  ;;  %v18062_v62 = vld [vmem:[#allocation3 + $0xc4] sm:$0xff] }
 0x82b   : > { %10354 = vst.msk [vmem:[#allocation4 + $0xa0] sm:$0xff] %vm227_vm2, %v10306_v15  ;;  %v10173_v45 = vpop.f32.mrf.mxu3  ;;  %13918 = vmatmul.msk.bf16.gmra.mxu2 %vm227_vm2, %v9507_v22  ;;  %v10730_v18 = vor.u32 %v10728_v28, %v10726_v42  ;;  %v9509_v42 = vsel %vm1786_vm7, %v9506_v35, %v9508_v30  ;;  %v10736_v35 = vshrl.u32 %v17996_v44, 16  ;;  %v9175_v22 = vld [vmem:[#allocation4 + $0xd0] sm:$0xff]  ;;  %v18049_v8 = vpop.f32.mrf.mxu0  ;;  %v10969_v28 = vld [vmem:[#allocation4 + $0x68] sm:$0xff] }
 0x82c   : > { %11064 = vst.msk [vmem:[#allocation4 + $0x60] sm:$0xff] %vm227_vm2, %v11016_v13 }
 0x82d   : > { %v10735_v31 = vsel %vm1067_vm6, %v10730_v18, %v10734_v10  ;;  %v11017_v18 = vadd.f32 %v10969_v28, %v17874_v43 }
 0x82e   : > { %v9655_v3 = vpop.f32.mrf.mxu2 }
 0x82f   : > { %v9790_v17 = vadd.f32 %v9742_v16, %v9655_v3  ;;  %v9089_v34 = vpop.f32.mrf.mxu1  ;;  %v10430_v3 = vld [vmem:[#allocation3 + $0xd8] sm:$0x1]  ;;  %v10742_v16 = vrot.slane %v10740_v46, 1  ;;  %11065 = vst.msk [vmem:[#allocation4 + $0x68] sm:$0xff] %vm227_vm2, %v11017_v18 }
 0x830   : > { %v10259_v14 = vld [vmem:[#allocation4 + $0xa8] sm:$0xff]  ;;  %v9221_v59 = vadd.f32 %v9173_v54, %v9089_v34 }
 0x831   : > { %v10307_v27 = vadd.f32 %v10259_v14, %v10170_v24  ;;  %9838 = vst.msk [vmem:[#allocation4 + $0xb0] sm:$0xff] %vm227_vm2, %v9790_v17  ;;  %v9743_v26 = vld [vmem:[#allocation4 + $0xb8] sm:$0xff]  ;;  %v10530_v17 = vunpack.c.l.b16 %v10430_v3  ;;  %v14671_v14 = vld [vmem:[#allocation3 + $0xc0] sm:$0xff] }
 0x832   : > { %9269 = vst.msk [vmem:[#allocation4 + $0xc0] sm:$0xff] %vm227_vm2, %v9221_v59  ;;  %13798 = vmatmul.msk.bf16.gmra.mxu1 %vm227_vm2, %v8920_v11  ;;  %v18030_v24 = vld [vmem:[#allocation3 + $0xbc] sm:$0xff] }
 0x833   : > { %10355 = vst.msk [vmem:[#allocation4 + $0xa8] sm:$0xff] %vm227_vm2, %v10307_v27  ;;  %v10175_v56 = vpop.f32.mrf.mxu3  ;;  %v8925_v0 = vshll.u32 %v18030_v24, 16  ;;  %v9510_v27 = vrot.slane %v18051_v50, 1  ;;  %v10555_v11 = vpack.c.b16 %v10530_v17, %v10530_v17  ;;  %v8929_v43 = vshrl.u32 %v18030_v24, 16 }
 0x834   : > { %14162 = vmatmul.msk.bf16.gmra.mxu0 %vm227_vm2, %v10735_v31  ;;  %v8937_v50 = vshrl.u32 %v18062_v62, 16 }
 0x835   : > { %v8927_v41 = vrot.slane %v8925_v0, 1  ;;  %v10748_v52 = vshll.u32 %v10555_v11, 16  ;;  %v9177_v0 = vld [vmem:[#allocation4 + $0xe0] sm:$0xff]  ;;  %v9179_v11 = vld [vmem:[#allocation4 + $0xf0] sm:$0xff] }
 0x836   : > { %v9657_v37 = vpop.f32.mrf.mxu2 }
 0x837   : > { %v9791_v39 = vadd.f32 %v9743_v26, %v9657_v37  ;;  %v9091_v60 = vpop.f32.mrf.mxu1  ;;  %v8928_v40 = vsel %vm1067_vm6, %v8923_v19, %v8927_v41  ;;  %v9511_v37 = vsel %vm1786_vm7, %v9508_v30, %v9510_v27  ;;  %v8931_v30 = vor.u32 %v8929_v43, %v8927_v41  ;;  %v18082_v19 = vld [vmem:[#allocation3 + $0xc4] sm:$0xff] }
 0x838   : > { %v10260_v55 = vld [vmem:[#allocation4 + $0xb0] sm:$0xff]  ;;  %14040 = vmatmul.msk.bf16.gmra.mxu3 %vm227_vm2, %v14670_v36  ;;  %v9222_v20 = vadd.f32 %v9174_v47, %v9091_v60  ;;  %v18073_v36 = vpop.f32.mrf.mxu0  ;;  %v10750_v24 = vrot.slane %v10748_v52, 1 }
 0x839   : > { %v10308_v23 = vadd.f32 %v10260_v55, %v10173_v45  ;;  %9839 = vst.msk [vmem:[#allocation4 + $0xb8] sm:$0xff] %vm227_vm2, %v9791_v39  ;;  %v9744_v48 = vld [vmem:[#allocation4 + $0xc0] sm:$0xff]  ;;  %v10738_v45 = vor.u32 %v10736_v35, %v10734_v10  ;;  %v8933_v39 = vshll.u32 %v18062_v62, 16 }
 0x83a   : > { %9270 = vst.msk [vmem:[#allocation4 + $0xc8] sm:$0xff] %vm227_vm2, %v9222_v20  ;;  %v8623_v20 = vld [vmem:[#allocation3 + $0xcc] sm:$0x1] }
 0x83b   : > { %10356 = vst.msk [vmem:[#allocation4 + $0xb0] sm:$0xff] %vm227_vm2, %v10308_v23  ;;  %v10178_v1 = vpop.f32.mrf.mxu3  ;;  %13919 = vmatmul.msk.bf16.gmra.mxu2 %vm227_vm2, %v9509_v42  ;;  %v10743_v21 = vsel %vm1067_vm6, %v10738_v45, %v10742_v16  ;;  %v10744_v23 = vshrl.u32 %v18040_v9, 16  ;;  %v8935_v47 = vrot.slane %v8933_v39, 1  ;;  %v10970_v42 = vld [vmem:[#allocation4 + $0x70] sm:$0xff]  ;;  %v8723_v46 = vunpack.c.l.b16 %v8623_v20 }
 0x83d   : > { %v8936_v9 = vsel %vm1067_vm6, %v8931_v30, %v8935_v47  ;;  %v8748_v41 = vpack.c.b16 %v8723_v46, %v8723_v46  ;;  %v8939_v18 = vor.u32 %v8937_v50, %v8935_v47 }
 0x83e   : > { %v9660_v61 = vpop.f32.mrf.mxu2 }
 0x83f   : > { %v9792_v2 = vadd.f32 %v9744_v48, %v9660_v61  ;;  %v9094_v4 = vpop.f32.mrf.mxu1  ;;  %v10746_v61 = vor.u32 %v10744_v23, %v10742_v16  ;;  %v11018_v48 = vadd.f32 %v10970_v42, %v17900_v49  ;;  %v9180_v42 = vld [vmem:[#allocation4 + $0xf8] sm:$0xff] }
 0x840   : > { %v10261_v15 = vld [vmem:[#allocation4 + $0xb8] sm:$0xff]  ;;  %v9223_v5 = vadd.f32 %v9175_v22, %v9094_v4  ;;  %v9512_v4 = vrot.slane %v18082_v19, 1 }
 0x841   : > { %v10309_v6 = vadd.f32 %v10261_v15, %v10175_v56  ;;  %9840 = vst.msk [vmem:[#allocation4 + $0xc0] sm:$0xff] %vm227_vm2, %v9792_v2  ;;  %v9745_v7 = vld [vmem:[#allocation4 + $0xc8] sm:$0xff]  ;;  %v9176_v56 = vld [vmem:[#allocation4 + $0xd8] sm:$0xff]  ;;  %v10751_v51 = vsel %vm1067_vm6, %v10746_v61, %v10750_v24  ;;  %v18090_v15 = vpop.f32.mrf.mxu0 }
 0x842   : > { %9271 = vst.msk [vmem:[#allocation4 + $0xd0] sm:$0xff] %vm227_vm2, %v9223_v5  ;;  %13799 = vmatmul.msk.bf16.gmra.mxu1 %vm227_vm2, %v8928_v40  ;;  %v10971_v40 = vld [vmem:[#allocation4 + $0x78] sm:$0xff] }
 0x843   : > { %10357 = vst.msk [vmem:[#allocation4 + $0xb8] sm:$0xff] %vm227_vm2, %v10309_v6  ;;  %v10180_v44 = vpop.f32.mrf.mxu3  ;;  %v14672_v6 = vld [vmem:[#allocation3 + $0xc8] sm:$0xff]  ;;  %v11019_v17 = vadd.f32 %v10971_v40, %v17917_v33 }
 0x844   : > { %14163 = vmatmul.msk.bf16.gmra.mxu0 %vm227_vm2, %v10743_v21  ;;  %11066 = vst.msk [vmem:[#allocation4 + $0x70] sm:$0xff] %vm227_vm2, %v11018_v48  ;;  %v9513_v21 = vsel %vm1786_vm7, %v9510_v27, %v9512_v4  ;;  %v14699_v48 = vld [vmem:[#allocation3 + $0x20] sm:$0xff] }
 0x845   : > { %11067 = vst.msk [vmem:[#allocation4 + $0x78] sm:$0xff] %vm227_vm2, %v11019_v17 }
 0x846   : > { %v9662_v32 = vpop.f32.mrf.mxu2 }
 0x847   : > { %v9793_v34 = vadd.f32 %v9745_v7, %v9662_v32  ;;  %v9096_v59 = vpop.f32.mrf.mxu1  ;;  %v8941_v7 = vshll.u32 %v8748_v41, 16 }
 0x848   : > { %v10262_v54 = vld [vmem:[#allocation4 + $0xc0] sm:$0xff]  ;;  %14041 = vmatmul.msk.bf16.gmra.mxu3 %vm227_vm2, %v14671_v14  ;;  %v9224_v31 = vadd.f32 %v9176_v56, %v9096_v59  ;;  %v9341_v14 = vld [vmem:[#allocation3 + $0xcc] sm:$0x1] }
 0x849   : > { %v10310_v10 = vadd.f32 %v10262_v54, %v10178_v1  ;;  %9841 = vst.msk [vmem:[#allocation4 + $0xc8] sm:$0xff] %vm227_vm2, %v9793_v34  ;;  %v9746_v63 = vld [vmem:[#allocation4 + $0xd0] sm:$0xff]  ;;  %v9441_v28 = vunpack.c.l.b16 %v9341_v14  ;;  %v8943_v27 = vrot.slane %v8941_v7, 1  ;;  %v10975_v14 = vld [vmem:[#allocation4 + $0x98] sm:$0xff] }
 0x84a   : > { %9272 = vst.msk [vmem:[#allocation4 + $0xd8] sm:$0xff] %vm227_vm2, %v9224_v31  ;;  %v10972_v31 = vld [vmem:[#allocation4 + $0x80] sm:$0xff] }
 0x84b   : > { %10358 = vst.msk [vmem:[#allocation4 + $0xc0] sm:$0xff] %vm227_vm2, %v10310_v10  ;;  %v10183_v26 = vpop.f32.mrf.mxu3  ;;  %13920 = vmatmul.msk.bf16.gmra.mxu2 %vm227_vm2, %v9511_v37  ;;  %v11020_v39 = vadd.f32 %v10972_v31, %v17942_v38  ;;  %v8944_v52 = vsel %vm1067_vm6, %v8939_v18, %v8943_v27  ;;  %v14168_v38 = vld [vmem:[#allocation3 + $0x18] sm:$0xe]  ;;  %v9183_v31 = vld [vmem:[#allocation4 + $0x110] sm:$0xff] }
 0x84d   : > { %11068 = vst.msk [vmem:[#allocation4 + $0x80] sm:$0xff] %vm227_vm2, %v11020_v39 }
 0x84e   : > { %v9665_v55 = vpop.f32.mrf.mxu2 }
 0x84f   : > { %v9794_v25 = vadd.f32 %v9746_v63, %v9665_v55  ;;  %v9099_v58 = vpop.f32.mrf.mxu1  ;;  %v14673_v63 = vld [vmem:[#allocation3 + $0xd0] sm:$0xff] }
 0x850   : > { %v10263_v60 = vld [vmem:[#allocation4 + $0xc8] sm:$0xff]  ;;  %v9225_v2 = vadd.f32 %v9177_v0, %v9099_v58 }
 0x851   : > { %v10311_v1 = vadd.f32 %v10263_v60, %v10180_v44  ;;  %9842 = vst.msk [vmem:[#allocation4 + $0xd0] sm:$0xff] %vm227_vm2, %v9794_v25  ;;  %v9747_v13 = vld [vmem:[#allocation4 + $0xd8] sm:$0xff]  ;;  %v9178_v44 = vld [vmem:[#allocation4 + $0xe8] sm:$0xff] }
 0x852   : > { %9273 = vst.msk [vmem:[#allocation4 + $0xe0] sm:$0xff] %vm227_vm2, %v9225_v2  ;;  %13800 = vmatmul.msk.bf16.gmra.mxu1 %vm227_vm2, %v8936_v9  ;;  %v14698_v60 = vld [vmem:[#allocation3 + $0x18] sm:$0xf0] }
 0x853   : > { %10359 = vst.msk [vmem:[#allocation4 + $0xc8] sm:$0xff] %vm227_vm2, %v10311_v1  ;;  %v10185_v35 = vpop.f32.mrf.mxu3  ;;  %v10973_v1 = vld [vmem:[#allocation4 + $0x88] sm:$0xff]  ;;  %v14169_v2 = vor.u32 %v14698_v60, %v14168_v38  ;;  %v9184_v38 = vld [vmem:[#allocation4 + $0x118] sm:$0xff] }
 0x854   : > { %14164 = vmatmul.msk.bf16.gmra.mxu0 %vm227_vm2, %v10751_v51  ;;  %v11021_v61 = vadd.f32 %v10973_v1, %v17960_v57  ;;  %v11275_v51 = vrot.slane %v14699_v48, 1 }
 0x855   : > { %v11274_v46 = vrot.slane %v14169_v2, 1 }
 0x856   : > { %v9667_v49 = vpop.f32.mrf.mxu2  ;;  %11069 = vst.msk [vmem:[#allocation4 + $0x88] sm:$0xff] %vm227_vm2, %v11021_v61 }
 0x857   : > { %v9795_v22 = vadd.f32 %v9747_v13, %v9667_v49  ;;  %v9101_v3 = vpop.f32.mrf.mxu1 }
 0x858   : > { %v10264_v45 = vld [vmem:[#allocation4 + $0xd0] sm:$0xff]  ;;  %14042 = vmatmul.msk.bf16.gmra.mxu3 %vm227_vm2, %v14672_v6  ;;  %v9226_v16 = vadd.f32 %v9178_v44, %v9101_v3  ;;  %v9181_v6 = vld [vmem:[#allocation4 + $0x100] sm:$0xff]  ;;  %v18126_v3 = vpop.f32.mrf.mxu0 }
 0x859   : > { %v10312_v5 = vadd.f32 %v10264_v45, %v10183_v26  ;;  %9843 = vst.msk [vmem:[#allocation4 + $0xd8] sm:$0xff] %vm227_vm2, %v9795_v22  ;;  %v9748_v54 = vld [vmem:[#allocation4 + $0xe0] sm:$0xff]  ;;  %v9466_v26 = vpack.c.b16 %v9441_v28, %v9441_v28  ;;  %v11023_v28 = vadd.f32 %v10975_v14, %v18010_v53 }
 0x85a   : > { %9274 = vst.msk [vmem:[#allocation4 + $0xe8] sm:$0xff] %vm227_vm2, %v9226_v16 }
 0x85b   : > { %10360 = vst.msk [vmem:[#allocation4 + $0xd0] sm:$0xff] %vm227_vm2, %v10312_v5  ;;  %v10188_v32 = vpop.f32.mrf.mxu3  ;;  %13921 = vmatmul.msk.bf16.gmra.mxu2 %vm227_vm2, %v9513_v21  ;;  %v9514_v25 = vrot.slane %v9466_v26, 1  ;;  %v11276_v5 = vsel %vm1786_vm7, %v11274_v46, %v11275_v51  ;;  %v10976_v26 = vld [vmem:[#allocation4 + $0xa0] sm:$0xff] }
 0x85c   : > { %11071 = vst.msk [vmem:[#allocation4 + $0x98] sm:$0xff] %vm227_vm2, %v11023_v28  ;;  %v9187_v28 = vld [vmem:[#allocation4 + $0x130] sm:$0xff] }
 0x85d   : > { %v9515_v0 = vsel %vm1786_vm7, %v9512_v4, %v9514_v25  ;;  %v10974_v4 = vld [vmem:[#allocation4 + $0x90] sm:$0xff] }
 0x85e   : > { %v9670_v34 = vpop.f32.mrf.mxu2  ;;  %v11022_v41 = vadd.f32 %v10974_v4, %v17984_v29 }
 0x85f   : > { %v9796_v10 = vadd.f32 %v9748_v54, %v9670_v34  ;;  %v9104_v56 = vpop.f32.mrf.mxu1  ;;  %v14700_v54 = vld [vmem:[#allocation3 + $0x28] sm:$0xff] }
 0x860   : > { %v10265_v59 = vld [vmem:[#allocation4 + $0xd8] sm:$0xff]  ;;  %v9227_v37 = vadd.f32 %v9179_v11, %v9104_v56  ;;  %11070 = vst.msk [vmem:[#allocation4 + $0x90] sm:$0xff] %vm227_vm2, %v11022_v41  ;;  %v18134_v27 = vpop.f32.mrf.mxu0 }
 0x861   : > { %v10313_v33 = vadd.f32 %v10265_v59, %v10185_v35  ;;  %9844 = vst.msk [vmem:[#allocation4 + $0xe0] sm:$0xff] %vm227_vm2, %v9796_v10  ;;  %v9749_v55 = vld [vmem:[#allocation4 + $0xe8] sm:$0xff] }
 0x862   : > { %9275 = vst.msk [vmem:[#allocation4 + $0xf0] sm:$0xff] %vm227_vm2, %v9227_v37  ;;  %13801 = vmatmul.msk.bf16.gmra.mxu1 %vm227_vm2, %v8944_v52 }
 0x863   : > { %10361 = vst.msk [vmem:[#allocation4 + $0xd8] sm:$0xff] %vm227_vm2, %v10313_v33  ;;  %v10190_v43 = vpop.f32.mrf.mxu3  ;;  %v11277_v33 = vrot.slane %v14700_v54, 1 }
 0x865   : > { %v11278_v39 = vsel %vm1786_vm7, %v11275_v51, %v11277_v33 }
 0x866   : > { %v9672_v62 = vpop.f32.mrf.mxu2 }
 0x867   : > { %v9797_v30 = vadd.f32 %v9749_v55, %v9672_v62  ;;  %v9106_v20 = vpop.f32.mrf.mxu1 }
 0x868   : > { %v10266_v23 = vld [vmem:[#allocation4 + $0xe0] sm:$0xff]  ;;  %14043 = vmatmul.msk.bf16.gmra.mxu3 %vm227_vm2, %v14673_v63  ;;  %v9228_v58 = vadd.f32 %v9180_v42, %v9106_v20  ;;  %v18143_v25 = vpop.f32.mrf.mxu0  ;;  %v14701_v20 = vld [vmem:[#allocation3 + $0x30] sm:$0xff] }
 0x869   : > { %v10314_v47 = vadd.f32 %v10266_v23, %v10188_v32  ;;  %9845 = vst.msk [vmem:[#allocation4 + $0xe8] sm:$0xff] %vm227_vm2, %v9797_v30  ;;  %v9750_v35 = vld [vmem:[#allocation4 + $0xf0] sm:$0xff]  ;;  %v9182_v32 = vld [vmem:[#allocation4 + $0x108] sm:$0xff]  ;;  %v11279_v61 = vrot.slane %v14701_v20, 1 }
 0x86a   : > { %9276 = vst.msk [vmem:[#allocation4 + $0xf8] sm:$0xff] %vm227_vm2, %v9228_v58 }
 0x86b   : > { %10362 = vst.msk [vmem:[#allocation4 + $0xe0] sm:$0xff] %vm227_vm2, %v10314_v47  ;;  %v10193_v24 = vpop.f32.mrf.mxu3  ;;  %13922 = vmatmul.msk.bf16.gmra.mxu2 %vm227_vm2, %v9515_v0  ;;  %v10977_v47 = vld [vmem:[#allocation4 + $0xa8] sm:$0xff]  ;;  %v11280_v51 = vsel %vm1786_vm7, %v11277_v33, %v11279_v61 }
 0x86c   : > { %v11025_v42 = vadd.f32 %v10977_v47, %v18049_v8 }
 0x86e   : > { %v9675_v19 = vpop.f32.mrf.mxu2  ;;  %11073 = vst.msk [vmem:[#allocation4 + $0xa8] sm:$0xff] %vm227_vm2, %v11025_v42  ;;  %v9189_v42 = vld [vmem:[#allocation4 + $0x140] sm:$0xff] }
 0x86f   : > { %v9798_v9 = vadd.f32 %v9750_v35, %v9675_v19  ;;  %v9109_v57 = vpop.f32.mrf.mxu1  ;;  %v9185_v19 = vld [vmem:[#allocation4 + $0x120] sm:$0xff] }
 0x870   : > { %v10267_v49 = vld [vmem:[#allocation4 + $0xe8] sm:$0xff]  ;;  %v9229_v22 = vadd.f32 %v9181_v6, %v9109_v57  ;;  %v18151_v46 = vpop.f32.mrf.mxu0 }
 0x871   : > { %v10315_v13 = vadd.f32 %v10267_v49, %v10190_v43  ;;  %9846 = vst.msk [vmem:[#allocation4 + $0xf0] sm:$0xff] %vm227_vm2, %v9798_v9  ;;  %v9751_v40 = vld [vmem:[#allocation4 + $0xf8] sm:$0xff]  ;;  %v11024_v43 = vadd.f32 %v10976_v26, %v18025_v12  ;;  %v10978_v9 = vld [vmem:[#allocation4 + $0xb0] sm:$0xff] }
 0x872   : > { %9277 = vst.msk [vmem:[#allocation4 + $0x100] sm:$0xff] %vm227_vm2, %v9229_v22  ;;  %14262 = vmatmul.msk.bf16.vlgmr.msra.gmra.mxu1 %vm227_vm2, %v11276_v5  ;;  %v11026_v49 = vadd.f32 %v10978_v9, %v18073_v36 }
 0x873   : > { %10363 = vst.msk [vmem:[#allocation4 + $0xe8] sm:$0xff] %vm227_vm2, %v10315_v13  ;;  %v10195_v45 = vpop.f32.mrf.mxu3 }
 0x874   : > { %11072 = vst.msk [vmem:[#allocation4 + $0xa0] sm:$0xff] %vm227_vm2, %v11024_v43 }
 0x875   : > { %11074 = vst.msk [vmem:[#allocation4 + $0xb0] sm:$0xff] %vm227_vm2, %v11026_v49 }
 0x876   : > { %v9677_v44 = vpop.f32.mrf.mxu2 }
 0x877   : > { %v9799_v16 = vadd.f32 %v9751_v40, %v9677_v44  ;;  %v9111_v29 = vpop.f32.mrf.mxu1  ;;  %v10979_v44 = vld [vmem:[#allocation4 + $0xb8] sm:$0xff] }
 0x878   : > { %v10268_v21 = vld [vmem:[#allocation4 + $0xf0] sm:$0xff]  ;;  %v9230_v7 = vadd.f32 %v9182_v32, %v9111_v29  ;;  %v14702_v40 = vld [vmem:[#allocation3 + $0x38] sm:$0xff] }
 0x879   : > { %v10316_v17 = vadd.f32 %v10268_v21, %v10193_v24  ;;  %9847 = vst.msk [vmem:[#allocation4 + $0xf8] sm:$0xff] %vm227_vm2, %v9799_v16  ;;  %v9752_v50 = vld [vmem:[#allocation4 + $0x100] sm:$0xff]  ;;  %v11027_v16 = vadd.f32 %v10979_v44, %v18090_v15  ;;  %v18163_v21 = vpop.f32.mrf.mxu0 }
 0x87a   : > { %9278 = vst.msk [vmem:[#allocation4 + $0x108] sm:$0xff] %vm227_vm2, %v9230_v7  ;;  %v11281_v7 = vrot.slane %v14702_v40, 1  ;;  %v9191_v40 = vld [vmem:[#allocation4 + $0x150] sm:$0xff] }
 0x87b   : > { %10364 = vst.msk [vmem:[#allocation4 + $0xf0] sm:$0xff] %vm227_vm2, %v10316_v17  ;;  %v10198_v34 = vpop.f32.mrf.mxu3 }
 0x87c   : > { %11075 = vst.msk [vmem:[#allocation4 + $0xb8] sm:$0xff] %vm227_vm2, %v11027_v16 }
 0x87e   : > { %v9680_v10 = vpop.f32.mrf.mxu2 }
 0x87f   : > { %v9800_v59 = vadd.f32 %v9752_v50, %v9680_v10  ;;  %v9114_v18 = vpop.f32.mrf.mxu1  ;;  %v10980_v50 = vld [vmem:[#allocation4 + $0xc0] sm:$0xff] }
 0x880   : > { %v10269_v56 = vld [vmem:[#allocation4 + $0xf8] sm:$0xff]  ;;  %v9231_v37 = vadd.f32 %v9183_v31, %v9114_v18  ;;  %v11028_v33 = vadd.f32 %v10980_v50, %v18126_v3 }
 0x881   : > { %v10317_v11 = vadd.f32 %v10269_v56, %v10195_v45  ;;  %9848 = vst.msk [vmem:[#allocation4 + $0x100] sm:$0xff] %vm227_vm2, %v9800_v59  ;;  %v9753_v62 = vld [vmem:[#allocation4 + $0x108] sm:$0xff]  ;;  %v11282_v59 = vsel %vm1786_vm7, %v11279_v61, %v11281_v7  ;;  %v18173_v18 = vpop.f32.mrf.mxu0 }
 0x882   : > { %9279 = vst.msk [vmem:[#allocation4 + $0x110] sm:$0xff] %vm227_vm2, %v9231_v37  ;;  %14263 = vmatmul.msk.bf16.gmra.mxu1 %vm227_vm2, %v11278_v39  ;;  %v9186_v45 = vld [vmem:[#allocation4 + $0x128] sm:$0xff]  ;;  %v9188_v39 = vld [vmem:[#allocation4 + $0x138] sm:$0xff] }
 0x883   : > { %10365 = vst.msk [vmem:[#allocation4 + $0xf8] sm:$0xff] %vm227_vm2, %v10317_v11  ;;  %v10200_v53 = vpop.f32.mrf.mxu3 }
 0x884   : > { %11076 = vst.msk [vmem:[#allocation4 + $0xc0] sm:$0xff] %vm227_vm2, %v11028_v33  ;;  %v14705_v33 = vld [vmem:[#allocation3 + $0x50] sm:$0xff] }
 0x886   : > { %v9682_v52 = vpop.f32.mrf.mxu2 }
 0x887   : > { %v9801_v55 = vadd.f32 %v9753_v62, %v9682_v52  ;;  %v9116_v23 = vpop.f32.mrf.mxu1  ;;  %v14703_v52 = vld [vmem:[#allocation3 + $0x40] sm:$0xff]  ;;  %v10981_v62 = vld [vmem:[#allocation4 + $0xc8] sm:$0xff] }
 0x888   : > { %v10270_v63 = vld [vmem:[#allocation4 + $0x100] sm:$0xff]  ;;  %v9232_v60 = vadd.f32 %v9184_v38, %v9116_v23  ;;  %v11283_v38 = vrot.slane %v14703_v52, 1 }
 0x889   : > { %v10318_v30 = vadd.f32 %v10270_v63, %v10198_v34  ;;  %9849 = vst.msk [vmem:[#allocation4 + $0x108] sm:$0xff] %vm227_vm2, %v9801_v55  ;;  %v9754_v58 = vld [vmem:[#allocation4 + $0x110] sm:$0xff]  ;;  %v11029_v55 = vadd.f32 %v10981_v62, %v18134_v27  ;;  %v18180_v47 = vpop.f32.mrf.mxu0  ;;  %v9193_v62 = vld [vmem:[#allocation4 + $0x160] sm:$0xff] }
 0x88a   : > { %9280 = vst.msk [vmem:[#allocation4 + $0x118] sm:$0xff] %vm227_vm2, %v9232_v60  ;;  %v11284_v27 = vsel %vm1786_vm7, %v11281_v7, %v11283_v38 }
 0x88b   : > { %10366 = vst.msk [vmem:[#allocation4 + $0x100] sm:$0xff] %vm227_vm2, %v10318_v30  ;;  %v10203_v12 = vpop.f32.mrf.mxu3 }
 0x88c   : > { %11077 = vst.msk [vmem:[#allocation4 + $0xc8] sm:$0xff] %vm227_vm2, %v11029_v55 }
 0x88e   : > { %v9685_v1 = vpop.f32.mrf.mxu2 }
 0x88f   : > { %v9802_v0 = vadd.f32 %v9754_v58, %v9685_v1  ;;  %v9119_v2 = vpop.f32.mrf.mxu1 }
 0x890   : > { %v10271_v24 = vld [vmem:[#allocation4 + $0x108] sm:$0xff]  ;;  %v9233_v35 = vadd.f32 %v9185_v19, %v9119_v2 }
 0x891   : > { %v10319_v48 = vadd.f32 %v10271_v24, %v10200_v53  ;;  %9850 = vst.msk [vmem:[#allocation4 + $0x110] sm:$0xff] %vm227_vm2, %v9802_v0  ;;  %v9755_v57 = vld [vmem:[#allocation4 + $0x118] sm:$0xff]  ;;  %v10982_v0 = vld [vmem:[#allocation4 + $0xd0] sm:$0xff]  ;;  %v18190_v49 = vpop.f32.mrf.mxu0 }
 0x892   : > { %9281 = vst.msk [vmem:[#allocation4 + $0x120] sm:$0xff] %vm227_vm2, %v9233_v35  ;;  %14264 = vmatmul.msk.bf16.gmra.mxu1 %vm227_vm2, %v11280_v51  ;;  %v11030_v61 = vadd.f32 %v10982_v0, %v18143_v25 }
 0x893   : > { %10367 = vst.msk [vmem:[#allocation4 + $0x108] sm:$0xff] %vm227_vm2, %v10319_v48  ;;  %v10205_v8 = vpop.f32.mrf.mxu3 }
 0x894   : > { %11078 = vst.msk [vmem:[#allocation4 + $0xd0] sm:$0xff] %vm227_vm2, %v11030_v61  ;;  %v14706_v61 = vld [vmem:[#allocation3 + $0x58] sm:$0xff] }
 0x896   : > { %v9687_v13 = vpop.f32.mrf.mxu2 }
 0x897   : > { %v9803_v6 = vadd.f32 %v9755_v57, %v9687_v13  ;;  %v9121_v41 = vpop.f32.mrf.mxu1  ;;  %v14704_v57 = vld [vmem:[#allocation3 + $0x48] sm:$0xff] }
 0x898   : > { %v10272_v4 = vld [vmem:[#allocation4 + $0x110] sm:$0xff]  ;;  %v9234_v5 = vadd.f32 %v9186_v45, %v9121_v41  ;;  %v11285_v45 = vrot.slane %v14704_v57, 1 }
 0x899   : > { %v10320_v22 = vadd.f32 %v10272_v4, %v10203_v12  ;;  %9851 = vst.msk [vmem:[#allocation4 + $0x118] sm:$0xff] %vm227_vm2, %v9803_v6  ;;  %v9756_v29 = vld [vmem:[#allocation4 + $0x120] sm:$0xff]  ;;  %v10983_v6 = vld [vmem:[#allocation4 + $0xd8] sm:$0xff]  ;;  %v18202_v7 = vpop.f32.mrf.mxu0 }
 0x89a   : > { %9282 = vst.msk [vmem:[#allocation4 + $0x128] sm:$0xff] %vm227_vm2, %v9234_v5  ;;  %v11031_v25 = vadd.f32 %v10983_v6, %v18151_v46 }
 0x89b   : > { %10368 = vst.msk [vmem:[#allocation4 + $0x110] sm:$0xff] %vm227_vm2, %v10320_v22  ;;  %v10208_v36 = vpop.f32.mrf.mxu3 }
 0x89c   : > { %11079 = vst.msk [vmem:[#allocation4 + $0xd8] sm:$0xff] %vm227_vm2, %v11031_v25 }
 0x89e   : > { %v9690_v17 = vpop.f32.mrf.mxu2 }
 0x89f   : > { %v9804_v32 = vadd.f32 %v9756_v29, %v9690_v17  ;;  %v9124_v54 = vpop.f32.mrf.mxu1  ;;  %v11286_v17 = vsel %vm1786_vm7, %v11283_v38, %v11285_v45  ;;  %v10984_v29 = vld [vmem:[#allocation4 + $0xe0] sm:$0xff] }
 0x8a0   : > { %v10273_v14 = vld [vmem:[#allocation4 + $0x118] sm:$0xff]  ;;  %v9235_v10 = vadd.f32 %v9187_v28, %v9124_v54 }
 0x8a1   : > { %v10321_v34 = vadd.f32 %v10273_v14, %v10205_v8  ;;  %9852 = vst.msk [vmem:[#allocation4 + $0x120] sm:$0xff] %vm227_vm2, %v9804_v32  ;;  %v9757_v11 = vld [vmem:[#allocation4 + $0x128] sm:$0xff]  ;;  %v11032_v32 = vadd.f32 %v10984_v29, %v18163_v21  ;;  %v14707_v29 = vld [vmem:[#allocation3 + $0x60] sm:$0xff] }
 0x8a2   : > { %9283 = vst.msk [vmem:[#allocation4 + $0x130] sm:$0xff] %vm227_vm2, %v9235_v10  ;;  %14265 = vmatmul.msk.bf16.gmra.mxu1 %vm227_vm2, %v11282_v59  ;;  %v9190_v8 = vld [vmem:[#allocation4 + $0x148] sm:$0xff] }
 0x8a3   : > { %10369 = vst.msk [vmem:[#allocation4 + $0x118] sm:$0xff] %vm227_vm2, %v10321_v34  ;;  %v10210_v15 = vpop.f32.mrf.mxu3 }
 0x8a4   : > { %11080 = vst.msk [vmem:[#allocation4 + $0xe0] sm:$0xff] %vm227_vm2, %v11032_v32 }
 0x8a6   : > { %v9692_v56 = vpop.f32.mrf.mxu2 }
 0x8a7   : > { %v9805_v31 = vadd.f32 %v9757_v11, %v9692_v56  ;;  %v9126_v53 = vpop.f32.mrf.mxu1  ;;  %v10985_v56 = vld [vmem:[#allocation4 + $0xe8] sm:$0xff] }
 0x8a8   : > { %v10274_v37 = vld [vmem:[#allocation4 + $0x120] sm:$0xff]  ;;  %v9236_v43 = vadd.f32 %v9188_v39, %v9126_v53  ;;  %v11033_v21 = vadd.f32 %v10985_v56, %v18173_v18  ;;  %v11287_v39 = vrot.slane %v14705_v33, 1 }
 0x8a9   : > { %v10322_v26 = vadd.f32 %v10274_v37, %v10208_v36  ;;  %9853 = vst.msk [vmem:[#allocation4 + $0x128] sm:$0xff] %vm227_vm2, %v9805_v31  ;;  %v9758_v30 = vld [vmem:[#allocation4 + $0x130] sm:$0xff]  ;;  %v11527_v33 = vld [vmem:[#allocation4] sm:$0xff] }
 0x8aa   : > { %9284 = vst.msk [vmem:[#allocation4 + $0x138] sm:$0xff] %vm227_vm2, %v9236_v43  ;;  %v11288_v18 = vsel %vm1786_vm7, %v11285_v45, %v11287_v39 }
 0x8ab   : > { %10370 = vst.msk [vmem:[#allocation4 + $0x120] sm:$0xff] %vm227_vm2, %v10322_v26  ;;  %v10213_v3 = vpop.f32.mrf.mxu3  ;;  %v18210_v26 = vpop.f32.mrf.mxu0 }
 0x8ac   : > { %11081 = vst.msk [vmem:[#allocation4 + $0xe8] sm:$0xff] %vm227_vm2, %v11033_v21 }
 0x8ae   : > { %v9695_v63 = vpop.f32.mrf.mxu2 }
 0x8af   : > { %v9806_v23 = vadd.f32 %v9758_v30, %v9695_v63  ;;  %v9129_v20 = vpop.f32.mrf.mxu1  ;;  %v10986_v63 = vld [vmem:[#allocation4 + $0xf0] sm:$0xff] }
 0x8b0   : > { %v10275_v60 = vld [vmem:[#allocation4 + $0x128] sm:$0xff]  ;;  %v9237_v1 = vadd.f32 %v9189_v42, %v9129_v20  ;;  %v11034_v30 = vadd.f32 %v10986_v63, %v18180_v47 }
 0x8b1   : > { %v10323_v12 = vadd.f32 %v10275_v60, %v10210_v15  ;;  %9854 = vst.msk [vmem:[#allocation4 + $0x130] sm:$0xff] %vm227_vm2, %v9806_v23  ;;  %v9759_v48 = vld [vmem:[#allocation4 + $0x138] sm:$0xff]  ;;  %v14708_v63 = vld [vmem:[#allocation3 + $0x68] sm:$0xff] }
 0x8b2   : > { %9285 = vst.msk [vmem:[#allocation4 + $0x140] sm:$0xff] %vm227_vm2, %v9237_v1  ;;  %14266 = vmatmul.msk.bf16.gmra.mxu1 %vm227_vm2, %v11284_v27  ;;  %v9192_v15 = vld [vmem:[#allocation4 + $0x158] sm:$0xff]  ;;  %v9194_v27 = vld [vmem:[#allocation4 + $0x168] sm:$0xff] }
 0x8b3   : > { %10371 = vst.msk [vmem:[#allocation4 + $0x128] sm:$0xff] %vm227_vm2, %v10323_v12  ;;  %v10215_v58 = vpop.f32.mrf.mxu3  ;;  %v18219_v42 = vpop.f32.mrf.mxu0 }
 0x8b4   : > { %11082 = vst.msk [vmem:[#allocation4 + $0xf0] sm:$0xff] %vm227_vm2, %v11034_v30  ;;  %v10991_v30 = vld [vmem:[#allocation4 + $0x118] sm:$0xff] }
 0x8b6   : > { %v9697_v24 = vpop.f32.mrf.mxu2 }
 0x8b7   : > { %v9807_v2 = vadd.f32 %v9759_v48, %v9697_v24  ;;  %v9131_v9 = vpop.f32.mrf.mxu1  ;;  %v10987_v24 = vld [vmem:[#allocation4 + $0xf8] sm:$0xff] }
 0x8b8   : > { %v10276_v19 = vld [vmem:[#allocation4 + $0x130] sm:$0xff]  ;;  %v9238_v51 = vadd.f32 %v9190_v8, %v9131_v9  ;;  %v11035_v47 = vadd.f32 %v10987_v24, %v18190_v49  ;;  %v10988_v49 = vld [vmem:[#allocation4 + $0x100] sm:$0xff] }
 0x8b9   : > { %v10324_v35 = vadd.f32 %v10276_v19, %v10213_v3  ;;  %9855 = vst.msk [vmem:[#allocation4 + $0x138] sm:$0xff] %vm227_vm2, %v9807_v2  ;;  %v9760_v22 = vld [vmem:[#allocation4 + $0x140] sm:$0xff] }
 0x8ba   : > { %9286 = vst.msk [vmem:[#allocation4 + $0x148] sm:$0xff] %vm227_vm2, %v9238_v51 }
 0x8bb   : > { %10372 = vst.msk [vmem:[#allocation4 + $0x130] sm:$0xff] %vm227_vm2, %v10324_v35  ;;  %v10218_v13 = vpop.f32.mrf.mxu3  ;;  %v11289_v35 = vrot.slane %v14706_v61, 1  ;;  %v10923_v25 = vpop.f32.mrf.mxu0  ;;  %v10992_v61 = vld [vmem:[#allocation4 + $0x120] sm:$0xff] }
 0x8bc   : > { %11083 = vst.msk [vmem:[#allocation4 + $0xf8] sm:$0xff] %vm227_vm2, %v11035_v47 }
 0x8be   : > { %v9700_v4 = vpop.f32.mrf.mxu2 }
 0x8bf   : > { %v9808_v41 = vadd.f32 %v9760_v22, %v9700_v4  ;;  %v9134_v36 = vpop.f32.mrf.mxu1  ;;  %v11290_v4 = vsel %vm1786_vm7, %v11287_v39, %v11289_v35  ;;  %v11036_v22 = vadd.f32 %v10988_v49, %v18202_v7 }
 0x8c0   : > { %v10277_v5 = vld [vmem:[#allocation4 + $0x138] sm:$0xff]  ;;  %v9239_v16 = vadd.f32 %v9191_v40, %v9134_v36 }
 0x8c1   : > { %v10325_v44 = vadd.f32 %v10277_v5, %v10215_v58  ;;  %9856 = vst.msk [vmem:[#allocation4 + $0x140] sm:$0xff] %vm227_vm2, %v9808_v41  ;;  %v9761_v34 = vld [vmem:[#allocation4 + $0x148] sm:$0xff] }
 0x8c2   : > { %9287 = vst.msk [vmem:[#allocation4 + $0x150] sm:$0xff] %vm227_vm2, %v9239_v16  ;;  %14267 = vmatmul.msk.bf16.gmra.mxu1 %vm227_vm2, %v11286_v17  ;;  %v9196_v16 = vld [vmem:[#allocation4 + $0x178] sm:$0xff] }
 0x8c3   : > { %10373 = vst.msk [vmem:[#allocation4 + $0x138] sm:$0xff] %vm227_vm2, %v10325_v44  ;;  %v10220_v46 = vpop.f32.mrf.mxu3 }
 0x8c4   : > { %11084 = vst.msk [vmem:[#allocation4 + $0x100] sm:$0xff] %vm227_vm2, %v11036_v22 }
 0x8c6   : > { %v9702_v14 = vpop.f32.mrf.mxu2 }
 0x8c7   : > { %v9809_v54 = vadd.f32 %v9761_v34, %v9702_v14  ;;  %v9136_v50 = vpop.f32.mrf.mxu1  ;;  %v10926_v14 = vpop.f32.mrf.mxu0 }
 0x8c8   : > { %v10278_v28 = vld [vmem:[#allocation4 + $0x140] sm:$0xff]  ;;  %v9240_v59 = vadd.f32 %v9192_v15, %v9136_v50  ;;  %v11040_v24 = vadd.f32 %v10992_v61, %v10926_v14  ;;  %v14713_v61 = vld [vmem:[#allocation3 + $0x90] sm:$0xff] }
 0x8c9   : > { %v10326_v10 = vadd.f32 %v10278_v28, %v10218_v13  ;;  %9857 = vst.msk [vmem:[#allocation4 + $0x148] sm:$0xff] %vm227_vm2, %v9809_v54  ;;  %v9762_v37 = vld [vmem:[#allocation4 + $0x150] sm:$0xff] }
 0x8ca   : > { %9288 = vst.msk [vmem:[#allocation4 + $0x158] sm:$0xff] %vm227_vm2, %v9240_v59  ;;  %v9195_v13 = vld [vmem:[#allocation4 + $0x170] sm:$0xff] }
 0x8cb   : > { %10374 = vst.msk [vmem:[#allocation4 + $0x140] sm:$0xff] %vm227_vm2, %v10326_v10  ;;  %v10223_v11 = vpop.f32.mrf.mxu3  ;;  %v11291_v10 = vrot.slane %v14707_v29, 1 }
 0x8cc   : > { %11088 = vst.msk [vmem:[#allocation4 + $0x120] sm:$0xff] %vm227_vm2, %v11040_v24 }
 0x8cd   : > { %v11292_v21 = vsel %vm1786_vm7, %v11289_v35, %v11291_v10  ;;  %v14709_v35 = vld [vmem:[#allocation3 + $0x70] sm:$0xff] }
 0x8ce   : > { %v9705_v31 = vpop.f32.mrf.mxu2 }
 0x8cf   : > { %v9810_v53 = vadd.f32 %v9762_v37, %v9705_v31  ;;  %v9139_v52 = vpop.f32.mrf.mxu1  ;;  %v10928_v39 = vpop.f32.mrf.mxu0 }
 0x8d0   : > { %v10279_v43 = vld [vmem:[#allocation4 + $0x148] sm:$0xff]  ;;  %v9241_v55 = vadd.f32 %v9193_v62, %v9139_v52 }
 0x8d1   : > { %v10327_v3 = vadd.f32 %v10279_v43, %v10220_v46  ;;  %9858 = vst.msk [vmem:[#allocation4 + $0x150] sm:$0xff] %vm227_vm2, %v9810_v53  ;;  %v9763_v38 = vld [vmem:[#allocation4 + $0x158] sm:$0xff]  ;;  %v10989_v46 = vld [vmem:[#allocation4 + $0x108] sm:$0xff] }
 0x8d2   : > { %9289 = vst.msk [vmem:[#allocation4 + $0x160] sm:$0xff] %vm227_vm2, %v9241_v55  ;;  %14268 = vmatmul.msk.bf16.gmra.mxu1 %vm227_vm2, %v11288_v18  ;;  %v11037_v7 = vadd.f32 %v10989_v46, %v18210_v26  ;;  %v11528_v55 = vld [vmem:[#allocation4 + $0x8] sm:$0xff]  ;;  %v11533_v46 = vld [vmem:[#allocation4 + $0x30] sm:$0xff]  ;;  %v10996_v14 = vld [vmem:[#allocation4 + $0x140] sm:$0xff] }
 0x8d3   : > { %10375 = vst.msk [vmem:[#allocation4 + $0x148] sm:$0xff] %vm227_vm2, %v10327_v3  ;;  %v10225_v20 = vpop.f32.mrf.mxu3 }
 0x8d4   : > { %11085 = vst.msk [vmem:[#allocation4 + $0x108] sm:$0xff] %vm227_vm2, %v11037_v7 }
 0x8d6   : > { %v9707_v23 = vpop.f32.mrf.mxu2 }
 0x8d7   : > { %v9811_v60 = vadd.f32 %v9763_v38, %v9707_v23  ;;  %v9141_v58 = vpop.f32.mrf.mxu1  ;;  %v11039_v23 = vadd.f32 %v10991_v30, %v10923_v25  ;;  %v11293_v38 = vrot.slane %v14708_v63, 1 }
 0x8d8   : > { %v10280_v12 = vld [vmem:[#allocation4 + $0x150] sm:$0xff]  ;;  %v9242_v0 = vadd.f32 %v9194_v27, %v9141_v58 }
 0x8d9   : > { %v10328_v1 = vadd.f32 %v10280_v12, %v10223_v11  ;;  %9859 = vst.msk [vmem:[#allocation4 + $0x158] sm:$0xff] %vm227_vm2, %v9811_v60  ;;  %v9764_v2 = vld [vmem:[#allocation4 + $0x160] sm:$0xff]  ;;  %v10990_v11 = vld [vmem:[#allocation4 + $0x110] sm:$0xff] }
 0x8da   : > { %9290 = vst.msk [vmem:[#allocation4 + $0x168] sm:$0xff] %vm227_vm2, %v9242_v0  ;;  %v11038_v31 = vadd.f32 %v10990_v11, %v18219_v42  ;;  %v11529_v58 = vld [vmem:[#allocation4 + $0x10] sm:$0xff]  ;;  %v11294_v0 = vsel %vm1786_vm7, %v11291_v10, %v11293_v38  ;;  %v11534_v10 = vld [vmem:[#allocation4 + $0x38] sm:$0xff]  ;;  %v11535_v11 = vld [vmem:[#allocation4 + $0x40] sm:$0xff] }
 0x8db   : > { %10376 = vst.msk [vmem:[#allocation4 + $0x150] sm:$0xff] %vm227_vm2, %v10328_v1  ;;  %v10228_v57 = vpop.f32.mrf.mxu3 }
 0x8dc   : > { %11086 = vst.msk [vmem:[#allocation4 + $0x110] sm:$0xff] %vm227_vm2, %v11038_v31 }
 0x8dd   : > { %11087 = vst.msk [vmem:[#allocation4 + $0x118] sm:$0xff] %vm227_vm2, %v11039_v23 }
 0x8de   : > { %v9710_v48 = vpop.f32.mrf.mxu2 }
 0x8df   : > { %v9812_v19 = vadd.f32 %v9764_v2, %v9710_v48  ;;  %v9144_v51 = vpop.f32.mrf.mxu1  ;;  %v11530_v48 = vld [vmem:[#allocation4 + $0x18] sm:$0xff] }
 0x8e0   : > { %v10281_v9 = vld [vmem:[#allocation4 + $0x158] sm:$0xff]  ;;  %v9243_v6 = vadd.f32 %v9195_v13, %v9144_v51  ;;  %v11295_v51 = vrot.slane %v14709_v35, 1  ;;  %v11539_v35 = vld [vmem:[#allocation4 + $0x60] sm:$0xff] }
 0x8e1   : > { %v10329_v8 = vadd.f32 %v10281_v9, %v10225_v20  ;;  %9860 = vst.msk [vmem:[#allocation4 + $0x160] sm:$0xff] %vm227_vm2, %v9812_v19  ;;  %v9765_v45 = vld [vmem:[#allocation4 + $0x168] sm:$0xff]  ;;  %v10931_v20 = vpop.f32.mrf.mxu0 }
 0x8e2   : > { %9291 = vst.msk [vmem:[#allocation4 + $0x170] sm:$0xff] %vm227_vm2, %v9243_v6  ;;  %14269 = vmatmul.msk.bf16.gmra.mxu1 %vm227_vm2, %v11290_v4  ;;  %v10993_v9 = vld [vmem:[#allocation4 + $0x128] sm:$0xff]  ;;  %v11296_v25 = vsel %vm1786_vm7, %v11293_v38, %v11295_v51  ;;  %v10994_v4 = vld [vmem:[#allocation4 + $0x130] sm:$0xff] }
 0x8e3   : > { %10377 = vst.msk [vmem:[#allocation4 + $0x158] sm:$0xff] %vm227_vm2, %v10329_v8  ;;  %v10230_v32 = vpop.f32.mrf.mxu3  ;;  %v11041_v8 = vadd.f32 %v10993_v9, %v10928_v39  ;;  %v11042_v49 = vadd.f32 %v10994_v4, %v10931_v20  ;;  %v11537_v38 = vld [vmem:[#allocation4 + $0x50] sm:$0xff] }
 0x8e5   : > { %11089 = vst.msk [vmem:[#allocation4 + $0x128] sm:$0xff] %vm227_vm2, %v11041_v8 }
 0x8e6   : > { %v9712_v41 = vpop.f32.mrf.mxu2  ;;  %11090 = vst.msk [vmem:[#allocation4 + $0x130] sm:$0xff] %vm227_vm2, %v11042_v49  ;;  %v14714_v49 = vld [vmem:[#allocation3 + $0x98] sm:$0xff] }
 0x8e7   : > { %v9813_v5 = vadd.f32 %v9765_v45, %v9712_v41  ;;  %v9146_v40 = vpop.f32.mrf.mxu1  ;;  %v11532_v45 = vld [vmem:[#allocation4 + $0x28] sm:$0xff] }
 0x8e8   : > { %v10282_v44 = vld [vmem:[#allocation4 + $0x160] sm:$0xff]  ;;  %v9244_v17 = vadd.f32 %v9196_v16, %v9146_v40 }
 0x8e9   : > { %v10330_v36 = vadd.f32 %v10282_v44, %v10228_v57  ;;  %9861 = vst.msk [vmem:[#allocation4 + $0x168] sm:$0xff] %vm227_vm2, %v9813_v5  ;;  %v9766_v54 = vld [vmem:[#allocation4 + $0x170] sm:$0xff]  ;;  %v10933_v19 = vpop.f32.mrf.mxu0  ;;  %v11531_v57 = vld [vmem:[#allocation4 + $0x20] sm:$0xff]  ;;  %v14710_v44 = vld [vmem:[#allocation3 + $0x78] sm:$0xff] }
 0x8ea   : > { %9292 = vst.msk [vmem:[#allocation4 + $0x178] sm:$0xff] %vm227_vm2, %v9244_v17  ;;  %v11297_v17 = vrot.slane %v14710_v44, 1  ;;  %v11541_v44 = vld [vmem:[#allocation4 + $0x70] sm:$0xff] }
 0x8eb   : > { %10378 = vst.msk [vmem:[#allocation4 + $0x160] sm:$0xff] %vm227_vm2, %v10330_v36  ;;  %v10233_v37 = vpop.f32.mrf.mxu3  ;;  %v10995_v36 = vld [vmem:[#allocation4 + $0x138] sm:$0xff] }
 0x8ec   : > { %v11043_v40 = vadd.f32 %v10995_v36, %v10933_v19  ;;  %v11298_v7 = vsel %vm1786_vm7, %v11295_v51, %v11297_v17 }
 0x8ee   : > { %v9715_v34 = vpop.f32.mrf.mxu2  ;;  %11091 = vst.msk [vmem:[#allocation4 + $0x138] sm:$0xff] %vm227_vm2, %v11043_v40 }
 0x8ef   : > { %v9814_v28 = vadd.f32 %v9766_v54, %v9715_v34  ;;  %v11407_v59 = vpop.f32.mrf.mxu1 }
 0x8f0   : > { %v10283_v50 = vld [vmem:[#allocation4 + $0x168] sm:$0xff]  ;;  %v11575_v56 = vadd.f32 %v11527_v33, %v11407_v59 }
 0x8f1   : > { %v10331_v15 = vadd.f32 %v10283_v50, %v10230_v32  ;;  %9862 = vst.msk [vmem:[#allocation4 + $0x170] sm:$0xff] %vm227_vm2, %v9814_v28  ;;  %v9767_v53 = vld [vmem:[#allocation4 + $0x178] sm:$0xff]  ;;  %v10936_v22 = vpop.f32.mrf.mxu0  ;;  %v10997_v59 = vld [vmem:[#allocation4 + $0x148] sm:$0xff] }
 0x8f2   : > { %11623 = vst.msk [vmem:[#allocation4] sm:$0xff] %vm227_vm2, %v11575_v56  ;;  %14270 = vmatmul.msk.bf16.gmra.mxu1 %vm227_vm2, %v11292_v21  ;;  %v11044_v34 = vadd.f32 %v10996_v14, %v10936_v22  ;;  %v11000_v20 = vld [vmem:[#allocation4 + $0x160] sm:$0xff] }
 0x8f3   : > { %10379 = vst.msk [vmem:[#allocation4 + $0x168] sm:$0xff] %vm227_vm2, %v10331_v15  ;;  %v10235_v60 = vpop.f32.mrf.mxu3  ;;  %v14711_v15 = vld [vmem:[#allocation3 + $0x80] sm:$0xff] }
 0x8f4   : > { %11092 = vst.msk [vmem:[#allocation4 + $0x140] sm:$0xff] %vm227_vm2, %v11044_v34  ;;  %v11299_v56 = vrot.slane %v14711_v15, 1  ;;  %v11543_v14 = vld [vmem:[#allocation4 + $0x80] sm:$0xff]  ;;  %v14716_v15 = vld [vmem:[#allocation3 + $0xa8] sm:$0xff] }
 0x8f6   : > { %v9717_v26 = vpop.f32.mrf.mxu2 }
 0x8f7   : > { %v9815_v43 = vadd.f32 %v9767_v53, %v9717_v26  ;;  %v11409_v62 = vpop.f32.mrf.mxu1  ;;  %v11300_v26 = vsel %vm1786_vm7, %v11297_v17, %v11299_v56  ;;  %v10998_v53 = vld [vmem:[#allocation4 + $0x150] sm:$0xff]  ;;  %v11542_v17 = vld [vmem:[#allocation4 + $0x78] sm:$0xff] }
 0x8f8   : > { %v10284_v3 = vld [vmem:[#allocation4 + $0x170] sm:$0xff]  ;;  %v11576_v18 = vadd.f32 %v11528_v55, %v11409_v62  ;;  %v14712_v62 = vld [vmem:[#allocation3 + $0x88] sm:$0xff]  ;;  %v10999_v55 = vld [vmem:[#allocation4 + $0x158] sm:$0xff] }
 0x8f9   : > { %v10332_v52 = vadd.f32 %v10284_v3, %v10233_v37  ;;  %9863 = vst.msk [vmem:[#allocation4 + $0x178] sm:$0xff] %vm227_vm2, %v9815_v43  ;;  %v10938_v16 = vpop.f32.mrf.mxu0  ;;  %v11536_v3 = vld [vmem:[#allocation4 + $0x48] sm:$0xff]  ;;  %v11301_v30 = vrot.slane %v14712_v62, 1 }
 0x8fa   : > { %11624 = vst.msk [vmem:[#allocation4 + $0x8] sm:$0xff] %vm227_vm2, %v11576_v18  ;;  %v11045_v33 = vadd.f32 %v10997_v59, %v10938_v16  ;;  %v11001_v24 = vld [vmem:[#allocation4 + $0x168] sm:$0xff]  ;;  %v11309_v59 = vrot.slane %v14716_v15, 1 }
 0x8fb   : > { %10380 = vst.msk [vmem:[#allocation4 + $0x170] sm:$0xff] %vm227_vm2, %v10332_v52 }
 0x8fc   : > { %11093 = vst.msk [vmem:[#allocation4 + $0x148] sm:$0xff] %vm227_vm2, %v11045_v33 }
 0x8ff   : > { %v11412_v1 = vpop.f32.mrf.mxu1 }
 0x900   : > { %v10285_v12 = vld [vmem:[#allocation4 + $0x178] sm:$0xff]  ;;  %v11577_v27 = vadd.f32 %v11529_v58, %v11412_v1 }
 0x901   : > { %v10333_v42 = vadd.f32 %v10285_v12, %v10235_v60  ;;  %v10941_v54 = vpop.f32.mrf.mxu0  ;;  %v11302_v12 = vsel %vm1786_vm7, %v11299_v56, %v11301_v30  ;;  %v11545_v56 = vld [vmem:[#allocation4 + $0x90] sm:$0xff] }
 0x902   : > { %11625 = vst.msk [vmem:[#allocation4 + $0x10] sm:$0xff] %vm227_vm2, %v11577_v27  ;;  %14271 = vmatmul.msk.bf16.gmra.mxu1 %vm227_vm2, %v11294_v0  ;;  %v11046_v39 = vadd.f32 %v10998_v53, %v10941_v54  ;;  %v11538_v27 = vld [vmem:[#allocation4 + $0x58] sm:$0xff]  ;;  %v11002_v51 = vld [vmem:[#allocation4 + $0x170] sm:$0xff] }
 0x903   : > { %10381 = vst.msk [vmem:[#allocation4 + $0x178] sm:$0xff] %vm227_vm2, %v10333_v42  ;;  %v14717_v53 = vld [vmem:[#allocation3 + $0xb0] sm:$0xff] }
 0x904   : > { %11094 = vst.msk [vmem:[#allocation4 + $0x150] sm:$0xff] %vm227_vm2, %v11046_v39  ;;  %v11311_v39 = vrot.slane %v14717_v53, 1 }
 0x906   : > { %v11312_v62 = vsel %vm1786_vm7, %v11309_v59, %v11311_v39 }
 0x907   : > { %v11414_v47 = vpop.f32.mrf.mxu1 }
 0x908   : > { %v11578_v2 = vadd.f32 %v11530_v48, %v11414_v47  ;;  %v11303_v48 = vrot.slane %v14713_v61, 1 }
 0x909   : > { %v10943_v37 = vpop.f32.mrf.mxu0 }
 0x90a   : > { %11626 = vst.msk [vmem:[#allocation4 + $0x18] sm:$0xff] %vm227_vm2, %v11578_v2  ;;  %v11047_v18 = vadd.f32 %v10999_v55, %v10943_v37  ;;  %v11304_v8 = vsel %vm1786_vm7, %v11301_v30, %v11303_v48  ;;  %v11003_v22 = vld [vmem:[#allocation4 + $0x178] sm:$0xff] }
 0x90b   : > { %v11546_v37 = vld [vmem:[#allocation4 + $0x98] sm:$0xff] }
 0x90c   : > { %11095 = vst.msk [vmem:[#allocation4 + $0x158] sm:$0xff] %vm227_vm2, %v11047_v18  ;;  %v11548_v18 = vld [vmem:[#allocation4 + $0xa8] sm:$0xff]  ;;  %v14718_v30 = vld [vmem:[#allocation3 + $0xb8] sm:$0xff] }
 0x90f   : > { %v11417_v13 = vpop.f32.mrf.mxu1 }
 0x910   : > { %v11579_v6 = vadd.f32 %v11531_v57, %v11417_v13 }
 0x911   : > { %v10946_v63 = vpop.f32.mrf.mxu0 }
 0x912   : > { %11627 = vst.msk [vmem:[#allocation4 + $0x20] sm:$0xff] %vm227_vm2, %v11579_v6  ;;  %14272 = vmatmul.msk.bf16.gmra.mxu1 %vm227_vm2, %v11296_v25  ;;  %v11048_v42 = vadd.f32 %v11000_v20, %v10946_v63  ;;  %v11540_v6 = vld [vmem:[#allocation4 + $0x68] sm:$0xff] }
 0x914   : > { %11096 = vst.msk [vmem:[#allocation4 + $0x160] sm:$0xff] %vm227_vm2, %v11048_v42 }
 0x917   : > { %v11419_v41 = vpop.f32.mrf.mxu1 }
 0x918   : > { %v11580_v5 = vadd.f32 %v11532_v45, %v11419_v41  ;;  %v11305_v45 = vrot.slane %v14714_v49, 1 }
 0x919   : > { %v10948_v1 = vpop.f32.mrf.mxu0 }
 0x91a   : > { %11628 = vst.msk [vmem:[#allocation4 + $0x28] sm:$0xff] %vm227_vm2, %v11580_v5  ;;  %v11049_v47 = vadd.f32 %v11001_v24, %v10948_v1  ;;  %v11306_v40 = vsel %vm1786_vm7, %v11303_v48, %v11305_v45  ;;  %v11550_v1 = vld [vmem:[#allocation4 + $0xb8] sm:$0xff]  ;;  %v11551_v24 = vld [vmem:[#allocation4 + $0xc0] sm:$0xff] }
 0x91c   : > { %11097 = vst.msk [vmem:[#allocation4 + $0x168] sm:$0xff] %vm227_vm2, %v11049_v47 }
 0x91f   : > { %v11422_v29 = vpop.f32.mrf.mxu1 }
 0x920   : > { %v11581_v32 = vadd.f32 %v11533_v46, %v11422_v29  ;;  %v14715_v46 = vld [vmem:[#allocation3 + $0xa0] sm:$0xff] }
 0x921   : > { %v10951_v2 = vpop.f32.mrf.mxu0 }
 0x922   : > { %11629 = vst.msk [vmem:[#allocation4 + $0x30] sm:$0xff] %vm227_vm2, %v11581_v32  ;;  %14273 = vmatmul.msk.bf16.gmra.mxu1 %vm227_vm2, %v11298_v7  ;;  %v11050_v13 = vadd.f32 %v11002_v51, %v10951_v2  ;;  %v11307_v32 = vrot.slane %v14715_v46, 1 }
 0x924   : > { %11098 = vst.msk [vmem:[#allocation4 + $0x170] sm:$0xff] %vm227_vm2, %v11050_v13  ;;  %v11308_v54 = vsel %vm1786_vm7, %v11305_v45, %v11307_v32  ;;  %v11553_v13 = vld [vmem:[#allocation4 + $0xd0] sm:$0xff] }
 0x927   : > { %v11424_v28 = vpop.f32.mrf.mxu1 }
 0x928   : > { %v11582_v50 = vadd.f32 %v11534_v10, %v11424_v28  ;;  %v11544_v10 = vld [vmem:[#allocation4 + $0x88] sm:$0xff] }
 0x929   : > { %v10953_v4 = vpop.f32.mrf.mxu0 }
 0x92a   : > { %11630 = vst.msk [vmem:[#allocation4 + $0x38] sm:$0xff] %vm227_vm2, %v11582_v50  ;;  %v11051_v41 = vadd.f32 %v11003_v22, %v10953_v4  ;;  %v11554_v4 = vld [vmem:[#allocation4 + $0xd8] sm:$0xff]  ;;  %v14721_v22 = vld [vmem:[#allocation3 + $0xd0] sm:$0xff] }
 0x92c   : > { %11099 = vst.msk [vmem:[#allocation4 + $0x178] sm:$0xff] %vm227_vm2, %v11051_v41  ;;  %v11319_v41 = vrot.slane %v14721_v22, 1 }
 0x92f   : > { %v11427_v21 = vpop.f32.mrf.mxu1 }
 0x930   : > { %v11583_v31 = vadd.f32 %v11535_v11, %v11427_v21  ;;  %v11310_v11 = vsel %vm1786_vm7, %v11307_v32, %v11309_v59 }
 0x932   : > { %11631 = vst.msk [vmem:[#allocation4 + $0x40] sm:$0xff] %vm227_vm2, %v11583_v31  ;;  %14274 = vmatmul.msk.bf16.gmra.mxu1 %vm227_vm2, %v11300_v26 }
 0x937   : > { %v11429_v43 = vpop.f32.mrf.mxu1 }
 0x938   : > { %v11584_v52 = vadd.f32 %v11536_v3, %v11429_v43  ;;  %v11547_v3 = vld [vmem:[#allocation4 + $0xa0] sm:$0xff] }
 0x93a   : > { %11632 = vst.msk [vmem:[#allocation4 + $0x48] sm:$0xff] %vm227_vm2, %v11584_v52 }
 0x93f   : > { %v11432_v23 = vpop.f32.mrf.mxu1 }
 0x940   : > { %v11585_v60 = vadd.f32 %v11537_v38, %v11432_v23  ;;  %v11313_v23 = vrot.slane %v14718_v30, 1 }
 0x942   : > { %11633 = vst.msk [vmem:[#allocation4 + $0x50] sm:$0xff] %vm227_vm2, %v11585_v60  ;;  %14275 = vmatmul.msk.bf16.gmra.mxu1 %vm227_vm2, %v11302_v12  ;;  %v11549_v60 = vld [vmem:[#allocation4 + $0xb0] sm:$0xff]  ;;  %v11314_v20 = vsel %vm1786_vm7, %v11311_v39, %v11313_v23 }
 0x947   : > { %v11434_v58 = vpop.f32.mrf.mxu1 }
 0x948   : > { %v11586_v0 = vadd.f32 %v11538_v27, %v11434_v58  ;;  %v14719_v27 = vld [vmem:[#allocation3 + $0xc0] sm:$0xff] }
 0x949   : > { %v18357_v22 = vld [vmem:[#allocation4 + $0x50] sm:$0xff] }
 0x94a   : > { %11634 = vst.msk [vmem:[#allocation4 + $0x58] sm:$0xff] %vm227_vm2, %v11586_v0  ;;  %v11315_v0 = vrot.slane %v14719_v27, 1  ;;  %v18334_v27 = vld [vmem:[#allocation4 + $0x18] sm:$0xff] }
 0x94c   : > { %v11316_v48 = vsel %vm1786_vm7, %v11313_v23, %v11315_v0 }
 0x94f   : > { %v11437_v19 = vpop.f32.mrf.mxu1 }
 0x950   : > { %v11587_v9 = vadd.f32 %v11539_v35, %v11437_v19  ;;  %v11552_v19 = vld [vmem:[#allocation4 + $0xc8] sm:$0xff] }
 0x952   : > { %11635 = vst.msk [vmem:[#allocation4 + $0x60] sm:$0xff] %vm227_vm2, %v11587_v9  ;;  %14276 = vmatmul.msk.bf16.gmra.mxu1 %vm227_vm2, %v11304_v8  ;;  %v14720_v9 = vld [vmem:[#allocation3 + $0xc8] sm:$0xff] }
 0x953   : > { %v11317_v8 = vrot.slane %v14720_v9, 1 }
 0x957   : > { %v11439_v57 = vpop.f32.mrf.mxu1 }
 0x958   : > { %v11588_v25 = vadd.f32 %v11540_v6, %v11439_v57  ;;  %v11318_v6 = vsel %vm1786_vm7, %v11315_v0, %v11317_v8 }
 0x95a   : > { %11636 = vst.msk [vmem:[#allocation4 + $0x68] sm:$0xff] %vm227_vm2, %v11588_v25 }
 0x95f   : > { %v11442_v5 = vpop.f32.mrf.mxu1 }
 0x960   : > { %v11589_v36 = vadd.f32 %v11541_v44, %v11442_v5  ;;  %v11555_v5 = vld [vmem:[#allocation4 + $0xe0] sm:$0xff] }
 0x962   : > { %11637 = vst.msk [vmem:[#allocation4 + $0x70] sm:$0xff] %vm227_vm2, %v11589_v36  ;;  %14277 = vmatmul.msk.bf16.gmra.mxu1 %vm227_vm2, %v11306_v40  ;;  %v11320_v36 = vsel %vm1786_vm7, %v11317_v8, %v11319_v41  ;;  %v11148_v40 = vld [vmem:[#allocation3 + $0xd8] sm:$0x1] }
 0x967   : > { %v11444_v16 = vpop.f32.mrf.mxu1 }
 0x968   : > { %v11590_v29 = vadd.f32 %v11542_v17, %v11444_v16  ;;  %v11248_v16 = vunpack.c.l.b16 %v11148_v40  ;;  %v11716_v40 = vsel %vm227_vm2, %v18357_v22, 0.0 }
 0x96a   : > { %11638 = vst.msk [vmem:[#allocation4 + $0x78] sm:$0xff] %vm227_vm2, %v11590_v29  ;;  %v11556_v29 = vld [vmem:[#allocation4 + $0xe8] sm:$0xff]  ;;  %v11273_v32 = vpack.c.b16 %v11248_v16, %v11248_v16 }
 0x96f   : > { %v11447_v7 = vpop.f32.mrf.mxu1 }
 0x970   : > { %v11591_v34 = vadd.f32 %v11543_v14, %v11447_v7  ;;  %v11321_v7 = vrot.slane %v11273_v32, 1 }
 0x972   : > { %11639 = vst.msk [vmem:[#allocation4 + $0x80] sm:$0xff] %vm227_vm2, %v11591_v34  ;;  %14278 = vmatmul.msk.bf16.gmra.mxu1 %vm227_vm2, %v11308_v54  ;;  %v11557_v34 = vld [vmem:[#allocation4 + $0xf0] sm:$0xff] }
 0x977   : > { %v11449_v28 = vpop.f32.mrf.mxu1 }
 0x978   : > { %v11592_v50 = vadd.f32 %v11544_v10, %v11449_v28  ;;  %v11322_v28 = vsel %vm1786_vm7, %v11319_v41, %v11321_v7  ;;  %v18370_v7 = vld [vmem:[#allocation4 + $0x78] sm:$0xff] }
 0x97a   : > { %11640 = vst.msk [vmem:[#allocation4 + $0x88] sm:$0xff] %vm227_vm2, %v11592_v50  ;;  %v11558_v50 = vld [vmem:[#allocation4 + $0xf8] sm:$0xff] }
 0x97f   : > { %v11452_v33 = vpop.f32.mrf.mxu1 }
 0x980   : > { %v11593_v21 = vadd.f32 %v11545_v56, %v11452_v33  ;;  %v11559_v33 = vld [vmem:[#allocation4 + $0x100] sm:$0xff] }
 0x982   : > { %11641 = vst.msk [vmem:[#allocation4 + $0x90] sm:$0xff] %vm227_vm2, %v11593_v21  ;;  %14279 = vmatmul.msk.bf16.gmra.mxu1 %vm227_vm2, %v11310_v11  ;;  %v11560_v11 = vld [vmem:[#allocation4 + $0x108] sm:$0xff] }
 0x987   : > { %v11454_v31 = vpop.f32.mrf.mxu1 }
 0x988   : > { %v11594_v26 = vadd.f32 %v11546_v37, %v11454_v31 }
 0x98a   : > { %11642 = vst.msk [vmem:[#allocation4 + $0x98] sm:$0xff] %vm227_vm2, %v11594_v26  ;;  %v11561_v26 = vld [vmem:[#allocation4 + $0x110] sm:$0xff] }
 0x98f   : > { %v11457_v43 = vpop.f32.mrf.mxu1 }
 0x990   : > { %v11595_v52 = vadd.f32 %v11547_v3, %v11457_v43  ;;  %v11562_v43 = vld [vmem:[#allocation4 + $0x118] sm:$0xff] }
 0x992   : > { %11643 = vst.msk [vmem:[#allocation4 + $0xa0] sm:$0xff] %vm227_vm2, %v11595_v52  ;;  %14280 = vmatmul.msk.bf16.gmra.mxu1 %vm227_vm2, %v11312_v62  ;;  %v11563_v62 = vld [vmem:[#allocation4 + $0x120] sm:$0xff] }
 0x997   : > { %v11459_v55 = vpop.f32.mrf.mxu1 }
 0x998   : > { %v11596_v63 = vadd.f32 %v11548_v18, %v11459_v55 }
 0x99a   : > { %11644 = vst.msk [vmem:[#allocation4 + $0xa8] sm:$0xff] %vm227_vm2, %v11596_v63  ;;  %v11564_v63 = vld [vmem:[#allocation4 + $0x128] sm:$0xff] }
 0x99f   : > { %v11462_v38 = vpop.f32.mrf.mxu1 }
 0x9a0   : > { %v11597_v12 = vadd.f32 %v11549_v60, %v11462_v38  ;;  %v11565_v38 = vld [vmem:[#allocation4 + $0x130] sm:$0xff] }
 0x9a2   : > { %11645 = vst.msk [vmem:[#allocation4 + $0xb0] sm:$0xff] %vm227_vm2, %v11597_v12  ;;  %14281 = vmatmul.msk.bf16.gmra.mxu1 %vm227_vm2, %v11314_v20  ;;  %v11566_v20 = vld [vmem:[#allocation4 + $0x138] sm:$0xff] }
 0x9a7   : > { %v11464_v42 = vpop.f32.mrf.mxu1 }
 0x9a8   : > { %v11598_v58 = vadd.f32 %v11550_v1, %v11464_v42  ;;  %v18329_v1 = vld [vmem:[#allocation4 + $0x8] sm:$0xff] }
 0x9a9   : > { %v11704_v0 = vsel %vm227_vm2, %v18329_v1, 0.0 }
 0x9aa   : > { %11646 = vst.msk [vmem:[#allocation4 + $0xb8] sm:$0xff] %vm227_vm2, %v11598_v58  ;;  %v18332_v58 = vld [vmem:[#allocation4] sm:$0xff] }
 0x9af   : > { %v11467_v61 = vpop.f32.mrf.mxu1 }
 0x9b0   : > { %v11599_v47 = vadd.f32 %v11551_v24, %v11467_v61  ;;  %v18338_v61 = vld [vmem:[#allocation4 + $0x20] sm:$0xff]  ;;  %v11703_v24 = vsel %vm227_vm2, %v18332_v58, 0.0 }
 0x9b1   : > { %v11708_v9 = vsel %vm227_vm2, %v18338_v61, 0.0 }
 0x9b2   : > { %11647 = vst.msk [vmem:[#allocation4 + $0xc0] sm:$0xff] %vm227_vm2, %v11599_v47  ;;  %14282 = vmatmul.msk.bf16.gmra.mxu1 %vm227_vm2, %v11316_v48  ;;  %v11706_v47 = vsel %vm227_vm2, %v18334_v27, 0.0  ;;  %v11705_v48 = vadd.f32 %v11704_v0, %v11703_v24 }
 0x9b7   : > { %v11469_v2 = vpop.f32.mrf.mxu1 }
 0x9b8   : > { %v11600_v35 = vadd.f32 %v11552_v19, %v11469_v2  ;;  %v18344_v2 = vld [vmem:[#allocation4 + $0x30] sm:$0xff] }
 0x9ba   : > { %11648 = vst.msk [vmem:[#allocation4 + $0xc8] sm:$0xff] %vm227_vm2, %v11600_v35  ;;  %v11567_v35 = vld [vmem:[#allocation4 + $0x140] sm:$0xff] }
 0x9bf   : > { %v11472_v51 = vpop.f32.mrf.mxu1 }
 0x9c0   : > { %v11601_v57 = vadd.f32 %v11553_v13, %v11472_v51  ;;  %v11707_v51 = vadd.f32 %v11706_v47, %v11705_v48  ;;  %v18348_v13 = vld [vmem:[#allocation4 + $0x38] sm:$0xff] }
 0x9c2   : > { %11649 = vst.msk [vmem:[#allocation4 + $0xd0] sm:$0xff] %vm227_vm2, %v11601_v57  ;;  %14283 = vmatmul.msk.bf16.gmra.mxu1 %vm227_vm2, %v11318_v6  ;;  %v11710_v57 = vsel %vm227_vm2, %v18344_v2, 0.0  ;;  %v11709_v6 = vadd.f32 %v11708_v9, %v11707_v51  ;;  %v11571_v9 = vld [vmem:[#allocation4 + $0x160] sm:$0xff] }
 0x9c7   : > { %v11474_v25 = vpop.f32.mrf.mxu1 }
 0x9c8   : > { %v11602_v49 = vadd.f32 %v11554_v4, %v11474_v25  ;;  %v18353_v25 = vld [vmem:[#allocation4 + $0x48] sm:$0xff]  ;;  %v11712_v4 = vsel %vm227_vm2, %v18348_v13, 0.0 }
 0x9c9   : > { %v11714_v41 = vsel %vm227_vm2, %v18353_v25, 0.0 }
 0x9ca   : > { %11650 = vst.msk [vmem:[#allocation4 + $0xd8] sm:$0xff] %vm227_vm2, %v11602_v49  ;;  %v11711_v49 = vadd.f32 %v11710_v57, %v11709_v6 }
 0x9cf   : > { %v11477_v45 = vpop.f32.mrf.mxu1 }
 0x9d0   : > { %v11603_v44 = vadd.f32 %v11555_v5, %v11477_v45  ;;  %v11713_v45 = vadd.f32 %v11712_v4, %v11711_v49  ;;  %v18361_v5 = vld [vmem:[#allocation4 + $0x60] sm:$0xff] }
 0x9d2   : > { %11651 = vst.msk [vmem:[#allocation4 + $0xe0] sm:$0xff] %vm227_vm2, %v11603_v44  ;;  %14284 = vmatmul.msk.bf16.gmra.mxu1 %vm227_vm2, %v11320_v36  ;;  %v11568_v36 = vld [vmem:[#allocation4 + $0x148] sm:$0xff] }
 0x9d7   : > { %v11479_v17 = vpop.f32.mrf.mxu1 }
 0x9d8   : > { %v11604_v46 = vadd.f32 %v11556_v29, %v11479_v17  ;;  %v11715_v17 = vadd.f32 %v11714_v41, %v11713_v45  ;;  %v18365_v29 = vld [vmem:[#allocation4 + $0x68] sm:$0xff] }
 0x9d9   : > { %v18408_v24 = vld [vmem:[#allocation4 + $0xe0] sm:$0xff] }
 0x9da   : > { %11652 = vst.msk [vmem:[#allocation4 + $0xe8] sm:$0xff] %vm227_vm2, %v11604_v46  ;;  %v11718_v46 = vsel %vm227_vm2, %v18361_v5, 0.0  ;;  %v11717_v32 = vadd.f32 %v11716_v40, %v11715_v17 }
 0x9df   : > { %v11482_v14 = vpop.f32.mrf.mxu1 }
 0x9e0   : > { %v11605_v54 = vadd.f32 %v11557_v34, %v11482_v14  ;;  %v11720_v14 = vsel %vm227_vm2, %v18365_v29, 0.0  ;;  %v11719_v34 = vadd.f32 %v11718_v46, %v11717_v32  ;;  %v11572_v32 = vld [vmem:[#allocation4 + $0x168] sm:$0xff] }
 0x9e2   : > { %11653 = vst.msk [vmem:[#allocation4 + $0xf0] sm:$0xff] %vm227_vm2, %v11605_v54  ;;  %14285 = vmatmul.msk.bf16.gmra.mxu1 %vm227_vm2, %v11322_v28  ;;  %v18374_v54 = vld [vmem:[#allocation4 + $0x80] sm:$0xff]  ;;  %v11722_v28 = vsel %vm227_vm2, %v18370_v7, 0.0 }
 0x9e7   : > { %v11484_v10 = vpop.f32.mrf.mxu1 }
 0x9e8   : > { %v11606_v15 = vadd.f32 %v11558_v50, %v11484_v10  ;;  %v11721_v10 = vadd.f32 %v11720_v14, %v11719_v34  ;;  %v18378_v50 = vld [vmem:[#allocation4 + $0x90] sm:$0xff] }
 0x9ea   : > { %11654 = vst.msk [vmem:[#allocation4 + $0xf8] sm:$0xff] %vm227_vm2, %v11606_v15 }
 0x9ef   : > { %v11487_v59 = vpop.f32.mrf.mxu1 }
 0x9f0   : > { %v11607_v56 = vadd.f32 %v11559_v33, %v11487_v59  ;;  %v11569_v59 = vld [vmem:[#allocation4 + $0x150] sm:$0xff]  ;;  %v11724_v33 = vsel %vm227_vm2, %v18374_v54, 0.0 }
 0x9f1   : > { %v18416_v6 = vld [vmem:[#allocation4 + $0xf8] sm:$0xff] }
 0x9f2   : > { %11655 = vst.msk [vmem:[#allocation4 + $0x100] sm:$0xff] %vm227_vm2, %v11607_v56  ;;  %v11744_v45 = vsel %vm227_vm2, %v18416_v6, 0.0 }
 0x9f7   : > { %v11489_v21 = vpop.f32.mrf.mxu1 }
 0x9f8   : > { %v11608_v31 = vadd.f32 %v11560_v11, %v11489_v21  ;;  %v11723_v21 = vadd.f32 %v11722_v28, %v11721_v10  ;;  %v18382_v11 = vld [vmem:[#allocation4 + $0x98] sm:$0xff] }
 0x9fa   : > { %11656 = vst.msk [vmem:[#allocation4 + $0x108] sm:$0xff] %vm227_vm2, %v11608_v31  ;;  %v11726_v31 = vsel %vm227_vm2, %v18378_v50, 0.0 }
 0x9ff   : > { %v11492_v37 = vpop.f32.mrf.mxu1 }
 0xa00   : > { %v11609_v53 = vadd.f32 %v11561_v26, %v11492_v37  ;;  %v11725_v37 = vadd.f32 %v11724_v33, %v11723_v21  ;;  %v18387_v26 = vld [vmem:[#allocation4 + $0xa8] sm:$0xff] }
 0xa01   : > { %v18421_v41 = vld [vmem:[#allocation4 + $0x108] sm:$0xff] }
 0xa02   : > { %11657 = vst.msk [vmem:[#allocation4 + $0x110] sm:$0xff] %vm227_vm2, %v11609_v53  ;;  %v11728_v53 = vsel %vm227_vm2, %v18382_v11, 0.0  ;;  %v11746_v40 = vsel %vm227_vm2, %v18421_v41, 0.0 }
 0xa07   : > { %v11494_v39 = vpop.f32.mrf.mxu1 }
 0xa08   : > { %v11610_v3 = vadd.f32 %v11562_v43, %v11494_v39  ;;  %v11727_v39 = vadd.f32 %v11726_v31, %v11725_v37  ;;  %v18391_v43 = vld [vmem:[#allocation4 + $0xb0] sm:$0xff] }
 0xa0a   : > { %11658 = vst.msk [vmem:[#allocation4 + $0x118] sm:$0xff] %vm227_vm2, %v11610_v3  ;;  %v11730_v3 = vsel %vm227_vm2, %v18387_v26, 0.0 }
 0xa0f   : > { %v11497_v52 = vpop.f32.mrf.mxu1 }
 0xa10   : > { %v11611_v55 = vadd.f32 %v11563_v62, %v11497_v52  ;;  %v11729_v52 = vadd.f32 %v11728_v53, %v11727_v39  ;;  %v18395_v62 = vld [vmem:[#allocation4 + $0xc0] sm:$0xff] }
 0xa12   : > { %11659 = vst.msk [vmem:[#allocation4 + $0x120] sm:$0xff] %vm227_vm2, %v11611_v55 }
 0xa17   : > { %v11499_v18 = vpop.f32.mrf.mxu1 }
 0xa18   : > { %v11612_v30 = vadd.f32 %v11564_v63, %v11499_v18  ;;  %v11570_v18 = vld [vmem:[#allocation4 + $0x158] sm:$0xff]  ;;  %v11732_v63 = vsel %vm227_vm2, %v18391_v43, 0.0 }
 0xa19   : > { %v18429_v17 = vld [vmem:[#allocation4 + $0x120] sm:$0xff] }
 0xa1a   : > { %11660 = vst.msk [vmem:[#allocation4 + $0x128] sm:$0xff] %vm227_vm2, %v11612_v30 }
 0xa1f   : > { %v11502_v23 = vpop.f32.mrf.mxu1 }
 0xa20   : > { %v11613_v60 = vadd.f32 %v11565_v38, %v11502_v23  ;;  %v11731_v23 = vadd.f32 %v11730_v3, %v11729_v52  ;;  %v18399_v38 = vld [vmem:[#allocation4 + $0xc8] sm:$0xff]  ;;  %v11573_v52 = vld [vmem:[#allocation4 + $0x170] sm:$0xff] }
 0xa21   : > { %v18433_v10 = vld [vmem:[#allocation4 + $0x128] sm:$0xff] }
 0xa22   : > { %11661 = vst.msk [vmem:[#allocation4 + $0x130] sm:$0xff] %vm227_vm2, %v11613_v60  ;;  %v11734_v60 = vsel %vm227_vm2, %v18395_v62, 0.0 }
 0xa27   : > { %v11504_v12 = vpop.f32.mrf.mxu1 }
 0xa28   : > { %v11614_v42 = vadd.f32 %v11566_v20, %v11504_v12  ;;  %v11733_v12 = vadd.f32 %v11732_v63, %v11731_v23  ;;  %v18404_v20 = vld [vmem:[#allocation4 + $0xd8] sm:$0xff] }
 0xa29   : > { %v11738_v47 = vsel %vm227_vm2, %v18404_v20, 0.0 }
 0xa2a   : > { %11662 = vst.msk [vmem:[#allocation4 + $0x138] sm:$0xff] %vm227_vm2, %v11614_v42  ;;  %v11736_v42 = vsel %vm227_vm2, %v18399_v38, 0.0  ;;  %v11735_v0 = vadd.f32 %v11734_v60, %v11733_v12 }
 0xa2c   : > { %v11737_v48 = vadd.f32 %v11736_v42, %v11735_v0 }
 0xa2e   : > { %v11739_v57 = vadd.f32 %v11738_v47, %v11737_v48 }
 0xa2f   : > { %v11507_v19 = vpop.f32.mrf.mxu1 }
 0xa30   : > { %v11615_v8 = vadd.f32 %v11567_v35, %v11507_v19  ;;  %v18412_v19 = vld [vmem:[#allocation4 + $0xf0] sm:$0xff] }
 0xa31   : > { %v11742_v4 = vsel %vm227_vm2, %v18412_v19, 0.0  ;;  %v18438_v33 = vld [vmem:[#allocation4 + $0x138] sm:$0xff] }
 0xa32   : > { %11663 = vst.msk [vmem:[#allocation4 + $0x140] sm:$0xff] %vm227_vm2, %v11615_v8  ;;  %v11740_v8 = vsel %vm227_vm2, %v18408_v24, 0.0  ;;  %v11754_v37 = vsel %vm227_vm2, %v18438_v33, 0.0 }
 0xa33   : > { %v11741_v49 = vadd.f32 %v11740_v8, %v11739_v57 }
 0xa37   : > { %v11509_v44 = vpop.f32.mrf.mxu1 }
 0xa38   : > { %v11616_v16 = vadd.f32 %v11568_v36, %v11509_v44  ;;  %v11743_v44 = vadd.f32 %v11742_v4, %v11741_v49  ;;  %v18425_v36 = vld [vmem:[#allocation4 + $0x110] sm:$0xff] }
 0xa39   : > { %v11748_v14 = vsel %vm227_vm2, %v18425_v36, 0.0  ;;  %v18442_v31 = vld [vmem:[#allocation4 + $0x140] sm:$0xff] }
 0xa3a   : > { %11664 = vst.msk [vmem:[#allocation4 + $0x148] sm:$0xff] %vm227_vm2, %v11616_v16  ;;  %v11745_v16 = vadd.f32 %v11744_v45, %v11743_v44 }
 0xa3c   : > { %v11747_v28 = vadd.f32 %v11746_v40, %v11745_v16 }
 0xa3f   : > { %v11512_v15 = vpop.f32.mrf.mxu1 }
 0xa40   : > { %v11617_v56 = vadd.f32 %v11569_v59, %v11512_v15  ;;  %v11750_v15 = vsel %vm227_vm2, %v18429_v17, 0.0  ;;  %v11749_v59 = vadd.f32 %v11748_v14, %v11747_v28 }
 0xa42   : > { %11665 = vst.msk [vmem:[#allocation4 + $0x150] sm:$0xff] %vm227_vm2, %v11617_v56  ;;  %v11752_v56 = vsel %vm227_vm2, %v18433_v10, 0.0  ;;  %v11751_v21 = vadd.f32 %v11750_v15, %v11749_v59 }
 0xa44   : > { %v11753_v53 = vadd.f32 %v11752_v56, %v11751_v21 }
 0xa46   : > { %v11755_v63 = vadd.f32 %v11754_v37, %v11753_v53 }
 0xa47   : > { %v11514_v55 = vpop.f32.mrf.mxu1 }
 0xa48   : > { %v11618_v30 = vadd.f32 %v11570_v18, %v11514_v55  ;;  %v11756_v55 = vsel %vm227_vm2, %v18442_v31, 0.0 }
 0xa49   : > { %v18446_v39 = vld [vmem:[#allocation4 + $0x150] sm:$0xff]  ;;  %v11757_v60 = vadd.f32 %v11756_v55, %v11755_v63 }
 0xa4a   : > { %11666 = vst.msk [vmem:[#allocation4 + $0x158] sm:$0xff] %vm227_vm2, %v11618_v30  ;;  %v11758_v23 = vsel %vm227_vm2, %v18446_v39, 0.0 }
 0xa4b   : > { %v11759_v0 = vadd.f32 %v11758_v23, %v11757_v60 }
 0xa4f   : > { %v11517_v35 = vpop.f32.mrf.mxu1 }
 0xa50   : > { %v11619_v51 = vadd.f32 %v11571_v9, %v11517_v35 }
 0xa51   : > { %v18450_v30 = vld [vmem:[#allocation4 + $0x158] sm:$0xff] }
 0xa52   : > { %11667 = vst.msk [vmem:[#allocation4 + $0x160] sm:$0xff] %vm227_vm2, %v11619_v51  ;;  %v11760_v42 = vsel %vm227_vm2, %v18450_v30, 0.0 }
 0xa53   : > { %v11761_v48 = vadd.f32 %v11760_v42, %v11759_v0 }
 0xa57   : > { %v11519_v46 = vpop.f32.mrf.mxu1 }
 0xa58   : > { %v11620_v34 = vadd.f32 %v11572_v32, %v11519_v46 }
 0xa5a   : > { %11668 = vst.msk [vmem:[#allocation4 + $0x168] sm:$0xff] %vm227_vm2, %v11620_v34 }
 0xa5f   : > { %v11522_v3 = vpop.f32.mrf.mxu1 }
 0xa60   : > { %v11621_v18 = vadd.f32 %v11573_v52, %v11522_v3 }
 0xa61   : > { %v18455_v12 = vld [vmem:[#allocation4 + $0x168] sm:$0xff] }
 0xa62   : > { %11669 = vst.msk [vmem:[#allocation4 + $0x170] sm:$0xff] %vm227_vm2, %v11621_v18  ;;  %v11762_v47 = vsel %vm227_vm2, %v18455_v12, 0.0 }
 0xa63   : > { %v11763_v35 = vadd.f32 %v11762_v47, %v11761_v48 }
 0xa69   : > { %v18461_v9 = vld [vmem:[#allocation4 + $0x170] sm:$0xff] }
 0xa6a   : > { %v11764_v8 = vsel %vm227_vm2, %v18461_v9, 0.0 }
 0xa6b   : > { %v11765_v51 = vadd.f32 %v11764_v8, %v11763_v35 }
 0xa6d   : > { %v11766_v57 = vrot.slane %v11765_v51, 4 }
 0xa6f   : > { %v11767_v4 = vadd.f32 %v11766_v57, %v11765_v51 }
 0xa71   : > { %v11768_v49 = vrot.slane %v11767_v4, 2 }
 0xa73   : > { %v11769_v45 = vadd.f32 %v11768_v49, %v11767_v4 }
 0xa75   : > { %v11770_v44 = vrot.slane %v11769_v45, 1 }
 0xa77   : > { %v11771_v40 = vadd.f32 %v11770_v44, %v11769_v45 }
 0xa79   : > { %v18465_v16 = vmul.f32 0.00390625, %v11771_v40 }
 0xa7b   : > { %v18469_v46 = vsub.f32 %v18332_v58, %v18465_v16  ;;  %v18473_v32 = vsub.f32 %v18329_v1, %v18465_v16  ;;  %v18477_v14 = vsub.f32 %v18334_v27, %v18465_v16  ;;  %v18481_v34 = vsub.f32 %v18338_v61, %v18465_v16 }
 0xa7c   : > { %v18489_v58 = vsub.f32 %v18344_v2, %v18465_v16  ;;  %v18495_v27 = vsub.f32 %v18348_v13, %v18465_v16  ;;  %v18503_v37 = vsub.f32 %v18353_v25, %v18465_v16  ;;  %v18510_v13 = vsub.f32 %v18357_v22, %v18465_v16 }
 0xa7d   : > { %v11805_v28 = vmul.f32 %v18469_v46, %v18469_v46  ;;  %v11806_v15 = vmul.f32 %v18473_v32, %v18473_v32  ;;  %v11807_v1 = vmul.f32 %v18477_v14, %v18477_v14  ;;  %v11808_v61 = vmul.f32 %v18481_v34, %v18481_v34 }
 0xa7e   : > { %v11809_v2 = vmul.f32 %v18489_v58, %v18489_v58  ;;  %v11810_v52 = vmul.f32 %v18495_v27, %v18495_v27  ;;  %v18517_v25 = vsub.f32 %v18361_v5, %v18465_v16  ;;  %v11811_v63 = vmul.f32 %v18503_v37, %v18503_v37 }
 0xa7f   : > { %v11837_v59 = vsel %vm227_vm2, %v11805_v28, 0.0  ;;  %v11838_v56 = vsel %vm227_vm2, %v11806_v15, 0.0  ;;  %v11840_v53 = vsel %vm227_vm2, %v11807_v1, 0.0  ;;  %v11842_v55 = vsel %vm227_vm2, %v11808_v61, 0.0 }
 0xa80   : > { %v11839_v21 = vadd.f32 %v11838_v56, %v11837_v59  ;;  %v11844_v23 = vsel %vm227_vm2, %v11809_v2, 0.0  ;;  %v18524_v22 = vsub.f32 %v18365_v29, %v18465_v16  ;;  %v11812_v42 = vmul.f32 %v18510_v13, %v18510_v13 }
 0xa81   : > { %v11846_v0 = vsel %vm227_vm2, %v11810_v52, 0.0  ;;  %v18531_v5 = vsub.f32 %v18370_v7, %v18465_v16  ;;  %v11813_v48 = vmul.f32 %v18517_v25, %v18517_v25  ;;  %v11848_v35 = vsel %vm227_vm2, %v11811_v63, 0.0 }
 0xa82   : > { %v11841_v3 = vadd.f32 %v11840_v53, %v11839_v21  ;;  %v18538_v29 = vsub.f32 %v18374_v54, %v18465_v16  ;;  %v11814_v51 = vmul.f32 %v18524_v22, %v18524_v22  ;;  %v11850_v57 = vsel %vm227_vm2, %v11812_v42, 0.0 }
 0xa83   : > { %v18545_v7 = vsub.f32 %v18378_v50, %v18465_v16  ;;  %v11815_v49 = vmul.f32 %v18531_v5, %v18531_v5  ;;  %v11852_v45 = vsel %vm227_vm2, %v11813_v48, 0.0  ;;  %v18552_v54 = vsub.f32 %v18382_v11, %v18465_v16 }
 0xa84   : > { %v11843_v18 = vadd.f32 %v11842_v55, %v11841_v3  ;;  %v11816_v40 = vmul.f32 %v18538_v29, %v18538_v29  ;;  %v11854_v28 = vsel %vm227_vm2, %v11814_v51, 0.0  ;;  %v18559_v50 = vsub.f32 %v18387_v26, %v18465_v16 }
 0xa85   : > { %v11817_v1 = vmul.f32 %v18545_v7, %v18545_v7  ;;  %v11856_v61 = vsel %vm227_vm2, %v11815_v49, 0.0  ;;  %v18566_v11 = vsub.f32 %v18391_v43, %v18465_v16  ;;  %v11818_v56 = vmul.f32 %v18552_v54, %v18552_v54 }
 0xa86   : > { %v11845_v60 = vadd.f32 %v11844_v23, %v11843_v18  ;;  %v11858_v21 = vsel %vm227_vm2, %v11816_v40, 0.0  ;;  %v18573_v26 = vsub.f32 %v18395_v62, %v18465_v16  ;;  %v11819_v53 = vmul.f32 %v18559_v50, %v18559_v50 }
 0xa87   : > { %v11860_v3 = vsel %vm227_vm2, %v11817_v1, 0.0  ;;  %v18580_v43 = vsub.f32 %v18399_v38, %v18465_v16  ;;  %v11820_v55 = vmul.f32 %v18566_v11, %v18566_v11  ;;  %v11862_v18 = vsel %vm227_vm2, %v11818_v56, 0.0 }
 0xa88   : > { %v11847_v47 = vadd.f32 %v11846_v0, %v11845_v60  ;;  %v18587_v62 = vsub.f32 %v18404_v20, %v18465_v16  ;;  %v11821_v23 = vmul.f32 %v18573_v26, %v18573_v26  ;;  %v11864_v60 = vsel %vm227_vm2, %v11819_v53, 0.0 }
 0xa89   : > { %v18594_v38 = vsub.f32 %v18408_v24, %v18465_v16  ;;  %v11822_v0 = vmul.f32 %v18580_v43, %v18580_v43  ;;  %v18601_v20 = vsub.f32 %v18412_v19, %v18465_v16  ;;  %v18608_v24 = vsub.f32 %v18416_v6, %v18465_v16 }
 0xa8a   : > { %v11849_v8 = vadd.f32 %v11848_v35, %v11847_v47  ;;  %v11866_v47 = vsel %vm227_vm2, %v11820_v55, 0.0  ;;  %v11823_v35 = vmul.f32 %v18587_v62, %v18587_v62  ;;  %v18615_v19 = vsub.f32 %v18421_v41, %v18465_v16 }
 0xa8b   : > { %v18622_v6 = vsub.f32 %v18425_v36, %v18465_v16  ;;  %v18629_v41 = vsub.f32 %v18429_v17, %v18465_v16  ;;  %v18636_v36 = vsub.f32 %v18433_v10, %v18465_v16  ;;  %v18643_v17 = vsub.f32 %v18438_v33, %v18465_v16 }
 0xa8c   : > { %v11851_v4 = vadd.f32 %v11850_v57, %v11849_v8  ;;  %v11868_v8 = vsel %vm227_vm2, %v11821_v23, 0.0  ;;  %v11824_v57 = vmul.f32 %v18594_v38, %v18594_v38  ;;  %v18650_v10 = vsub.f32 %v18442_v31, %v18465_v16 }
 0xa8d   : > { %v18657_v33 = vsub.f32 %v18446_v39, %v18465_v16 }
 0xa8e   : > { %v11853_v44 = vadd.f32 %v11852_v45, %v11851_v4  ;;  %v11870_v4 = vsel %vm227_vm2, %v11822_v0, 0.0  ;;  %v11825_v45 = vmul.f32 %v18601_v20, %v18601_v20  ;;  %v11831_v0 = vmul.f32 %v18643_v17, %v18643_v17 }
 0xa90   : > { %v11855_v15 = vadd.f32 %v11854_v28, %v11853_v44  ;;  %v11872_v44 = vsel %vm227_vm2, %v11823_v35, 0.0  ;;  %v11826_v28 = vmul.f32 %v18608_v24, %v18608_v24  ;;  %v18664_v35 = vsub.f32 %v18450_v30, %v18465_v16 }
 0xa91   : > { %v18679_v30 = vsub.f32 %v18461_v9, %v18465_v16 }
 0xa92   : > { %v11857_v59 = vadd.f32 %v11856_v61, %v11855_v15  ;;  %v11874_v15 = vsel %vm227_vm2, %v11824_v57, 0.0  ;;  %v11827_v61 = vmul.f32 %v18615_v19, %v18615_v19  ;;  %v18672_v57 = vsub.f32 %v18455_v12, %v18465_v16 }
 0xa94   : > { %v11859_v2 = vadd.f32 %v11858_v21, %v11857_v59  ;;  %v11876_v59 = vsel %vm227_vm2, %v11825_v45, 0.0  ;;  %v11828_v21 = vmul.f32 %v18622_v6, %v18622_v6  ;;  %v11835_v12 = vmul.f32 %v18672_v57, %v18672_v57 }
 0xa96   : > { %v11861_v52 = vadd.f32 %v11860_v3, %v11859_v2  ;;  %v11878_v2 = vsel %vm227_vm2, %v11826_v28, 0.0  ;;  %v11829_v3 = vmul.f32 %v18629_v41, %v18629_v41  ;;  %v11896_v9 = vsel %vm227_vm2, %v11835_v12, 0.0 }
 0xa98   : > { %v11863_v63 = vadd.f32 %v11862_v18, %v11861_v52  ;;  %v11880_v52 = vsel %vm227_vm2, %v11827_v61, 0.0  ;;  %v11830_v18 = vmul.f32 %v18636_v36, %v18636_v36  ;;  %v11836_v61 = vmul.f32 %v18679_v30, %v18679_v30 }
 0xa9a   : > { %v11865_v42 = vadd.f32 %v11864_v60, %v11863_v63  ;;  %v11882_v63 = vsel %vm227_vm2, %v11828_v21, 0.0  ;;  %v11524_v60 = vpop.f32.mrf.mxu1  ;;  %v11898_v21 = vsel %vm227_vm2, %v11836_v61, 0.0 }
 0xa9c   : > { %v11867_v48 = vadd.f32 %v11866_v47, %v11865_v42  ;;  %v11574_v42 = vld [vmem:[#allocation4 + $0x178] sm:$0xff]  ;;  %v11884_v47 = vsel %vm227_vm2, %v11829_v3, 0.0 }
 0xa9e   : > { %v11869_v51 = vadd.f32 %v11868_v8, %v11867_v48  ;;  %v11622_v48 = vadd.f32 %v11574_v42, %v11524_v60  ;;  %v11832_v8 = vmul.f32 %v18650_v10, %v18650_v10 }
 0xaa0   : > { %v11871_v49 = vadd.f32 %v11870_v4, %v11869_v51  ;;  %v11886_v51 = vsel %vm227_vm2, %v11830_v18, 0.0  ;;  %11670 = vst.msk [vmem:[#allocation4 + $0x178] sm:$0xff] %vm227_vm2, %v11622_v48  ;;  %v11833_v4 = vmul.f32 %v18657_v33, %v18657_v33 }
 0xaa2   : > { %v11873_v40 = vadd.f32 %v11872_v44, %v11871_v49  ;;  %v11888_v49 = vsel %vm227_vm2, %v11831_v0, 0.0  ;;  %v11834_v44 = vmul.f32 %v18664_v35, %v18664_v35 }
 0xaa4   : > { %v11875_v1 = vadd.f32 %v11874_v15, %v11873_v40  ;;  %v11890_v40 = vsel %vm227_vm2, %v11832_v8, 0.0  ;;  %v11892_v15 = vsel %vm227_vm2, %v11833_v4, 0.0 }
 0xaa6   : > { %v11877_v56 = vadd.f32 %v11876_v59, %v11875_v1  ;;  %v11894_v59 = vsel %vm227_vm2, %v11834_v44, 0.0  ;;  %v11950_v44 = vld [vmem:[%s14801_s25] sm:$0xff] }
 0xaa8   : > { %v11879_v53 = vadd.f32 %v11878_v2, %v11877_v56 }
 0xaaa   : > { %v11881_v55 = vadd.f32 %v11880_v52, %v11879_v53 }
 0xaac   : > { %v11883_v23 = vadd.f32 %v11882_v63, %v11881_v55 }
 0xaae   : > { %v11885_v31 = vadd.f32 %v11884_v47, %v11883_v23 }
 0xab0   : > { %v11887_v39 = vadd.f32 %v11886_v51, %v11885_v31 }
 0xab2   : > { %v11889_v45 = vadd.f32 %v11888_v49, %v11887_v39 }
 0xab4   : > { %v11891_v28 = vadd.f32 %v11890_v40, %v11889_v45  ;;  %v11951_v40 = vld [vmem:[%s14801_s25 + $0x8] sm:$0xff] }
 0xab6   : > { %v11893_v1 = vadd.f32 %v11892_v15, %v11891_v28  ;;  %v11952_v28 = vld [vmem:[%s14801_s25 + $0x10] sm:$0xff]  ;;  %v11953_v15 = vld [vmem:[%s14801_s25 + $0x18] sm:$0xff] }
 0xab8   : > { %v11895_v56 = vadd.f32 %v11894_v59, %v11893_v1 }
 0xaba   : > { %v11897_v16 = vadd.f32 %v11896_v9, %v11895_v56  ;;  %v11956_v56 = vld [vmem:[%s14801_s25 + $0x30] sm:$0xff] }
 0xabc   : > { %v11899_v2 = vadd.f32 %v11898_v21, %v11897_v16  ;;  %v11957_v16 = vld [vmem:[%s14801_s25 + $0x38] sm:$0xff] }
 0xabe   : > { %v11900_v53 = vrot.slane %v11899_v2, 4 }
 0xac0   : > { %v11901_v3 = vadd.f32 %v11900_v53, %v11899_v2  ;;  %v11958_v2 = vld [vmem:[%s14801_s25 + $0x40] sm:$0xff] }
 0xac2   : > { %v11902_v52 = vrot.slane %v11901_v3, 2 }
 0xac4   : > { %v11903_v55 = vadd.f32 %v11902_v52, %v11901_v3  ;;  %v11959_v3 = vld [vmem:[%s14801_s25 + $0x48] sm:$0xff] }
 0xac6   : > { %v11904_v18 = vrot.slane %v11903_v55, 1 }
 0xac8   : > { %v11905_v63 = vadd.f32 %v11904_v18, %v11903_v55  ;;  %v11960_v55 = vld [vmem:[%s14801_s25 + $0x50] sm:$0xff] }
 0xaca   : > { %v11906_v23 = vmul.f32 0.00390625, %v11905_v63  ;;  %v11961_v63 = vld [vmem:[%s14801_s25 + $0x58] sm:$0xff] }
 0xacc   : > { %v11907_v60 = vadd.f32 1e-05, %v11906_v23 }
 0xace   : > { %14736 = vrsqrt.f32 %v11907_v60  ;;  %vm11914_vm12 = vweird.f32 %v11907_v60 }
 0xad4   : > { %v14737_v42 = vpop.eup %14736 }
 0xad5   : > { %v11909_v0 = vmul.f32 %v14737_v42, %v11907_v60  ;;  %vm11915_vm11 = vweird.f32 %v14737_v42  ;;  %v11962_v60 = vld [vmem:[%s14801_s25 + $0x60] sm:$0xff] }
 0xad6   : > { %vm11916_vm13 = vmor %vm11914_vm12, %vm11915_vm11 }
 0xad7   : > { %v11910_v47 = vmul.f32 %v14737_v42, %v11909_v0  ;;  %v11963_v0 = vld [vmem:[%s14801_s25 + $0x68] sm:$0xff] }
 0xad9   : > { %v11911_v48 = vmul.f32 0.5, %v11910_v47 }
 0xadb   : > { %v11912_v31 = vsub.f32 1.5, %v11911_v48  ;;  %v11964_v48 = vld [vmem:[%s14801_s25 + $0x70] sm:$0xff] }
 0xadd   : > { %v11913_v8 = vmul.f32 %v14737_v42, %v11912_v31 }
 0xadf   : > { %v18692_v51 = vsel %vm11916_vm13, %v14737_v42, %v11913_v8  ;;  %v11965_v8 = vld [vmem:[%s14801_s25 + $0x78] sm:$0xff] }
 0xae0   : > { %v11918_v39 = vmul.f32 %v18692_v51, %v18469_v46  ;;  %v11919_v4 = vmul.f32 %v18692_v51, %v18473_v32  ;;  %v11920_v49 = vmul.f32 %v18692_v51, %v18477_v14  ;;  %v11921_v45 = vmul.f32 %v18692_v51, %v18481_v34  ;;  %v11954_v32 = vld [vmem:[%s14801_s25 + $0x20] sm:$0xff]  ;;  %v11955_v34 = vld [vmem:[%s14801_s25 + $0x28] sm:$0xff] }
 0xae1   : > { %v11922_v12 = vmul.f32 %v18692_v51, %v18489_v58  ;;  %v11923_v46 = vmul.f32 %v18692_v51, %v18495_v27  ;;  %v11924_v14 = vmul.f32 %v18692_v51, %v18503_v37  ;;  %v11925_v59 = vmul.f32 %v18692_v51, %v18510_v13 }
 0xae2   : > { %v11982_v58 = vadd.f32 %v11950_v44, %v11918_v39  ;;  %v11983_v1 = vadd.f32 %v11951_v40, %v11919_v4  ;;  %v11984_v61 = vadd.f32 %v11952_v28, %v11920_v49  ;;  %v11985_v9 = vadd.f32 %v11953_v15, %v11921_v45  ;;  %v11966_v4 = vld [vmem:[%s14801_s25 + $0x80] sm:$0xff]  ;;  %v11967_v45 = vld [vmem:[%s14801_s25 + $0x88] sm:$0xff]  ;;  %v11968_v40 = vld [vmem:[%s14801_s25 + $0x90] sm:$0xff] }
 0xae3   : > { %v11926_v27 = vmul.f32 %v18692_v51, %v18517_v25  ;;  %v11986_v21 = vadd.f32 %v11954_v32, %v11922_v12  ;;  %v11927_v37 = vmul.f32 %v18692_v51, %v18524_v22  ;;  %v11987_v53 = vadd.f32 %v11955_v34, %v11923_v46  ;;  %v11969_v12 = vld [vmem:[%s14801_s25 + $0x98] sm:$0xff]  ;;  %v11970_v46 = vld [vmem:[%s14801_s25 + $0xa0] sm:$0xff] }
 0xae4   : > { %12014 = vst.msk [vmem:[%s18713_s6] sm:$0xff] %vm227_vm2, %v11982_v58  ;;  %v11928_v13 = vmul.f32 %v18692_v51, %v18531_v5  ;;  %v11988_v25 = vadd.f32 %v11956_v56, %v11924_v14  ;;  %v11929_v52 = vmul.f32 %v18692_v51, %v18538_v29  ;;  %v11989_v22 = vadd.f32 %v11957_v16, %v11925_v59  ;;  %v11971_v14 = vld [vmem:[%s14801_s25 + $0xa8] sm:$0xff]  ;;  %v11972_v58 = vld [vmem:[%s14801_s25 + $0xb0] sm:$0xff]  ;;  %v11974_v56 = vld [vmem:[%s14801_s25 + $0xc0] sm:$0xff] }
 0xae5   : > { %12015 = vst.msk [vmem:[%s18713_s6 + $0x8] sm:$0xff] %vm227_vm2, %v11983_v1  ;;  %v11930_v18 = vmul.f32 %v18692_v51, %v18545_v7  ;;  %v11990_v5 = vadd.f32 %v11958_v2, %v11926_v27  ;;  %v11931_v23 = vmul.f32 %v18692_v51, %v18552_v54  ;;  %v11991_v29 = vadd.f32 %v11959_v3, %v11927_v37  ;;  %v11975_v27 = vld [vmem:[%s14801_s25 + $0xc8] sm:$0xff] }
 0xae6   : > { %12016 = vst.msk [vmem:[%s18713_s6 + $0x10] sm:$0xff] %vm227_vm2, %v11984_v61  ;;  %v11932_v42 = vmul.f32 %v18692_v51, %v18559_v50  ;;  %v11992_v7 = vadd.f32 %v11960_v55, %v11928_v13  ;;  %v11933_v47 = vmul.f32 %v18692_v51, %v18566_v11  ;;  %v11993_v54 = vadd.f32 %v11961_v63, %v11929_v52  ;;  %v11973_v61 = vld [vmem:[%s14801_s25 + $0xb8] sm:$0xff]  ;;  %v11980_v52 = vld [vmem:[%s14801_s25 + $0xf0] sm:$0xff] }
 0xae7   : > { %12017 = vst.msk [vmem:[%s18713_s6 + $0x18] sm:$0xff] %vm227_vm2, %v11985_v9  ;;  %v11934_v31 = vmul.f32 %v18692_v51, %v18573_v26  ;;  %v11994_v50 = vadd.f32 %v11962_v60, %v11930_v18  ;;  %v11935_v39 = vmul.f32 %v18692_v51, %v18580_v43  ;;  %v11995_v11 = vadd.f32 %v11963_v0, %v11931_v23 }
 0xae8   : > { %12018 = vst.msk [vmem:[%s18713_s6 + $0x20] sm:$0xff] %vm227_vm2, %v11986_v21  ;;  %v11936_v49 = vmul.f32 %v18692_v51, %v18587_v62  ;;  %v11996_v26 = vadd.f32 %v11964_v48, %v11932_v42  ;;  %v11937_v44 = vmul.f32 %v18692_v51, %v18594_v38  ;;  %v11997_v43 = vadd.f32 %v11965_v8, %v11933_v47  ;;  %v11976_v21 = vld [vmem:[%s14801_s25 + $0xd0] sm:$0xff] }
 0xae9   : > { %12019 = vst.msk [vmem:[%s18713_s6 + $0x28] sm:$0xff] %vm227_vm2, %v11987_v53  ;;  %v11938_v28 = vmul.f32 %v18692_v51, %v18601_v20  ;;  %v11998_v62 = vadd.f32 %v11966_v4, %v11934_v31  ;;  %v11939_v15 = vmul.f32 %v18692_v51, %v18608_v24  ;;  %v11999_v38 = vadd.f32 %v11967_v45, %v11935_v39 }
 0xaea   : > { %12020 = vst.msk [vmem:[%s18713_s6 + $0x30] sm:$0xff] %vm227_vm2, %v11988_v25  ;;  %v11940_v32 = vmul.f32 %v18692_v51, %v18615_v19  ;;  %v12000_v20 = vadd.f32 %v11968_v40, %v11936_v49  ;;  %v11941_v34 = vmul.f32 %v18692_v51, %v18622_v6  ;;  %v12001_v24 = vadd.f32 %v11969_v12, %v11937_v44 }
 0xaeb   : > { %12021 = vst.msk [vmem:[%s18713_s6 + $0x38] sm:$0xff] %vm227_vm2, %v11989_v22  ;;  %v11942_v1 = vmul.f32 %v18692_v51, %v18629_v41  ;;  %v12002_v19 = vadd.f32 %v11970_v46, %v11938_v28  ;;  %v11943_v59 = vmul.f32 %v18692_v51, %v18636_v36  ;;  %v12003_v6 = vadd.f32 %v11971_v14, %v11939_v15  ;;  %v11981_v22 = vld [vmem:[%s14801_s25 + $0xf8] sm:$0xff] }
 0xaec   : > { %12022 = vst.msk [vmem:[%s18713_s6 + $0x40] sm:$0xff] %vm227_vm2, %v11990_v5  ;;  %v11944_v9 = vmul.f32 %v18692_v51, %v18643_v17  ;;  %v12004_v41 = vadd.f32 %v11972_v58, %v11940_v32  ;;  %v11945_v16 = vmul.f32 %v18692_v51, %v18650_v10  ;;  %v12005_v36 = vadd.f32 %v11973_v61, %v11941_v34  ;;  %v11977_v17 = vld [vmem:[%s14801_s25 + $0xd8] sm:$0xff]  ;;  %v11978_v10 = vld [vmem:[%s14801_s25 + $0xe0] sm:$0xff] }
 0xaed   : > { %12023 = vst.msk [vmem:[%s18713_s6 + $0x48] sm:$0xff] %vm227_vm2, %v11991_v29  ;;  %v11946_v37 = vmul.f32 %v18692_v51, %v18657_v33  ;;  %v12006_v2 = vadd.f32 %v11974_v56, %v11942_v1  ;;  %v11947_v53 = vmul.f32 %v18692_v51, %v18664_v35  ;;  %v12007_v13 = vadd.f32 %v11975_v27, %v11943_v59  ;;  %v11979_v33 = vld [vmem:[%s14801_s25 + $0xe8] sm:$0xff] }
 0xaee   : > { %12024 = vst.msk [vmem:[%s18713_s6 + $0x50] sm:$0xff] %vm227_vm2, %v11992_v7  ;;  %v11948_v3 = vmul.f32 %v18692_v51, %v18672_v57  ;;  %v12008_v25 = vadd.f32 %v11976_v21, %v11944_v9  ;;  %v11949_v35 = vmul.f32 %v18692_v51, %v18679_v30  ;;  %v12009_v55 = vadd.f32 %v11977_v17, %v11945_v16 }
 0xaef   : > { %12025 = vst.msk [vmem:[%s18713_s6 + $0x58] sm:$0xff] %vm227_vm2, %v11993_v54  ;;  %v12010_v18 = vadd.f32 %v11978_v10, %v11946_v37  ;;  %v12011_v57 = vadd.f32 %v11979_v33, %v11947_v53 }
 0xaf0   : > { %12026 = vst.msk [vmem:[%s18713_s6 + $0x60] sm:$0xff] %vm227_vm2, %v11994_v50  ;;  %v12012_v63 = vadd.f32 %v11980_v52, %v11948_v3  ;;  %v12013_v5 = vadd.f32 %v11981_v22, %v11949_v35 }
 0xaf1   : > { %12027 = vst.msk [vmem:[%s18713_s6 + $0x68] sm:$0xff] %vm227_vm2, %v11995_v11 }
 0xaf2   : > { %12028 = vst.msk [vmem:[%s18713_s6 + $0x70] sm:$0xff] %vm227_vm2, %v11996_v26 }
 0xaf3   : > { %12029 = vst.msk [vmem:[%s18713_s6 + $0x78] sm:$0xff] %vm227_vm2, %v11997_v43 }
 0xaf4   : > { %12030 = vst.msk [vmem:[%s18713_s6 + $0x80] sm:$0xff] %vm227_vm2, %v11998_v62 }
 0xaf5   : > { %12031 = vst.msk [vmem:[%s18713_s6 + $0x88] sm:$0xff] %vm227_vm2, %v11999_v38 }
 0xaf6   : > { %12032 = vst.msk [vmem:[%s18713_s6 + $0x90] sm:$0xff] %vm227_vm2, %v12000_v20 }
 0xaf7   : > { %12033 = vst.msk [vmem:[%s18713_s6 + $0x98] sm:$0xff] %vm227_vm2, %v12001_v24 }
 0xaf8   : > { %12034 = vst.msk [vmem:[%s18713_s6 + $0xa0] sm:$0xff] %vm227_vm2, %v12002_v19 }
 0xaf9   : > { %12035 = vst.msk [vmem:[%s18713_s6 + $0xa8] sm:$0xff] %vm227_vm2, %v12003_v6 }
 0xafa   : > { %12036 = vst.msk [vmem:[%s18713_s6 + $0xb0] sm:$0xff] %vm227_vm2, %v12004_v41 }
 0xafb   : > { %12037 = vst.msk [vmem:[%s18713_s6 + $0xb8] sm:$0xff] %vm227_vm2, %v12005_v36 }
 0xafc   : > { %12038 = vst.msk [vmem:[%s18713_s6 + $0xc0] sm:$0xff] %vm227_vm2, %v12006_v2 }
 0xafd   : > { %12039 = vst.msk [vmem:[%s18713_s6 + $0xc8] sm:$0xff] %vm227_vm2, %v12007_v13 }
 0xafe   : > { %12040 = vst.msk [vmem:[%s18713_s6 + $0xd0] sm:$0xff] %vm227_vm2, %v12008_v25 }
 0xaff   : > { %12041 = vst.msk [vmem:[%s18713_s6 + $0xd8] sm:$0xff] %vm227_vm2, %v12009_v55 }
 0xb00   : > { %12042 = vst.msk [vmem:[%s18713_s6 + $0xe0] sm:$0xff] %vm227_vm2, %v12010_v18 }
 0xb01   : > { %12043 = vst.msk [vmem:[%s18713_s6 + $0xe8] sm:$0xff] %vm227_vm2, %v12011_v57 }
 0xb02   : > { %12044 = vst.msk [vmem:[%s18713_s6 + $0xf0] sm:$0xff] %vm227_vm2, %v12012_v63 }
 0xb03   : > { %12045 = vst.msk [vmem:[%s18713_s6 + $0xf8] sm:$0xff] %vm227_vm2, %v12013_v5 }
 0xb04 PF: > { %s13_s12 = sadd.s32 1, %s14744_s12  }
 0xb05   : > { %p10_p4 = scmp.ge.s32.totalorder %s13_s12, 4  }
 0xb07   :  { %12 = sbr.rel (!%p10_p4) target bundleno = 1 (0x1), region = 82 }

</bundles_post_ra>
